<compile_context>
chip_gen: v7x
topology: tpu7x:2x2x1
jax: 0.10.0
libtpu: 0.0.40
codegen_flags: <defaults>
</compile_context>

<pallas_src>
import functools

import jax
import jax.numpy as jnp
from jax.experimental import pallas as pl
from jax.experimental.pallas import tpu as pltpu

NEG_SLOPE = 0.1  # nn.LeakyReLU(0.1) used by YOLO Conv for act='lrelu'
LANE = 128       # lane width: pad every channel dim to a multiple of this


def _rup(n, m=LANE):
    return ((n + m - 1) // m) * m


def _leaky(x):
    return jnp.where(x > 0, x, NEG_SLOPE * x)


# ------------------------- fused whole-block kernel -------------------------
def make_sppblockcsp_kernel(H, W, C1P, CHP, CSP, C2P):
    HW = H * W

    def init_halos(cpad_ref, ppad_ref):
        # Border-only init (interiors are fully overwritten before every read).
        cpad_ref[0:1, :, :] = jnp.zeros((1, W + 2, CHP), cpad_ref.dtype)
        cpad_ref[H + 1:H + 2, :, :] = jnp.zeros((1, W + 2, CHP), cpad_ref.dtype)
        cpad_ref[:, 0:1, :] = jnp.zeros((H + 2, 1, CHP), cpad_ref.dtype)
        cpad_ref[:, W + 1:W + 2, :] = jnp.zeros((H + 2, 1, CHP), cpad_ref.dtype)
        ninf_r = jnp.full((2, W + 4, CSP), -jnp.inf, ppad_ref.dtype)
        ninf_c = jnp.full((H + 4, 2, CSP), -jnp.inf, ppad_ref.dtype)
        ppad_ref[0:2, :, :] = ninf_r
        ppad_ref[H + 2:H + 4, :, :] = ninf_r
        ppad_ref[:, 0:2, :] = ninf_c
        ppad_ref[:, W + 2:W + 4, :] = ninf_c

    def conv3x3(x_hwc, w_ref, b_ref, cpad_ref, col_ref):
        # 'same' 3x3 conv as in-VMEM im2col + ONE long-K (=9*CHP) MXU matmul.
        # x_hwc: (H, W, CHP) f32; w_ref: (9*CHP, CHP) bf16 (tap-major, cin-minor).
        cpad_ref[1:H + 1, 1:W + 1, :] = x_hwc
        t = 0
        for dy in range(3):
            for dx in range(3):
                tap = cpad_ref[dy:dy + H, dx:dx + W, :].reshape(HW, CHP)
                col_ref[:, t * CHP:(t + 1) * CHP] = tap.astype(jnp.bfloat16)
                t += 1
        acc = jnp.dot(col_ref[...], w_ref[...], preferred_element_type=jnp.float32)
        return _leaky(acc + b_ref[...])                      # (HW, CHP) f32

    def pool5(x_hwc, ppad_ref):
        # MaxPool2d(kernel=5, stride=1, padding=2); separable window max; f32
        # (v5e-safe).  Halo of ppad_ref is pre-set to -inf by init_halos.
        ppad_ref[2:H + 2, 2:W + 2, :] = x_hwc
        t = ppad_ref[:, 0:W, :]
        for dx in range(1, 5):
            t = jnp.maximum(t, ppad_ref[:, dx:dx + W, :])    # (H+4, W, CSP)
        out = t[0:H]
        for dy in range(1, 5):
            out = jnp.maximum(out, t[dy:dy + H])             # (H, W, CSP)
        return out

    def kernel(x_ref, w12_ref, b12_ref, wm0_ref, bm0_ref, ws1_ref, bs1_ref,
               ws2_ref, bs2_ref, wm2_ref, bm2_ref, wc3_ref, bc3_ref,
               y_ref, cpad_ref, col_ref, ppad_ref):
        init_halos(cpad_ref, ppad_ref)

        # ---- stem: cv1 and cv2 fused into one matmul ----
        x12 = _leaky(jnp.dot(x_ref[...].astype(jnp.bfloat16), w12_ref[...],
                             preferred_element_type=jnp.float32) + b12_ref[...])
        x1 = x12[:, :CHP]                                    # (HW, CHP) f32
        x2 = x12[:, CHP:]

        # ---- m[0]: 3x3 conv ----
        t = conv3x3(x2.reshape(H, W, CHP), wm0_ref, bm0_ref, cpad_ref, col_ref)

        # ---- SPP.cv1 (1x1) ----
        s = _leaky(jnp.dot(t.astype(jnp.bfloat16), ws1_ref[...],
                           preferred_element_type=jnp.float32) + bs1_ref[...])

        # ---- cascaded 5x5 pools == pools of 5 / 9 / 13 (SPPF identity) ----
        p5 = pool5(s.reshape(H, W, CSP), ppad_ref)
        p9 = pool5(p5, ppad_ref)
        p13 = pool5(p9, ppad_ref)

        # ---- SPP.cv2: concat folded into ONE long-K (=4*CSP) matmul ----
        cat4 = jnp.concatenate(
            [s.astype(jnp.bfloat16),
             p5.reshape(HW, CSP).astype(jnp.bfloat16),
             p9.reshape(HW, CSP).astype(jnp.bfloat16),
             p13.reshape(HW, CSP).astype(jnp.bfloat16)], axis=-1)
        u = _leaky(jnp.dot(cat4, ws2_ref[...],
                           preferred_element_type=jnp.float32) + bs2_ref[...])

        # ---- m[2]: 3x3 conv ----
        x3 = conv3x3(u.reshape(H, W, CHP), wm2_ref, bm2_ref, cpad_ref, col_ref)

        # ---- cv3: concat folded into ONE long-K (=2*CHP) matmul ----
        cat2 = jnp.concatenate([x1.astype(jnp.bfloat16),
                                x3.astype(jnp.bfloat16)], axis=-1)
        y = _leaky(jnp.dot(cat2, wc3_ref[...],
                           preferred_element_type=jnp.float32) + bc3_ref[...])
        y_ref[...] = y.astype(y_ref.dtype)                   # lane-dense (HW, C2P)

    return kernel


# ------------------------------- forward -----------------------------------
_PARAM_ORDER = ('w12', 'b12', 'wm0', 'bm0', 'ws1', 'bs1',
                'ws2', 'bs2', 'wm2', 'bm2', 'wc3', 'bc3')


@functools.partial(jax.jit, static_argnames=('c2',))
def spp_block_csp(x_nchw, params, c2):
    B, c1, H, W = x_nchw.shape
    HW = H * W
    C1P = params['w12'].shape[0]
    CHP = params['b12'].shape[1] // 2
    CSP = params['bs1'].shape[1]
    C2P = params['bc3'].shape[1]

    # NCHW -> (B, HW, C1P) lane-padded, lane-dense input slab.
    x = jnp.transpose(x_nchw, (0, 2, 3, 1)).reshape(B, HW, c1)
    if C1P > c1:
        x = jnp.pad(x, ((0, 0), (0, 0), (0, C1P - c1)))

    def wspec(a):
        n = a.ndim
        return pl.BlockSpec(a.shape, lambda b, n=n: (0,) * n)   # grid-invariant block

    in_specs = ([pl.BlockSpec((None, HW, C1P), lambda b: (b, 0, 0))]
                + [wspec(params[k]) for k in _PARAM_ORDER])

    y = pl.pallas_call(
        make_sppblockcsp_kernel(H, W, C1P, CHP, CSP, C2P),
        out_shape=jax.ShapeDtypeStruct((B, HW, C2P), x.dtype),
        grid_spec=pltpu.PrefetchScalarGridSpec(
            num_scalar_prefetch=0,
            grid=(B,),
            in_specs=in_specs,
            out_specs=pl.BlockSpec((None, HW, C2P), lambda b: (b, 0, 0)),
            scratch_shapes=[
                pltpu.VMEM((H + 2, W + 2, CHP), jnp.float32),    # 3x3-conv zero halo
                pltpu.VMEM((HW, 9 * CHP), jnp.bfloat16),         # im2col buffer
                pltpu.VMEM((H + 4, W + 4, CSP), jnp.float32),    # 5x5-pool -inf halo
            ],
        ),
        compiler_params=pltpu.CompilerParams(
            dimension_semantics=("parallel",),
            vmem_limit_bytes=32 * 1024 * 1024),
    )(x, *[params[k] for k in _PARAM_ORDER])

    # Lane-dense kernel output -> NCHW module output.
    y = y[:, :, :c2].reshape(B, H, W, c2)
    return jnp.transpose(y, (0, 3, 1, 2))


# ----------------------------- parameter init ------------------------------
def _pad_to(a, shape):
    return jnp.pad(a, [(0, s - d) for d, s in zip(a.shape, shape)])


def init_sppblockcsp_params(key, c1, c2, e=0.5):
    """Synthetic folded-BN params, packed/lane-padded for the fused kernel."""
    ch = c1 // 2                 # c1 // 2
    c_ = int(ch * e)             # SPP hidden channels
    C1P, CHP, CSP, C2P = _rup(c1), _rup(ch), _rup(c_), _rup(c2)
    keys = jax.random.split(key, 7)

    def conv_wb(k, cin, cout, ksz):
        kw, kb = jax.random.split(k)
        fan_in = cin * ksz * ksz
        w = jax.random.normal(kw, (ksz, ksz, cin, cout), jnp.float32) / jnp.sqrt(
            jnp.float32(fan_in))
        b = jax.random.normal(kb, (1, cout), jnp.float32) * 0.01
        return w, b

    w1, b1 = conv_wb(keys[0], c1, ch, 1)        # cv1
    w2, b2 = conv_wb(keys[1], c1, ch, 1)        # cv2
    wm0, bm0 = conv_wb(keys[2], ch, ch, 3)      # m[0]: 3x3 conv
    ws1, bs1 = conv_wb(keys[3], ch, c_, 1)      # SPP.cv1
    ws2, bs2 = conv_wb(keys[4], 4 * c_, ch, 1)  # SPP.cv2 (concat of 4)
    wm2, bm2 = conv_wb(keys[5], ch, ch, 3)      # m[2]: 3x3 conv
    wc3, bc3 = conv_wb(keys[6], 2 * ch, c2, 1)  # cv3 (concat of 2)

    def pack1x1(w, cinp, coutp):                 # (1,1,cin,cout) -> (cinp,coutp) bf16
        return _pad_to(w.reshape(w.shape[2], w.shape[3]),
                       (cinp, coutp)).astype(jnp.bfloat16)

    def pack3x3(w, cinp, coutp):                 # (3,3,cin,cout) -> (9*cinp,coutp) bf16
        w = _pad_to(w.reshape(9, w.shape[2], w.shape[3]), (9, cinp, coutp))
        return w.reshape(9 * cinp, coutp).astype(jnp.bfloat16)

    def pack_split(w, parts, cin_each, cinp, coutp):
        # 1x1 weight consuming a channel-concat: pad each concat part's cin to
        # a lane multiple so the kernel-side lane-concat lines up row-for-row.
        w = w.reshape(parts * cin_each, w.shape[3])
        blocks = [_pad_to(w[i * cin_each:(i + 1) * cin_each], (cinp, coutp))
                  for i in range(parts)]
        return jnp.concatenate(blocks, axis=0).astype(jnp.bfloat16)

    def packb(b, coutp):
        return _pad_to(b, (1, coutp))            # f32 bias, zero-padded lanes

    return {
        'w12': jnp.concatenate([pack1x1(w1, C1P, CHP), pack1x1(w2, C1P, CHP)], axis=1),
        'b12': jnp.concatenate([packb(b1, CHP), packb(b2, CHP)], axis=1),
        'wm0': pack3x3(wm0, CHP, CHP), 'bm0': packb(bm0, CHP),
        'ws1': pack1x1(ws1, CHP, CSP), 'bs1': packb(bs1, CSP),
        'ws2': pack_split(ws2, 4, c_, CSP, CHP), 'bs2': packb(bs2, CHP),
        'wm2': pack3x3(wm2, CHP, CHP), 'bm2': packb(bm2, CHP),
        'wc3': pack_split(wc3, 2, ch, CHP, C2P), 'bc3': packb(bc3, C2P),
    }


if __name__ == "__main__":
    B, c1, H, W = 2, 8, 16, 16
    c2 = 8
    key = jax.random.PRNGKey(0)
    kx, kp = jax.random.split(key)
    x = jax.random.normal(kx, (B, c1, H, W), jnp.float32)
    params = init_sppblockcsp_params(kp, c1, c2)
    y = spp_block_csp(x, params, c2)
    jax.block_until_ready(y)
    assert y.shape == (B, c2, H, W), y.shape
    assert bool(jnp.all(jnp.isfinite(y)))
    print("KERNEL_OK")
</pallas_src>

<mosaic_0001>
module attributes {stable_mosaic.version = 11 : i64} {
  func.func @kernel(%arg0: i32, %arg1: memref<1x256x128xf32, #tpu.memory_space<vmem>>, %arg2: memref<128x256xbf16, #tpu.memory_space<vmem>>, %arg3: memref<1x256xf32, #tpu.memory_space<vmem>>, %arg4: memref<1152x128xbf16, #tpu.memory_space<vmem>>, %arg5: memref<1x128xf32, #tpu.memory_space<vmem>>, %arg6: memref<128x128xbf16, #tpu.memory_space<vmem>>, %arg7: memref<1x128xf32, #tpu.memory_space<vmem>>, %arg8: memref<512x128xbf16, #tpu.memory_space<vmem>>, %arg9: memref<1x128xf32, #tpu.memory_space<vmem>>, %arg10: memref<1152x128xbf16, #tpu.memory_space<vmem>>, %arg11: memref<1x128xf32, #tpu.memory_space<vmem>>, %arg12: memref<256x128xbf16, #tpu.memory_space<vmem>>, %arg13: memref<1x128xf32, #tpu.memory_space<vmem>>, %arg14: memref<1x256x128xf32, #tpu.memory_space<vmem>>, %arg15: memref<18x18x128xf32, #tpu.memory_space<vmem>>, %arg16: memref<256x1152xbf16, #tpu.memory_space<vmem>>, %arg17: memref<20x20x128xf32, #tpu.memory_space<vmem>>) attributes {dimension_semantics = [#tpu.dimension_semantics<parallel>], iteration_bounds = array<i64: 2>, scalar_prefetch = 0 : i64, scratch_operands = 3 : i64, tpu.core_type = #tpu.core_type<tc>, window_params = [{transform_indices = @transform_0, window_bounds = array<i64: 1, 256, 128>}, {pipeline_mode = #tpu.pipeline_mode<synchronous>, transform_indices = @transform_1, window_bounds = array<i64: 128, 256>}, {pipeline_mode = #tpu.pipeline_mode<synchronous>, transform_indices = @transform_2, window_bounds = array<i64: 1, 256>}, {pipeline_mode = #tpu.pipeline_mode<synchronous>, transform_indices = @transform_3, window_bounds = array<i64: 1152, 128>}, {pipeline_mode = #tpu.pipeline_mode<synchronous>, transform_indices = @transform_4, window_bounds = array<i64: 1, 128>}, {pipeline_mode = #tpu.pipeline_mode<synchronous>, transform_indices = @transform_5, window_bounds = array<i64: 128, 128>}, {pipeline_mode = #tpu.pipeline_mode<synchronous>, transform_indices = @transform_6, window_bounds = array<i64: 1, 128>}, {pipeline_mode = #tpu.pipeline_mode<synchronous>, transform_indices = @transform_7, window_bounds = array<i64: 512, 128>}, {pipeline_mode = #tpu.pipeline_mode<synchronous>, transform_indices = @transform_8, window_bounds = array<i64: 1, 128>}, {pipeline_mode = #tpu.pipeline_mode<synchronous>, transform_indices = @transform_9, window_bounds = array<i64: 1152, 128>}, {pipeline_mode = #tpu.pipeline_mode<synchronous>, transform_indices = @transform_10, window_bounds = array<i64: 1, 128>}, {pipeline_mode = #tpu.pipeline_mode<synchronous>, transform_indices = @transform_11, window_bounds = array<i64: 256, 128>}, {pipeline_mode = #tpu.pipeline_mode<synchronous>, transform_indices = @transform_12, window_bounds = array<i64: 1, 128>}, {transform_indices = @transform_13, window_bounds = array<i64: 1, 256, 128>}]} {
    %cst = arith.constant 0.000000e+00 : f32
    %0 = vector.broadcast %cst : f32 to vector<1x18x128xf32>
    %c0 = arith.constant 0 : index
    %c0_0 = arith.constant 0 : index
    %c0_1 = arith.constant 0 : index
    %1 = vector.load %arg15[%c0, %c0_0, %c0_1] : memref<18x18x128xf32, #tpu.memory_space<vmem>>, vector<1x18x128xf32>
    tpu.vector_store %arg15[%c0, %c0_0, %c0_1], %0 {strides = array<i32>} : memref<18x18x128xf32, #tpu.memory_space<vmem>>, vector<1x18x128xf32>,
    %cst_2 = arith.constant 0.000000e+00 : f32
    %2 = vector.broadcast %cst_2 : f32 to vector<1x18x128xf32>
    %c17 = arith.constant 17 : index
    %c0_3 = arith.constant 0 : index
    %c0_4 = arith.constant 0 : index
    %3 = vector.load %arg15[%c17, %c0_3, %c0_4] : memref<18x18x128xf32, #tpu.memory_space<vmem>>, vector<1x18x128xf32>
    tpu.vector_store %arg15[%c17, %c0_3, %c0_4], %2 {strides = array<i32>} : memref<18x18x128xf32, #tpu.memory_space<vmem>>, vector<1x18x128xf32>,
    %cst_5 = arith.constant 0.000000e+00 : f32
    %4 = vector.broadcast %cst_5 : f32 to vector<18x1x128xf32>
    %c0_6 = arith.constant 0 : index
    %c0_7 = arith.constant 0 : index
    %c0_8 = arith.constant 0 : index
    %5 = vector.load %arg15[%c0_6, %c0_7, %c0_8] : memref<18x18x128xf32, #tpu.memory_space<vmem>>, vector<18x1x128xf32>
    tpu.vector_store %arg15[%c0_6, %c0_7, %c0_8], %4 {strides = array<i32>} : memref<18x18x128xf32, #tpu.memory_space<vmem>>, vector<18x1x128xf32>,
    %cst_9 = arith.constant 0.000000e+00 : f32
    %6 = vector.broadcast %cst_9 : f32 to vector<18x1x128xf32>
    %c0_10 = arith.constant 0 : index
    %c17_11 = arith.constant 17 : index
    %c0_12 = arith.constant 0 : index
    %7 = vector.load %arg15[%c0_10, %c17_11, %c0_12] : memref<18x18x128xf32, #tpu.memory_space<vmem>>, vector<18x1x128xf32>
    tpu.vector_store %arg15[%c0_10, %c17_11, %c0_12], %6 {strides = array<i32>} : memref<18x18x128xf32, #tpu.memory_space<vmem>>, vector<18x1x128xf32>,
    %cst_13 = arith.constant 0xFF800000 : f32
    %8 = vector.broadcast %cst_13 : f32 to vector<2x20x128xf32>
    %cst_14 = arith.constant 0xFF800000 : f32
    %9 = vector.broadcast %cst_14 : f32 to vector<20x2x128xf32>
    %c0_15 = arith.constant 0 : index
    %c0_16 = arith.constant 0 : index
    %c0_17 = arith.constant 0 : index
    %10 = vector.load %arg17[%c0_15, %c0_16, %c0_17] : memref<20x20x128xf32, #tpu.memory_space<vmem>>, vector<2x20x128xf32>
    tpu.vector_store %arg17[%c0_15, %c0_16, %c0_17], %8 {strides = array<i32>} : memref<20x20x128xf32, #tpu.memory_space<vmem>>, vector<2x20x128xf32>,
    %c18 = arith.constant 18 : index
    %c0_18 = arith.constant 0 : index
    %c0_19 = arith.constant 0 : index
    %11 = vector.load %arg17[%c18, %c0_18, %c0_19] : memref<20x20x128xf32, #tpu.memory_space<vmem>>, vector<2x20x128xf32>
    tpu.vector_store %arg17[%c18, %c0_18, %c0_19], %8 {strides = array<i32>} : memref<20x20x128xf32, #tpu.memory_space<vmem>>, vector<2x20x128xf32>,
    %c0_20 = arith.constant 0 : index
    %c0_21 = arith.constant 0 : index
    %c0_22 = arith.constant 0 : index
    %12 = vector.load %arg17[%c0_20, %c0_21, %c0_22] : memref<20x20x128xf32, #tpu.memory_space<vmem>>, vector<20x2x128xf32>
    tpu.vector_store %arg17[%c0_20, %c0_21, %c0_22], %9 {strides = array<i32>} : memref<20x20x128xf32, #tpu.memory_space<vmem>>, vector<20x2x128xf32>,
    %c0_23 = arith.constant 0 : index
    %c18_24 = arith.constant 18 : index
    %c0_25 = arith.constant 0 : index
    %13 = vector.load %arg17[%c0_23, %c18_24, %c0_25] : memref<20x20x128xf32, #tpu.memory_space<vmem>>, vector<20x2x128xf32>
    tpu.vector_store %arg17[%c0_23, %c18_24, %c0_25], %9 {strides = array<i32>} : memref<20x20x128xf32, #tpu.memory_space<vmem>>, vector<20x2x128xf32>,
    %c0_26 = arith.constant 0 : index
    %c0_27 = arith.constant 0 : index
    %c0_28 = arith.constant 0 : index
    %14 = vector.load %arg1[%c0_26, %c0_27, %c0_28] : memref<1x256x128xf32, #tpu.memory_space<vmem>>, vector<1x256x128xf32>
    %15 = vector.shape_cast %14 : vector<1x256x128xf32> to vector<256x128xf32>
    %16 = arith.truncf %15 : vector<256x128xf32> to vector<256x128xbf16>
    %c0_29 = arith.constant 0 : index
    %c0_30 = arith.constant 0 : index
    %17 = vector.load %arg2[%c0_29, %c0_30] : memref<128x256xbf16, #tpu.memory_space<vmem>>, vector<128x256xbf16>
    %cst_31 = arith.constant dense<0.000000e+00> : vector<256x256xf32>
    %18 = tpu.matmul %16, %17, %cst_31 {dimension_numbers = #tpu.dot_dimension_numbers<[1], [0], [0], [1], [0, 0, 1, 1], [], []>} : vector<256x128xbf16>, vector<128x256xbf16>, vector<256x256xf32> -> vector<256x256xf32>
    %c0_32 = arith.constant 0 : index
    %c0_33 = arith.constant 0 : index
    %19 = vector.load %arg3[%c0_32, %c0_33] : memref<1x256xf32, #tpu.memory_space<vmem>>, vector<1x256xf32>
    %20 = vector.broadcast %19 : vector<1x256xf32> to vector<256x256xf32>
    %21 = arith.addf %18, %20 : vector<256x256xf32>
    %cst_34 = arith.constant 0.000000e+00 : f32
    %22 = vector.broadcast %cst_34 : f32 to vector<256x256xf32>
    %23 = arith.cmpf ogt, %21, %22 : vector<256x256xf32>
    %cst_35 = arith.constant 1.000000e-01 : f32
    %24 = vector.broadcast %cst_35 : f32 to vector<256x256xf32>
    %25 = arith.mulf %24, %21 : vector<256x256xf32>
    %26 = arith.select %23, %21, %25 : vector<256x256xi1>, vector<256x256xf32>
    %27 = vector.extract_strided_slice %26 {offsets = [0, 0], sizes = [256, 128], strides = [1, 1]} : vector<256x256xf32> to vector<256x128xf32>
    %28 = vector.extract_strided_slice %26 {offsets = [0, 128], sizes = [256, 128], strides = [1, 1]} : vector<256x256xf32> to vector<256x128xf32>
    %29 = vector.shape_cast %28 : vector<256x128xf32> to vector<16x16x128xf32>
    %c1 = arith.constant 1 : index
    %c1_36 = arith.constant 1 : index
    %c0_37 = arith.constant 0 : index
    %30 = vector.load %arg15[%c1, %c1_36, %c0_37] : memref<18x18x128xf32, #tpu.memory_space<vmem>>, vector<16x16x128xf32>
    tpu.vector_store %arg15[%c1, %c1_36, %c0_37], %29 {strides = array<i32>} : memref<18x18x128xf32, #tpu.memory_space<vmem>>, vector<16x16x128xf32>,
    %c0_38 = arith.constant 0 : index
    %c0_39 = arith.constant 0 : index
    %c0_40 = arith.constant 0 : index
    %31 = vector.load %arg15[%c0_38, %c0_39, %c0_40] : memref<18x18x128xf32, #tpu.memory_space<vmem>>, vector<16x16x128xf32>
    %32 = vector.shape_cast %31 : vector<16x16x128xf32> to vector<256x128xf32>
    %33 = arith.truncf %32 : vector<256x128xf32> to vector<256x128xbf16>
    %c0_41 = arith.constant 0 : index
    %c0_42 = arith.constant 0 : index
    %34 = vector.load %arg16[%c0_41, %c0_42] : memref<256x1152xbf16, #tpu.memory_space<vmem>>, vector<256x128xbf16>
    tpu.vector_store %arg16[%c0_41, %c0_42], %33 {strides = array<i32>} : memref<256x1152xbf16, #tpu.memory_space<vmem>>, vector<256x128xbf16>,
    %c0_43 = arith.constant 0 : index
    %c1_44 = arith.constant 1 : index
    %c0_45 = arith.constant 0 : index
    %35 = vector.load %arg15[%c0_43, %c1_44, %c0_45] : memref<18x18x128xf32, #tpu.memory_space<vmem>>, vector<16x16x128xf32>
    %36 = vector.shape_cast %35 : vector<16x16x128xf32> to vector<256x128xf32>
    %37 = arith.truncf %36 : vector<256x128xf32> to vector<256x128xbf16>
    %c0_46 = arith.constant 0 : index
    %c128 = arith.constant 128 : index
    %38 = vector.load %arg16[%c0_46, %c128] : memref<256x1152xbf16, #tpu.memory_space<vmem>>, vector<256x128xbf16>
    tpu.vector_store %arg16[%c0_46, %c128], %37 {strides = array<i32>} : memref<256x1152xbf16, #tpu.memory_space<vmem>>, vector<256x128xbf16>,
    %c0_47 = arith.constant 0 : index
    %c2 = arith.constant 2 : index
    %c0_48 = arith.constant 0 : index
    %39 = vector.load %arg15[%c0_47, %c2, %c0_48] : memref<18x18x128xf32, #tpu.memory_space<vmem>>, vector<16x16x128xf32>
    %40 = vector.shape_cast %39 : vector<16x16x128xf32> to vector<256x128xf32>
    %41 = arith.truncf %40 : vector<256x128xf32> to vector<256x128xbf16>
    %c0_49 = arith.constant 0 : index
    %c256 = arith.constant 256 : index
    %42 = vector.load %arg16[%c0_49, %c256] : memref<256x1152xbf16, #tpu.memory_space<vmem>>, vector<256x128xbf16>
    tpu.vector_store %arg16[%c0_49, %c256], %41 {strides = array<i32>} : memref<256x1152xbf16, #tpu.memory_space<vmem>>, vector<256x128xbf16>,
    %c1_50 = arith.constant 1 : index
    %c0_51 = arith.constant 0 : index
    %c0_52 = arith.constant 0 : index
    %43 = vector.load %arg15[%c1_50, %c0_51, %c0_52] : memref<18x18x128xf32, #tpu.memory_space<vmem>>, vector<16x16x128xf32>
    %44 = vector.shape_cast %43 : vector<16x16x128xf32> to vector<256x128xf32>
    %45 = arith.truncf %44 : vector<256x128xf32> to vector<256x128xbf16>
    %c0_53 = arith.constant 0 : index
    %c384 = arith.constant 384 : index
    %46 = vector.load %arg16[%c0_53, %c384] : memref<256x1152xbf16, #tpu.memory_space<vmem>>, vector<256x128xbf16>
    tpu.vector_store %arg16[%c0_53, %c384], %45 {strides = array<i32>} : memref<256x1152xbf16, #tpu.memory_space<vmem>>, vector<256x128xbf16>,
    %c1_54 = arith.constant 1 : index
    %c1_55 = arith.constant 1 : index
    %c0_56 = arith.constant 0 : index
    %47 = vector.load %arg15[%c1_54, %c1_55, %c0_56] : memref<18x18x128xf32, #tpu.memory_space<vmem>>, vector<16x16x128xf32>
    %48 = vector.shape_cast %47 : vector<16x16x128xf32> to vector<256x128xf32>
    %49 = arith.truncf %48 : vector<256x128xf32> to vector<256x128xbf16>
    %c0_57 = arith.constant 0 : index
    %c512 = arith.constant 512 : index
    %50 = vector.load %arg16[%c0_57, %c512] : memref<256x1152xbf16, #tpu.memory_space<vmem>>, vector<256x128xbf16>
    tpu.vector_store %arg16[%c0_57, %c512], %49 {strides = array<i32>} : memref<256x1152xbf16, #tpu.memory_space<vmem>>, vector<256x128xbf16>,
    %c1_58 = arith.constant 1 : index
    %c2_59 = arith.constant 2 : index
    %c0_60 = arith.constant 0 : index
    %51 = vector.load %arg15[%c1_58, %c2_59, %c0_60] : memref<18x18x128xf32, #tpu.memory_space<vmem>>, vector<16x16x128xf32>
    %52 = vector.shape_cast %51 : vector<16x16x128xf32> to vector<256x128xf32>
    %53 = arith.truncf %52 : vector<256x128xf32> to vector<256x128xbf16>
    %c0_61 = arith.constant 0 : index
    %c640 = arith.constant 640 : index
    %54 = vector.load %arg16[%c0_61, %c640] : memref<256x1152xbf16, #tpu.memory_space<vmem>>, vector<256x128xbf16>
    tpu.vector_store %arg16[%c0_61, %c640], %53 {strides = array<i32>} : memref<256x1152xbf16, #tpu.memory_space<vmem>>, vector<256x128xbf16>,
    %c2_62 = arith.constant 2 : index
    %c0_63 = arith.constant 0 : index
    %c0_64 = arith.constant 0 : index
    %55 = vector.load %arg15[%c2_62, %c0_63, %c0_64] : memref<18x18x128xf32, #tpu.memory_space<vmem>>, vector<16x16x128xf32>
    %56 = vector.shape_cast %55 : vector<16x16x128xf32> to vector<256x128xf32>
    %57 = arith.truncf %56 : vector<256x128xf32> to vector<256x128xbf16>
    %c0_65 = arith.constant 0 : index
    %c768 = arith.constant 768 : index
    %58 = vector.load %arg16[%c0_65, %c768] : memref<256x1152xbf16, #tpu.memory_space<vmem>>, vector<256x128xbf16>
    tpu.vector_store %arg16[%c0_65, %c768], %57 {strides = array<i32>} : memref<256x1152xbf16, #tpu.memory_space<vmem>>, vector<256x128xbf16>,
    %c2_66 = arith.constant 2 : index
    %c1_67 = arith.constant 1 : index
    %c0_68 = arith.constant 0 : index
    %59 = vector.load %arg15[%c2_66, %c1_67, %c0_68] : memref<18x18x128xf32, #tpu.memory_space<vmem>>, vector<16x16x128xf32>
    %60 = vector.shape_cast %59 : vector<16x16x128xf32> to vector<256x128xf32>
    %61 = arith.truncf %60 : vector<256x128xf32> to vector<256x128xbf16>
    %c0_69 = arith.constant 0 : index
    %c896 = arith.constant 896 : index
    %62 = vector.load %arg16[%c0_69, %c896] : memref<256x1152xbf16, #tpu.memory_space<vmem>>, vector<256x128xbf16>
    tpu.vector_store %arg16[%c0_69, %c896], %61 {strides = array<i32>} : memref<256x1152xbf16, #tpu.memory_space<vmem>>, vector<256x128xbf16>,
    %c2_70 = arith.constant 2 : index
    %c2_71 = arith.constant 2 : index
    %c0_72 = arith.constant 0 : index
    %63 = vector.load %arg15[%c2_70, %c2_71, %c0_72] : memref<18x18x128xf32, #tpu.memory_space<vmem>>, vector<16x16x128xf32>
    %64 = vector.shape_cast %63 : vector<16x16x128xf32> to vector<256x128xf32>
    %65 = arith.truncf %64 : vector<256x128xf32> to vector<256x128xbf16>
    %c0_73 = arith.constant 0 : index
    %c1024 = arith.constant 1024 : index
    %66 = vector.load %arg16[%c0_73, %c1024] : memref<256x1152xbf16, #tpu.memory_space<vmem>>, vector<256x128xbf16>
    tpu.vector_store %arg16[%c0_73, %c1024], %65 {strides = array<i32>} : memref<256x1152xbf16, #tpu.memory_space<vmem>>, vector<256x128xbf16>,
    %c0_74 = arith.constant 0 : index
    %c0_75 = arith.constant 0 : index
    %67 = vector.load %arg16[%c0_74, %c0_75] : memref<256x1152xbf16, #tpu.memory_space<vmem>>, vector<256x1152xbf16>
    %c0_76 = arith.constant 0 : index
    %c0_77 = arith.constant 0 : index
    %68 = vector.load %arg4[%c0_76, %c0_77] : memref<1152x128xbf16, #tpu.memory_space<vmem>>, vector<1152x128xbf16>
    %cst_78 = arith.constant dense<0.000000e+00> : vector<256x128xf32>
    %69 = tpu.matmul %67, %68, %cst_78 {dimension_numbers = #tpu.dot_dimension_numbers<[1], [0], [0], [1], [0, 0, 1, 1], [], []>} : vector<256x1152xbf16>, vector<1152x128xbf16>, vector<256x128xf32> -> vector<256x128xf32>
    %c0_79 = arith.constant 0 : index
    %c0_80 = arith.constant 0 : index
    %70 = vector.load %arg5[%c0_79, %c0_80] : memref<1x128xf32, #tpu.memory_space<vmem>>, vector<1x128xf32>
    %71 = vector.broadcast %70 : vector<1x128xf32> to vector<256x128xf32>
    %72 = arith.addf %69, %71 : vector<256x128xf32>
    %cst_81 = arith.constant 0.000000e+00 : f32
    %73 = vector.broadcast %cst_81 : f32 to vector<256x128xf32>
    %74 = arith.cmpf ogt, %72, %73 : vector<256x128xf32>
    %cst_82 = arith.constant 1.000000e-01 : f32
    %75 = vector.broadcast %cst_82 : f32 to vector<256x128xf32>
    %76 = arith.mulf %75, %72 : vector<256x128xf32>
    %77 = arith.select %74, %72, %76 : vector<256x128xi1>, vector<256x128xf32>
    %78 = arith.truncf %77 : vector<256x128xf32> to vector<256x128xbf16>
    %c0_83 = arith.constant 0 : index
    %c0_84 = arith.constant 0 : index
    %79 = vector.load %arg6[%c0_83, %c0_84] : memref<128x128xbf16, #tpu.memory_space<vmem>>, vector<128x128xbf16>
    %cst_85 = arith.constant dense<0.000000e+00> : vector<256x128xf32>
    %80 = tpu.matmul %78, %79, %cst_85 {dimension_numbers = #tpu.dot_dimension_numbers<[1], [0], [0], [1], [0, 0, 1, 1], [], []>} : vector<256x128xbf16>, vector<128x128xbf16>, vector<256x128xf32> -> vector<256x128xf32>
    %c0_86 = arith.constant 0 : index
    %c0_87 = arith.constant 0 : index
    %81 = vector.load %arg7[%c0_86, %c0_87] : memref<1x128xf32, #tpu.memory_space<vmem>>, vector<1x128xf32>
    %82 = vector.broadcast %81 : vector<1x128xf32> to vector<256x128xf32>
    %83 = arith.addf %80, %82 : vector<256x128xf32>
    %cst_88 = arith.constant 0.000000e+00 : f32
    %84 = vector.broadcast %cst_88 : f32 to vector<256x128xf32>
    %85 = arith.cmpf ogt, %83, %84 : vector<256x128xf32>
    %cst_89 = arith.constant 1.000000e-01 : f32
    %86 = vector.broadcast %cst_89 : f32 to vector<256x128xf32>
    %87 = arith.mulf %86, %83 : vector<256x128xf32>
    %88 = arith.select %85, %83, %87 : vector<256x128xi1>, vector<256x128xf32>
    %89 = vector.shape_cast %88 : vector<256x128xf32> to vector<16x16x128xf32>
    %c2_90 = arith.constant 2 : index
    %c2_91 = arith.constant 2 : index
    %c0_92 = arith.constant 0 : index
    %90 = vector.load %arg17[%c2_90, %c2_91, %c0_92] : memref<20x20x128xf32, #tpu.memory_space<vmem>>, vector<16x16x128xf32>
    tpu.vector_store %arg17[%c2_90, %c2_91, %c0_92], %89 {strides = array<i32>} : memref<20x20x128xf32, #tpu.memory_space<vmem>>, vector<16x16x128xf32>,
    %c0_93 = arith.constant 0 : index
    %c0_94 = arith.constant 0 : index
    %c0_95 = arith.constant 0 : index
    %91 = vector.load %arg17[%c0_93, %c0_94, %c0_95] : memref<20x20x128xf32, #tpu.memory_space<vmem>>, vector<20x16x128xf32>
    %c0_96 = arith.constant 0 : index
    %c1_97 = arith.constant 1 : index
    %c0_98 = arith.constant 0 : index
    %92 = vector.load %arg17[%c0_96, %c1_97, %c0_98] : memref<20x20x128xf32, #tpu.memory_space<vmem>>, vector<20x16x128xf32>
    %93 = arith.maximumf %91, %92 : vector<20x16x128xf32>
    %c0_99 = arith.constant 0 : index
    %c2_100 = arith.constant 2 : index
    %c0_101 = arith.constant 0 : index
    %94 = vector.load %arg17[%c0_99, %c2_100, %c0_101] : memref<20x20x128xf32, #tpu.memory_space<vmem>>, vector<20x16x128xf32>
    %95 = arith.maximumf %93, %94 : vector<20x16x128xf32>
    %c0_102 = arith.constant 0 : index
    %c3 = arith.constant 3 : index
    %c0_103 = arith.constant 0 : index
    %96 = vector.load %arg17[%c0_102, %c3, %c0_103] : memref<20x20x128xf32, #tpu.memory_space<vmem>>, vector<20x16x128xf32>
    %97 = arith.maximumf %95, %96 : vector<20x16x128xf32>
    %c0_104 = arith.constant 0 : index
    %c4 = arith.constant 4 : index
    %c0_105 = arith.constant 0 : index
    %98 = vector.load %arg17[%c0_104, %c4, %c0_105] : memref<20x20x128xf32, #tpu.memory_space<vmem>>, vector<20x16x128xf32>
    %99 = arith.maximumf %97, %98 : vector<20x16x128xf32>
    %100 = vector.extract_strided_slice %99 {offsets = [0, 0, 0], sizes = [16, 16, 128], strides = [1, 1, 1]} : vector<20x16x128xf32> to vector<16x16x128xf32>
    %101 = vector.extract_strided_slice %99 {offsets = [1, 0, 0], sizes = [16, 16, 128], strides = [1, 1, 1]} : vector<20x16x128xf32> to vector<16x16x128xf32>
    %102 = arith.maximumf %100, %101 : vector<16x16x128xf32>
    %103 = vector.extract_strided_slice %99 {offsets = [2, 0, 0], sizes = [16, 16, 128], strides = [1, 1, 1]} : vector<20x16x128xf32> to vector<16x16x128xf32>
    %104 = arith.maximumf %102, %103 : vector<16x16x128xf32>
    %105 = vector.extract_strided_slice %99 {offsets = [3, 0, 0], sizes = [16, 16, 128], strides = [1, 1, 1]} : vector<20x16x128xf32> to vector<16x16x128xf32>
    %106 = arith.maximumf %104, %105 : vector<16x16x128xf32>
    %107 = vector.extract_strided_slice %99 {offsets = [4, 0, 0], sizes = [16, 16, 128], strides = [1, 1, 1]} : vector<20x16x128xf32> to vector<16x16x128xf32>
    %108 = arith.maximumf %106, %107 : vector<16x16x128xf32>
    %c2_106 = arith.constant 2 : index
    %c2_107 = arith.constant 2 : index
    %c0_108 = arith.constant 0 : index
    %109 = vector.load %arg17[%c2_106, %c2_107, %c0_108] : memref<20x20x128xf32, #tpu.memory_space<vmem>>, vector<16x16x128xf32>
    tpu.vector_store %arg17[%c2_106, %c2_107, %c0_108], %108 {strides = array<i32>} : memref<20x20x128xf32, #tpu.memory_space<vmem>>, vector<16x16x128xf32>,
    %c0_109 = arith.constant 0 : index
    %c0_110 = arith.constant 0 : index
    %c0_111 = arith.constant 0 : index
    %110 = vector.load %arg17[%c0_109, %c0_110, %c0_111] : memref<20x20x128xf32, #tpu.memory_space<vmem>>, vector<20x16x128xf32>
    %c0_112 = arith.constant 0 : index
    %c1_113 = arith.constant 1 : index
    %c0_114 = arith.constant 0 : index
    %111 = vector.load %arg17[%c0_112, %c1_113, %c0_114] : memref<20x20x128xf32, #tpu.memory_space<vmem>>, vector<20x16x128xf32>
    %112 = arith.maximumf %110, %111 : vector<20x16x128xf32>
    %c0_115 = arith.constant 0 : index
    %c2_116 = arith.constant 2 : index
    %c0_117 = arith.constant 0 : index
    %113 = vector.load %arg17[%c0_115, %c2_116, %c0_117] : memref<20x20x128xf32, #tpu.memory_space<vmem>>, vector<20x16x128xf32>
    %114 = arith.maximumf %112, %113 : vector<20x16x128xf32>
    %c0_118 = arith.constant 0 : index
    %c3_119 = arith.constant 3 : index
    %c0_120 = arith.constant 0 : index
    %115 = vector.load %arg17[%c0_118, %c3_119, %c0_120] : memref<20x20x128xf32, #tpu.memory_space<vmem>>, vector<20x16x128xf32>
    %116 = arith.maximumf %114, %115 : vector<20x16x128xf32>
    %c0_121 = arith.constant 0 : index
    %c4_122 = arith.constant 4 : index
    %c0_123 = arith.constant 0 : index
    %117 = vector.load %arg17[%c0_121, %c4_122, %c0_123] : memref<20x20x128xf32, #tpu.memory_space<vmem>>, vector<20x16x128xf32>
    %118 = arith.maximumf %116, %117 : vector<20x16x128xf32>
    %119 = vector.extract_strided_slice %118 {offsets = [0, 0, 0], sizes = [16, 16, 128], strides = [1, 1, 1]} : vector<20x16x128xf32> to vector<16x16x128xf32>
    %120 = vector.extract_strided_slice %118 {offsets = [1, 0, 0], sizes = [16, 16, 128], strides = [1, 1, 1]} : vector<20x16x128xf32> to vector<16x16x128xf32>
    %121 = arith.maximumf %119, %120 : vector<16x16x128xf32>
    %122 = vector.extract_strided_slice %118 {offsets = [2, 0, 0], sizes = [16, 16, 128], strides = [1, 1, 1]} : vector<20x16x128xf32> to vector<16x16x128xf32>
    %123 = arith.maximumf %121, %122 : vector<16x16x128xf32>
    %124 = vector.extract_strided_slice %118 {offsets = [3, 0, 0], sizes = [16, 16, 128], strides = [1, 1, 1]} : vector<20x16x128xf32> to vector<16x16x128xf32>
    %125 = arith.maximumf %123, %124 : vector<16x16x128xf32>
    %126 = vector.extract_strided_slice %118 {offsets = [4, 0, 0], sizes = [16, 16, 128], strides = [1, 1, 1]} : vector<20x16x128xf32> to vector<16x16x128xf32>
    %127 = arith.maximumf %125, %126 : vector<16x16x128xf32>
    %c2_124 = arith.constant 2 : index
    %c2_125 = arith.constant 2 : index
    %c0_126 = arith.constant 0 : index
    %128 = vector.load %arg17[%c2_124, %c2_125, %c0_126] : memref<20x20x128xf32, #tpu.memory_space<vmem>>, vector<16x16x128xf32>
    tpu.vector_store %arg17[%c2_124, %c2_125, %c0_126], %127 {strides = array<i32>} : memref<20x20x128xf32, #tpu.memory_space<vmem>>, vector<16x16x128xf32>,
    %c0_127 = arith.constant 0 : index
    %c0_128 = arith.constant 0 : index
    %c0_129 = arith.constant 0 : index
    %129 = vector.load %arg17[%c0_127, %c0_128, %c0_129] : memref<20x20x128xf32, #tpu.memory_space<vmem>>, vector<20x16x128xf32>
    %c0_130 = arith.constant 0 : index
    %c1_131 = arith.constant 1 : index
    %c0_132 = arith.constant 0 : index
    %130 = vector.load %arg17[%c0_130, %c1_131, %c0_132] : memref<20x20x128xf32, #tpu.memory_space<vmem>>, vector<20x16x128xf32>
    %131 = arith.maximumf %129, %130 : vector<20x16x128xf32>
    %c0_133 = arith.constant 0 : index
    %c2_134 = arith.constant 2 : index
    %c0_135 = arith.constant 0 : index
    %132 = vector.load %arg17[%c0_133, %c2_134, %c0_135] : memref<20x20x128xf32, #tpu.memory_space<vmem>>, vector<20x16x128xf32>
    %133 = arith.maximumf %131, %132 : vector<20x16x128xf32>
    %c0_136 = arith.constant 0 : index
    %c3_137 = arith.constant 3 : index
    %c0_138 = arith.constant 0 : index
    %134 = vector.load %arg17[%c0_136, %c3_137, %c0_138] : memref<20x20x128xf32, #tpu.memory_space<vmem>>, vector<20x16x128xf32>
    %135 = arith.maximumf %133, %134 : vector<20x16x128xf32>
    %c0_139 = arith.constant 0 : index
    %c4_140 = arith.constant 4 : index
    %c0_141 = arith.constant 0 : index
    %136 = vector.load %arg17[%c0_139, %c4_140, %c0_141] : memref<20x20x128xf32, #tpu.memory_space<vmem>>, vector<20x16x128xf32>
    %137 = arith.maximumf %135, %136 : vector<20x16x128xf32>
    %138 = vector.extract_strided_slice %137 {offsets = [0, 0, 0], sizes = [16, 16, 128], strides = [1, 1, 1]} : vector<20x16x128xf32> to vector<16x16x128xf32>
    %139 = vector.extract_strided_slice %137 {offsets = [1, 0, 0], sizes = [16, 16, 128], strides = [1, 1, 1]} : vector<20x16x128xf32> to vector<16x16x128xf32>
    %140 = arith.maximumf %138, %139 : vector<16x16x128xf32>
    %141 = vector.extract_strided_slice %137 {offsets = [2, 0, 0], sizes = [16, 16, 128], strides = [1, 1, 1]} : vector<20x16x128xf32> to vector<16x16x128xf32>
    %142 = arith.maximumf %140, %141 : vector<16x16x128xf32>
    %143 = vector.extract_strided_slice %137 {offsets = [3, 0, 0], sizes = [16, 16, 128], strides = [1, 1, 1]} : vector<20x16x128xf32> to vector<16x16x128xf32>
    %144 = arith.maximumf %142, %143 : vector<16x16x128xf32>
    %145 = vector.extract_strided_slice %137 {offsets = [4, 0, 0], sizes = [16, 16, 128], strides = [1, 1, 1]} : vector<20x16x128xf32> to vector<16x16x128xf32>
    %146 = arith.maximumf %144, %145 : vector<16x16x128xf32>
    %147 = arith.truncf %88 : vector<256x128xf32> to vector<256x128xbf16>
    %148 = vector.shape_cast %108 : vector<16x16x128xf32> to vector<256x128xf32>
    %149 = arith.truncf %148 : vector<256x128xf32> to vector<256x128xbf16>
    %150 = vector.shape_cast %127 : vector<16x16x128xf32> to vector<256x128xf32>
    %151 = arith.truncf %150 : vector<256x128xf32> to vector<256x128xbf16>
    %152 = vector.shape_cast %146 : vector<16x16x128xf32> to vector<256x128xf32>
    %153 = arith.truncf %152 : vector<256x128xf32> to vector<256x128xbf16>
    %154 = tpu.concatenate %147, %149, %151, %153 in 1 : vector<256x128xbf16>, vector<256x128xbf16>, vector<256x128xbf16>, vector<256x128xbf16> -> vector<256x512xbf16>
    %c0_142 = arith.constant 0 : index
    %c0_143 = arith.constant 0 : index
    %155 = vector.load %arg8[%c0_142, %c0_143] : memref<512x128xbf16, #tpu.memory_space<vmem>>, vector<512x128xbf16>
    %cst_144 = arith.constant dense<0.000000e+00> : vector<256x128xf32>
    %156 = tpu.matmul %154, %155, %cst_144 {dimension_numbers = #tpu.dot_dimension_numbers<[1], [0], [0], [1], [0, 0, 1, 1], [], []>} : vector<256x512xbf16>, vector<512x128xbf16>, vector<256x128xf32> -> vector<256x128xf32>
    %c0_145 = arith.constant 0 : index
    %c0_146 = arith.constant 0 : index
    %157 = vector.load %arg9[%c0_145, %c0_146] : memref<1x128xf32, #tpu.memory_space<vmem>>, vector<1x128xf32>
    %158 = vector.broadcast %157 : vector<1x128xf32> to vector<256x128xf32>
    %159 = arith.addf %156, %158 : vector<256x128xf32>
    %cst_147 = arith.constant 0.000000e+00 : f32
    %160 = vector.broadcast %cst_147 : f32 to vector<256x128xf32>
    %161 = arith.cmpf ogt, %159, %160 : vector<256x128xf32>
    %cst_148 = arith.constant 1.000000e-01 : f32
    %162 = vector.broadcast %cst_148 : f32 to vector<256x128xf32>
    %163 = arith.mulf %162, %159 : vector<256x128xf32>
    %164 = arith.select %161, %159, %163 : vector<256x128xi1>, vector<256x128xf32>
    %165 = vector.shape_cast %164 : vector<256x128xf32> to vector<16x16x128xf32>
    %c1_149 = arith.constant 1 : index
    %c1_150 = arith.constant 1 : index
    %c0_151 = arith.constant 0 : index
    %166 = vector.load %arg15[%c1_149, %c1_150, %c0_151] : memref<18x18x128xf32, #tpu.memory_space<vmem>>, vector<16x16x128xf32>
    tpu.vector_store %arg15[%c1_149, %c1_150, %c0_151], %165 {strides = array<i32>} : memref<18x18x128xf32, #tpu.memory_space<vmem>>, vector<16x16x128xf32>,
    %c0_152 = arith.constant 0 : index
    %c0_153 = arith.constant 0 : index
    %c0_154 = arith.constant 0 : index
    %167 = vector.load %arg15[%c0_152, %c0_153, %c0_154] : memref<18x18x128xf32, #tpu.memory_space<vmem>>, vector<16x16x128xf32>
    %168 = vector.shape_cast %167 : vector<16x16x128xf32> to vector<256x128xf32>
    %169 = arith.truncf %168 : vector<256x128xf32> to vector<256x128xbf16>
    %c0_155 = arith.constant 0 : index
    %c0_156 = arith.constant 0 : index
    %170 = vector.load %arg16[%c0_155, %c0_156] : memref<256x1152xbf16, #tpu.memory_space<vmem>>, vector<256x128xbf16>
    tpu.vector_store %arg16[%c0_155, %c0_156], %169 {strides = array<i32>} : memref<256x1152xbf16, #tpu.memory_space<vmem>>, vector<256x128xbf16>,
    %c0_157 = arith.constant 0 : index
    %c1_158 = arith.constant 1 : index
    %c0_159 = arith.constant 0 : index
    %171 = vector.load %arg15[%c0_157, %c1_158, %c0_159] : memref<18x18x128xf32, #tpu.memory_space<vmem>>, vector<16x16x128xf32>
    %172 = vector.shape_cast %171 : vector<16x16x128xf32> to vector<256x128xf32>
    %173 = arith.truncf %172 : vector<256x128xf32> to vector<256x128xbf16>
    %c0_160 = arith.constant 0 : index
    %c128_161 = arith.constant 128 : index
    %174 = vector.load %arg16[%c0_160, %c128_161] : memref<256x1152xbf16, #tpu.memory_space<vmem>>, vector<256x128xbf16>
    tpu.vector_store %arg16[%c0_160, %c128_161], %173 {strides = array<i32>} : memref<256x1152xbf16, #tpu.memory_space<vmem>>, vector<256x128xbf16>,
    %c0_162 = arith.constant 0 : index
    %c2_163 = arith.constant 2 : index
    %c0_164 = arith.constant 0 : index
    %175 = vector.load %arg15[%c0_162, %c2_163, %c0_164] : memref<18x18x128xf32, #tpu.memory_space<vmem>>, vector<16x16x128xf32>
    %176 = vector.shape_cast %175 : vector<16x16x128xf32> to vector<256x128xf32>
    %177 = arith.truncf %176 : vector<256x128xf32> to vector<256x128xbf16>
    %c0_165 = arith.constant 0 : index
    %c256_166 = arith.constant 256 : index
    %178 = vector.load %arg16[%c0_165, %c256_166] : memref<256x1152xbf16, #tpu.memory_space<vmem>>, vector<256x128xbf16>
    tpu.vector_store %arg16[%c0_165, %c256_166], %177 {strides = array<i32>} : memref<256x1152xbf16, #tpu.memory_space<vmem>>, vector<256x128xbf16>,
    %c1_167 = arith.constant 1 : index
    %c0_168 = arith.constant 0 : index
    %c0_169 = arith.constant 0 : index
    %179 = vector.load %arg15[%c1_167, %c0_168, %c0_169] : memref<18x18x128xf32, #tpu.memory_space<vmem>>, vector<16x16x128xf32>
    %180 = vector.shape_cast %179 : vector<16x16x128xf32> to vector<256x128xf32>
    %181 = arith.truncf %180 : vector<256x128xf32> to vector<256x128xbf16>
    %c0_170 = arith.constant 0 : index
    %c384_171 = arith.constant 384 : index
    %182 = vector.load %arg16[%c0_170, %c384_171] : memref<256x1152xbf16, #tpu.memory_space<vmem>>, vector<256x128xbf16>
    tpu.vector_store %arg16[%c0_170, %c384_171], %181 {strides = array<i32>} : memref<256x1152xbf16, #tpu.memory_space<vmem>>, vector<256x128xbf16>,
    %c1_172 = arith.constant 1 : index
    %c1_173 = arith.constant 1 : index
    %c0_174 = arith.constant 0 : index
    %183 = vector.load %arg15[%c1_172, %c1_173, %c0_174] : memref<18x18x128xf32, #tpu.memory_space<vmem>>, vector<16x16x128xf32>
    %184 = vector.shape_cast %183 : vector<16x16x128xf32> to vector<256x128xf32>
    %185 = arith.truncf %184 : vector<256x128xf32> to vector<256x128xbf16>
    %c0_175 = arith.constant 0 : index
    %c512_176 = arith.constant 512 : index
    %186 = vector.load %arg16[%c0_175, %c512_176] : memref<256x1152xbf16, #tpu.memory_space<vmem>>, vector<256x128xbf16>
    tpu.vector_store %arg16[%c0_175, %c512_176], %185 {strides = array<i32>} : memref<256x1152xbf16, #tpu.memory_space<vmem>>, vector<256x128xbf16>,
    %c1_177 = arith.constant 1 : index
    %c2_178 = arith.constant 2 : index
    %c0_179 = arith.constant 0 : index
    %187 = vector.load %arg15[%c1_177, %c2_178, %c0_179] : memref<18x18x128xf32, #tpu.memory_space<vmem>>, vector<16x16x128xf32>
    %188 = vector.shape_cast %187 : vector<16x16x128xf32> to vector<256x128xf32>
    %189 = arith.truncf %188 : vector<256x128xf32> to vector<256x128xbf16>
    %c0_180 = arith.constant 0 : index
    %c640_181 = arith.constant 640 : index
    %190 = vector.load %arg16[%c0_180, %c640_181] : memref<256x1152xbf16, #tpu.memory_space<vmem>>, vector<256x128xbf16>
    tpu.vector_store %arg16[%c0_180, %c640_181], %189 {strides = array<i32>} : memref<256x1152xbf16, #tpu.memory_space<vmem>>, vector<256x128xbf16>,
    %c2_182 = arith.constant 2 : index
    %c0_183 = arith.constant 0 : index
    %c0_184 = arith.constant 0 : index
    %191 = vector.load %arg15[%c2_182, %c0_183, %c0_184] : memref<18x18x128xf32, #tpu.memory_space<vmem>>, vector<16x16x128xf32>
    %192 = vector.shape_cast %191 : vector<16x16x128xf32> to vector<256x128xf32>
    %193 = arith.truncf %192 : vector<256x128xf32> to vector<256x128xbf16>
    %c0_185 = arith.constant 0 : index
    %c768_186 = arith.constant 768 : index
    %194 = vector.load %arg16[%c0_185, %c768_186] : memref<256x1152xbf16, #tpu.memory_space<vmem>>, vector<256x128xbf16>
    tpu.vector_store %arg16[%c0_185, %c768_186], %193 {strides = array<i32>} : memref<256x1152xbf16, #tpu.memory_space<vmem>>, vector<256x128xbf16>,
    %c2_187 = arith.constant 2 : index
    %c1_188 = arith.constant 1 : index
    %c0_189 = arith.constant 0 : index
    %195 = vector.load %arg15[%c2_187, %c1_188, %c0_189] : memref<18x18x128xf32, #tpu.memory_space<vmem>>, vector<16x16x128xf32>
    %196 = vector.shape_cast %195 : vector<16x16x128xf32> to vector<256x128xf32>
    %197 = arith.truncf %196 : vector<256x128xf32> to vector<256x128xbf16>
    %c0_190 = arith.constant 0 : index
    %c896_191 = arith.constant 896 : index
    %198 = vector.load %arg16[%c0_190, %c896_191] : memref<256x1152xbf16, #tpu.memory_space<vmem>>, vector<256x128xbf16>
    tpu.vector_store %arg16[%c0_190, %c896_191], %197 {strides = array<i32>} : memref<256x1152xbf16, #tpu.memory_space<vmem>>, vector<256x128xbf16>,
    %c2_192 = arith.constant 2 : index
    %c2_193 = arith.constant 2 : index
    %c0_194 = arith.constant 0 : index
    %199 = vector.load %arg15[%c2_192, %c2_193, %c0_194] : memref<18x18x128xf32, #tpu.memory_space<vmem>>, vector<16x16x128xf32>
    %200 = vector.shape_cast %199 : vector<16x16x128xf32> to vector<256x128xf32>
    %201 = arith.truncf %200 : vector<256x128xf32> to vector<256x128xbf16>
    %c0_195 = arith.constant 0 : index
    %c1024_196 = arith.constant 1024 : index
    %202 = vector.load %arg16[%c0_195, %c1024_196] : memref<256x1152xbf16, #tpu.memory_space<vmem>>, vector<256x128xbf16>
    tpu.vector_store %arg16[%c0_195, %c1024_196], %201 {strides = array<i32>} : memref<256x1152xbf16, #tpu.memory_space<vmem>>, vector<256x128xbf16>,
    %c0_197 = arith.constant 0 : index
    %c0_198 = arith.constant 0 : index
    %203 = vector.load %arg16[%c0_197, %c0_198] : memref<256x1152xbf16, #tpu.memory_space<vmem>>, vector<256x1152xbf16>
    %c0_199 = arith.constant 0 : index
    %c0_200 = arith.constant 0 : index
    %204 = vector.load %arg10[%c0_199, %c0_200] : memref<1152x128xbf16, #tpu.memory_space<vmem>>, vector<1152x128xbf16>
    %cst_201 = arith.constant dense<0.000000e+00> : vector<256x128xf32>
    %205 = tpu.matmul %203, %204, %cst_201 {dimension_numbers = #tpu.dot_dimension_numbers<[1], [0], [0], [1], [0, 0, 1, 1], [], []>} : vector<256x1152xbf16>, vector<1152x128xbf16>, vector<256x128xf32> -> vector<256x128xf32>
    %c0_202 = arith.constant 0 : index
    %c0_203 = arith.constant 0 : index
    %206 = vector.load %arg11[%c0_202, %c0_203] : memref<1x128xf32, #tpu.memory_space<vmem>>, vector<1x128xf32>
    %207 = vector.broadcast %206 : vector<1x128xf32> to vector<256x128xf32>
    %208 = arith.addf %205, %207 : vector<256x128xf32>
    %cst_204 = arith.constant 0.000000e+00 : f32
    %209 = vector.broadcast %cst_204 : f32 to vector<256x128xf32>
    %210 = arith.cmpf ogt, %208, %209 : vector<256x128xf32>
    %cst_205 = arith.constant 1.000000e-01 : f32
    %211 = vector.broadcast %cst_205 : f32 to vector<256x128xf32>
    %212 = arith.mulf %211, %208 : vector<256x128xf32>
    %213 = arith.select %210, %208, %212 : vector<256x128xi1>, vector<256x128xf32>
    %214 = arith.truncf %27 : vector<256x128xf32> to vector<256x128xbf16>
    %215 = arith.truncf %213 : vector<256x128xf32> to vector<256x128xbf16>
    %216 = tpu.concatenate %214, %215 in 1 : vector<256x128xbf16>, vector<256x128xbf16> -> vector<256x256xbf16>
    %c0_206 = arith.constant 0 : index
    %c0_207 = arith.constant 0 : index
    %217 = vector.load %arg12[%c0_206, %c0_207] : memref<256x128xbf16, #tpu.memory_space<vmem>>, vector<256x128xbf16>
    %cst_208 = arith.constant dense<0.000000e+00> : vector<256x128xf32>
    %218 = tpu.matmul %216, %217, %cst_208 {dimension_numbers = #tpu.dot_dimension_numbers<[1], [0], [0], [1], [0, 0, 1, 1], [], []>} : vector<256x256xbf16>, vector<256x128xbf16>, vector<256x128xf32> -> vector<256x128xf32>
    %c0_209 = arith.constant 0 : index
    %c0_210 = arith.constant 0 : index
    %219 = vector.load %arg13[%c0_209, %c0_210] : memref<1x128xf32, #tpu.memory_space<vmem>>, vector<1x128xf32>
    %220 = vector.broadcast %219 : vector<1x128xf32> to vector<256x128xf32>
    %221 = arith.addf %218, %220 : vector<256x128xf32>
    %cst_211 = arith.constant 0.000000e+00 : f32
    %222 = vector.broadcast %cst_211 : f32 to vector<256x128xf32>
    %223 = arith.cmpf ogt, %221, %222 : vector<256x128xf32>
    %cst_212 = arith.constant 1.000000e-01 : f32
    %224 = vector.broadcast %cst_212 : f32 to vector<256x128xf32>
    %225 = arith.mulf %224, %221 : vector<256x128xf32>
    %226 = arith.select %223, %221, %225 : vector<256x128xi1>, vector<256x128xf32>
    %c0_213 = arith.constant 0 : index
    %c0_214 = arith.constant 0 : index
    %c0_215 = arith.constant 0 : index
    %227 = vector.load %arg14[%c0_213, %c0_214, %c0_215] : memref<1x256x128xf32, #tpu.memory_space<vmem>>, vector<1x256x128xf32>
    %228 = vector.shape_cast %227 : vector<1x256x128xf32> to vector<256x128xf32>
    %229 = vector.shape_cast %226 : vector<256x128xf32> to vector<1x256x128xf32>
    tpu.vector_store %arg14[%c0_213, %c0_214, %c0_215], %229 {strides = array<i32>} : memref<1x256x128xf32, #tpu.memory_space<vmem>>, vector<1x256x128xf32>,
    return
  }
  func.func @transform_0(%arg0: i32) -> (i32, i32, i32) {
    %c0_i32 = arith.constant 0 : i32
    %c0_i32_0 = arith.constant 0 : i32
    %c0_i32_1 = arith.constant 0 : i32
    return %arg0, %c0_i32, %c0_i32_0 : i32, i32, i32
  }
  func.func @transform_1(%arg0: i32) -> (i32, i32) {
    %c0_i32 = arith.constant 0 : i32
    %c0_i32_0 = arith.constant 0 : i32
    %c0_i32_1 = arith.constant 0 : i32
    return %c0_i32, %c0_i32_0 : i32, i32
  }
  func.func @transform_2(%arg0: i32) -> (i32, i32) {
    %c0_i32 = arith.constant 0 : i32
    %c0_i32_0 = arith.constant 0 : i32
    %c0_i32_1 = arith.constant 0 : i32
    return %c0_i32, %c0_i32_0 : i32, i32
  }
  func.func @transform_3(%arg0: i32) -> (i32, i32) {
    %c0_i32 = arith.constant 0 : i32
    %c0_i32_0 = arith.constant 0 : i32
    %c0_i32_1 = arith.constant 0 : i32
    return %c0_i32, %c0_i32_0 : i32, i32
  }
  func.func @transform_4(%arg0: i32) -> (i32, i32) {
    %c0_i32 = arith.constant 0 : i32
    %c0_i32_0 = arith.constant 0 : i32
    %c0_i32_1 = arith.constant 0 : i32
    return %c0_i32, %c0_i32_0 : i32, i32
  }
  func.func @transform_5(%arg0: i32) -> (i32, i32) {
    %c0_i32 = arith.constant 0 : i32
    %c0_i32_0 = arith.constant 0 : i32
    %c0_i32_1 = arith.constant 0 : i32
    return %c0_i32, %c0_i32_0 : i32, i32
  }
  func.func @transform_6(%arg0: i32) -> (i32, i32) {
    %c0_i32 = arith.constant 0 : i32
    %c0_i32_0 = arith.constant 0 : i32
    %c0_i32_1 = arith.constant 0 : i32
    return %c0_i32, %c0_i32_0 : i32, i32
  }
  func.func @transform_7(%arg0: i32) -> (i32, i32) {
    %c0_i32 = arith.constant 0 : i32
    %c0_i32_0 = arith.constant 0 : i32
    %c0_i32_1 = arith.constant 0 : i32
    return %c0_i32, %c0_i32_0 : i32, i32
  }
  func.func @transform_8(%arg0: i32) -> (i32, i32) {
    %c0_i32 = arith.constant 0 : i32
    %c0_i32_0 = arith.constant 0 : i32
    %c0_i32_1 = arith.constant 0 : i32
    return %c0_i32, %c0_i32_0 : i32, i32
  }
  func.func @transform_9(%arg0: i32) -> (i32, i32) {
    %c0_i32 = arith.constant 0 : i32
    %c0_i32_0 = arith.constant 0 : i32
    %c0_i32_1 = arith.constant 0 : i32
    return %c0_i32, %c0_i32_0 : i32, i32
  }
  func.func @transform_10(%arg0: i32) -> (i32, i32) {
    %c0_i32 = arith.constant 0 : i32
    %c0_i32_0 = arith.constant 0 : i32
    %c0_i32_1 = arith.constant 0 : i32
    return %c0_i32, %c0_i32_0 : i32, i32
  }
  func.func @transform_11(%arg0: i32) -> (i32, i32) {
    %c0_i32 = arith.constant 0 : i32
    %c0_i32_0 = arith.constant 0 : i32
    %c0_i32_1 = arith.constant 0 : i32
    return %c0_i32, %c0_i32_0 : i32, i32
  }
  func.func @transform_12(%arg0: i32) -> (i32, i32) {
    %c0_i32 = arith.constant 0 : i32
    %c0_i32_0 = arith.constant 0 : i32
    %c0_i32_1 = arith.constant 0 : i32
    return %c0_i32, %c0_i32_0 : i32, i32
  }
  func.func @transform_13(%arg0: i32) -> (i32, i32, i32) {
    %c0_i32 = arith.constant 0 : i32
    %c0_i32_0 = arith.constant 0 : i32
    %c0_i32_1 = arith.constant 0 : i32
    return %arg0, %c0_i32, %c0_i32_0 : i32, i32, i32
  }
}

</mosaic_0001>

<bundles_post_ra>
// kernel: spp_block_csp.1
= control target key start
LH: loop header
LB: loop body
LE: loop exit
PB: predicated region body
PF: predicated region fallthrough
CT: control target
= control target key end

     0   :  { %s10739_s25 = smov 0   ;;  %s14336_s0 = inlined_call_operand.vmem [shape: f32[2,256,128], index: 0, kind: input, shape index: {}]   ;;  %s14337_s1 = inlined_call_operand.vmem [shape: bf16[128,256], index: 1, kind: input, shape index: {}]   ;;  %s14338_s2 = inlined_call_operand.vmem [shape: f32[1,256], index: 2, kind: input, shape index: {}]   ;;  %s14339_s3 = inlined_call_operand.vmem [shape: bf16[1152,128], index: 3, kind: input, shape index: {}]   ;;  %s14340_s4 = inlined_call_operand.vmem [shape: f32[1,128], index: 4, kind: input, shape index: {}]   ;;  %s14341_s5 = inlined_call_operand.vmem [shape: bf16[128,128], index: 5, kind: input, shape index: {}]   ;;  %s14342_s6 = inlined_call_operand.vmem [shape: f32[1,128], index: 6, kind: input, shape index: {}]   ;;  %s14343_s7 = inlined_call_operand.vmem [shape: bf16[512,128], index: 7, kind: input, shape index: {}]   ;;  %s14344_s8 = inlined_call_operand.vmem [shape: f32[1,128], index: 8, kind: input, shape index: {}]   ;;  %s14345_s9 = inlined_call_operand.vmem [shape: bf16[1152,128], index: 9, kind: input, shape index: {}]   ;;  %s14346_s10 = inlined_call_operand.vmem [shape: f32[1,128], index: 10, kind: input, shape index: {}]   ;;  %s14347_s11 = inlined_call_operand.vmem [shape: bf16[256,128], index: 11, kind: input, shape index: {}]   ;;  %s14348_s12 = inlined_call_operand.vmem [shape: f32[1,128], index: 12, kind: input, shape index: {}]   ;;  %s14349_s13 = inlined_call_operand.vmem [shape: f32[2,256,128], index: 13, kind: output, shape index: {}]  }
   0x1 LB: > { %s8714_s26 = sadd.s32 4294967295, %s10664_s25   ;;  %p8718_p0 = scmp.ge.s32.totalorder %s10664_s25, 1  ;;  %s10664_s25 = sphi %s10739_s25, %s23_s25  }
   0x2   : > { %p387_p1 = scmp.lt.s32.totalorder %s10664_s25, 3 }
   0x4   : > { %p388_p2 = pnand %p8718_p0, %p387_p1 }
   0x6   : > { %391 = sbr.rel (%p388_p2) target bundleno = 2190 (0x88e), region = 72 }
   0xd   : > { %v10423_v0 = vld [vmem:[%s14337_s1 + $0x4] ss:$8 sps:$4 sm:$0xff]   ;;  %v10425_v1 = vld [vmem:[%s14337_s1] ss:$8 sps:$4 sm:$0xff]   ;;  %v10666_v2 = vmov 0   ;;  %p431_p3 = scmp.lt.s32.totalorder %s8714_s26, 1 }
   0xe   : > { %726 = vmatprep.mubr.bf16.mxu0 %v10666_v2  ;;  %694 = vmatprep.subr.bf16.mxu0 %v10423_v0  ;;  %v10426_v3 = vld [vmem:[%s14337_s1 + $0x14] ss:$8 sps:$4 sm:$0xff]   ;;  %v10428_v4 = vld [vmem:[%s14337_s1 + $0x10] ss:$8 sps:$4 sm:$0xff]   ;;  %v10429_v5 = vld [vmem:[%s14337_s1 + $0x24] ss:$8 sps:$4 sm:$0xff]  }
   0xf   : > { %695 = vmatpush1.bf16.msra.mxu0 %v10425_v1  ;;  %v10431_v6 = vld [vmem:[%s14337_s1 + $0x20] ss:$8 sps:$4 sm:$0xff]   ;;  %v10432_v7 = vld [vmem:[%s14337_s1 + $0x34] ss:$8 sps:$4 sm:$0xff]   ;;  %v10434_v8 = vld [vmem:[%s14337_s1 + $0x30] ss:$8 sps:$4 sm:$0xff]  }
  0x10   : > { %696 = vmatprep.subr.bf16.mxu0 %v10426_v3  ;;  %v10435_v9 = vld [vmem:[%s14337_s1 + $0x44] ss:$8 sps:$4 sm:$0xff]   ;;  %v10437_v10 = vld [vmem:[%s14337_s1 + $0x40] ss:$8 sps:$4 sm:$0xff]   ;;  %v10438_v11 = vld [vmem:[%s14337_s1 + $0x54] ss:$8 sps:$4 sm:$0xff]  }
  0x11   : > { %s14519_s26 = smov (!%p431_p3, %s8714_s26), 1  ;;  %v10440_v12 = vld [vmem:[%s14337_s1 + $0x50] ss:$8 sps:$4 sm:$0xff]   ;;  %v10441_v13 = vld [vmem:[%s14337_s1 + $0x64] ss:$8 sps:$4 sm:$0xff]   ;;  %v10667_v0 = vmov 0.0  }
  0x12   : > { %s8946_s21 = sshll.u32 %s14519_s26, 8  ;;  %v10443_v14 = vld [vmem:[%s14337_s1 + $0x60] ss:$8 sps:$4 sm:$0xff]   ;;  %v10444_v15 = vld [vmem:[%s14337_s1 + $0x74] ss:$8 sps:$4 sm:$0xff]   ;;  %442 = vst [vmem:[#allocation2] sm:$0xff] %v10667_v0 }
  0x13   : > { %697 = vmatpush1.bf16.msra.mxu0 %v10428_v4  ;;  %s10801_s30 = scalar_lea.vmem %s14336_s0, %s8946_s21  ;;  %v10446_v16 = vld [vmem:[%s14337_s1 + $0x70] ss:$8 sps:$4 sm:$0xff]   ;;  %v10447_v17 = vld [vmem:[%s14339_s3 + $0x40] sm:$0xff]   ;;  %v10449_v21 = vld [vmem:[%s14339_s3 + $0x48] sm:$0xff]   ;;  %443 = vst [vmem:[#allocation2 + $0x8] sm:$0xff] %v10667_v0 }
  0x14   : > { %698 = vmatprep.subr.bf16.mxu0 %v10429_v5  ;;  %v538_v18 = vld [vmem:[%s10801_s30] sm:$0xff]  ;;  %v539_v19 = vld [vmem:[%s10801_s30 + $0x8] sm:$0xff]  ;;  %10396 = vmatprep.subr.bf16.mxu1 %v10447_v17  ;;  %v10451_v24 = vld [vmem:[%s14339_s3 + $0x50] sm:$0xff]   ;;  %444 = vst [vmem:[#allocation2 + $0x10] sm:$0x3] %v10667_v0 }
  0x15   : > { %v10448_v20 = vld [vmem:[%s14339_s3] sm:$0xff]   ;;  %v570_v22 = vpack.c.bf16 %v539_v19, %v538_v18  ;;  %v10450_v23 = vld [vmem:[%s14339_s3 + $0x8] sm:$0xff]   ;;  %v540_v25 = vld [vmem:[%s10801_s30 + $0x10] sm:$0xff]  ;;  %446 = vst [vmem:[#allocation2 + $0x198] sm:$0xff] %v10667_v0 }
  0x16   : > { %10404 = vmatpush3.bf16.msra.mxu1 %v10448_v20  ;;  %v541_v26 = vld [vmem:[%s10801_s30 + $0x18] sm:$0xff]  ;;  %v10452_v27 = vld [vmem:[%s14339_s3 + $0x10] sm:$0xff]   ;;  %v10455_v31 = vld [vmem:[%s14339_s3 + $0x60] sm:$0xff]   ;;  %447 = vst [vmem:[#allocation2 + $0x1a0] sm:$0xff] %v10667_v0 }
  0x17   : > { %699 = vmatpush1.bf16.msra.mxu0 %v10431_v6  ;;  %10397 = vmatprep.subr.bf16.mxu1 %v10449_v21  ;;  %v10453_v28 = vld [vmem:[%s14339_s3 + $0x58] sm:$0xff]   ;;  %v571_v30 = vpack.c.bf16 %v541_v26, %v540_v25  ;;  %v542_v32 = vld [vmem:[%s10801_s30 + $0x20] sm:$0xff]  ;;  %v543_v33 = vld [vmem:[%s10801_s30 + $0x28] sm:$0xff]  ;;  %448 = vst [vmem:[#allocation2 + $0x1a8] sm:$0x3] %v10667_v0 }
  0x18   : > { %700 = vmatprep.subr.bf16.mxu0 %v10432_v7  ;;  %v10454_v29 = vld [vmem:[%s14339_s3 + $0x18] sm:$0xff]   ;;  %v10456_v34 = vld [vmem:[%s14339_s3 + $0x20] sm:$0xff]   ;;  %v572_v35 = vpack.c.bf16 %v543_v33, %v542_v32  ;;  %v544_v36 = vld [vmem:[%s10801_s30 + $0x30] sm:$0xff]  ;;  %450 = vst [vmem:[#allocation2 + $0x18] sm:$0x1] %v10667_v0 }
  0x19   : > { %v545_v37 = vld [vmem:[%s10801_s30 + $0x38] sm:$0xff]  ;;  %v546_v39 = vld [vmem:[%s10801_s30 + $0x40] sm:$0xff]  ;;  %v547_v40 = vld [vmem:[%s10801_s30 + $0x48] sm:$0xff]  ;;  %451 = vst [vmem:[#allocation2 + $0x30] sm:$0x1] %v10667_v0 }
  0x1a   : > { %10405 = vmatpush3.bf16.msra.mxu1 %v10450_v23  ;;  %v573_v38 = vpack.c.bf16 %v545_v37, %v544_v36  ;;  %v574_v41 = vpack.c.bf16 %v547_v40, %v546_v39  ;;  %v548_v42 = vld [vmem:[%s10801_s30 + $0x50] sm:$0xff]  ;;  %v549_v43 = vld [vmem:[%s10801_s30 + $0x58] sm:$0xff]  ;;  %v550_v45 = vld [vmem:[%s10801_s30 + $0x60] sm:$0xff]  ;;  %452 = vst [vmem:[#allocation2 + $0x48] sm:$0x1] %v10667_v0 }
  0x1b   : > { %701 = vmatpush1.bf16.msra.mxu0 %v10434_v8  ;;  %10398 = vmatprep.subr.bf16.mxu1 %v10451_v24  ;;  %v575_v44 = vpack.c.bf16 %v549_v43, %v548_v42  ;;  %v551_v46 = vld [vmem:[%s10801_s30 + $0x68] sm:$0xff]  ;;  %v552_v48 = vld [vmem:[%s10801_s30 + $0x70] sm:$0xff]  ;;  %v553_v49 = vld [vmem:[%s10801_s30 + $0x78] sm:$0xff]  ;;  %453 = vst [vmem:[#allocation2 + $0x60] sm:$0x1] %v10667_v0 }
  0x1c   : > { %702 = vmatprep.subr.bf16.mxu0 %v10435_v9  ;;  %v576_v47 = vpack.c.bf16 %v551_v46, %v550_v45  ;;  %v577_v50 = vpack.c.bf16 %v553_v49, %v552_v48  ;;  %v554_v51 = vld [vmem:[%s10801_s30 + $0x80] sm:$0xff]  ;;  %v555_v52 = vld [vmem:[%s10801_s30 + $0x88] sm:$0xff]  ;;  %v556_v54 = vld [vmem:[%s10801_s30 + $0x90] sm:$0xff]  ;;  %454 = vst [vmem:[#allocation2 + $0x78] sm:$0x1] %v10667_v0 }
  0x1d   : > { %v578_v53 = vpack.c.bf16 %v555_v52, %v554_v51  ;;  %v557_v55 = vld [vmem:[%s10801_s30 + $0x98] sm:$0xff]  ;;  %v558_v57 = vld [vmem:[%s10801_s30 + $0xa0] sm:$0xff]  ;;  %v559_v58 = vld [vmem:[%s10801_s30 + $0xa8] sm:$0xff]  ;;  %455 = vst [vmem:[#allocation2 + $0x90] sm:$0x1] %v10667_v0 }
  0x1e   : > { %10406 = vmatpush3.bf16.msra.mxu1 %v10452_v27  ;;  %v579_v56 = vpack.c.bf16 %v557_v55, %v556_v54  ;;  %v580_v59 = vpack.c.bf16 %v559_v58, %v558_v57  ;;  %v560_v60 = vld [vmem:[%s10801_s30 + $0xb0] sm:$0xff]  ;;  %v10457_v61 = vld [vmem:[%s14339_s3 + $0x68] sm:$0xff]   ;;  %v561_v63 = vld [vmem:[%s10801_s30 + $0xb8] sm:$0xff]  ;;  %456 = vst [vmem:[#allocation2 + $0xa8] sm:$0x1] %v10667_v0 }
  0x1f   : > { %703 = vmatpush1.bf16.msra.mxu0 %v10437_v10  ;;  %10399 = vmatprep.subr.bf16.mxu1 %v10453_v28  ;;  %v10458_v62 = vld [vmem:[%s14339_s3 + $0x28] sm:$0xff]   ;;  %457 = vst [vmem:[#allocation2 + $0xc0] sm:$0x1] %v10667_v0  ;;  %458 = vst [vmem:[#allocation2 + $0xd8] sm:$0x1] %v10667_v0  ;;  %v10459_v1 = vld [vmem:[%s14339_s3 + $0x70] sm:$0xff]   ;;  %v581_v3 = vpack.c.bf16 %v561_v63, %v560_v60 }
  0x20   : > { %704 = vmatprep.subr.bf16.mxu0 %v10438_v11  ;;  %459 = vst [vmem:[#allocation2 + $0xf0] sm:$0x1] %v10667_v0  ;;  %460 = vst [vmem:[#allocation2 + $0x108] sm:$0x1] %v10667_v0  ;;  %v10460_v4 = vld [vmem:[%s14339_s3 + $0x30] sm:$0xff]   ;;  %v10461_v5 = vld [vmem:[%s14339_s3 + $0x78] sm:$0xff]  }
  0x21   : > { %461 = vst [vmem:[#allocation2 + $0x120] sm:$0x1] %v10667_v0  ;;  %462 = vst [vmem:[#allocation2 + $0x138] sm:$0x1] %v10667_v0  ;;  %v10462_v6 = vld [vmem:[%s14339_s3 + $0x38] sm:$0xff]   ;;  %v562_v7 = vld [vmem:[%s10801_s30 + $0xc0] sm:$0xff] }
  0x22   : > { %10407 = vmatpush3.bf16.msra.mxu1 %v10454_v29  ;;  %463 = vst [vmem:[#allocation2 + $0x150] sm:$0x1] %v10667_v0  ;;  %464 = vst [vmem:[#allocation2 + $0x168] sm:$0x1] %v10667_v0  ;;  %v563_v8 = vld [vmem:[%s10801_s30 + $0xc8] sm:$0xff]  ;;  %v10463_v10 = vld [vmem:[%s14339_s3 + $0xc0] sm:$0xff]  }
  0x23   : > { %705 = vmatpush1.bf16.msra.mxu0 %v10440_v12  ;;  %10400 = vmatprep.subr.bf16.mxu1 %v10455_v31  ;;  %465 = vst [vmem:[#allocation2 + $0x180] sm:$0x1] %v10667_v0  ;;  %468 = vst [vmem:[#allocation2 + $0x29] sm:$0x1] %v10667_v0  ;;  %v582_v9 = vpack.c.bf16 %v563_v8, %v562_v7  ;;  %v564_v11 = vld [vmem:[%s10801_s30 + $0xd0] sm:$0xff]  ;;  %v565_v12 = vld [vmem:[%s10801_s30 + $0xd8] sm:$0xff] }
  0x24   : > { %706 = vmatprep.subr.bf16.mxu0 %v10441_v13  ;;  %469 = vst [vmem:[#allocation2 + $0x41] sm:$0x1] %v10667_v0  ;;  %470 = vst [vmem:[#allocation2 + $0x59] sm:$0x1] %v10667_v0  ;;  %v583_v13 = vpack.c.bf16 %v565_v12, %v564_v11  ;;  %v569_v18 = vld [vmem:[%s10801_s30 + $0xf8] sm:$0xff]  ;;  %v1176_v19 = vld [vmem:[#allocation2 + $0x1] sm:$0xff] }
  0x25   : > { %471 = vst [vmem:[#allocation2 + $0x71] sm:$0x1] %v10667_v0  ;;  %472 = vst [vmem:[#allocation2 + $0x89] sm:$0x1] %v10667_v0  ;;  %v10465_v26 = vld [vmem:[%s14339_s3 + $0xc8] sm:$0xff]   ;;  %v10471_v32 = vld [vmem:[%s14339_s3 + $0xe0] sm:$0xff]  }
  0x26   : > { %10408 = vmatpush3.bf16.msra.mxu1 %v10456_v34  ;;  %473 = vst [vmem:[#allocation2 + $0xa1] sm:$0x1] %v10667_v0  ;;  %474 = vst [vmem:[#allocation2 + $0xb9] sm:$0x1] %v10667_v0  ;;  %v10472_v33 = vld [vmem:[%s14339_s3 + $0xa0] sm:$0xff]   ;;  %v10475_v36 = vld [vmem:[%s14339_s3 + $0xf0] sm:$0xff]  }
  0x27   : > { %707 = vmatpush1.bf16.msra.mxu0 %v10443_v14  ;;  %475 = vst [vmem:[#allocation2 + $0xd1] sm:$0x1] %v10667_v0  ;;  %476 = vst [vmem:[#allocation2 + $0xe9] sm:$0x1] %v10667_v0  ;;  %10401 = vmatprep.subr.bf16.mxu1 %v10457_v61  ;;  %v566_v14 = vld [vmem:[%s10801_s30 + $0xe0] sm:$0xff]  ;;  %v10476_v37 = vld [vmem:[%s14339_s3 + $0xb0] sm:$0xff]  }
  0x28   : > { %708 = vmatprep.subr.bf16.mxu0 %v10444_v15  ;;  %477 = vst [vmem:[#allocation2 + $0x101] sm:$0x1] %v10667_v0  ;;  %478 = vst [vmem:[#allocation2 + $0x119] sm:$0x1] %v10667_v0  ;;  %v567_v15 = vld [vmem:[%s10801_s30 + $0xe8] sm:$0xff]  ;;  %v10478_v39 = vld [vmem:[%s14339_s3 + $0xb8] sm:$0xff]  }
  0x29   : > { %479 = vst [vmem:[#allocation2 + $0x131] sm:$0x1] %v10667_v0  ;;  %480 = vst [vmem:[#allocation2 + $0x149] sm:$0x1] %v10667_v0  ;;  %v10491_v40 = vld [vmem:[%s14339_s3 + $0x1c0] sm:$0xff]  }
  0x2a   : > { %481 = vst [vmem:[#allocation2 + $0x161] sm:$0x1] %v10667_v0  ;;  %482 = vst [vmem:[#allocation2 + $0x179] sm:$0x1] %v10667_v0  ;;  %10409 = vmatpush3.bf16.msra.mxu1 %v10458_v62 }
  0x2b   : > { %709 = vmatpush1.bf16.msra.mxu0 %v10446_v16  ;;  %483 = vst [vmem:[#allocation2 + $0x191] sm:$0x1] %v10667_v0  ;;  %467 = vst [vmem:[#allocation2 + $0x11] sm:$0x1] %v10667_v0  ;;  %10402 = vmatprep.subr.bf16.mxu1 %v10459_v1  ;;  %v584_v16 = vpack.c.bf16 %v567_v15, %v566_v14 }
  0x2c   : > { %8948 = vmatprep.subr.bf16.mxu0 %v10447_v17  ;;  %449 = vst [vmem:[#allocation2] sm:$0x1] %v10667_v0  ;;  %466 = vst [vmem:[#allocation2 + $0x198] sm:$0x1] %v10667_v0  ;;  %v568_v17 = vld [vmem:[%s10801_s30 + $0xf0] sm:$0xff]  ;;  %s14268_s30 = scalar_lea.vmem %s14349_s13, %s8946_s21 }
  0x2d   : > { %484 = vst [vmem:[#allocation2 + $0x1a9] sm:$0x1] %v10667_v0 }
  0x2e   : > { %727 = vmatmul.mubr.bf16.vlgmr.msra.gmra.mrb[0].mxu0 %v570_v22  ;;  %10410 = vmatpush3.bf16.msra.mxu1 %v10460_v4 }
  0x2f   : > { %736 = vmatprep.mubr.bf16.mxu0 %v10666_v2  ;;  %8949 = vmatpush3.bf16.msra.mxu0 %v10448_v20  ;;  %v1177_v20 = vld [vmem:[#allocation2 + $0x9] sm:$0xff] }
  0x30   : > { %8950 = vmatprep.subr.bf16.mxu0 %v10449_v21  ;;  %10403 = vmatprep.subr.bf16.mxu1 %v10461_v5  ;;  %v585_v21 = vpack.c.bf16 %v569_v18, %v568_v17  ;;  %v1208_v22 = vpack.c.bf16 %v1177_v20, %v1176_v19 }
  0x32   : > { %10411 = vmatpush3.bf16.msra.mxu1 %v10462_v6 }
  0x33   : > { %8951 = vmatpush3.bf16.msra.mxu0 %v10450_v23  ;;  %v1112_v23 = vld [vmem:[#allocation2] sm:$0xff] }
  0x34   : > { %8952 = vmatprep.subr.bf16.mxu0 %v10451_v24  ;;  %v10464_v24 = vld [vmem:[%s14339_s3 + $0x80] sm:$0xff]   ;;  %v1144_v25 = vpack.c.bf16 %v10667_v0, %v1112_v23 }
  0x36   : > { %737 = vmatmul.mubr.bf16.gmra.mrb[4].mxu0 %v571_v30  ;;  %v10469_v30 = vld [vmem:[%s14339_s3 + $0xd8] sm:$0xff]  }
  0x37   : > { %746 = vmatprep.mubr.bf16.mxu0 %v10666_v2  ;;  %8953 = vmatpush3.bf16.msra.mxu0 %v10452_v27  ;;  %v10467_v27 = vld [vmem:[%s14339_s3 + $0xd0] sm:$0xff]  }
  0x38   : > { %8954 = vmatprep.subr.bf16.mxu0 %v10453_v28  ;;  %v10468_v28 = vld [vmem:[%s14339_s3 + $0x90] sm:$0xff]  }
  0x3b   : > { %8955 = vmatpush3.bf16.msra.mxu0 %v10454_v29  ;;  %v10479_v29 = vld [vmem:[%s14339_s3 + $0x140] sm:$0xff]  }
  0x3c   : > { %8956 = vmatprep.subr.bf16.mxu0 %v10455_v31  ;;  %9172 = vmatprep.subr.bf16.mxu1 %v10479_v29  ;;  %v10470_v31 = vld [vmem:[%s14339_s3 + $0x98] sm:$0xff]  }
  0x3e   : > { %747 = vmatmul.mubr.bf16.gmra.mrb[8].mxu0 %v572_v35  ;;  %v10474_v35 = vld [vmem:[%s14339_s3 + $0xa8] sm:$0xff]  }
  0x3f   : > { %756 = vmatprep.mubr.bf16.mxu0 %v10666_v2  ;;  %8957 = vmatpush3.bf16.msra.mxu0 %v10456_v34  ;;  %v10473_v34 = vld [vmem:[%s14339_s3 + $0xe8] sm:$0xff]  }
  0x40   : > { %8958 = vmatprep.subr.bf16.mxu0 %v10457_v61 }
  0x43   : > { %8959 = vmatpush3.bf16.msra.mxu0 %v10458_v62 }
  0x44   : > { %8960 = vmatprep.subr.bf16.mxu0 %v10459_v1 }
  0x46   : > { %757 = vmatmul.mubr.bf16.gmra.mrb[12].mxu0 %v573_v38  ;;  %v10477_v38 = vld [vmem:[%s14339_s3 + $0xf8] sm:$0xff]  }
  0x47   : > { %766 = vmatprep.mubr.bf16.mxu0 %v10666_v2  ;;  %8961 = vmatpush3.bf16.msra.mxu0 %v10460_v4 }
  0x48   : > { %8962 = vmatprep.subr.bf16.mxu0 %v10461_v5 }
  0x4b   : > { %8963 = vmatpush3.bf16.msra.mxu0 %v10462_v6 }
  0x4c   : > { %9060 = vmatprep.subr.bf16.mxu0 %v10463_v10 }
  0x4e   : > { %767 = vmatmul.mubr.bf16.gmra.mrb[16].mxu0 %v574_v41  ;;  %v604_v41 = vlaneseq }
  0x4f   : > { %776 = vmatprep.mubr.bf16.mxu0 %v10666_v2 }
  0x50   : > { %v605_v42 = vshrl.u32 %v604_v41, 7 }
  0x52   : > { %v606_v43 = vsub.s32 0, %v605_v42  ;;  %v610_v45 = vsub.s32 1, %v605_v42 }
  0x56   : > { %777 = vmatmul.mubr.bf16.gmra.mrb[20].mxu0 %v575_v44  ;;  %v602_v44 = vld [vmem:[%s14338_s2] sm:$0x3] }
  0x57   : > { %786 = vmatprep.mubr.bf16.mxu0 %v10666_v2  ;;  %v11001_v46 = vrot.slane %v602_v44, %v606_v43 }
  0x5e   : > { %787 = vmatmul.mubr.bf16.gmra.mrb[24].mxu0 %v576_v47  ;;  %v11003_v47 = vrot.slane %v602_v44, %v610_v45 }
  0x5f   : > { %796 = vmatprep.mubr.bf16.mxu0 %v10666_v2 }
  0x66   : > { %797 = vmatmul.mubr.bf16.gmra.mrb[28].mxu0 %v577_v50 }
  0x67   : > { %806 = vmatprep.mubr.bf16.mxu0 %v10666_v2 }
  0x6e   : > { %807 = vmatmul.mubr.bf16.gmra.mrb[32].mxu0 %v578_v53 }
  0x6f   : > { %816 = vmatprep.mubr.bf16.mxu0 %v10666_v2 }
  0x76   : > { %817 = vmatmul.mubr.bf16.gmra.mrb[36].mxu0 %v579_v56 }
  0x77   : > { %826 = vmatprep.mubr.bf16.mxu0 %v10666_v2 }
  0x7e   : > { %827 = vmatmul.mubr.bf16.gmra.mrb[40].mxu0 %v580_v59 }
  0x7f   : > { %836 = vmatprep.mubr.bf16.mxu0 %v10666_v2 }
  0x86   : > { %837 = vmatmul.mubr.bf16.gmra.mrb[44].mxu0 %v581_v3 }
  0x87   : > { %846 = vmatprep.mubr.bf16.mxu0 %v10666_v2 }
  0x8e   : > { %847 = vmatmul.mubr.bf16.gmra.mrb[48].mxu0 %v582_v9 }
  0x8f   : > { %856 = vmatprep.mubr.bf16.mxu0 %v10666_v2 }
  0x96   : > { %857 = vmatmul.mubr.bf16.gmra.mrb[52].mxu0 %v583_v13 }
  0x97   : > { %866 = vmatprep.mubr.bf16.mxu0 %v10666_v2 }
  0x9e   : > { %867 = vmatmul.mubr.bf16.gmra.mrb[56].mxu0 %v584_v16 }
  0x9f   : > { %876 = vmatprep.mubr.bf16.mxu0 %v10666_v2  ;;  %v10466_v2 = vld [vmem:[%s14339_s3 + $0x88] sm:$0xff]  }
  0xa6   : > { %877 = vmatmul.mubr.bf16.gmra.mrb[60].mxu0 %v585_v21 }
  0xa7   : > { %2448 = vmatprep.mubr.bf16.mxu0 %v1208_v22 }
  0xae   : > { %2449 = vmatmul.mubr.bf16.vlgmr.msra.gmra.mrb[64].mxu0 %v1144_v25 }
  0xaf   : > { %9061 = vmatpush3.bf16.msra.mxu0 %v10464_v24 }
  0xb0   : > { %9062 = vmatprep.subr.bf16.mxu0 %v10465_v26 }
  0xb3   : > { %9063 = vmatpush3.bf16.msra.mxu0 %v10466_v2 }
  0xb4   : > { %9064 = vmatprep.subr.bf16.mxu0 %v10467_v27 }
  0xb7   : > { %9065 = vmatpush3.bf16.msra.mxu0 %v10468_v28 }
  0xb8   : > { %9066 = vmatprep.subr.bf16.mxu0 %v10469_v30 }
  0xbb   : > { %9067 = vmatpush3.bf16.msra.mxu0 %v10470_v31 }
  0xbc   : > { %9068 = vmatprep.subr.bf16.mxu0 %v10471_v32 }
  0xbf   : > { %9069 = vmatpush3.bf16.msra.mxu0 %v10472_v33 }
  0xc0   : > { %9070 = vmatprep.subr.bf16.mxu0 %v10473_v34 }
  0xc3   : > { %9071 = vmatpush3.bf16.msra.mxu0 %v10474_v35 }
  0xc4   : > { %9072 = vmatprep.subr.bf16.mxu0 %v10475_v36 }
  0xc7   : > { %9073 = vmatpush3.bf16.msra.mxu0 %v10476_v37 }
  0xc8   : > { %9074 = vmatprep.subr.bf16.mxu0 %v10477_v38 }
  0xcb   : > { %9075 = vmatpush3.bf16.msra.mxu0 %v10478_v39 }
  0xcc   : > { %9284 = vmatprep.subr.bf16.mxu0 %v10491_v40 }
 0x101   : > { %v728_v48 = vpop.f32.mrb[0].mxu0 }
 0x102   : > { %v729_v49 = vadd.f32 %v728_v48, %v11001_v46  ;;  %v730_v50 = vpop.f32.mrb[1].mxu0 }
 0x103   : > { %v731_v51 = vadd.f32 %v730_v50, %v11003_v47  ;;  %v732_v52 = vpop.f32.mrb[2].mxu0 }
 0x104   : > { %v951_v53 = vmul.f32 0.1, %v729_v49  ;;  %v733_v54 = vadd.f32 %v732_v52, %v11001_v46  ;;  %v734_v55 = vpop.f32.mrb[3].mxu0  ;;  %vm887_vm0 = vcmp.gt.f32.partialorder %v729_v49, 0.0 }
 0x105   : > { %vm888_vm1 = vcmp.gt.f32.partialorder %v731_v51, 0.0  ;;  %v952_v56 = vmul.f32 0.1, %v731_v51  ;;  %v735_v57 = vadd.f32 %v734_v55, %v11003_v47 }
 0x106   : > { %vm889_vm2 = vcmp.gt.f32.partialorder %v733_v54, 0.0  ;;  %v953_v58 = vmul.f32 0.1, %v733_v54  ;;  %v11009_v61 = vsel %vm887_vm0, %v729_v49, %v951_v53 }
 0x107   : > { %v1016_v59 = vsel %vm888_vm1, %v731_v51, %v952_v56  ;;  %vm890_vm3 = vcmp.gt.f32.partialorder %v735_v57, 0.0  ;;  %v954_v60 = vmul.f32 0.1, %v735_v57  ;;  %14390 = vst [vmem:[#allocation5_spill] sm:$0xff] %v11009_v61 }
 0x108   : > { %1080 = vst [vmem:[#allocation2 + $0x19] sm:$0xff] %v1016_v59  ;;  %v11011_v62 = vsel %vm889_vm2, %v733_v54, %v953_v58 }
 0x109   : > { %14391 = vst [vmem:[#allocation6_spill] sm:$0xff] %v11011_v62  ;;  %v1018_v0 = vsel %vm890_vm3, %v735_v57, %v954_v60  ;;  %v738_v1 = vpop.f32.mrb[4].mxu0 }
 0x10a   : > { %1081 = vst [vmem:[#allocation2 + $0x21] sm:$0xff] %v1018_v0  ;;  %v739_v3 = vadd.f32 %v738_v1, %v11001_v46  ;;  %v740_v4 = vpop.f32.mrb[5].mxu0  ;;  %v1209_v5 = vpack.c.bf16 %v1018_v0, %v1016_v59 }
 0x10b   : > { %v741_v6 = vadd.f32 %v740_v4, %v11003_v47  ;;  %v742_v7 = vpop.f32.mrb[6].mxu0 }
 0x10c   : > { %v955_v8 = vmul.f32 0.1, %v739_v3  ;;  %v743_v9 = vadd.f32 %v742_v7, %v11001_v46  ;;  %v744_v10 = vpop.f32.mrb[7].mxu0  ;;  %2456 = vmatprep.mubr.bf16.mxu0 %v1209_v5  ;;  %vm891_vm4 = vcmp.gt.f32.partialorder %v739_v3, 0.0 }
 0x10d   : > { %vm892_vm5 = vcmp.gt.f32.partialorder %v741_v6, 0.0  ;;  %v956_v11 = vmul.f32 0.1, %v741_v6  ;;  %v745_v12 = vadd.f32 %v744_v10, %v11003_v47 }
 0x10e   : > { %vm893_vm6 = vcmp.gt.f32.partialorder %v743_v9, 0.0  ;;  %v957_v13 = vmul.f32 0.1, %v743_v9  ;;  %v11019_v16 = vsel %vm891_vm4, %v739_v3, %v955_v8 }
 0x10f   : > { %v1020_v14 = vsel %vm892_vm5, %v741_v6, %v956_v11  ;;  %vm894_vm7 = vcmp.gt.f32.partialorder %v745_v12, 0.0  ;;  %v958_v15 = vmul.f32 0.1, %v745_v12  ;;  %14392 = vst [vmem:[#allocation7_spill] sm:$0xff] %v11019_v16  ;;  %v1114_v21 = vld [vmem:[#allocation2 + $0x18] sm:$0xff] }
 0x110   : > { %1082 = vst [vmem:[#allocation2 + $0x31] sm:$0xff] %v1020_v14  ;;  %v11021_v17 = vsel %vm893_vm6, %v743_v9, %v957_v13 }
 0x111   : > { %14393 = vst [vmem:[#allocation8_spill] sm:$0xff] %v11021_v17  ;;  %v1022_v19 = vsel %vm894_vm7, %v745_v12, %v958_v15  ;;  %v748_v20 = vpop.f32.mrb[8].mxu0  ;;  %v1115_v22 = vld [vmem:[#allocation2 + $0x20] sm:$0xff] }
 0x112   : > { %1083 = vst [vmem:[#allocation2 + $0x39] sm:$0xff] %v1022_v19  ;;  %v749_v23 = vadd.f32 %v748_v20, %v11001_v46  ;;  %v750_v24 = vpop.f32.mrb[9].mxu0  ;;  %v11026_v25 = vpack.c.bf16 %v1115_v22, %v1114_v21  ;;  %v1210_v26 = vpack.c.bf16 %v1022_v19, %v1020_v14  ;;  %v1240_v20 = vld [vmem:[#allocation2 + $0x2] sm:$0xff]  ;;  %v1241_v21 = vld [vmem:[#allocation2 + $0xa] sm:$0xff] }
 0x113   : > { %v751_v2 = vadd.f32 %v750_v24, %v11003_v47  ;;  %v752_v27 = vpop.f32.mrb[10].mxu0 }
 0x114   : > { %v959_v28 = vmul.f32 0.1, %v749_v23  ;;  %v753_v29 = vadd.f32 %v752_v27, %v11001_v46  ;;  %v754_v30 = vpop.f32.mrb[11].mxu0  ;;  %2457 = vmatmul.mubr.bf16.gmra.mrb[68].mxu0 %v11026_v25  ;;  %vm895_vm8 = vcmp.gt.f32.partialorder %v749_v23, 0.0  ;;  %v1272_v27 = vpack.c.bf16 %v1241_v21, %v1240_v20  ;;  %v10499_v20 = vld [vmem:[%s14339_s3 + $0x1d0] sm:$0xff]  }
 0x115   : > { %vm896_vm9 = vcmp.gt.f32.partialorder %v751_v2, 0.0  ;;  %v960_v31 = vmul.f32 0.1, %v751_v2  ;;  %v755_v32 = vadd.f32 %v754_v30, %v11003_v47  ;;  %2464 = vmatprep.mubr.bf16.mxu0 %v1210_v26 }
 0x116   : > { %vm897_vm10 = vcmp.gt.f32.partialorder %v753_v29, 0.0  ;;  %v961_v33 = vmul.f32 0.1, %v753_v29  ;;  %v11032_v36 = vsel %vm895_vm8, %v749_v23, %v959_v28 }
 0x117   : > { %v1024_v34 = vsel %vm896_vm9, %v751_v2, %v960_v31  ;;  %vm898_vm11 = vcmp.gt.f32.partialorder %v755_v32, 0.0  ;;  %v962_v35 = vmul.f32 0.1, %v755_v32  ;;  %14394 = vst [vmem:[#allocation9_spill] sm:$0xff] %v11032_v36  ;;  %v1116_v41 = vld [vmem:[#allocation2 + $0x30] sm:$0xff] }
 0x118   : > { %1084 = vst [vmem:[#allocation2 + $0x49] sm:$0xff] %v1024_v34  ;;  %v11034_v37 = vsel %vm897_vm10, %v753_v29, %v961_v33 }
 0x119   : > { %14395 = vst [vmem:[#allocation10_spill] sm:$0xff] %v11034_v37  ;;  %v1026_v39 = vsel %vm898_vm11, %v755_v32, %v962_v35  ;;  %v758_v40 = vpop.f32.mrb[12].mxu0  ;;  %v1117_v42 = vld [vmem:[#allocation2 + $0x38] sm:$0xff]  ;;  %v10480_v32 = vld [vmem:[%s14339_s3 + $0x100] sm:$0xff]  }
 0x11a   : > { %1085 = vst [vmem:[#allocation2 + $0x51] sm:$0xff] %v1026_v39  ;;  %v759_v43 = vadd.f32 %v758_v40, %v11001_v46  ;;  %v760_v44 = vpop.f32.mrb[13].mxu0  ;;  %v11039_v45 = vpack.c.bf16 %v1117_v42, %v1116_v41  ;;  %v1211_v48 = vpack.c.bf16 %v1026_v39, %v1024_v34  ;;  %v10481_v40 = vld [vmem:[%s14339_s3 + $0x148] sm:$0xff]  }
 0x11b   : > { %v761_v49 = vadd.f32 %v760_v44, %v11003_v47  ;;  %v762_v50 = vpop.f32.mrb[14].mxu0 }
 0x11c   : > { %v963_v51 = vmul.f32 0.1, %v759_v43  ;;  %v763_v52 = vadd.f32 %v762_v50, %v11001_v46  ;;  %v764_v53 = vpop.f32.mrb[15].mxu0  ;;  %2465 = vmatmul.mubr.bf16.gmra.mrb[72].mxu0 %v11039_v45  ;;  %vm899_vm12 = vcmp.gt.f32.partialorder %v759_v43, 0.0  ;;  %v10495_v50 = vld [vmem:[%s14339_s3 + $0x1c8] sm:$0xff]  }
 0x11d   : > { %vm900_vm13 = vcmp.gt.f32.partialorder %v761_v49, 0.0  ;;  %v964_v54 = vmul.f32 0.1, %v761_v49  ;;  %v765_v55 = vadd.f32 %v764_v53, %v11003_v47  ;;  %2472 = vmatprep.mubr.bf16.mxu0 %v1211_v48  ;;  %v10482_v53 = vld [vmem:[%s14339_s3 + $0x108] sm:$0xff]  }
 0x11e   : > { %vm901_vm14 = vcmp.gt.f32.partialorder %v763_v52, 0.0  ;;  %v965_v56 = vmul.f32 0.1, %v763_v52  ;;  %v11045_v59 = vsel %vm899_vm12, %v759_v43, %v963_v51  ;;  %v10492_v43 = vld [vmem:[%s14339_s3 + $0x180] sm:$0xff]  }
 0x11f   : > { %v1028_v57 = vsel %vm900_vm13, %v761_v49, %v964_v54  ;;  %vm902_vm15 = vcmp.gt.f32.partialorder %v765_v55, 0.0  ;;  %v966_v58 = vmul.f32 0.1, %v765_v55  ;;  %14396 = vst [vmem:[#allocation11_spill] sm:$0xff] %v11045_v59  ;;  %v1118_v4 = vld [vmem:[#allocation2 + $0x48] sm:$0xff] }
 0x120   : > { %1086 = vst [vmem:[#allocation2 + $0x61] sm:$0xff] %v1028_v57  ;;  %v11047_v60 = vsel %vm901_vm14, %v763_v52, %v965_v56 }
 0x121   : > { %14397 = vst [vmem:[#allocation12_spill] sm:$0xff] %v11047_v60  ;;  %v1030_v1 = vsel %vm902_vm15, %v765_v55, %v966_v58  ;;  %v768_v3 = vpop.f32.mrb[16].mxu0  ;;  %v1119_v5 = vld [vmem:[#allocation2 + $0x50] sm:$0xff]  ;;  %v1242_v58 = vld [vmem:[#allocation2 + $0x1a] sm:$0xff] }
 0x122   : > { %1087 = vst [vmem:[#allocation2 + $0x69] sm:$0xff] %v1030_v1  ;;  %v769_v6 = vadd.f32 %v768_v3, %v11001_v46  ;;  %v770_v7 = vpop.f32.mrb[17].mxu0  ;;  %v11052_v8 = vpack.c.bf16 %v1119_v5, %v1118_v4  ;;  %v1212_v9 = vpack.c.bf16 %v1030_v1, %v1028_v57  ;;  %v10483_v55 = vld [vmem:[%s14339_s3 + $0x150] sm:$0xff]   ;;  %v1243_v1 = vld [vmem:[#allocation2 + $0x22] sm:$0xff] }
 0x123   : > { %v771_v10 = vadd.f32 %v770_v7, %v11003_v47  ;;  %v772_v11 = vpop.f32.mrb[18].mxu0 }
 0x124   : > { %v967_v12 = vmul.f32 0.1, %v769_v6  ;;  %v773_v13 = vadd.f32 %v772_v11, %v11001_v46  ;;  %v774_v14 = vpop.f32.mrb[19].mxu0  ;;  %2473 = vmatmul.mubr.bf16.gmra.mrb[76].mxu0 %v11052_v8  ;;  %2480 = vmatprep.mubr.bf16.mxu1 %v1212_v9  ;;  %vm903_vm0 = vcmp.gt.f32.partialorder %v769_v6, 0.0 }
 0x125   : > { %vm904_vm1 = vcmp.gt.f32.partialorder %v771_v10, 0.0  ;;  %v968_v15 = vmul.f32 0.1, %v771_v10  ;;  %v775_v19 = vadd.f32 %v774_v14, %v11003_v47  ;;  %2609 = vmatprep.mubr.bf16.mxu0 %v11026_v25  ;;  %v11104_v14 = vpack.c.bf16 %v1243_v1, %v1242_v58  ;;  %v10488_v1 = vld [vmem:[%s14339_s3 + $0x120] sm:$0xff]  }
 0x126   : > { %vm905_vm2 = vcmp.gt.f32.partialorder %v773_v13, 0.0  ;;  %v969_v22 = vmul.f32 0.1, %v773_v13  ;;  %v11059_v26 = vsel %vm903_vm0, %v769_v6, %v967_v12 }
 0x127   : > { %v1032_v23 = vsel %vm904_vm1, %v771_v10, %v968_v15  ;;  %vm906_vm3 = vcmp.gt.f32.partialorder %v775_v19, 0.0  ;;  %v970_v24 = vmul.f32 0.1, %v775_v19  ;;  %14398 = vst [vmem:[#allocation13_spill] sm:$0xff] %v11059_v26  ;;  %v1120_v31 = vld [vmem:[#allocation2 + $0x60] sm:$0xff] }
 0x128   : > { %1088 = vst [vmem:[#allocation2 + $0x79] sm:$0xff] %v1032_v23  ;;  %v11061_v2 = vsel %vm905_vm2, %v773_v13, %v969_v22 }
 0x129   : > { %14399 = vst [vmem:[#allocation14_spill] sm:$0xff] %v11061_v2  ;;  %v1034_v29 = vsel %vm906_vm3, %v775_v19, %v970_v24  ;;  %v778_v30 = vpop.f32.mrb[20].mxu0  ;;  %v1121_v25 = vld [vmem:[#allocation2 + $0x68] sm:$0xff]  ;;  %v10484_v19 = vld [vmem:[%s14339_s3 + $0x110] sm:$0xff]  }
 0x12a   : > { %1089 = vst [vmem:[#allocation2 + $0x81] sm:$0xff] %v1034_v29  ;;  %v779_v33 = vadd.f32 %v778_v30, %v11001_v46  ;;  %v780_v34 = vpop.f32.mrb[21].mxu0  ;;  %v11069_v35 = vpack.c.bf16 %v1121_v25, %v1120_v31  ;;  %v1213_v39 = vpack.c.bf16 %v1034_v29, %v1032_v23  ;;  %v10485_v23 = vld [vmem:[%s14339_s3 + $0x158] sm:$0xff]   ;;  %v10500_v24 = vld [vmem:[%s14339_s3 + $0x190] sm:$0xff]  }
 0x12b   : > { %v781_v41 = vadd.f32 %v780_v34, %v11003_v47  ;;  %v782_v42 = vpop.f32.mrb[22].mxu0  ;;  %v10502_v31 = vld [vmem:[%s14339_s3 + $0x1d8] sm:$0xff]  }
 0x12c   : > { %v971_v44 = vmul.f32 0.1, %v779_v33  ;;  %v783_v48 = vadd.f32 %v782_v42, %v11001_v46  ;;  %v784_v49 = vpop.f32.mrb[23].mxu0  ;;  %2481 = vmatmul.mubr.bf16.vlgmr.msra.gmra.mrb[0].mxu1 %v11069_v35  ;;  %2610 = vmatmul.mubr.bf16.vlgmr.msra.gmra.mrb[80].mxu0 %v1272_v27  ;;  %vm907_vm4 = vcmp.gt.f32.partialorder %v779_v33, 0.0  ;;  %v10486_v34 = vld [vmem:[%s14339_s3 + $0x118] sm:$0xff]  }
 0x12d   : > { %vm908_vm5 = vcmp.gt.f32.partialorder %v781_v41, 0.0  ;;  %v972_v51 = vmul.f32 0.1, %v781_v41  ;;  %v785_v52 = vadd.f32 %v784_v49, %v11003_v47  ;;  %9173 = vmatpush3.bf16.msra.mxu1 %v10480_v32  ;;  %2617 = vmatprep.mubr.bf16.mxu0 %v11039_v45  ;;  %v10496_v45 = vld [vmem:[%s14339_s3 + $0x188] sm:$0xff]   ;;  %v1244_v42 = vld [vmem:[#allocation2 + $0x32] sm:$0xff] }
 0x12e   : > { %vm909_vm6 = vcmp.gt.f32.partialorder %v783_v48, 0.0  ;;  %v973_v54 = vmul.f32 0.1, %v783_v48  ;;  %2488 = vmatprep.mubr.bf16.mxu1 %v1213_v39  ;;  %9174 = vmatprep.subr.bf16.mxu1 %v10481_v40  ;;  %v11095_v3 = vsel %vm907_vm4, %v779_v33, %v971_v44  ;;  %v10487_v39 = vld [vmem:[%s14339_s3 + $0x160] sm:$0xff]  }
 0x12f   : > { %v1036_v56 = vsel %vm908_vm5, %v781_v41, %v972_v51  ;;  %vm910_vm7 = vcmp.gt.f32.partialorder %v785_v52, 0.0  ;;  %v974_v57 = vmul.f32 0.1, %v785_v52  ;;  %9285 = vmatpush3.bf16.msra.mxu0 %v10492_v43  ;;  %14400 = vst [vmem:[#allocation15_spill] sm:$0xff] %v11095_v3  ;;  %v1122_v9 = vld [vmem:[#allocation2 + $0x78] sm:$0xff] }
 0x130   : > { %1090 = vst [vmem:[#allocation2 + $0x91] sm:$0xff] %v1036_v56  ;;  %v11097_v4 = vsel %vm909_vm6, %v783_v48, %v973_v54  ;;  %9286 = vmatprep.subr.bf16.mxu0 %v10495_v50  ;;  %v1245_v43 = vld [vmem:[#allocation2 + $0x3a] sm:$0xff] }
 0x131   : > { %14401 = vst [vmem:[#allocation16_spill] sm:$0xff] %v11097_v4  ;;  %v1038_v6 = vsel %vm910_vm7, %v785_v52, %v974_v57  ;;  %v788_v7 = vpop.f32.mrb[24].mxu0  ;;  %v1123_v10 = vld [vmem:[#allocation2 + $0x80] sm:$0xff]  ;;  %9175 = vmatpush3.bf16.msra.mxu1 %v10482_v53  ;;  %v11147_v57 = vpack.c.bf16 %v1245_v43, %v1244_v42 }
 0x132   : > { %1091 = vst [vmem:[#allocation2 + $0x99] sm:$0xff] %v1038_v6  ;;  %v789_v11 = vadd.f32 %v788_v7, %v11001_v46  ;;  %v790_v12 = vpop.f32.mrb[25].mxu0  ;;  %v11102_v13 = vpack.c.bf16 %v1123_v10, %v1122_v9  ;;  %v1214_v15 = vpack.c.bf16 %v1038_v6, %v1036_v56  ;;  %9176 = vmatprep.subr.bf16.mxu1 %v10483_v55  ;;  %v10489_v9 = vld [vmem:[%s14339_s3 + $0x168] sm:$0xff]   ;;  %v10506_v10 = vld [vmem:[%s14339_s3 + $0x1a0] sm:$0xff]  }
 0x133   : > { %v791_v21 = vadd.f32 %v790_v12, %v11003_v47  ;;  %v792_v22 = vpop.f32.mrb[26].mxu0  ;;  %9287 = vmatpush3.bf16.msra.mxu0 %v10496_v45  ;;  %v10505_v45 = vld [vmem:[%s14339_s3 + $0x1e0] sm:$0xff]  }
 0x134   : > { %v975_v27 = vmul.f32 0.1, %v789_v11  ;;  %v793_v29 = vadd.f32 %v792_v22, %v11001_v46  ;;  %v794_v30 = vpop.f32.mrb[27].mxu0  ;;  %2489 = vmatmul.mubr.bf16.gmra.mrb[4].mxu1 %v11102_v13  ;;  %2618 = vmatmul.mubr.bf16.gmra.mrb[84].mxu0 %v11104_v14  ;;  %vm911_vm8 = vcmp.gt.f32.partialorder %v789_v11, 0.0 }
 0x135   : > { %vm912_vm9 = vcmp.gt.f32.partialorder %v791_v21, 0.0  ;;  %v976_v25 = vmul.f32 0.1, %v791_v21  ;;  %v795_v32 = vadd.f32 %v794_v30, %v11003_v47  ;;  %2625 = vmatprep.mubr.bf16.mxu0 %v11052_v8  ;;  %2496 = vmatprep.mubr.bf16.mxu1 %v1214_v15  ;;  %v10503_v8 = vld [vmem:[%s14339_s3 + $0x198] sm:$0xff]   ;;  %v1246_v30 = vld [vmem:[#allocation2 + $0x4a] sm:$0xff] }
 0x136   : > { %vm913_vm10 = vcmp.gt.f32.partialorder %v793_v29, 0.0  ;;  %v977_v33 = vmul.f32 0.1, %v793_v29  ;;  %9177 = vmatpush3.bf16.msra.mxu1 %v10484_v19  ;;  %9288 = vmatprep.subr.bf16.mxu0 %v10499_v20  ;;  %v11137_v44 = vsel %vm911_vm8, %v789_v11, %v975_v27  ;;  %v10507_v19 = vld [vmem:[%s14339_s3 + $0x1e8] sm:$0xff]  }
 0x137   : > { %v1040_v40 = vsel %vm912_vm9, %v791_v21, %v976_v25  ;;  %vm914_vm11 = vcmp.gt.f32.partialorder %v795_v32, 0.0  ;;  %v978_v41 = vmul.f32 0.1, %v795_v32  ;;  %9178 = vmatprep.subr.bf16.mxu1 %v10485_v23  ;;  %9289 = vmatpush3.bf16.msra.mxu0 %v10500_v24  ;;  %14402 = vst [vmem:[#allocation17_spill] sm:$0xff] %v11137_v44  ;;  %v1124_v52 = vld [vmem:[#allocation2 + $0x90] sm:$0xff]  ;;  %v10490_v23 = vld [vmem:[%s14339_s3 + $0x128] sm:$0xff]  }
 0x138   : > { %1092 = vst [vmem:[#allocation2 + $0xa9] sm:$0xff] %v1040_v40  ;;  %v11140_v48 = vsel %vm913_vm10, %v793_v29, %v977_v33  ;;  %9290 = vmatprep.subr.bf16.mxu0 %v10502_v31  ;;  %v10493_v24 = vld [vmem:[%s14339_s3 + $0x170] sm:$0xff]  }
 0x139   : > { %14403 = vst [vmem:[#allocation18_spill] sm:$0xff] %v11140_v48  ;;  %v1042_v50 = vsel %vm914_vm11, %v795_v32, %v978_v41  ;;  %v798_v51 = vpop.f32.mrb[28].mxu0  ;;  %v1125_v53 = vld [vmem:[#allocation2 + $0x98] sm:$0xff] }
 0x13a   : > { %1093 = vst [vmem:[#allocation2 + $0xb1] sm:$0xff] %v1042_v50  ;;  %v799_v54 = vadd.f32 %v798_v51, %v11001_v46  ;;  %v800_v55 = vpop.f32.mrb[29].mxu0  ;;  %v11145_v56 = vpack.c.bf16 %v1125_v53, %v1124_v52  ;;  %v1215_v58 = vpack.c.bf16 %v1042_v50, %v1040_v40  ;;  %9179 = vmatpush3.bf16.msra.mxu1 %v10486_v34  ;;  %v1247_v31 = vld [vmem:[#allocation2 + $0x52] sm:$0xff] }
 0x13b   : > { %v801_v6 = vadd.f32 %v800_v55, %v11003_v47  ;;  %v802_v7 = vpop.f32.mrb[30].mxu0  ;;  %9180 = vmatprep.subr.bf16.mxu1 %v10487_v39  ;;  %9291 = vmatpush3.bf16.msra.mxu0 %v10503_v8  ;;  %v11190_v50 = vpack.c.bf16 %v1247_v31, %v1246_v30  ;;  %v10494_v52 = vld [vmem:[%s14339_s3 + $0x130] sm:$0xff]  }
 0x13c   : > { %v979_v11 = vmul.f32 0.1, %v799_v54  ;;  %v803_v12 = vadd.f32 %v802_v7, %v11001_v46  ;;  %v804_v15 = vpop.f32.mrb[31].mxu0  ;;  %2497 = vmatmul.mubr.bf16.gmra.mrb[8].mxu1 %v11145_v56  ;;  %2626 = vmatmul.mubr.bf16.gmra.mrb[88].mxu0 %v11147_v57  ;;  %vm915_vm12 = vcmp.gt.f32.partialorder %v799_v54, 0.0  ;;  %v10509_v53 = vld [vmem:[%s14339_s3 + $0x1f0] sm:$0xff]  }
 0x13d   : > { %vm916_vm13 = vcmp.gt.f32.partialorder %v801_v6, 0.0  ;;  %v980_v20 = vmul.f32 0.1, %v801_v6  ;;  %v805_v21 = vadd.f32 %v804_v15, %v11003_v47  ;;  %2633 = vmatprep.mubr.bf16.mxu0 %v11069_v35  ;;  %2504 = vmatprep.mubr.bf16.mxu1 %v1215_v58  ;;  %v10508_v35 = vld [vmem:[%s14339_s3 + $0x1a8] sm:$0xff]   ;;  %v10497_v58 = vld [vmem:[%s14339_s3 + $0x178] sm:$0xff]  }
 0x13e   : > { %vm917_vm14 = vcmp.gt.f32.partialorder %v803_v12, 0.0  ;;  %v981_v22 = vmul.f32 0.1, %v803_v12  ;;  %9181 = vmatpush3.bf16.msra.mxu1 %v10488_v1  ;;  %9292 = vmatprep.subr.bf16.mxu0 %v10505_v45  ;;  %v11180_v25 = vsel %vm915_vm12, %v799_v54, %v979_v11  ;;  %v10510_v1 = vld [vmem:[%s14339_s3 + $0x1b0] sm:$0xff]   ;;  %v10498_v15 = vld [vmem:[%s14339_s3 + $0x138] sm:$0xff]  }
 0x13f   : > { %v1044_v27 = vsel %vm916_vm13, %v801_v6, %v980_v20  ;;  %vm918_vm15 = vcmp.gt.f32.partialorder %v805_v21, 0.0  ;;  %v982_v29 = vmul.f32 0.1, %v805_v21  ;;  %9182 = vmatprep.subr.bf16.mxu1 %v10489_v9  ;;  %9293 = vmatpush3.bf16.msra.mxu0 %v10506_v10  ;;  %14404 = vst [vmem:[#allocation19_spill] sm:$0xff] %v11180_v25  ;;  %v1126_v40 = vld [vmem:[#allocation2 + $0xa8] sm:$0xff]  ;;  %v10511_v9 = vld [vmem:[%s14339_s3 + $0x1f8] sm:$0xff]  }
 0x140   : > { %1094 = vst [vmem:[#allocation2 + $0xc1] sm:$0xff] %v1044_v27  ;;  %v11183_v32 = vsel %vm917_vm14, %v803_v12, %v981_v22  ;;  %9294 = vmatprep.subr.bf16.mxu0 %v10507_v19  ;;  %v11219_v19 = vld [vmem:[%s14339_s3 + $0x200] sm:$0xff]  }
 0x141   : > { %14405 = vst [vmem:[#allocation20_spill] sm:$0xff] %v11183_v32  ;;  %v1046_v34 = vsel %vm918_vm15, %v805_v21, %v982_v29  ;;  %v808_v39 = vpop.f32.mrb[32].mxu0  ;;  %v1127_v41 = vld [vmem:[#allocation2 + $0xb0] sm:$0xff]  ;;  %v1248_v22 = vld [vmem:[#allocation2 + $0x62] sm:$0xff] }
 0x142   : > { %1095 = vst [vmem:[#allocation2 + $0xc9] sm:$0xff] %v1046_v34  ;;  %v809_v42 = vadd.f32 %v808_v39, %v11001_v46  ;;  %v810_v43 = vpop.f32.mrb[33].mxu0  ;;  %v11188_v8 = vpack.c.bf16 %v1127_v41, %v1126_v40  ;;  %v1216_v51 = vpack.c.bf16 %v1046_v34, %v1044_v27  ;;  %9183 = vmatpush3.bf16.msra.mxu1 %v10490_v23  ;;  %v1249_v23 = vld [vmem:[#allocation2 + $0x6a] sm:$0xff] }
 0x143   : > { %v811_v54 = vadd.f32 %v810_v43, %v11003_v47  ;;  %v812_v55 = vpop.f32.mrb[34].mxu0  ;;  %9184 = vmatprep.subr.bf16.mxu1 %v10493_v24  ;;  %9295 = vmatpush3.bf16.msra.mxu0 %v10508_v35 }
 0x144   : > { %v983_v45 = vmul.f32 0.1, %v809_v42  ;;  %v813_v6 = vadd.f32 %v812_v55, %v11001_v46  ;;  %v814_v7 = vpop.f32.mrb[35].mxu0  ;;  %2505 = vmatmul.mubr.bf16.gmra.mrb[12].mxu1 %v11188_v8  ;;  %2634 = vmatmul.mubr.bf16.gmra.mrb[92].mxu0 %v11190_v50  ;;  %vm919_vm0 = vcmp.gt.f32.partialorder %v809_v42, 0.0 }
 0x145   : > { %vm920_vm1 = vcmp.gt.f32.partialorder %v811_v54, 0.0  ;;  %v984_v10 = vmul.f32 0.1, %v811_v54  ;;  %v815_v11 = vadd.f32 %v814_v7, %v11003_v47  ;;  %2641 = vmatprep.mubr.bf16.mxu0 %v11102_v13  ;;  %2512 = vmatprep.mubr.bf16.mxu1 %v1216_v51  ;;  %v10512_v13 = vld [vmem:[%s14339_s3 + $0x1b8] sm:$0xff]  }
 0x146   : > { %vm921_vm2 = vcmp.gt.f32.partialorder %v813_v6, 0.0  ;;  %v985_v12 = vmul.f32 0.1, %v813_v6  ;;  %9185 = vmatpush3.bf16.msra.mxu1 %v10494_v52  ;;  %9296 = vmatprep.subr.bf16.mxu0 %v10509_v53  ;;  %v11225_v24 = vsel %vm919_vm0, %v809_v42, %v983_v45  ;;  %v11235_v42 = vpack.c.bf16 %v1249_v23, %v1248_v22 }
 0x147   : > { %v1048_v20 = vsel %vm920_vm1, %v811_v54, %v984_v10  ;;  %vm922_vm3 = vcmp.gt.f32.partialorder %v815_v11, 0.0  ;;  %v986_v21 = vmul.f32 0.1, %v815_v11  ;;  %9186 = vmatprep.subr.bf16.mxu1 %v10497_v58  ;;  %9297 = vmatpush3.bf16.msra.mxu0 %v10510_v1  ;;  %14406 = vst [vmem:[#allocation21_spill] sm:$0xff] %v11225_v24  ;;  %v1128_v35 = vld [vmem:[#allocation2 + $0xc0] sm:$0xff] }
 0x148   : > { %1096 = vst [vmem:[#allocation2 + $0xd9] sm:$0xff] %v1048_v20  ;;  %v11228_v27 = vsel %vm921_vm2, %v813_v6, %v985_v12  ;;  %9298 = vmatprep.subr.bf16.mxu0 %v10511_v9  ;;  %v1250_v9 = vld [vmem:[#allocation2 + $0x7a] sm:$0xff]  ;;  %v1251_v10 = vld [vmem:[#allocation2 + $0x82] sm:$0xff] }
 0x149   : > { %14407 = vst [vmem:[#allocation22_spill] sm:$0xff] %v11228_v27  ;;  %v1050_v30 = vsel %vm922_vm3, %v815_v11, %v986_v21  ;;  %v818_v31 = vpop.f32.mrb[36].mxu0  ;;  %v1129_v34 = vld [vmem:[#allocation2 + $0xc8] sm:$0xff] }
 0x14a   : > { %1097 = vst [vmem:[#allocation2 + $0xe1] sm:$0xff] %v1050_v30  ;;  %v819_v39 = vadd.f32 %v818_v31, %v11001_v46  ;;  %v820_v40 = vpop.f32.mrb[37].mxu0  ;;  %v11233_v41 = vpack.c.bf16 %v1129_v34, %v1128_v35  ;;  %v1217_v43 = vpack.c.bf16 %v1050_v30, %v1048_v20  ;;  %9187 = vmatpush3.bf16.msra.mxu1 %v10498_v15 }
 0x14b   : > { %v821_v51 = vadd.f32 %v820_v40, %v11003_v47  ;;  %v822_v52 = vpop.f32.mrb[38].mxu0  ;;  %10252 = vmatprep.subr.bf16.mxu1 %v11219_v19  ;;  %9299 = vmatpush3.bf16.msra.mxu0 %v10512_v13  ;;  %v11253_v31 = vpack.c.bf16 %v1251_v10, %v1250_v9 }
 0x14c   : > { %v987_v53 = vmul.f32 0.1, %v819_v39  ;;  %v823_v54 = vadd.f32 %v822_v52, %v11001_v46  ;;  %v824_v55 = vpop.f32.mrb[39].mxu0  ;;  %2513 = vmatmul.mubr.bf16.gmra.mrb[16].mxu1 %v11233_v41  ;;  %2642 = vmatmul.mubr.bf16.gmra.mrb[96].mxu0 %v11235_v42  ;;  %vm923_vm4 = vcmp.gt.f32.partialorder %v819_v39, 0.0 }
 0x14d   : > { %vm924_vm5 = vcmp.gt.f32.partialorder %v821_v51, 0.0  ;;  %v988_v58 = vmul.f32 0.1, %v821_v51  ;;  %v825_v1 = vadd.f32 %v824_v55, %v11003_v47  ;;  %2649 = vmatprep.mubr.bf16.mxu0 %v11145_v56  ;;  %2520 = vmatprep.mubr.bf16.mxu1 %v1217_v43 }
 0x14e   : > { %vm925_vm6 = vcmp.gt.f32.partialorder %v823_v54, 0.0  ;;  %v989_v45 = vmul.f32 0.1, %v823_v54  ;;  %v11244_v11 = vsel %vm923_vm4, %v819_v39, %v987_v53 }
 0x14f   : > { %v1052_v6 = vsel %vm924_vm5, %v821_v51, %v988_v58  ;;  %vm926_vm7 = vcmp.gt.f32.partialorder %v825_v1, 0.0  ;;  %v990_v7 = vmul.f32 0.1, %v825_v1  ;;  %14408 = vst [vmem:[#allocation23_spill] sm:$0xff] %v11244_v11  ;;  %v1130_v22 = vld [vmem:[#allocation2 + $0xd8] sm:$0xff] }
 0x150   : > { %1098 = vst [vmem:[#allocation2 + $0xf1] sm:$0xff] %v1052_v6  ;;  %v11246_v12 = vsel %vm925_vm6, %v823_v54, %v989_v45  ;;  %v1253_v45 = vld [vmem:[#allocation2 + $0x9a] sm:$0xff] }
 0x151   : > { %14409 = vst [vmem:[#allocation24_spill] sm:$0xff] %v11246_v12  ;;  %v1054_v20 = vsel %vm926_vm7, %v825_v1, %v990_v7  ;;  %v828_v21 = vpop.f32.mrb[40].mxu0  ;;  %v1131_v56 = vld [vmem:[#allocation2 + $0xe0] sm:$0xff]  ;;  %v1252_v1 = vld [vmem:[#allocation2 + $0x92] sm:$0xff] }
 0x152   : > { %1099 = vst [vmem:[#allocation2 + $0xf9] sm:$0xff] %v1054_v20  ;;  %v829_v23 = vadd.f32 %v828_v21, %v11001_v46  ;;  %v830_v13 = vpop.f32.mrb[41].mxu0  ;;  %v11251_v30 = vpack.c.bf16 %v1131_v56, %v1130_v22  ;;  %v1218_v35 = vpack.c.bf16 %v1054_v20, %v1052_v6 }
 0x153   : > { %v831_v34 = vadd.f32 %v830_v13, %v11003_v47  ;;  %v832_v39 = vpop.f32.mrb[42].mxu0 }
 0x154   : > { %v991_v40 = vmul.f32 0.1, %v829_v23  ;;  %v833_v43 = vadd.f32 %v832_v39, %v11001_v46  ;;  %v834_v51 = vpop.f32.mrb[43].mxu0  ;;  %2521 = vmatmul.mubr.bf16.gmra.mrb[20].mxu1 %v11251_v30  ;;  %2650 = vmatmul.mubr.bf16.gmra.mrb[100].mxu0 %v11253_v31  ;;  %vm927_vm8 = vcmp.gt.f32.partialorder %v829_v23, 0.0 }
 0x155   : > { %vm928_vm9 = vcmp.gt.f32.partialorder %v831_v34, 0.0  ;;  %v992_v52 = vmul.f32 0.1, %v831_v34  ;;  %v835_v53 = vadd.f32 %v834_v51, %v11003_v47  ;;  %2657 = vmatprep.mubr.bf16.mxu0 %v11188_v8  ;;  %2528 = vmatprep.mubr.bf16.mxu1 %v1218_v35  ;;  %v11270_v35 = vpack.c.bf16 %v1253_v45, %v1252_v1  ;;  %v1254_v1 = vld [vmem:[#allocation2 + $0xaa] sm:$0xff]  ;;  %v1255_v45 = vld [vmem:[#allocation2 + $0xb2] sm:$0xff] }
 0x156   : > { %vm929_vm10 = vcmp.gt.f32.partialorder %v833_v43, 0.0  ;;  %v993_v54 = vmul.f32 0.1, %v833_v43  ;;  %v11261_v6 = vsel %vm927_vm8, %v829_v23, %v991_v40 }
 0x157   : > { %v1056_v55 = vsel %vm928_vm9, %v831_v34, %v992_v52  ;;  %vm930_vm11 = vcmp.gt.f32.partialorder %v835_v53, 0.0  ;;  %v994_v58 = vmul.f32 0.1, %v835_v53  ;;  %14410 = vst [vmem:[#allocation25_spill] sm:$0xff] %v11261_v6  ;;  %v1132_v21 = vld [vmem:[#allocation2 + $0xf0] sm:$0xff] }
 0x158   : > { %1100 = vst [vmem:[#allocation2 + $0x109] sm:$0xff] %v1056_v55  ;;  %v11263_v7 = vsel %vm929_vm10, %v833_v43, %v993_v54 }
 0x159   : > { %14411 = vst [vmem:[#allocation26_spill] sm:$0xff] %v11263_v7  ;;  %v1058_v10 = vsel %vm930_vm11, %v835_v53, %v994_v58  ;;  %v838_v20 = vpop.f32.mrb[44].mxu0  ;;  %v1133_v8 = vld [vmem:[#allocation2 + $0xf8] sm:$0xff] }
 0x15a   : > { %1101 = vst [vmem:[#allocation2 + $0x111] sm:$0xff] %v1058_v10  ;;  %v839_v22 = vadd.f32 %v838_v20, %v11001_v46  ;;  %v840_v56 = vpop.f32.mrb[45].mxu0  ;;  %v11268_v13 = vpack.c.bf16 %v1133_v8, %v1132_v21  ;;  %v1219_v23 = vpack.c.bf16 %v1058_v10, %v1056_v55 }
 0x15b   : > { %v841_v34 = vadd.f32 %v840_v56, %v11003_v47  ;;  %v842_v39 = vpop.f32.mrb[46].mxu0 }
 0x15c   : > { %v995_v40 = vmul.f32 0.1, %v839_v22  ;;  %v843_v43 = vadd.f32 %v842_v39, %v11001_v46  ;;  %v844_v51 = vpop.f32.mrb[47].mxu0  ;;  %2529 = vmatmul.mubr.bf16.gmra.mrb[24].mxu1 %v11268_v13  ;;  %2658 = vmatmul.mubr.bf16.gmra.mrb[104].mxu0 %v11270_v35  ;;  %vm931_vm12 = vcmp.gt.f32.partialorder %v839_v22, 0.0 }
 0x15d   : > { %vm932_vm13 = vcmp.gt.f32.partialorder %v841_v34, 0.0  ;;  %v996_v52 = vmul.f32 0.1, %v841_v34  ;;  %v845_v53 = vadd.f32 %v844_v51, %v11003_v47  ;;  %2665 = vmatprep.mubr.bf16.mxu0 %v11233_v41  ;;  %2536 = vmatprep.mubr.bf16.mxu1 %v1219_v23 }
 0x15e   : > { %vm933_vm14 = vcmp.gt.f32.partialorder %v843_v43, 0.0  ;;  %v997_v54 = vmul.f32 0.1, %v843_v43  ;;  %v11278_v10 = vsel %vm931_vm12, %v839_v22, %v995_v40 }
 0x15f   : > { %v1060_v55 = vsel %vm932_vm13, %v841_v34, %v996_v52  ;;  %vm934_vm15 = vcmp.gt.f32.partialorder %v845_v53, 0.0  ;;  %v998_v58 = vmul.f32 0.1, %v845_v53  ;;  %14412 = vst [vmem:[#allocation27_spill] sm:$0xff] %v11278_v10  ;;  %v1134_v39 = vld [vmem:[#allocation2 + $0x108] sm:$0xff]  ;;  %v11287_v52 = vpack.c.bf16 %v1255_v45, %v1254_v1 }
 0x160   : > { %1102 = vst [vmem:[#allocation2 + $0x121] sm:$0xff] %v1060_v55  ;;  %v11280_v20 = vsel %vm933_vm14, %v843_v43, %v997_v54 }
 0x161   : > { %14413 = vst [vmem:[#allocation28_spill] sm:$0xff] %v11280_v20  ;;  %v1062_v8 = vsel %vm934_vm15, %v845_v53, %v998_v58  ;;  %v848_v56 = vpop.f32.mrb[48].mxu0  ;;  %v1135_v41 = vld [vmem:[#allocation2 + $0x110] sm:$0xff] }
 0x162   : > { %1103 = vst [vmem:[#allocation2 + $0x129] sm:$0xff] %v1062_v8  ;;  %v849_v23 = vadd.f32 %v848_v56, %v11001_v46  ;;  %v850_v34 = vpop.f32.mrb[49].mxu0  ;;  %v11285_v51 = vpack.c.bf16 %v1135_v41, %v1134_v39  ;;  %v11289_v22 = vpack.c.bf16 %v1062_v8, %v1060_v55  ;;  %v1256_v8 = vld [vmem:[#allocation2 + $0xc2] sm:$0xff]  ;;  %v1257_v39 = vld [vmem:[#allocation2 + $0xca] sm:$0xff] }
 0x163   : > { %v851_v40 = vadd.f32 %v850_v34, %v11003_v47  ;;  %v852_v43 = vpop.f32.mrb[50].mxu0  ;;  %v11307_v33 = vpack.c.bf16 %v1257_v39, %v1256_v8  ;;  %v1258_v39 = vld [vmem:[#allocation2 + $0xda] sm:$0xff] }
 0x164   : > { %v999_v54 = vmul.f32 0.1, %v849_v23  ;;  %v853_v21 = vadd.f32 %v852_v43, %v11001_v46  ;;  %v854_v53 = vpop.f32.mrb[51].mxu0  ;;  %2537 = vmatmul.mubr.bf16.gmra.mrb[28].mxu1 %v11285_v51  ;;  %2666 = vmatmul.mubr.bf16.gmra.mrb[108].mxu0 %v11287_v52  ;;  %vm935_vm0 = vcmp.gt.f32.partialorder %v849_v23, 0.0 }
 0x165   : > { %vm936_vm1 = vcmp.gt.f32.partialorder %v851_v40, 0.0  ;;  %v1000_v58 = vmul.f32 0.1, %v851_v40  ;;  %v855_v56 = vadd.f32 %v854_v53, %v11003_v47  ;;  %2673 = vmatprep.mubr.bf16.mxu0 %v11251_v30  ;;  %2544 = vmatprep.mubr.bf16.mxu1 %v11289_v22 }
 0x166   : > { %vm937_vm2 = vcmp.gt.f32.partialorder %v853_v21, 0.0  ;;  %v1001_v55 = vmul.f32 0.1, %v853_v21  ;;  %v11298_v41 = vsel %vm935_vm0, %v849_v23, %v999_v54 }
 0x167   : > { %v1064_v1 = vsel %vm936_vm1, %v851_v40, %v1000_v58  ;;  %vm938_vm3 = vcmp.gt.f32.partialorder %v855_v56, 0.0  ;;  %v1002_v45 = vmul.f32 0.1, %v855_v56  ;;  %14414 = vst [vmem:[#allocation29_spill] sm:$0xff] %v11298_v41  ;;  %v1136_v30 = vld [vmem:[#allocation2 + $0x120] sm:$0xff] }
 0x168   : > { %1104 = vst [vmem:[#allocation2 + $0x139] sm:$0xff] %v1064_v1  ;;  %v11300_v34 = vsel %vm937_vm2, %v853_v21, %v1001_v55 }
 0x169   : > { %14415 = vst [vmem:[#allocation30_spill] sm:$0xff] %v11300_v34  ;;  %v1066_v53 = vsel %vm938_vm3, %v855_v56, %v1002_v45  ;;  %v858_v9 = vpop.f32.mrb[52].mxu0  ;;  %v1137_v15 = vld [vmem:[#allocation2 + $0x128] sm:$0xff] }
 0x16a   : > { %1105 = vst [vmem:[#allocation2 + $0x141] sm:$0xff] %v1066_v53  ;;  %v859_v29 = vadd.f32 %v858_v9, %v11001_v46  ;;  %v860_v40 = vpop.f32.mrb[53].mxu0  ;;  %v11305_v58 = vpack.c.bf16 %v1137_v15, %v1136_v30  ;;  %v11309_v23 = vpack.c.bf16 %v1066_v53, %v1064_v1  ;;  %v1259_v53 = vld [vmem:[#allocation2 + $0xe2] sm:$0xff] }
 0x16b   : > { %v861_v21 = vadd.f32 %v860_v40, %v11003_v47  ;;  %v862_v54 = vpop.f32.mrb[54].mxu0  ;;  %v11327_v0 = vpack.c.bf16 %v1259_v53, %v1258_v39  ;;  %v1260_v53 = vld [vmem:[#allocation2 + $0xf2] sm:$0xff] }
 0x16c   : > { %v1003_v55 = vmul.f32 0.1, %v859_v29  ;;  %v863_v43 = vadd.f32 %v862_v54, %v11001_v46  ;;  %v864_v56 = vpop.f32.mrb[55].mxu0  ;;  %2545 = vmatmul.mubr.bf16.gmra.mrb[32].mxu1 %v11305_v58  ;;  %2674 = vmatmul.mubr.bf16.gmra.mrb[112].mxu0 %v11307_v33  ;;  %vm939_vm4 = vcmp.gt.f32.partialorder %v859_v29, 0.0 }
 0x16d   : > { %vm940_vm5 = vcmp.gt.f32.partialorder %v861_v21, 0.0  ;;  %v1004_v9 = vmul.f32 0.1, %v861_v21  ;;  %v865_v15 = vadd.f32 %v864_v56, %v11003_v47  ;;  %2681 = vmatprep.mubr.bf16.mxu0 %v11268_v13  ;;  %2552 = vmatprep.mubr.bf16.mxu1 %v11309_v23 }
 0x16e   : > { %vm941_vm6 = vcmp.gt.f32.partialorder %v863_v43, 0.0  ;;  %v1005_v1 = vmul.f32 0.1, %v863_v43  ;;  %v11318_v30 = vsel %vm939_vm4, %v859_v29, %v1003_v55 }
 0x16f   : > { %v1068_v45 = vsel %vm940_vm5, %v861_v21, %v1004_v9  ;;  %vm942_vm7 = vcmp.gt.f32.partialorder %v865_v15, 0.0  ;;  %v1006_v8 = vmul.f32 0.1, %v865_v15  ;;  %14416 = vst [vmem:[#allocation31_spill] sm:$0xff] %v11318_v30  ;;  %v1138_v13 = vld [vmem:[#allocation2 + $0x138] sm:$0xff] }
 0x170   : > { %1106 = vst [vmem:[#allocation2 + $0x151] sm:$0xff] %v1068_v45  ;;  %v11320_v40 = vsel %vm941_vm6, %v863_v43, %v1005_v1 }
 0x171   : > { %14417 = vst [vmem:[#allocation32_spill] sm:$0xff] %v11320_v40  ;;  %v1070_v56 = vsel %vm942_vm7, %v865_v15, %v1006_v8  ;;  %v868_v49 = vpop.f32.mrb[56].mxu0  ;;  %v1139_v5 = vld [vmem:[#allocation2 + $0x140] sm:$0xff] }
 0x172   : > { %1107 = vst [vmem:[#allocation2 + $0x159] sm:$0xff] %v1070_v56  ;;  %v869_v28 = vadd.f32 %v868_v49, %v11001_v46  ;;  %v870_v21 = vpop.f32.mrb[57].mxu0  ;;  %v11325_v9 = vpack.c.bf16 %v1139_v5, %v1138_v13  ;;  %v11329_v29 = vpack.c.bf16 %v1070_v56, %v1068_v45  ;;  %v1261_v56 = vld [vmem:[#allocation2 + $0xfa] sm:$0xff] }
 0x173   : > { %v871_v43 = vadd.f32 %v870_v21, %v11003_v47  ;;  %v872_v55 = vpop.f32.mrb[58].mxu0 }
 0x174   : > { %v1007_v1 = vmul.f32 0.1, %v869_v28  ;;  %v873_v54 = vadd.f32 %v872_v55, %v11001_v46  ;;  %v874_v15 = vpop.f32.mrb[59].mxu0  ;;  %2553 = vmatmul.mubr.bf16.gmra.mrb[36].mxu1 %v11325_v9  ;;  %2682 = vmatmul.mubr.bf16.gmra.mrb[116].mxu0 %v11327_v0  ;;  %vm943_vm8 = vcmp.gt.f32.partialorder %v869_v28, 0.0 }
 0x175   : > { %vm944_vm9 = vcmp.gt.f32.partialorder %v871_v43, 0.0  ;;  %v1008_v49 = vmul.f32 0.1, %v871_v43  ;;  %v875_v5 = vadd.f32 %v874_v15, %v11003_v47  ;;  %2689 = vmatprep.mubr.bf16.mxu0 %v11285_v51  ;;  %2560 = vmatprep.mubr.bf16.mxu1 %v11329_v29 }
 0x176   : > { %vm945_vm10 = vcmp.gt.f32.partialorder %v873_v54, 0.0  ;;  %v1009_v45 = vmul.f32 0.1, %v873_v54  ;;  %v11338_v13 = vsel %vm943_vm8, %v869_v28, %v1007_v1 }
 0x177   : > { %v1072_v8 = vsel %vm944_vm9, %v871_v43, %v1008_v49  ;;  %vm946_vm11 = vcmp.gt.f32.partialorder %v875_v5, 0.0  ;;  %v1010_v39 = vmul.f32 0.1, %v875_v5  ;;  %14418 = vst [vmem:[#allocation33_spill] sm:$0xff] %v11338_v13  ;;  %v1140_v38 = vld [vmem:[#allocation2 + $0x150] sm:$0xff]  ;;  %v11346_v43 = vpack.c.bf16 %v1261_v56, %v1260_v53 }
 0x178   : > { %1108 = vst [vmem:[#allocation2 + $0x169] sm:$0xff] %v1072_v8  ;;  %v11340_v21 = vsel %vm945_vm10, %v873_v54, %v1009_v45  ;;  %v1262_v56 = vld [vmem:[#allocation2 + $0x10a] sm:$0xff] }
 0x179   : > { %14419 = vst [vmem:[#allocation34_spill] sm:$0xff] %v11340_v21  ;;  %v1074_v15 = vsel %vm946_vm11, %v875_v5, %v1010_v39  ;;  %v1141_v18 = vld [vmem:[#allocation2 + $0x158] sm:$0xff]  ;;  %v878_v63 = vpop.f32.mrb[60].mxu0 }
 0x17a   : > { %1109 = vst [vmem:[#allocation2 + $0x171] sm:$0xff] %v1074_v15  ;;  %v11344_v30 = vpack.c.bf16 %v1141_v18, %v1140_v38  ;;  %v11348_v49 = vpack.c.bf16 %v1074_v15, %v1072_v8  ;;  %v879_v28 = vadd.f32 %v878_v63, %v11001_v46  ;;  %v880_v1 = vpop.f32.mrb[61].mxu0  ;;  %v1263_v15 = vld [vmem:[#allocation2 + $0x112] sm:$0xff] }
 0x17b   : > { %v881_v54 = vadd.f32 %v880_v1, %v11003_v47  ;;  %v882_v45 = vpop.f32.mrb[62].mxu0  ;;  %v1376_v21 = vld [vmem:[#allocation2 + $0x79] sm:$0xff] }
 0x17c   : > { %2561 = vmatmul.mubr.bf16.gmra.mrb[40].mxu1 %v11344_v30  ;;  %2690 = vmatmul.mubr.bf16.gmra.mrb[120].mxu0 %v11346_v43  ;;  %vm947_vm12 = vcmp.gt.f32.partialorder %v879_v28, 0.0  ;;  %v1011_v5 = vmul.f32 0.1, %v879_v28  ;;  %v883_v39 = vadd.f32 %v882_v45, %v11001_v46  ;;  %v884_v18 = vpop.f32.mrb[63].mxu0 }
 0x17d   : > { %2697 = vmatprep.mubr.bf16.mxu0 %v11305_v58  ;;  %2568 = vmatprep.mubr.bf16.mxu1 %v11348_v49  ;;  %vm948_vm13 = vcmp.gt.f32.partialorder %v881_v54, 0.0  ;;  %v1012_v38 = vmul.f32 0.1, %v881_v54  ;;  %v885_v63 = vadd.f32 %v884_v18, %v11003_v47 }
 0x17e   : > { %v11358_v8 = vsel %vm947_vm12, %v879_v28, %v1011_v5  ;;  %vm949_vm14 = vcmp.gt.f32.partialorder %v883_v39, 0.0  ;;  %v1013_v53 = vmul.f32 0.1, %v883_v39  ;;  %v11366_v28 = vpack.c.bf16 %v1263_v15, %v1262_v56  ;;  %v1368_v56 = vld [vmem:[#allocation2 + $0x19] sm:$0xff]  ;;  %v10504_v15 = vld [vmem:[%s14339_s3 + $0x208] sm:$0xff]  }
 0x17f   : > { %14420 = vst [vmem:[#allocation35_spill] sm:$0xff] %v11358_v8  ;;  %v1076_v1 = vsel %vm948_vm13, %v881_v54, %v1012_v38  ;;  %vm950_vm15 = vcmp.gt.f32.partialorder %v885_v63, 0.0  ;;  %v1014_v55 = vmul.f32 0.1, %v885_v63  ;;  %v1142_v45 = vld [vmem:[#allocation2 + $0x168] sm:$0xff]  ;;  %v1378_v8 = vld [vmem:[#allocation2 + $0x91] sm:$0xff] }
 0x180   : > { %1110 = vst [vmem:[#allocation2 + $0x181] sm:$0xff] %v1076_v1  ;;  %v11360_v46 = vsel %vm949_vm14, %v883_v39, %v1013_v53  ;;  %v1369_v53 = vld [vmem:[#allocation2 + $0x21] sm:$0xff] }
 0x181   : > { %14421 = vst [vmem:[#allocation36_spill] sm:$0xff] %v11360_v46  ;;  %v1143_v13 = vld [vmem:[#allocation2 + $0x170] sm:$0xff]  ;;  %v1078_v40 = vsel %vm950_vm15, %v885_v63, %v1014_v55  ;;  %v8964_v41 = vpop.f32.mrb[64].mxu0  ;;  %v1264_v55 = vld [vmem:[#allocation2 + $0x122] sm:$0xff] }
 0x182   : > { %v11364_v47 = vpack.c.bf16 %v1143_v13, %v1142_v45  ;;  %1111 = vst [vmem:[#allocation2 + $0x189] sm:$0xff] %v1078_v40  ;;  %v8965_v5 = vpop.f32.mrb[65].mxu0  ;;  %v11368_v18 = vpack.c.bf16 %v1078_v40, %v1076_v1  ;;  %v1265_v63 = vld [vmem:[#allocation2 + $0x12a] sm:$0xff]  ;;  %v1266_v1 = vld [vmem:[#allocation2 + $0x13a] sm:$0xff]  ;;  %v1267_v45 = vld [vmem:[#allocation2 + $0x142] sm:$0xff] }
 0x183   : > { %v11370_v54 = vadd.f32 %v8965_v5, %v8964_v41  ;;  %v8967_v38 = vpop.f32.mrb[66].mxu0  ;;  %v11378_v40 = vpack.c.bf16 %v1265_v63, %v1264_v55  ;;  %v1400_v41 = vpack.c.bf16 %v1369_v53, %v1368_v56  ;;  %v1371_v5 = vld [vmem:[#allocation2 + $0x39] sm:$0xff]  ;;  %v1499_v46 = vld [vmem:[#allocation2 + $0x48] sm:$0xff] }
 0x184   : > { %2569 = vmatmul.mubr.bf16.gmra.mrb[44].mxu1 %v11364_v47  ;;  %2698 = vmatmul.mubr.bf16.gmra.mrb[124].mxu0 %v11366_v28  ;;  %v8968_v39 = vpop.f32.mrb[67].mxu0  ;;  %v1268_v56 = vld [vmem:[#allocation2 + $0x152] sm:$0xff] }
 0x185   : > { %2705 = vmatprep.mubr.bf16.mxu0 %v11325_v9  ;;  %2770 = vmatprep.mubr.bf16.mxu1 %v11104_v14  ;;  %v11376_v13 = vadd.f32 %v8968_v39, %v8967_v38  ;;  %v10513_v14 = vld [vmem:[%s14339_s3 + $0x210] sm:$0xff]   ;;  %v11390_v39 = vpack.c.bf16 %v1267_v45, %v1266_v1 }
 0x186   : > { %v1370_v38 = vld [vmem:[#allocation2 + $0x31] sm:$0xff]  ;;  %v1372_v1 = vld [vmem:[#allocation2 + $0x49] sm:$0xff] }
 0x187   : > { %v1401_v55 = vpack.c.bf16 %v1371_v5, %v1370_v38  ;;  %v1334_v63 = vld [vmem:[#allocation2 + $0x180] sm:$0xff] }
 0x189   : > { %v1335_v53 = vld [vmem:[#allocation2 + $0x188] sm:$0xff] }
 0x18a   : > { %v11401_v45 = vpack.c.bf16 %v1335_v53, %v1334_v63  ;;  %v1270_v63 = vld [vmem:[#allocation2 + $0x16a] sm:$0xff]  ;;  %v1271_v53 = vld [vmem:[#allocation2 + $0x172] sm:$0xff] }
 0x18c   : > { %2706 = vmatmul.mubr.bf16.gmra.mrb[128].mxu0 %v11378_v40  ;;  %2771 = vmatmul.mubr.bf16.vlgmr.msra.gmra.mrb[48].mxu1 %v1400_v41  ;;  %v1269_v41 = vld [vmem:[#allocation2 + $0x15a] sm:$0xff] }
 0x18d   : > { %10253 = vmatpush3.bf16.msra.mxu1 %v11219_v19  ;;  %2713 = vmatprep.mubr.bf16.mxu0 %v11344_v30  ;;  %v10514_v19 = vld [vmem:[%s14339_s3 + $0x218] sm:$0xff]   ;;  %v11403_v5 = vpack.c.bf16 %v1269_v41, %v1268_v56  ;;  %v11414_v56 = vpack.c.bf16 %v1271_v53, %v1270_v63  ;;  %v1497_v63 = vld [vmem:[#allocation2 + $0x30] sm:$0xff] }
 0x18e   : > { %2778 = vmatprep.mubr.bf16.mxu1 %v11147_v57  ;;  %10254 = vmatprep.subr.bf16.mxu1 %v10504_v15  ;;  %v1373_v57 = vld [vmem:[#allocation2 + $0x51] sm:$0xff] }
 0x18f   : > { %v1402_v38 = vpack.c.bf16 %v1373_v57, %v1372_v1  ;;  %v1374_v57 = vld [vmem:[#allocation2 + $0x61] sm:$0xff]  ;;  %v1498_v1 = vld [vmem:[#allocation2 + $0x38] sm:$0xff] }
 0x191   : > { %10255 = vmatpush3.bf16.msra.mxu1 %v10504_v15  ;;  %v10515_v15 = vld [vmem:[%s14339_s3 + $0x220] sm:$0xff]  }
 0x192   : > { %10256 = vmatprep.subr.bf16.mxu1 %v10513_v14 }
 0x194   : > { %2714 = vmatmul.mubr.bf16.gmra.mrb[132].mxu0 %v11390_v39  ;;  %2779 = vmatmul.mubr.bf16.gmra.mrb[52].mxu1 %v1401_v55 }
 0x195   : > { %2721 = vmatprep.mubr.bf16.mxu0 %v11364_v47  ;;  %2786 = vmatprep.mubr.bf16.mxu1 %v11190_v50  ;;  %v10516_v50 = vld [vmem:[%s14339_s3 + $0x228] sm:$0xff]  }
 0x196   : > { %10257 = vmatpush3.bf16.msra.mxu1 %v10513_v14  ;;  %v1375_v14 = vld [vmem:[#allocation2 + $0x69] sm:$0xff] }
 0x197   : > { %10258 = vmatprep.subr.bf16.mxu1 %v10514_v19  ;;  %v1403_v41 = vpack.c.bf16 %v1375_v14, %v1374_v57  ;;  %v1529_v14 = vpack.c.bf16 %v1498_v1, %v1497_v63  ;;  %v1500_v57 = vld [vmem:[#allocation2 + $0x50] sm:$0xff] }
 0x19a   : > { %10259 = vmatpush3.bf16.msra.mxu1 %v10514_v19  ;;  %v10517_v19 = vld [vmem:[%s14339_s3 + $0x230] sm:$0xff]  }
 0x19b   : > { %10260 = vmatprep.subr.bf16.mxu1 %v10515_v15 }
 0x19c   : > { %2722 = vmatmul.mubr.bf16.gmra.mrb[136].mxu0 %v11403_v5  ;;  %2787 = vmatmul.mubr.bf16.gmra.mrb[56].mxu1 %v1402_v38 }
 0x19d   : > { %2794 = vmatprep.mubr.bf16.mxu1 %v11235_v42  ;;  %2729 = vmatprep.mubr.bf16.mxu0 %v11401_v45  ;;  %v10518_v42 = vld [vmem:[%s14339_s3 + $0x238] sm:$0xff]  }
 0x19e   : > { %10261 = vmatpush3.bf16.msra.mxu1 %v10515_v15  ;;  %v1377_v15 = vld [vmem:[#allocation2 + $0x81] sm:$0xff] }
 0x19f   : > { %10262 = vmatprep.subr.bf16.mxu1 %v10516_v50  ;;  %v1404_v53 = vpack.c.bf16 %v1377_v15, %v1376_v21  ;;  %v1502_v21 = vld [vmem:[#allocation2 + $0x68] sm:$0xff] }
 0x1a0   : > { %v1380_v15 = vld [vmem:[#allocation2 + $0xa9] sm:$0xff] }
 0x1a2   : > { %10263 = vmatpush3.bf16.msra.mxu1 %v10516_v50  ;;  %v1379_v50 = vld [vmem:[#allocation2 + $0x99] sm:$0xff] }
 0x1a3   : > { %10264 = vmatprep.subr.bf16.mxu1 %v10517_v19 }
 0x1a4   : > { %2730 = vmatmul.mubr.bf16.gmra.mrb[140].mxu0 %v11414_v56  ;;  %2795 = vmatmul.mubr.bf16.gmra.mrb[60].mxu1 %v1403_v41 }
 0x1a5   : > { %2802 = vmatprep.mubr.bf16.mxu1 %v11253_v31  ;;  %2931 = vmatprep.mubr.bf16.mxu0 %v1401_v55  ;;  %v1405_v31 = vpack.c.bf16 %v1379_v50, %v1378_v8  ;;  %v1530_v55 = vpack.c.bf16 %v1500_v57, %v1499_v46  ;;  %v1382_v8 = vld [vmem:[#allocation2 + $0xc1] sm:$0xff]  ;;  %v1503_v46 = vld [vmem:[#allocation2 + $0x78] sm:$0xff] }
 0x1a6   : > { %10265 = vmatpush3.bf16.msra.mxu1 %v10517_v19  ;;  %v1381_v19 = vld [vmem:[#allocation2 + $0xb1] sm:$0xff]  ;;  %v1384_v57 = vld [vmem:[#allocation2 + $0xd9] sm:$0xff] }
 0x1a7   : > { %10266 = vmatprep.subr.bf16.mxu1 %v10518_v42  ;;  %v1406_v1 = vpack.c.bf16 %v1381_v19, %v1380_v15  ;;  %v1386_v15 = vld [vmem:[#allocation2 + $0xf1] sm:$0xff] }
 0x1aa   : > { %10267 = vmatpush3.bf16.msra.mxu1 %v10518_v42  ;;  %v1501_v42 = vld [vmem:[#allocation2 + $0x60] sm:$0xff] }
 0x1ab   : > { %v1531_v63 = vpack.c.bf16 %v1502_v21, %v1501_v42  ;;  %v1507_v42 = vld [vmem:[#allocation2 + $0xa8] sm:$0xff] }
 0x1ac   : > { %2803 = vmatmul.mubr.bf16.gmra.mrb[64].mxu1 %v1404_v53  ;;  %2932 = vmatmul.mubr.bf16.vlgmr.msra.gmra.mrb[144].mxu0 %v1529_v14 }
 0x1ad   : > { %2810 = vmatprep.mubr.bf16.mxu1 %v11270_v35  ;;  %2939 = vmatprep.mubr.bf16.mxu0 %v1402_v38  ;;  %v1383_v35 = vld [vmem:[#allocation2 + $0xc9] sm:$0xff]  ;;  %v1504_v38 = vld [vmem:[#allocation2 + $0x80] sm:$0xff] }
 0x1ae   : > { %v1407_v14 = vpack.c.bf16 %v1383_v35, %v1382_v8  ;;  %v1532_v50 = vpack.c.bf16 %v1504_v38, %v1503_v46  ;;  %v1388_v38 = vld [vmem:[#allocation2 + $0x109] sm:$0xff]  ;;  %v1509_v8 = vld [vmem:[#allocation2 + $0xc0] sm:$0xff] }
 0x1b4   : > { %2811 = vmatmul.mubr.bf16.gmra.mrb[68].mxu1 %v1405_v31  ;;  %2940 = vmatmul.mubr.bf16.gmra.mrb[148].mxu0 %v1530_v55  ;;  %v1505_v55 = vld [vmem:[#allocation2 + $0x90] sm:$0xff] }
 0x1b5   : > { %2818 = vmatprep.mubr.bf16.mxu1 %v11287_v52  ;;  %2947 = vmatprep.mubr.bf16.mxu0 %v1403_v41  ;;  %v1385_v52 = vld [vmem:[#allocation2 + $0xe1] sm:$0xff]  ;;  %v1506_v41 = vld [vmem:[#allocation2 + $0x98] sm:$0xff] }
 0x1b6   : > { %v1408_v19 = vpack.c.bf16 %v1385_v52, %v1384_v57  ;;  %v1533_v21 = vpack.c.bf16 %v1506_v41, %v1505_v55 }
 0x1bc   : > { %2819 = vmatmul.mubr.bf16.gmra.mrb[72].mxu1 %v1406_v1  ;;  %2948 = vmatmul.mubr.bf16.gmra.mrb[152].mxu0 %v1531_v63 }
 0x1bd   : > { %2826 = vmatprep.mubr.bf16.mxu1 %v11307_v33  ;;  %2955 = vmatprep.mubr.bf16.mxu0 %v1404_v53  ;;  %v1387_v33 = vld [vmem:[#allocation2 + $0xf9] sm:$0xff]  ;;  %v1508_v53 = vld [vmem:[#allocation2 + $0xb0] sm:$0xff] }
 0x1be   : > { %v1409_v63 = vpack.c.bf16 %v1387_v33, %v1386_v15  ;;  %v1534_v35 = vpack.c.bf16 %v1508_v53, %v1507_v42 }
 0x1c4   : > { %2827 = vmatmul.mubr.bf16.gmra.mrb[76].mxu1 %v1407_v14  ;;  %2956 = vmatmul.mubr.bf16.gmra.mrb[156].mxu0 %v1532_v50 }
 0x1c5   : > { %2834 = vmatprep.mubr.bf16.mxu1 %v11327_v0  ;;  %2963 = vmatprep.mubr.bf16.mxu0 %v1405_v31  ;;  %v1389_v0 = vld [vmem:[#allocation2 + $0x111] sm:$0xff]  ;;  %v1510_v31 = vld [vmem:[#allocation2 + $0xc8] sm:$0xff] }
 0x1c6   : > { %v1410_v46 = vpack.c.bf16 %v1389_v0, %v1388_v38  ;;  %v1535_v50 = vpack.c.bf16 %v1510_v31, %v1509_v8  ;;  %v1462_v8 = vld [vmem:[#allocation2 + $0x182] sm:$0xff] }
 0x1cc   : > { %2835 = vmatmul.mubr.bf16.gmra.mrb[80].mxu1 %v1408_v19  ;;  %2964 = vmatmul.mubr.bf16.gmra.mrb[160].mxu0 %v1533_v21  ;;  %v1513_v21 = vld [vmem:[#allocation2 + $0xf0] sm:$0xff] }
 0x1cd   : > { %2842 = vmatprep.mubr.bf16.mxu1 %v11346_v43  ;;  %2971 = vmatprep.mubr.bf16.mxu0 %v1406_v1  ;;  %v1512_v43 = vld [vmem:[#allocation2 + $0xe0] sm:$0xff]  ;;  %v1511_v1 = vld [vmem:[#allocation2 + $0xd8] sm:$0xff] }
 0x1ce   : > { %v1536_v52 = vpack.c.bf16 %v1512_v43, %v1511_v1 }
 0x1d4   : > { %2843 = vmatmul.mubr.bf16.gmra.mrb[84].mxu1 %v1409_v63  ;;  %2972 = vmatmul.mubr.bf16.gmra.mrb[164].mxu0 %v1534_v35  ;;  %v1581_v35 = vld [vmem:[#allocation2 + $0x121] sm:$0xff] }
 0x1d5   : > { %2850 = vmatprep.mubr.bf16.mxu1 %v11366_v28  ;;  %2979 = vmatprep.mubr.bf16.mxu0 %v1407_v14  ;;  %v1514_v14 = vld [vmem:[#allocation2 + $0xf8] sm:$0xff] }
 0x1d6   : > { %v1537_v53 = vpack.c.bf16 %v1514_v14, %v1513_v21 }
 0x1dc   : > { %2851 = vmatmul.mubr.bf16.gmra.mrb[88].mxu1 %v1410_v46  ;;  %2980 = vmatmul.mubr.bf16.gmra.mrb[168].mxu0 %v1535_v50  ;;  %v1584_v50 = vld [vmem:[#allocation2 + $0x141] sm:$0xff] }
 0x1dd   : > { %2858 = vmatprep.mubr.bf16.mxu1 %v11378_v40  ;;  %2987 = vmatprep.mubr.bf16.mxu0 %v1408_v19  ;;  %v1582_v19 = vld [vmem:[#allocation2 + $0x129] sm:$0xff] }
 0x1de   : > { %v1603_v31 = vpack.c.bf16 %v1582_v19, %v1581_v35 }
 0x1e4   : > { %2859 = vmatmul.mubr.bf16.gmra.mrb[92].mxu1 %v11289_v22  ;;  %2988 = vmatmul.mubr.bf16.gmra.mrb[172].mxu0 %v1536_v52 }
 0x1e5   : > { %2866 = vmatprep.mubr.bf16.mxu1 %v11390_v39  ;;  %2995 = vmatprep.mubr.bf16.mxu0 %v1409_v63 }
 0x1e7   : > { %v8970_v28 = vpop.f32.mrb[68].mxu0 }
 0x1e8   : > { %v8971_v41 = vpop.f32.mrb[69].mxu0 }
 0x1e9   : > { %v11430_v57 = vadd.f32 %v8971_v41, %v8970_v28  ;;  %v8973_v55 = vpop.f32.mrb[70].mxu0  ;;  %v1583_v28 = vld [vmem:[#allocation2 + $0x139] sm:$0xff] }
 0x1ea   : > { %v8974_v33 = vpop.f32.mrb[71].mxu0 }
 0x1eb   : > { %v11432_v40 = vadd.f32 %v8974_v33, %v8973_v55 }
 0x1ec   : > { %2867 = vmatmul.mubr.bf16.gmra.mrb[96].mxu1 %v11309_v23  ;;  %2996 = vmatmul.mubr.bf16.gmra.mrb[176].mxu0 %v1537_v53  ;;  %v1625_v53 = vld [vmem:[#allocation2 + $0x32] sm:$0xff] }
 0x1ed   : > { %2874 = vmatprep.mubr.bf16.mxu1 %v11403_v5  ;;  %3003 = vmatprep.mubr.bf16.mxu0 %v1410_v46  ;;  %v1463_v46 = vld [vmem:[#allocation2 + $0x18a] sm:$0xff] }
 0x1ee   : > { %v11447_v41 = vpack.c.bf16 %v1463_v46, %v1462_v8 }
 0x1ef   : > { %v8976_v22 = vpop.f32.mrb[72].mxu0 }
 0x1f0   : > { %v8977_v39 = vpop.f32.mrb[73].mxu0 }
 0x1f1   : > { %v11436_v15 = vadd.f32 %v8977_v39, %v8976_v22  ;;  %v8979_v42 = vpop.f32.mrb[74].mxu0  ;;  %v1626_v22 = vld [vmem:[#allocation2 + $0x3a] sm:$0xff] }
 0x1f2   : > { %v8980_v63 = vpop.f32.mrb[75].mxu0  ;;  %v1657_v8 = vpack.c.bf16 %v1626_v22, %v1625_v53  ;;  %v1588_v53 = vld [vmem:[#allocation2 + $0x171] sm:$0xff]  ;;  %v1629_v22 = vld [vmem:[#allocation2 + $0x62] sm:$0xff] }
 0x1f3   : > { %v11438_v0 = vadd.f32 %v8980_v63, %v8979_v42 }
 0x1f4   : > { %2875 = vmatmul.mubr.bf16.gmra.mrb[100].mxu1 %v11329_v29  ;;  %3004 = vmatmul.mubr.bf16.gmra.mrb[180].mxu0 %v11285_v51  ;;  %v1604_v29 = vpack.c.bf16 %v1584_v50, %v1583_v28  ;;  %v11455_v51 = vld [vmem:[%s14340_s4] ss:$0 sm:$0xff]  ;;  %v1627_v28 = vld [vmem:[#allocation2 + $0x4a] sm:$0xff] }
 0x1f5   : > { %2882 = vmatprep.mubr.bf16.mxu1 %v11414_v56  ;;  %3011 = vmatprep.mubr.bf16.mxu0 %v1603_v31  ;;  %v2451_v55 = vadd.f32 %v11370_v54, %v11455_v51 }
 0x1f7   : > { %v8982_v23 = vpop.f32.mrb[76].mxu0 }
 0x1f8   : > { %v8983_v38 = vpop.f32.mrb[77].mxu0 }
 0x1f9   : > { %v11443_v43 = vadd.f32 %v8983_v38, %v8982_v23  ;;  %v8985_v1 = vpop.f32.mrb[78].mxu0  ;;  %v1585_v38 = vld [vmem:[#allocation2 + $0x151] sm:$0xff] }
 0x1fa   : > { %v8986_v52 = vpop.f32.mrb[79].mxu0 }
 0x1fb   : > { %v11445_v14 = vadd.f32 %v8986_v52, %v8985_v1 }
 0x1fc   : > { %2883 = vmatmul.mubr.bf16.gmra.mrb[104].mxu1 %v11348_v49  ;;  %3012 = vmatmul.mubr.bf16.gmra.mrb[184].mxu0 %v11305_v58  ;;  %v1586_v49 = vld [vmem:[#allocation2 + $0x159] sm:$0xff]  ;;  %v2454_v58 = vadd.f32 %v11376_v13, %v11455_v51 }
 0x1fd   : > { %2890 = vmatprep.mubr.bf16.mxu1 %v11447_v41  ;;  %3019 = vmatprep.mubr.bf16.mxu0 %v1604_v29  ;;  %v1605_v1 = vpack.c.bf16 %v1586_v49, %v1585_v38  ;;  %v1628_v29 = vld [vmem:[#allocation2 + $0x52] sm:$0xff]  ;;  %v2459_v49 = vadd.f32 %v11430_v57, %v11455_v51 }
 0x1ff   : > { %v8988_v21 = vpop.f32.mrb[0].mxu1  ;;  %v9076_v33 = vpop.f32.mrb[80].mxu0 }
 0x200   : > { %v8989_v39 = vpop.f32.mrb[1].mxu1  ;;  %v9077_v19 = vpop.f32.mrb[81].mxu0 }
 0x201   : > { %v11461_v42 = vadd.f32 %v8989_v39, %v8988_v21  ;;  %v8991_v63 = vpop.f32.mrb[2].mxu1  ;;  %v9078_v35 = vadd.f32 %v9077_v19, %v9076_v33  ;;  %v9079_v31 = vpop.f32.mrb[82].mxu0  ;;  %v1630_v39 = vld [vmem:[#allocation2 + $0x6a] sm:$0xff] }
 0x202   : > { %v8992_v23 = vpop.f32.mrb[3].mxu1  ;;  %v9080_v46 = vpop.f32.mrb[83].mxu0 }
 0x203   : > { %v11463_v54 = vadd.f32 %v8992_v23, %v8991_v63  ;;  %v11465_v50 = vadd.f32 %v9078_v35, %v2451_v55  ;;  %v9081_v52 = vadd.f32 %v9080_v46, %v9079_v31  ;;  %v1587_v23 = vld [vmem:[#allocation2 + $0x169] sm:$0xff] }
 0x204   : > { %2891 = vmatmul.mubr.bf16.gmra.mrb[108].mxu1 %v11368_v18  ;;  %3020 = vmatmul.mubr.bf16.gmra.mrb[188].mxu0 %v11325_v9  ;;  %v1606_v46 = vpack.c.bf16 %v1588_v53, %v1587_v23  ;;  %v1633_v53 = vld [vmem:[#allocation2 + $0x92] sm:$0xff] }
 0x205   : > { %3027 = vmatprep.mubr.bf16.mxu0 %v1605_v1  ;;  %10268 = vmatprep.mubr.bf16.mxu1 %v1657_v8  ;;  %v11469_v13 = vadd.f32 %v9081_v52, %v2454_v58  ;;  %v1658_v8 = vpack.c.bf16 %v1628_v29, %v1627_v28  ;;  %v1659_v1 = vpack.c.bf16 %v1630_v39, %v1629_v22  ;;  %v1632_v29 = vld [vmem:[#allocation2 + $0x82] sm:$0xff]  ;;  %v1634_v22 = vld [vmem:[#allocation2 + $0x9a] sm:$0xff] }
 0x206   : > { %v2462_v52 = vadd.f32 %v11432_v40, %v11455_v51  ;;  %v1661_v23 = vpack.c.bf16 %v1634_v22, %v1633_v53  ;;  %v1638_v53 = vld [vmem:[#allocation2 + $0xca] sm:$0xff] }
 0x207   : > { %v8994_v21 = vpop.f32.mrb[4].mxu1  ;;  %v9082_v33 = vpop.f32.mrb[84].mxu0 }
 0x208   : > { %v8995_v19 = vpop.f32.mrb[5].mxu1  ;;  %v9083_v55 = vpop.f32.mrb[85].mxu0 }
 0x209   : > { %v11473_v63 = vadd.f32 %v8995_v19, %v8994_v21  ;;  %v9084_v35 = vadd.f32 %v9083_v55, %v9082_v33  ;;  %v8997_v9 = vpop.f32.mrb[6].mxu1  ;;  %v9085_v31 = vpop.f32.mrb[86].mxu0  ;;  %v1631_v21 = vld [vmem:[#allocation2 + $0x7a] sm:$0xff]  ;;  %v2467_v19 = vadd.f32 %v11436_v15, %v11455_v51 }
 0x20a   : > { %v8998_v58 = vpop.f32.mrb[7].mxu1  ;;  %v9086_v38 = vpop.f32.mrb[87].mxu0 }
 0x20b   : > { %v11477_v34 = vadd.f32 %v9084_v35, %v2459_v49  ;;  %v11479_v10 = vadd.f32 %v8998_v58, %v8997_v9  ;;  %v9087_v20 = vadd.f32 %v9086_v38, %v9085_v31  ;;  %v1660_v31 = vpack.c.bf16 %v1632_v29, %v1631_v21  ;;  %v1592_v21 = vld [vmem:[#allocation2 + $0x1a1] sm:$0xff]  ;;  %v1636_v29 = vld [vmem:[#allocation2 + $0xb2] sm:$0xff] }
 0x20c   : > { %3028 = vmatmul.mubr.bf16.gmra.mrb[192].mxu0 %v11344_v30  ;;  %10269 = vmatmul.mubr.bf16.vlgmr.msra.gmra.mrb[112].mxu1 %v1658_v8  ;;  %v2470_v58 = vadd.f32 %v11438_v0, %v11455_v51  ;;  %v1637_v0 = vld [vmem:[#allocation2 + $0xc2] sm:$0xff] }
 0x20d   : > { %v11482_v57 = vadd.f32 %v9087_v20, %v2462_v52  ;;  %3035 = vmatprep.mubr.bf16.mxu0 %v1606_v46  ;;  %10272 = vmatprep.mubr.bf16.mxu1 %v1659_v1  ;;  %v1635_v1 = vld [vmem:[#allocation2 + $0xaa] sm:$0xff]  ;;  %v1591_v52 = vld [vmem:[#allocation2 + $0x199] sm:$0xff] }
 0x20f   : > { %v9000_v33 = vpop.f32.mrb[8].mxu1  ;;  %v9088_v28 = vpop.f32.mrb[88].mxu0 }
 0x210   : > { %v9001_v39 = vpop.f32.mrb[9].mxu1  ;;  %v9089_v40 = vpop.f32.mrb[89].mxu0 }
 0x211   : > { %v11486_v55 = vadd.f32 %v9001_v39, %v9000_v33  ;;  %v9090_v49 = vadd.f32 %v9089_v40, %v9088_v28  ;;  %v9003_v30 = vpop.f32.mrb[10].mxu1  ;;  %v9091_v35 = vpop.f32.mrb[90].mxu0  ;;  %v2475_v40 = vadd.f32 %v11443_v43, %v11455_v51 }
 0x212   : > { %v9004_v20 = vpop.f32.mrb[11].mxu1  ;;  %v9092_v9 = vpop.f32.mrb[91].mxu0 }
 0x213   : > { %v11490_v38 = vadd.f32 %v9090_v49, %v2467_v19  ;;  %v11492_v8 = vadd.f32 %v9004_v20, %v9003_v30  ;;  %v9093_v46 = vadd.f32 %v9092_v9, %v9091_v35  ;;  %v1662_v9 = vpack.c.bf16 %v1636_v29, %v1635_v1  ;;  %v1641_v29 = vld [vmem:[#allocation2 + $0xf2] sm:$0xff] }
 0x214   : > { %3036 = vmatmul.mubr.bf16.gmra.mrb[196].mxu0 %v11364_v47  ;;  %10273 = vmatmul.mubr.bf16.gmra.mrb[116].mxu1 %v1660_v31  ;;  %v1663_v31 = vpack.c.bf16 %v1638_v53, %v1637_v0  ;;  %v1642_v0 = vld [vmem:[#allocation2 + $0xfa] sm:$0xff] }
 0x215   : > { %v11495_v15 = vadd.f32 %v9093_v46, %v2470_v58  ;;  %3043 = vmatprep.mubr.bf16.mxu0 %v11368_v18  ;;  %10276 = vmatprep.mubr.bf16.mxu1 %v1661_v23  ;;  %v1608_v18 = vpack.c.bf16 %v1592_v21, %v1591_v52  ;;  %v2478_v23 = vadd.f32 %v11445_v14, %v11455_v51  ;;  %v1527_v52 = vld [vmem:[#allocation2 + $0x198] sm:$0xff] }
 0x216   : > { %v1639_v21 = vld [vmem:[#allocation2 + $0xda] sm:$0xff] }
 0x217   : > { %v9006_v33 = vpop.f32.mrb[12].mxu1  ;;  %v9094_v28 = vpop.f32.mrb[92].mxu0 }
 0x218   : > { %v9007_v22 = vpop.f32.mrb[13].mxu1  ;;  %v9095_v39 = vpop.f32.mrb[93].mxu0 }
 0x219   : > { %v11500_v47 = vadd.f32 %v9007_v22, %v9006_v33  ;;  %v9096_v19 = vadd.f32 %v9095_v39, %v9094_v28  ;;  %v9009_v49 = vpop.f32.mrb[14].mxu1  ;;  %v9097_v30 = vpop.f32.mrb[94].mxu0  ;;  %v1640_v28 = vld [vmem:[#allocation2 + $0xe2] sm:$0xff] }
 0x21a   : > { %v9010_v35 = vpop.f32.mrb[15].mxu1  ;;  %v9098_v20 = vpop.f32.mrb[95].mxu0  ;;  %v10647_v22 = vld [vmem:[#allocation2 + $0x8] sm:$0xff] }
 0x21b   : > { %v11504_v58 = vadd.f32 %v9096_v19, %v2475_v40  ;;  %v11506_v46 = vadd.f32 %v9010_v35, %v9009_v49  ;;  %v9099_v6 = vadd.f32 %v9098_v20, %v9097_v30  ;;  %v1544_v39 = vpack.c.bf16 %v10647_v22, %v1527_v52  ;;  %v1645_v22 = vld [vmem:[#allocation2 + $0x122] sm:$0xff] }
 0x21c   : > { %3044 = vmatmul.mubr.bf16.gmra.mrb[200].mxu0 %v11401_v45  ;;  %10277 = vmatmul.mubr.bf16.gmra.mrb[120].mxu1 %v1662_v9  ;;  %v2483_v40 = vadd.f32 %v11461_v42, %v11455_v51  ;;  %v1664_v35 = vpack.c.bf16 %v1640_v28, %v1639_v21  ;;  %v1665_v20 = vpack.c.bf16 %v1642_v0, %v1641_v29  ;;  %v1646_v21 = vld [vmem:[#allocation2 + $0x12a] sm:$0xff] }
 0x21d   : > { %v11509_v43 = vadd.f32 %v9099_v6, %v2478_v23  ;;  %10280 = vmatprep.mubr.bf16.mxu1 %v1663_v31  ;;  %3051 = vmatprep.mubr.bf16.mxu0 %v1608_v18  ;;  %v2486_v9 = vadd.f32 %v11463_v54, %v11455_v51  ;;  %v2491_v54 = vadd.f32 %v11473_v63, %v11455_v51  ;;  %v10519_v63 = vld [vmem:[%s14341_s5] sm:$0xff]  }
 0x21e   : > { %10300 = vmatprep.subr.bf16.mxu1 %v10519_v63 }
 0x21f   : > { %v9012_v33 = vpop.f32.mrb[16].mxu1  ;;  %v9100_v1 = vpop.f32.mrb[96].mxu0  ;;  %10301 = vmatpush3.bf16.msra.mxu1 %v10519_v63 }
 0x220   : > { %v9013_v14 = vpop.f32.mrb[17].mxu1  ;;  %v9101_v53 = vpop.f32.mrb[97].mxu0 }
 0x221   : > { %v11513_v45 = vadd.f32 %v9013_v14, %v9012_v33  ;;  %v9102_v6 = vadd.f32 %v9101_v53, %v9100_v1  ;;  %v9015_v19 = vpop.f32.mrb[18].mxu1  ;;  %v9103_v49 = vpop.f32.mrb[98].mxu0  ;;  %v1643_v33 = vld [vmem:[#allocation2 + $0x10a] sm:$0xff]  ;;  %v1644_v53 = vld [vmem:[#allocation2 + $0x112] sm:$0xff] }
 0x222   : > { %v9016_v30 = vpop.f32.mrb[19].mxu1  ;;  %v9104_v18 = vpop.f32.mrb[99].mxu0 }
 0x223   : > { %v11517_v31 = vadd.f32 %v9102_v6, %v2483_v40  ;;  %v11519_v23 = vadd.f32 %v9016_v30, %v9015_v19  ;;  %v9105_v52 = vadd.f32 %v9104_v18, %v9103_v49  ;;  %v1666_v30 = vpack.c.bf16 %v1644_v53, %v1643_v33  ;;  %v1647_v53 = vld [vmem:[#allocation2 + $0x13a] sm:$0xff] }
 0x224   : > { %3052 = vmatmul.mubr.bf16.gmra.mrb[204].mxu0 %v1544_v39  ;;  %10281 = vmatmul.mubr.bf16.gmra.mrb[124].mxu1 %v1664_v35  ;;  %v1667_v18 = vpack.c.bf16 %v1646_v21, %v1645_v22  ;;  %v2494_v35 = vadd.f32 %v11479_v10, %v11455_v51  ;;  %v1648_v22 = vld [vmem:[#allocation2 + $0x142] sm:$0xff] }
 0x225   : > { %v11521_v42 = vadd.f32 %v9105_v52, %v2486_v9  ;;  %10284 = vmatprep.mubr.bf16.mxu1 %v1665_v20 }
 0x227   : > { %v9018_v1 = vpop.f32.mrb[20].mxu1  ;;  %v9106_v14 = vpop.f32.mrb[100].mxu0 }
 0x228   : > { %v9019_v28 = vpop.f32.mrb[21].mxu1  ;;  %v9107_v29 = vpop.f32.mrb[101].mxu0 }
 0x229   : > { %v11525_v0 = vadd.f32 %v9019_v28, %v9018_v1  ;;  %v9108_v40 = vadd.f32 %v9107_v29, %v9106_v14  ;;  %v9021_v6 = vpop.f32.mrb[22].mxu1  ;;  %v9109_v39 = vpop.f32.mrb[102].mxu0  ;;  %v2499_v28 = vadd.f32 %v11486_v55, %v11455_v51  ;;  %v10520_v55 = vld [vmem:[%s14341_s5 + $0x8] sm:$0xff]  }
 0x22a   : > { %v9022_v19 = vpop.f32.mrb[23].mxu1  ;;  %v9110_v49 = vpop.f32.mrb[103].mxu0  ;;  %10302 = vmatprep.subr.bf16.mxu1 %v10520_v55 }
 0x22b   : > { %v11529_v20 = vadd.f32 %v9108_v40, %v2491_v54  ;;  %v11531_v9 = vadd.f32 %v9022_v19, %v9021_v6  ;;  %v9111_v52 = vadd.f32 %v9110_v49, %v9109_v39  ;;  %v1668_v49 = vpack.c.bf16 %v1648_v22, %v1647_v53  ;;  %10303 = vmatpush3.bf16.msra.mxu1 %v10520_v55  ;;  %v1656_v55 = vld [vmem:[#allocation2 + $0x1a2] sm:$0xff] }
 0x22c   : > { %10285 = vmatmul.mubr.bf16.gmra.mrb[128].mxu1 %v1666_v30  ;;  %v2502_v30 = vadd.f32 %v11492_v8, %v11455_v51  ;;  %v2507_v22 = vadd.f32 %v11500_v47, %v11455_v51 }
 0x22d   : > { %v11536_v1 = vadd.f32 %v9111_v52, %v2494_v35  ;;  %10288 = vmatprep.mubr.bf16.mxu1 %v1667_v18 }
 0x22f   : > { %v9024_v33 = vpop.f32.mrb[24].mxu1  ;;  %v9112_v14 = vpop.f32.mrb[104].mxu0 }
 0x230   : > { %v9025_v10 = vpop.f32.mrb[25].mxu1  ;;  %v9113_v21 = vpop.f32.mrb[105].mxu0 }
 0x231   : > { %v11540_v29 = vadd.f32 %v9025_v10, %v9024_v33  ;;  %v9114_v54 = vadd.f32 %v9113_v21, %v9112_v14  ;;  %v9027_v40 = vpop.f32.mrb[26].mxu1  ;;  %v9115_v6 = vpop.f32.mrb[106].mxu0 }
 0x232   : > { %v9028_v39 = vpop.f32.mrb[27].mxu1  ;;  %v9116_v19 = vpop.f32.mrb[107].mxu0 }
 0x233   : > { %v11544_v18 = vadd.f32 %v9114_v54, %v2499_v28  ;;  %v11546_v35 = vadd.f32 %v9028_v39, %v9027_v40  ;;  %v9117_v52 = vadd.f32 %v9116_v19, %v9115_v6  ;;  %v2510_v39 = vadd.f32 %v11506_v46, %v11455_v51 }
 0x234   : > { %10289 = vmatmul.mubr.bf16.gmra.mrb[132].mxu1 %v1668_v49 }
 0x235   : > { %v11551_v63 = vadd.f32 %v9117_v52, %v2502_v30  ;;  %10292 = vmatprep.mubr.bf16.mxu1 %v11403_v5  ;;  %v10521_v30 = vld [vmem:[%s14341_s5 + $0x10] sm:$0xff]   ;;  %v1655_v52 = vld [vmem:[#allocation2 + $0x19a] sm:$0xff] }
 0x236   : > { %10304 = vmatprep.subr.bf16.mxu1 %v10521_v30 }
 0x237   : > { %v9030_v33 = vpop.f32.mrb[28].mxu1  ;;  %v9118_v14 = vpop.f32.mrb[108].mxu0  ;;  %10305 = vmatpush3.bf16.msra.mxu1 %v10521_v30 }
 0x238   : > { %v9031_v53 = vpop.f32.mrb[29].mxu1  ;;  %v9119_v8 = vpop.f32.mrb[109].mxu0 }
 0x239   : > { %v11556_v10 = vadd.f32 %v9031_v53, %v9030_v33  ;;  %v9120_v21 = vadd.f32 %v9119_v8, %v9118_v14  ;;  %v9033_v28 = vpop.f32.mrb[30].mxu1  ;;  %v9121_v54 = vpop.f32.mrb[110].mxu0  ;;  %v1672_v8 = vpack.c.bf16 %v1656_v55, %v1655_v52 }
 0x23a   : > { %v9034_v40 = vpop.f32.mrb[31].mxu1  ;;  %v9122_v6 = vpop.f32.mrb[111].mxu0 }
 0x23b   : > { %v11560_v5 = vadd.f32 %v9120_v21, %v2507_v22  ;;  %v11562_v19 = vadd.f32 %v9034_v40, %v9033_v28  ;;  %v9123_v49 = vadd.f32 %v9122_v6, %v9121_v54  ;;  %v2515_v22 = vadd.f32 %v11513_v45, %v11455_v51  ;;  %v10522_v45 = vld [vmem:[%s14341_s5 + $0x18] sm:$0xff]  }
 0x23c   : > { %10293 = vmatmul.mubr.bf16.gmra.mrb[136].mxu1 %v11414_v56  ;;  %10306 = vmatprep.subr.bf16.mxu1 %v10522_v45 }
 0x23d   : > { %v11568_v47 = vadd.f32 %v9123_v49, %v2510_v39  ;;  %10296 = vmatprep.mubr.bf16.mxu1 %v11447_v41  ;;  %v2518_v41 = vadd.f32 %v11519_v23, %v11455_v51  ;;  %10307 = vmatpush3.bf16.msra.mxu1 %v10522_v45  ;;  %v2523_v23 = vadd.f32 %v11525_v0, %v11455_v51  ;;  %v10523_v0 = vld [vmem:[%s14341_s5 + $0x20] sm:$0xff]  }
 0x23e   : > { %10308 = vmatprep.subr.bf16.mxu1 %v10523_v0 }
 0x23f   : > { %v9036_v46 = vpop.f32.mrb[32].mxu1  ;;  %v9124_v33 = vpop.f32.mrb[112].mxu0 }
 0x240   : > { %v9037_v14 = vpop.f32.mrb[33].mxu1  ;;  %v9125_v53 = vpop.f32.mrb[113].mxu0 }
 0x241   : > { %v11573_v21 = vadd.f32 %v9037_v14, %v9036_v46  ;;  %v9126_v28 = vadd.f32 %v9125_v53, %v9124_v33  ;;  %v9039_v56 = vpop.f32.mrb[34].mxu1  ;;  %v9127_v54 = vpop.f32.mrb[114].mxu0  ;;  %10309 = vmatpush3.bf16.msra.mxu1 %v10523_v0 }
 0x242   : > { %v9040_v40 = vpop.f32.mrb[35].mxu1  ;;  %v9128_v6 = vpop.f32.mrb[115].mxu0 }
 0x243   : > { %v11577_v39 = vadd.f32 %v9126_v28, %v2515_v22  ;;  %v11579_v49 = vadd.f32 %v9040_v40, %v9039_v56  ;;  %v9129_v30 = vadd.f32 %v9128_v6, %v9127_v54  ;;  %v2526_v40 = vadd.f32 %v11531_v9, %v11455_v51 }
 0x244   : > { %10297 = vmatmul.mubr.bf16.gmra.mrb[140].mxu1 %v1672_v8  ;;  %v2531_v9 = vadd.f32 %v11540_v29, %v11455_v51  ;;  %v10524_v29 = vld [vmem:[%s14341_s5 + $0x28] sm:$0xff]  }
 0x245   : > { %v11581_v52 = vadd.f32 %v9129_v30, %v2518_v41  ;;  %10310 = vmatprep.subr.bf16.mxu1 %v10524_v29 }
 0x246   : > { %10311 = vmatpush3.bf16.msra.mxu1 %v10524_v29 }
 0x247   : > { %v9042_v55 = vpop.f32.mrb[36].mxu1  ;;  %v9130_v46 = vpop.f32.mrb[116].mxu0 }
 0x248   : > { %v9043_v33 = vpop.f32.mrb[37].mxu1  ;;  %v9131_v14 = vpop.f32.mrb[117].mxu0 }
 0x249   : > { %v11588_v53 = vadd.f32 %v9043_v33, %v9042_v55  ;;  %v9132_v22 = vadd.f32 %v9131_v14, %v9130_v46  ;;  %v9045_v28 = vpop.f32.mrb[38].mxu1  ;;  %v9133_v8 = vpop.f32.mrb[118].mxu0 }
 0x24a   : > { %v9046_v56 = vpop.f32.mrb[39].mxu1  ;;  %v9134_v54 = vpop.f32.mrb[119].mxu0 }
 0x24b   : > { %v11592_v6 = vadd.f32 %v9132_v22, %v2523_v23  ;;  %v11594_v41 = vadd.f32 %v9046_v56, %v9045_v28  ;;  %v9135_v30 = vadd.f32 %v9134_v54, %v9133_v8  ;;  %v2534_v54 = vadd.f32 %v11546_v35, %v11455_v51 }
 0x24c   : > { %v2539_v35 = vadd.f32 %v11556_v10, %v11455_v51  ;;  %v10525_v10 = vld [vmem:[%s14341_s5 + $0x30] sm:$0xff]  }
 0x24d   : > { %v11596_v7 = vadd.f32 %v9135_v30, %v2526_v40  ;;  %10312 = vmatprep.subr.bf16.mxu1 %v10525_v10 }
 0x24e   : > { %10313 = vmatpush3.bf16.msra.mxu1 %v10525_v10 }
 0x24f   : > { %v9048_v45 = vpop.f32.mrb[40].mxu1  ;;  %v9136_v55 = vpop.f32.mrb[120].mxu0 }
 0x250   : > { %v9049_v46 = vpop.f32.mrb[41].mxu1  ;;  %v9137_v33 = vpop.f32.mrb[121].mxu0 }
 0x251   : > { %v11603_v14 = vadd.f32 %v9049_v46, %v9048_v45  ;;  %v9138_v23 = vadd.f32 %v9137_v33, %v9136_v55  ;;  %v9051_v22 = vpop.f32.mrb[42].mxu1  ;;  %v9139_v28 = vpop.f32.mrb[122].mxu0 }
 0x252   : > { %v9052_v8 = vpop.f32.mrb[43].mxu1  ;;  %v9140_v56 = vpop.f32.mrb[123].mxu0 }
 0x253   : > { %v11607_v40 = vadd.f32 %v9138_v23, %v2531_v9  ;;  %v11609_v30 = vadd.f32 %v9052_v8, %v9051_v22  ;;  %v9141_v11 = vadd.f32 %v9140_v56, %v9139_v28  ;;  %v2542_v8 = vadd.f32 %v11562_v19, %v11455_v51 }
 0x254   : > { %v2547_v19 = vadd.f32 %v11573_v21, %v11455_v51 }
 0x255   : > { %v11611_v12 = vadd.f32 %v9141_v11, %v2534_v54 }
 0x257   : > { %v9054_v0 = vpop.f32.mrb[44].mxu1  ;;  %v9142_v45 = vpop.f32.mrb[124].mxu0 }
 0x258   : > { %v9055_v55 = vpop.f32.mrb[45].mxu1  ;;  %v9143_v46 = vpop.f32.mrb[125].mxu0 }
 0x259   : > { %v11618_v33 = vadd.f32 %v9055_v55, %v9054_v0  ;;  %v9144_v9 = vadd.f32 %v9143_v46, %v9142_v45  ;;  %v9057_v23 = vpop.f32.mrb[46].mxu1  ;;  %v9145_v22 = vpop.f32.mrb[126].mxu0 }
 0x25a   : > { %v9058_v11 = vpop.f32.mrb[47].mxu1  ;;  %v9146_v28 = vpop.f32.mrb[127].mxu0 }
 0x25b   : > { %v11622_v56 = vadd.f32 %v9144_v9, %v2539_v35  ;;  %v11624_v54 = vadd.f32 %v9058_v11, %v9057_v23  ;;  %v9147_v24 = vadd.f32 %v9146_v28, %v9145_v22 }
 0x25d   : > { %v11626_v27 = vadd.f32 %v9147_v24, %v2542_v8  ;;  %v2550_v24 = vadd.f32 %v11579_v49, %v11455_v51  ;;  %v10526_v49 = vld [vmem:[%s14341_s5 + $0x38] sm:$0xff]  }
 0x25e   : > { %10314 = vmatprep.subr.bf16.mxu1 %v10526_v49 }
 0x25f   : > { %v9148_v29 = vpop.f32.mrb[128].mxu0  ;;  %v9188_v0 = vpop.f32.mrb[48].mxu1  ;;  %10315 = vmatpush3.bf16.msra.mxu1 %v10526_v49 }
 0x260   : > { %v9149_v45 = vpop.f32.mrb[129].mxu0  ;;  %v9189_v55 = vpop.f32.mrb[49].mxu1 }
 0x261   : > { %v9150_v46 = vadd.f32 %v9149_v45, %v9148_v29  ;;  %v9190_v35 = vadd.f32 %v9189_v55, %v9188_v0  ;;  %v9151_v9 = vpop.f32.mrb[130].mxu0  ;;  %v9191_v23 = vpop.f32.mrb[50].mxu1 }
 0x262   : > { %v9152_v22 = vpop.f32.mrb[131].mxu0  ;;  %v9192_v11 = vpop.f32.mrb[51].mxu1 }
 0x263   : > { %v11635_v28 = vadd.f32 %v9150_v46, %v2547_v19  ;;  %v11638_v8 = vadd.f32 %v9190_v35, %v11465_v50  ;;  %v9153_v25 = vadd.f32 %v9152_v22, %v9151_v9  ;;  %v9193_v32 = vadd.f32 %v9192_v11, %v9191_v23 }
 0x264   : > { %v2555_v19 = vadd.f32 %v11588_v53, %v11455_v51 }
 0x265   : > { %v11640_v10 = vadd.f32 %v9153_v25, %v2550_v24  ;;  %v11643_v21 = vadd.f32 %v9193_v32, %v11469_v13  ;;  %v2558_v25 = vadd.f32 %v11594_v41, %v11455_v51  ;;  %v2563_v41 = vadd.f32 %v11603_v14, %v11455_v51 }
 0x267   : > { %v9154_v29 = vpop.f32.mrb[132].mxu0  ;;  %v9194_v0 = vpop.f32.mrb[52].mxu1 }
 0x268   : > { %v9155_v45 = vpop.f32.mrb[133].mxu0  ;;  %v9195_v55 = vpop.f32.mrb[53].mxu1 }
 0x269   : > { %v9156_v50 = vadd.f32 %v9155_v45, %v9154_v29  ;;  %v9196_v46 = vadd.f32 %v9195_v55, %v9194_v0  ;;  %v9157_v35 = vpop.f32.mrb[134].mxu0  ;;  %v9197_v9 = vpop.f32.mrb[54].mxu1 }
 0x26a   : > { %v9158_v32 = vpop.f32.mrb[135].mxu0  ;;  %v9198_v13 = vpop.f32.mrb[55].mxu1 }
 0x26b   : > { %v11652_v23 = vadd.f32 %v9156_v50, %v2555_v19  ;;  %v11655_v24 = vadd.f32 %v9196_v46, %v11477_v34  ;;  %v9159_v22 = vadd.f32 %v9158_v32, %v9157_v35  ;;  %v9199_v11 = vadd.f32 %v9198_v13, %v9197_v9 }
 0x26c   : > { %v2566_v34 = vadd.f32 %v11609_v30, %v11455_v51  ;;  %v2571_v30 = vadd.f32 %v11618_v33, %v11455_v51 }
 0x26d   : > { %v11657_v44 = vadd.f32 %v9159_v22, %v2558_v25  ;;  %v11660_v53 = vadd.f32 %v9199_v11, %v11482_v57 }
 0x26f   : > { %v9160_v29 = vpop.f32.mrb[136].mxu0  ;;  %v9200_v0 = vpop.f32.mrb[56].mxu1 }
 0x270   : > { %v9161_v45 = vpop.f32.mrb[137].mxu0  ;;  %v9201_v55 = vpop.f32.mrb[57].mxu1 }
 0x271   : > { %v9162_v49 = vadd.f32 %v9161_v45, %v9160_v29  ;;  %v9202_v19 = vadd.f32 %v9201_v55, %v9200_v0  ;;  %v9163_v50 = vpop.f32.mrb[138].mxu0  ;;  %v9203_v48 = vpop.f32.mrb[58].mxu1 }
 0x272   : > { %v9164_v46 = vpop.f32.mrb[139].mxu0  ;;  %v9204_v35 = vpop.f32.mrb[59].mxu1 }
 0x273   : > { %v11666_v9 = vadd.f32 %v9162_v49, %v2563_v41  ;;  %v11669_v57 = vadd.f32 %v9202_v19, %v11490_v38  ;;  %v9165_v25 = vadd.f32 %v9164_v46, %v9163_v50  ;;  %v9205_v32 = vadd.f32 %v9204_v35, %v9203_v48 }
 0x274   : > { %v2574_v38 = vadd.f32 %v11624_v54, %v11455_v51 }
 0x275   : > { %v11671_v13 = vadd.f32 %v9165_v25, %v2566_v34  ;;  %v11674_v14 = vadd.f32 %v9205_v32, %v11495_v15 }
 0x277   : > { %v9166_v22 = vpop.f32.mrb[140].mxu0  ;;  %v9206_v11 = vpop.f32.mrb[60].mxu1 }
 0x278   : > { %v9167_v29 = vpop.f32.mrb[141].mxu0  ;;  %v9207_v0 = vpop.f32.mrb[61].mxu1 }
 0x279   : > { %v9168_v45 = vadd.f32 %v9167_v29, %v9166_v22  ;;  %v9208_v55 = vadd.f32 %v9207_v0, %v9206_v11  ;;  %v9169_v41 = vpop.f32.mrb[142].mxu0  ;;  %v9209_v49 = vpop.f32.mrb[62].mxu1 }
 0x27a   : > { %v9170_v48 = vpop.f32.mrb[143].mxu0  ;;  %v9210_v19 = vpop.f32.mrb[63].mxu1 }
 0x27b   : > { %v11680_v50 = vadd.f32 %v9168_v45, %v2571_v30  ;;  %v11683_v15 = vadd.f32 %v9208_v55, %v11504_v58  ;;  %v9171_v34 = vadd.f32 %v9170_v48, %v9169_v41  ;;  %v9211_v46 = vadd.f32 %v9210_v19, %v9209_v49 }
 0x27d   : > { %v11685_v35 = vadd.f32 %v9171_v34, %v2574_v38  ;;  %v11688_v33 = vadd.f32 %v9211_v46, %v11509_v43 }
 0x27f   : > { %v9212_v25 = vpop.f32.mrb[64].mxu1  ;;  %v9300_v32 = vpop.f32.mrb[144].mxu0 }
 0x280   : > { %v9213_v22 = vpop.f32.mrb[65].mxu1  ;;  %v9301_v11 = vpop.f32.mrb[145].mxu0 }
 0x281   : > { %v9214_v29 = vadd.f32 %v9213_v22, %v9212_v25  ;;  %v9302_v51 = vadd.f32 %v9301_v11, %v9300_v32  ;;  %v9215_v54 = vpop.f32.mrb[66].mxu1  ;;  %v9303_v0 = vpop.f32.mrb[146].mxu0 }
 0x282   : > { %v9216_v30 = vpop.f32.mrb[67].mxu1  ;;  %v9304_v45 = vpop.f32.mrb[147].mxu0 }
 0x283   : > { %v11691_v58 = vadd.f32 %v9214_v29, %v11517_v31  ;;  %v9217_v55 = vadd.f32 %v9216_v30, %v9215_v54  ;;  %v9305_v41 = vadd.f32 %v9304_v45, %v9303_v0  ;;  %v11694_v49 = vadd.f32 %v9302_v51, %v11638_v8 }
 0x285   : > { %v11697_v43 = vadd.f32 %v9217_v55, %v11521_v42  ;;  %v11700_v38 = vadd.f32 %v9305_v41, %v11643_v21 }
 0x287   : > { %v9218_v48 = vpop.f32.mrb[68].mxu1  ;;  %v9306_v19 = vpop.f32.mrb[148].mxu0 }
 0x288   : > { %v9219_v34 = vpop.f32.mrb[69].mxu1  ;;  %v9307_v46 = vpop.f32.mrb[149].mxu0 }
 0x289   : > { %v9220_v25 = vadd.f32 %v9219_v34, %v9218_v48  ;;  %v9308_v32 = vadd.f32 %v9307_v46, %v9306_v19  ;;  %v9221_v22 = vpop.f32.mrb[70].mxu1  ;;  %v9309_v31 = vpop.f32.mrb[150].mxu0 }
 0x28a   : > { %v9222_v11 = vpop.f32.mrb[71].mxu1  ;;  %v9310_v29 = vpop.f32.mrb[151].mxu0 }
 0x28b   : > { %v11703_v54 = vadd.f32 %v9220_v25, %v11529_v20  ;;  %v9223_v8 = vadd.f32 %v9222_v11, %v9221_v22  ;;  %v9311_v51 = vadd.f32 %v9310_v29, %v9309_v31  ;;  %v11706_v42 = vadd.f32 %v9308_v32, %v11655_v24 }
 0x28d   : > { %v11709_v21 = vadd.f32 %v9223_v8, %v11536_v1  ;;  %v11712_v0 = vadd.f32 %v9311_v51, %v11660_v53 }
 0x28f   : > { %v9224_v30 = vpop.f32.mrb[72].mxu1  ;;  %v9312_v45 = vpop.f32.mrb[152].mxu0 }
 0x290   : > { %v9225_v55 = vpop.f32.mrb[73].mxu1  ;;  %v9313_v41 = vpop.f32.mrb[153].mxu0 }
 0x291   : > { %v9226_v48 = vadd.f32 %v9225_v55, %v9224_v30  ;;  %v9314_v19 = vadd.f32 %v9313_v41, %v9312_v45  ;;  %v9227_v34 = vpop.f32.mrb[74].mxu1  ;;  %v9315_v20 = vpop.f32.mrb[154].mxu0 }
 0x292   : > { %v9228_v46 = vpop.f32.mrb[75].mxu1  ;;  %v9316_v25 = vpop.f32.mrb[155].mxu0 }
 0x293   : > { %v11715_v22 = vadd.f32 %v9226_v48, %v11544_v18  ;;  %v9229_v24 = vadd.f32 %v9228_v46, %v9227_v34  ;;  %v9317_v32 = vadd.f32 %v9316_v25, %v9315_v20  ;;  %v11718_v1 = vadd.f32 %v9314_v19, %v11669_v57 }
 0x295   : > { %v11721_v53 = vadd.f32 %v9229_v24, %v11551_v63  ;;  %v11724_v31 = vadd.f32 %v9317_v32, %v11674_v14 }
 0x297   : > { %v9230_v11 = vpop.f32.mrb[76].mxu1  ;;  %v9318_v29 = vpop.f32.mrb[156].mxu0 }
 0x298   : > { %v9231_v8 = vpop.f32.mrb[77].mxu1  ;;  %v9319_v51 = vpop.f32.mrb[157].mxu0 }
 0x299   : > { %v9232_v30 = vadd.f32 %v9231_v8, %v9230_v11  ;;  %v9320_v45 = vadd.f32 %v9319_v51, %v9318_v29  ;;  %v9233_v55 = vpop.f32.mrb[78].mxu1  ;;  %v9321_v18 = vpop.f32.mrb[158].mxu0 }
 0x29a   : > { %v9234_v41 = vpop.f32.mrb[79].mxu1  ;;  %v9322_v48 = vpop.f32.mrb[159].mxu0 }
 0x29b   : > { %v11727_v34 = vadd.f32 %v9232_v30, %v11560_v5  ;;  %v9235_v57 = vadd.f32 %v9234_v41, %v9233_v55  ;;  %v9323_v19 = vadd.f32 %v9322_v48, %v9321_v18  ;;  %v11730_v63 = vadd.f32 %v9320_v45, %v11683_v15  ;;  %v10528_v45 = vld [vmem:[%s14343_s7] sm:$0xff]   ;;  %v10529_v41 = vld [vmem:[%s14343_s7 + $0x48] sm:$0xff]  }
 0x29d   : > { %v11733_v14 = vadd.f32 %v9235_v57, %v11568_v47  ;;  %v11736_v20 = vadd.f32 %v9323_v19, %v11688_v33  ;;  %v10527_v33 = vld [vmem:[%s14343_s7 + $0x40] sm:$0xff]  }
 0x29e   : > { %9444 = vmatprep.subr.bf16.mxu0 %v10527_v33 }
 0x29f   : > { %v9236_v46 = vpop.f32.mrb[80].mxu1  ;;  %v9324_v25 = vpop.f32.mrb[160].mxu0  ;;  %9445 = vmatpush3.bf16.msra.mxu0 %v10528_v45 }
 0x2a0   : > { %v9237_v24 = vpop.f32.mrb[81].mxu1  ;;  %v9325_v32 = vpop.f32.mrb[161].mxu0  ;;  %9446 = vmatprep.subr.bf16.mxu0 %v10529_v41 }
 0x2a1   : > { %v9238_v11 = vadd.f32 %v9237_v24, %v9236_v46  ;;  %v9326_v29 = vadd.f32 %v9325_v32, %v9324_v25  ;;  %v9239_v8 = vpop.f32.mrb[82].mxu1  ;;  %v9327_v5 = vpop.f32.mrb[162].mxu0  ;;  %v10531_v46 = vld [vmem:[%s14343_s7 + $0x50] sm:$0xff]  }
 0x2a2   : > { %v9240_v51 = vpop.f32.mrb[83].mxu1  ;;  %v9328_v30 = vpop.f32.mrb[163].mxu0 }
 0x2a3   : > { %v9241_v55 = vadd.f32 %v9240_v51, %v9239_v8  ;;  %v9329_v18 = vadd.f32 %v9328_v30, %v9327_v5  ;;  %v11739_v15 = vadd.f32 %v9238_v11, %v11577_v39  ;;  %v11742_v47 = vadd.f32 %v9326_v29, %v11691_v58  ;;  %v10530_v58 = vld [vmem:[%s14343_s7 + $0x8] sm:$0xff]   ;;  %v10532_v5 = vld [vmem:[%s14343_s7 + $0x10] sm:$0xff]  }
 0x2a4   : > { %9447 = vmatpush3.bf16.msra.mxu0 %v10530_v58 }
 0x2a5   : > { %v11754_v48 = vadd.f32 %v9241_v55, %v11581_v52  ;;  %v11757_v39 = vadd.f32 %v9329_v18, %v11697_v43  ;;  %9448 = vmatprep.subr.bf16.mxu0 %v10531_v46 }
 0x2a7   : > { %v9242_v57 = vpop.f32.mrb[84].mxu1  ;;  %v9330_v19 = vpop.f32.mrb[164].mxu0 }
 0x2a8   : > { %v9243_v25 = vpop.f32.mrb[85].mxu1  ;;  %v9331_v24 = vpop.f32.mrb[165].mxu0  ;;  %9449 = vmatpush3.bf16.msra.mxu0 %v10532_v5 }
 0x2a9   : > { %v9244_v52 = vadd.f32 %v9243_v25, %v9242_v57  ;;  %v9332_v32 = vadd.f32 %v9331_v24, %v9330_v19  ;;  %v9245_v11 = vpop.f32.mrb[86].mxu1  ;;  %v9333_v43 = vpop.f32.mrb[166].mxu0 }
 0x2aa   : > { %v9246_v29 = vpop.f32.mrb[87].mxu1  ;;  %v9334_v8 = vpop.f32.mrb[167].mxu0 }
 0x2ab   : > { %v9247_v51 = vadd.f32 %v9246_v29, %v9245_v11  ;;  %v9335_v30 = vadd.f32 %v9334_v8, %v9333_v43  ;;  %v11769_v55 = vadd.f32 %v9244_v52, %v11592_v6  ;;  %v11772_v18 = vadd.f32 %v9332_v32, %v11703_v54 }
 0x2ad   : > { %v11775_v33 = vadd.f32 %v9247_v51, %v11596_v7  ;;  %v11778_v45 = vadd.f32 %v9335_v30, %v11709_v21 }
 0x2af   : > { %v9248_v41 = vpop.f32.mrb[88].mxu1  ;;  %v9336_v58 = vpop.f32.mrb[168].mxu0 }
 0x2b0   : > { %v9249_v57 = vpop.f32.mrb[89].mxu1  ;;  %v9337_v19 = vpop.f32.mrb[169].mxu0 }
 0x2b1   : > { %v9250_v25 = vadd.f32 %v9249_v57, %v9248_v41  ;;  %v9338_v24 = vadd.f32 %v9337_v19, %v9336_v58  ;;  %v9251_v11 = vpop.f32.mrb[90].mxu1  ;;  %v9339_v6 = vpop.f32.mrb[170].mxu0 }
 0x2b2   : > { %v9252_v52 = vpop.f32.mrb[91].mxu1  ;;  %v9340_v43 = vpop.f32.mrb[171].mxu0 }
 0x2b3   : > { %v9253_v54 = vadd.f32 %v9252_v52, %v9251_v11  ;;  %v9341_v32 = vadd.f32 %v9340_v43, %v9339_v6  ;;  %v2853_v46 = vadd.f32 %v9250_v25, %v11607_v40  ;;  %v11782_v7 = vadd.f32 %v9338_v24, %v11715_v22 }
 0x2b5   : > { %v11785_v21 = vadd.f32 %v9253_v54, %v11611_v12  ;;  %v11788_v29 = vadd.f32 %v9341_v32, %v11721_v53 }
 0x2b7   : > { %v9254_v8 = vpop.f32.mrb[92].mxu1  ;;  %v9342_v5 = vpop.f32.mrb[172].mxu0 }
 0x2b8   : > { %v9255_v51 = vpop.f32.mrb[93].mxu1  ;;  %v9343_v30 = vpop.f32.mrb[173].mxu0 }
 0x2b9   : > { %v9256_v41 = vadd.f32 %v9255_v51, %v9254_v8  ;;  %v9344_v58 = vadd.f32 %v9343_v30, %v9342_v5  ;;  %v9257_v57 = vpop.f32.mrb[94].mxu1  ;;  %v9345_v19 = vpop.f32.mrb[174].mxu0 }
 0x2ba   : > { %v9258_v11 = vpop.f32.mrb[95].mxu1  ;;  %v9346_v6 = vpop.f32.mrb[175].mxu0 }
 0x2bb   : > { %v9259_v40 = vadd.f32 %v9258_v11, %v9257_v57  ;;  %v9347_v25 = vadd.f32 %v9346_v6, %v9345_v19  ;;  %v2861_v22 = vadd.f32 %v9256_v41, %v11622_v56  ;;  %v11792_v12 = vadd.f32 %v9344_v58, %v11727_v34 }
 0x2bd   : > { %v11795_v53 = vadd.f32 %v9259_v40, %v11626_v27  ;;  %v11798_v24 = vadd.f32 %v9347_v25, %v11733_v14 }
 0x2bf   : > { %v9260_v52 = vpop.f32.mrb[96].mxu1  ;;  %v9348_v43 = vpop.f32.mrb[176].mxu0 }
 0x2c0   : > { %v9261_v54 = vpop.f32.mrb[97].mxu1  ;;  %v9349_v32 = vpop.f32.mrb[177].mxu0 }
 0x2c1   : > { %v9262_v8 = vadd.f32 %v9261_v54, %v9260_v52  ;;  %v9350_v5 = vadd.f32 %v9349_v32, %v9348_v43  ;;  %v9263_v51 = vpop.f32.mrb[98].mxu1  ;;  %v9351_v30 = vpop.f32.mrb[178].mxu0 }
 0x2c2   : > { %v9264_v57 = vpop.f32.mrb[99].mxu1  ;;  %v9352_v19 = vpop.f32.mrb[179].mxu0 }
 0x2c3   : > { %v11801_v56 = vadd.f32 %v9350_v5, %v11739_v15  ;;  %v9265_v34 = vadd.f32 %v9264_v57, %v9263_v51  ;;  %v9353_v41 = vadd.f32 %v9352_v19, %v9351_v30  ;;  %v11804_v27 = vadd.f32 %v9262_v8, %v11635_v28 }
 0x2c5   : > { %v11807_v14 = vadd.f32 %v9353_v41, %v11754_v48  ;;  %v11810_v58 = vadd.f32 %v9265_v34, %v11640_v10 }
 0x2c7   : > { %v9266_v11 = vpop.f32.mrb[100].mxu1  ;;  %v9354_v6 = vpop.f32.mrb[180].mxu0 }
 0x2c8   : > { %v9267_v40 = vpop.f32.mrb[101].mxu1  ;;  %v9355_v25 = vpop.f32.mrb[181].mxu0 }
 0x2c9   : > { %v9268_v52 = vadd.f32 %v9267_v40, %v9266_v11  ;;  %v9356_v43 = vadd.f32 %v9355_v25, %v9354_v6  ;;  %v9269_v54 = vpop.f32.mrb[102].mxu1  ;;  %v9357_v15 = vpop.f32.mrb[182].mxu0 }
 0x2ca   : > { %v9270_v32 = vpop.f32.mrb[103].mxu1  ;;  %v9358_v5 = vpop.f32.mrb[183].mxu0 }
 0x2cb   : > { %v11813_v51 = vadd.f32 %v9356_v43, %v11769_v55  ;;  %v9271_v28 = vadd.f32 %v9270_v32, %v9269_v54  ;;  %v9359_v8 = vadd.f32 %v9358_v5, %v9357_v15  ;;  %v11816_v48 = vadd.f32 %v9268_v52, %v11652_v23 }
 0x2cd   : > { %v11819_v10 = vadd.f32 %v9359_v8, %v11775_v33  ;;  %v11822_v30 = vadd.f32 %v9271_v28, %v11657_v44 }
 0x2cf   : > { %v9272_v57 = vpop.f32.mrb[104].mxu1  ;;  %v9360_v19 = vpop.f32.mrb[184].mxu0 }
 0x2d0   : > { %v9273_v34 = vpop.f32.mrb[105].mxu1  ;;  %v9361_v41 = vpop.f32.mrb[185].mxu0 }
 0x2d1   : > { %v9274_v11 = vadd.f32 %v9273_v34, %v9272_v57  ;;  %v9362_v6 = vadd.f32 %v9361_v41, %v9360_v19  ;;  %v9275_v40 = vpop.f32.mrb[106].mxu1  ;;  %v9363_v55 = vpop.f32.mrb[186].mxu0 }
 0x2d2   : > { %v9276_v25 = vpop.f32.mrb[107].mxu1  ;;  %v9364_v43 = vpop.f32.mrb[187].mxu0 }
 0x2d3   : > { %v11824_v54 = vadd.f32 %v9362_v6, %v2853_v46  ;;  %v9277_v23 = vadd.f32 %v9276_v25, %v9275_v40  ;;  %v9365_v52 = vadd.f32 %v9364_v43, %v9363_v55  ;;  %v11827_v33 = vadd.f32 %v9274_v11, %v11666_v9 }
 0x2d5   : > { %v11830_v44 = vadd.f32 %v9365_v52, %v11785_v21  ;;  %v11833_v15 = vadd.f32 %v9277_v23, %v11671_v13 }
 0x2d7   : > { %v9278_v32 = vpop.f32.mrb[108].mxu1  ;;  %v9366_v5 = vpop.f32.mrb[188].mxu0 }
 0x2d8   : > { %v9279_v28 = vpop.f32.mrb[109].mxu1  ;;  %v9367_v8 = vpop.f32.mrb[189].mxu0 }
 0x2d9   : > { %v9280_v57 = vadd.f32 %v9279_v28, %v9278_v32  ;;  %v9368_v19 = vadd.f32 %v9367_v8, %v9366_v5  ;;  %v9281_v34 = vpop.f32.mrb[110].mxu1  ;;  %v9369_v46 = vpop.f32.mrb[190].mxu0 }
 0x2da   : > { %v9282_v41 = vpop.f32.mrb[111].mxu1  ;;  %v9370_v6 = vpop.f32.mrb[191].mxu0 }
 0x2db   : > { %v11835_v40 = vadd.f32 %v9368_v19, %v2861_v22  ;;  %v9283_v9 = vadd.f32 %v9282_v41, %v9281_v34  ;;  %v9371_v11 = vadd.f32 %v9370_v6, %v9369_v46  ;;  %v11838_v21 = vadd.f32 %v9280_v57, %v11680_v50 }
 0x2dd   : > { %v11841_v13 = vadd.f32 %v9371_v11, %v11795_v53  ;;  %v11844_v55 = vadd.f32 %v9283_v9, %v11685_v35 }
 0x2df   : > { %v9372_v25 = vpop.f32.mrb[192].mxu0  ;;  %v10270_v43 = vpop.f32.mrb[112].mxu1 }
 0x2e0   : > { %v3103_v23 = vadd.f32 %v10270_v43, %v11706_v42  ;;  %v9373_v52 = vpop.f32.mrb[193].mxu0  ;;  %v3094_v32 = vpop.f32.mrb[113].mxu1 }
 0x2e1   : > { %v9374_v5 = vadd.f32 %v9373_v52, %v9372_v25  ;;  %v3095_v22 = vadd.f32 %v3094_v32, %v11694_v49  ;;  %v9375_v28 = vpop.f32.mrb[194].mxu0  ;;  %v10271_v8 = vpop.f32.mrb[114].mxu1 }
 0x2e2   : > { %vm3223_vm0 = vcmp.gt.f32.partialorder %v3103_v23, 0.0  ;;  %v3255_v50 = vmul.f32 0.1, %v3103_v23  ;;  %v3106_v57 = vadd.f32 %v10271_v8, %v11712_v0  ;;  %v9376_v53 = vpop.f32.mrb[195].mxu0  ;;  %v3097_v19 = vpop.f32.mrb[115].mxu1 }
 0x2e3   : > { %v11850_v35 = vadd.f32 %v9374_v5, %v11804_v27  ;;  %v3253_v34 = vmul.f32 0.1, %v3095_v22  ;;  %v9377_v46 = vadd.f32 %v9376_v53, %v9375_v28  ;;  %v3098_v42 = vadd.f32 %v3097_v19, %v11700_v38 }
 0x2e4   : > { %vm3224_vm1 = vcmp.gt.f32.partialorder %v3106_v57, 0.0  ;;  %v3256_v41 = vmul.f32 0.1, %v3106_v57  ;;  %vm3221_vm2 = vcmp.gt.f32.partialorder %v3095_v22, 0.0  ;;  %v3287_v9 = vsel %vm3223_vm0, %v3103_v23, %v3255_v50 }
 0x2e5   : > { %v11854_v49 = vadd.f32 %v9377_v46, %v11810_v58  ;;  %v3254_v6 = vmul.f32 0.1, %v3098_v42  ;;  %vm3222_vm3 = vcmp.gt.f32.partialorder %v3098_v42, 0.0  ;;  %v3285_v52 = vsel %vm3221_vm2, %v3095_v22, %v3253_v34 }
 0x2e6   : > { %v3288_v11 = vsel %vm3224_vm1, %v3106_v57, %v3256_v41 }
 0x2e7   : > { %v3318_v0 = vpack.c.bf16 %v3288_v11, %v3287_v9  ;;  %v9378_v25 = vpop.f32.mrb[196].mxu0  ;;  %v10274_v43 = vpop.f32.mrb[116].mxu1  ;;  %v3286_v27 = vsel %vm3222_vm3, %v3098_v42, %v3254_v6 }
 0x2e8   : > { %v3119_v32 = vadd.f32 %v10274_v43, %v11730_v63  ;;  %v9379_v5 = vpop.f32.mrb[197].mxu0  ;;  %v3110_v28 = vpop.f32.mrb[117].mxu1  ;;  %v3317_v38 = vpack.c.bf16 %v3286_v27, %v3285_v52 }
 0x2e9   : > { %v9380_v8 = vadd.f32 %v9379_v5, %v9378_v25  ;;  %v3111_v53 = vadd.f32 %v3110_v28, %v11718_v1  ;;  %v9381_v19 = vpop.f32.mrb[198].mxu0  ;;  %v10275_v58 = vpop.f32.mrb[118].mxu1 }
 0x2ea   : > { %v3259_v46 = vmul.f32 0.1, %v3119_v32  ;;  %v3122_v3 = vadd.f32 %v10275_v58, %v11736_v20  ;;  %v9382_v23 = vpop.f32.mrb[199].mxu0  ;;  %v3113_v50 = vpop.f32.mrb[119].mxu1  ;;  %10316 = vmatprep.mubr.bf16.mxu1 %v3317_v38  ;;  %vm3227_vm4 = vcmp.gt.f32.partialorder %v3119_v32, 0.0 }
 0x2eb   : > { %v11860_v22 = vadd.f32 %v9380_v8, %v11816_v48  ;;  %v3257_v57 = vmul.f32 0.1, %v3111_v53  ;;  %v9383_v63 = vadd.f32 %v9382_v23, %v9381_v19  ;;  %v3114_v34 = vadd.f32 %v3113_v50, %v11724_v31  ;;  %10317 = vmatmul.mubr.bf16.vlgmr.msra.gmra.mrb[144].mxu1 %v3318_v0 }
 0x2ec   : > { %v3260_v42 = vmul.f32 0.1, %v3122_v3  ;;  %vm3225_vm5 = vcmp.gt.f32.partialorder %v3111_v53, 0.0  ;;  %vm3228_vm6 = vcmp.gt.f32.partialorder %v3122_v3, 0.0  ;;  %v3291_v20 = vsel %vm3227_vm4, %v3119_v32, %v3259_v46 }
 0x2ed   : > { %v11864_v1 = vadd.f32 %v9383_v63, %v11822_v30  ;;  %v3258_v41 = vmul.f32 0.1, %v3114_v34  ;;  %vm3226_vm7 = vcmp.gt.f32.partialorder %v3114_v34, 0.0  ;;  %v3289_v25 = vsel %vm3225_vm5, %v3111_v53, %v3257_v57 }
 0x2ee   : > { %v3292_v6 = vsel %vm3228_vm6, %v3122_v3, %v3260_v42 }
 0x2ef   : > { %v9384_v9 = vpop.f32.mrb[200].mxu0  ;;  %v10278_v11 = vpop.f32.mrb[120].mxu1  ;;  %v3290_v48 = vsel %vm3226_vm7, %v3114_v34, %v3258_v41  ;;  %v3320_v43 = vpack.c.bf16 %v3292_v6, %v3291_v20 }
 0x2f0   : > { %v3135_v52 = vadd.f32 %v10278_v11, %v11772_v18  ;;  %v9385_v27 = vpop.f32.mrb[201].mxu0  ;;  %v3126_v31 = vpop.f32.mrb[121].mxu1  ;;  %v3319_v0 = vpack.c.bf16 %v3290_v48, %v3289_v25 }
 0x2f1   : > { %v9386_v5 = vadd.f32 %v9385_v27, %v9384_v9  ;;  %v3127_v28 = vadd.f32 %v3126_v31, %v11742_v47  ;;  %v9387_v38 = vpop.f32.mrb[202].mxu0  ;;  %v10279_v30 = vpop.f32.mrb[122].mxu1 }
 0x2f2   : > { %v3263_v8 = vmul.f32 0.1, %v3135_v52  ;;  %v3138_v19 = vadd.f32 %v10279_v30, %v11778_v45  ;;  %v9388_v32 = vpop.f32.mrb[203].mxu0  ;;  %v3129_v3 = vpop.f32.mrb[123].mxu1  ;;  %10320 = vmatprep.mubr.bf16.mxu1 %v3319_v0  ;;  %vm3231_vm8 = vcmp.gt.f32.partialorder %v3135_v52, 0.0 }
 0x2f3   : > { %v11870_v53 = vadd.f32 %v9386_v5, %v11827_v33  ;;  %v3261_v58 = vmul.f32 0.1, %v3127_v28  ;;  %v9389_v18 = vadd.f32 %v9388_v32, %v9387_v38  ;;  %v3130_v46 = vadd.f32 %v3129_v3, %v11757_v39  ;;  %10321 = vmatmul.mubr.bf16.gmra.mrb[148].mxu1 %v3320_v43 }
 0x2f4   : > { %v3264_v23 = vmul.f32 0.1, %v3138_v19  ;;  %vm3229_vm9 = vcmp.gt.f32.partialorder %v3127_v28, 0.0  ;;  %vm3232_vm10 = vcmp.gt.f32.partialorder %v3138_v19, 0.0  ;;  %v3295_v45 = vsel %vm3231_vm8, %v3135_v52, %v3263_v8 }
 0x2f5   : > { %v11874_v47 = vadd.f32 %v9389_v18, %v11833_v15  ;;  %v3262_v50 = vmul.f32 0.1, %v3130_v46  ;;  %vm3230_vm11 = vcmp.gt.f32.partialorder %v3130_v46, 0.0  ;;  %v3293_v42 = vsel %vm3229_vm9, %v3127_v28, %v3261_v58 }
 0x2f6   : > { %v3296_v57 = vsel %vm3232_vm10, %v3138_v19, %v3264_v23 }
 0x2f7   : > { %v9390_v63 = vpop.f32.mrb[204].mxu0  ;;  %v10282_v34 = vpop.f32.mrb[124].mxu1  ;;  %v3294_v33 = vsel %vm3230_vm11, %v3130_v46, %v3262_v50  ;;  %v3322_v41 = vpack.c.bf16 %v3296_v57, %v3295_v45 }
 0x2f8   : > { %v3151_v20 = vadd.f32 %v10282_v34, %v11792_v12  ;;  %v9391_v6 = vpop.f32.mrb[205].mxu0  ;;  %v3142_v39 = vpop.f32.mrb[125].mxu1  ;;  %v3321_v9 = vpack.c.bf16 %v3294_v33, %v3293_v42 }
 0x2f9   : > { %v9392_v11 = vadd.f32 %v9391_v6, %v9390_v63  ;;  %v3143_v25 = vadd.f32 %v3142_v39, %v11782_v7  ;;  %v9393_v48 = vpop.f32.mrb[206].mxu0  ;;  %v10283_v15 = vpop.f32.mrb[126].mxu1 }
 0x2fa   : > { %v3267_v43 = vmul.f32 0.1, %v3151_v20  ;;  %v3154_v27 = vadd.f32 %v10283_v15, %v11798_v24  ;;  %v9394_v52 = vpop.f32.mrb[207].mxu0  ;;  %v3145_v31 = vpop.f32.mrb[127].mxu1  ;;  %10324 = vmatprep.mubr.bf16.mxu1 %v3321_v9  ;;  %vm3235_vm12 = vcmp.gt.f32.partialorder %v3151_v20, 0.0 }
 0x2fb   : > { %v11880_v0 = vadd.f32 %v9392_v11, %v11838_v21  ;;  %v3265_v5 = vmul.f32 0.1, %v3143_v25  ;;  %v9395_v12 = vadd.f32 %v9394_v52, %v9393_v48  ;;  %v3146_v28 = vadd.f32 %v3145_v31, %v11788_v29  ;;  %10325 = vmatmul.mubr.bf16.gmra.mrb[152].mxu1 %v3322_v41 }
 0x2fc   : > { %v3268_v38 = vmul.f32 0.1, %v3154_v27  ;;  %vm3233_vm13 = vcmp.gt.f32.partialorder %v3143_v25, 0.0  ;;  %vm3236_vm14 = vcmp.gt.f32.partialorder %v3154_v27, 0.0  ;;  %v3299_v24 = vsel %vm3235_vm12, %v3151_v20, %v3267_v43 }
 0x2fd   : > { %v11884_v7 = vadd.f32 %v9395_v12, %v11844_v55  ;;  %v3266_v30 = vmul.f32 0.1, %v3146_v28  ;;  %vm3234_vm15 = vcmp.gt.f32.partialorder %v3146_v28, 0.0  ;;  %v3297_v32 = vsel %vm3233_vm13, %v3143_v25, %v3265_v5 }
 0x2fe   : > { %v3300_v8 = vsel %vm3236_vm14, %v3154_v27, %v3268_v38 }
 0x2ff   : > { %v10286_v19 = vpop.f32.mrb[128].mxu1  ;;  %v3298_v3 = vsel %vm3234_vm15, %v3146_v28, %v3266_v30  ;;  %v3324_v21 = vpack.c.bf16 %v3300_v8, %v3299_v24 }
 0x300   : > { %v3167_v58 = vadd.f32 %v10286_v19, %v11813_v51  ;;  %v3158_v18 = vpop.f32.mrb[129].mxu1  ;;  %v3323_v46 = vpack.c.bf16 %v3298_v3, %v3297_v32 }
 0x301   : > { %v3159_v29 = vadd.f32 %v3158_v18, %v11801_v56  ;;  %v10287_v23 = vpop.f32.mrb[130].mxu1 }
 0x302   : > { %v3271_v50 = vmul.f32 0.1, %v3167_v58  ;;  %v3170_v45 = vadd.f32 %v10287_v23, %v11819_v10  ;;  %v3161_v55 = vpop.f32.mrb[131].mxu1  ;;  %10328 = vmatprep.mubr.bf16.mxu1 %v3323_v46  ;;  %vm3239_vm0 = vcmp.gt.f32.partialorder %v3167_v58, 0.0 }
 0x303   : > { %v3269_v57 = vmul.f32 0.1, %v3159_v29  ;;  %v3162_v63 = vadd.f32 %v3161_v55, %v11807_v14  ;;  %10329 = vmatmul.mubr.bf16.gmra.mrb[156].mxu1 %v3324_v21  ;;  %vm3237_vm1 = vcmp.gt.f32.partialorder %v3159_v29, 0.0 }
 0x304   : > { %v3272_v34 = vmul.f32 0.1, %v3170_v45  ;;  %vm3240_vm2 = vcmp.gt.f32.partialorder %v3170_v45, 0.0  ;;  %v3303_v51 = vsel %vm3239_vm0, %v3167_v58, %v3271_v50 }
 0x305   : > { %v3270_v42 = vmul.f32 0.1, %v3162_v63  ;;  %vm3238_vm3 = vcmp.gt.f32.partialorder %v3162_v63, 0.0  ;;  %v3301_v56 = vsel %vm3237_vm1, %v3159_v29, %v3269_v57 }
 0x306   : > { %v3304_v33 = vsel %vm3240_vm2, %v3170_v45, %v3272_v34 }
 0x307   : > { %v10290_v41 = vpop.f32.mrb[132].mxu1  ;;  %v3302_v20 = vsel %vm3238_vm3, %v3162_v63, %v3270_v42  ;;  %v3326_v6 = vpack.c.bf16 %v3304_v33, %v3303_v51 }
 0x308   : > { %v3183_v10 = vadd.f32 %v10290_v41, %v11835_v40  ;;  %v3174_v39 = vpop.f32.mrb[133].mxu1  ;;  %v3325_v9 = vpack.c.bf16 %v3302_v20, %v3301_v56 }
 0x309   : > { %v3175_v11 = vadd.f32 %v3174_v39, %v11824_v54  ;;  %v10291_v14 = vpop.f32.mrb[134].mxu1 }
 0x30a   : > { %v3275_v25 = vmul.f32 0.1, %v3183_v10  ;;  %v3186_v48 = vadd.f32 %v10291_v14, %v11841_v13  ;;  %v3177_v15 = vpop.f32.mrb[135].mxu1  ;;  %10332 = vmatprep.mubr.bf16.mxu1 %v3325_v9  ;;  %vm3243_vm4 = vcmp.gt.f32.partialorder %v3183_v10, 0.0  ;;  %v10535_v14 = vld [vmem:[%s14343_s7 + $0x60] sm:$0xff]  }
 0x30b   : > { %v3273_v43 = vmul.f32 0.1, %v3175_v11  ;;  %v3178_v27 = vadd.f32 %v3177_v15, %v11830_v44  ;;  %10333 = vmatmul.mubr.bf16.gmra.mrb[160].mxu1 %v3326_v6  ;;  %vm3241_vm5 = vcmp.gt.f32.partialorder %v3175_v11, 0.0  ;;  %v10540_v15 = vld [vmem:[%s14343_s7 + $0x28] sm:$0xff]  }
 0x30c   : > { %v3276_v52 = vmul.f32 0.1, %v3186_v48  ;;  %vm3244_vm6 = vcmp.gt.f32.partialorder %v3186_v48, 0.0  ;;  %v3307_v40 = vsel %vm3243_vm4, %v3183_v10, %v3275_v25  ;;  %v10536_v25 = vld [vmem:[%s14343_s7 + $0x20] sm:$0xff]  }
 0x30d   : > { %v3274_v31 = vmul.f32 0.1, %v3178_v27  ;;  %vm3242_vm7 = vcmp.gt.f32.partialorder %v3178_v27, 0.0  ;;  %v3305_v54 = vsel %vm3241_vm5, %v3175_v11, %v3273_v43  ;;  %v10534_v11 = vld [vmem:[%s14343_s7 + $0x18] sm:$0xff]   ;;  %v10541_v43 = vld [vmem:[%s14343_s7 + $0x70] sm:$0xff]  }
 0x30e   : > { %v3308_v5 = vsel %vm3244_vm6, %v3186_v48, %v3276_v52  ;;  %v10538_v48 = vld [vmem:[%s14343_s7 + $0x68] sm:$0xff]   ;;  %v10542_v52 = vld [vmem:[%s14343_s7 + $0x30] sm:$0xff]  }
 0x30f   : > { %v10294_v12 = vpop.f32.mrb[136].mxu1  ;;  %v3306_v28 = vsel %vm3242_vm7, %v3178_v27, %v3274_v31  ;;  %v3328_v38 = vpack.c.bf16 %v3308_v5, %v3307_v40  ;;  %v10537_v27 = vld [vmem:[%s14343_s7 + $0xc0] sm:$0xff]   ;;  %v10544_v40 = vld [vmem:[%s14343_s7 + $0x78] sm:$0xff]  }
 0x310   : > { %v3199_v13 = vadd.f32 %v10294_v12, %v11860_v22  ;;  %v3190_v30 = vpop.f32.mrb[137].mxu1  ;;  %v3327_v24 = vpack.c.bf16 %v3306_v28, %v3305_v54  ;;  %v10539_v31 = vld [vmem:[%s14343_s7 + $0x80] sm:$0xff]   ;;  %9556 = vmatprep.subr.bf16.mxu1 %v10537_v27  ;;  %v10546_v5 = vld [vmem:[%s14343_s7 + $0x38] sm:$0xff]   ;;  %v10543_v12 = vld [vmem:[%s14343_s7 + $0xc8] sm:$0xff]  }
 0x311   : > { %v3191_v8 = vadd.f32 %v3190_v30, %v11850_v35  ;;  %v10295_v44 = vpop.f32.mrb[138].mxu1  ;;  %9557 = vmatpush3.bf16.msra.mxu1 %v10539_v31  ;;  %v10545_v54 = vld [vmem:[%s14343_s7 + $0x88] sm:$0xff]   ;;  %v10547_v28 = vld [vmem:[%s14343_s7 + $0xd0] sm:$0xff]   ;;  %v10550_v30 = vld [vmem:[%s14343_s7 + $0x98] sm:$0xff]  }
 0x312   : > { %v3279_v19 = vmul.f32 0.1, %v3199_v13  ;;  %v3202_v32 = vadd.f32 %v10295_v44, %v11864_v1  ;;  %v3193_v3 = vpop.f32.mrb[139].mxu1  ;;  %10336 = vmatprep.mubr.bf16.mxu1 %v3327_v24  ;;  %vm3247_vm8 = vcmp.gt.f32.partialorder %v3199_v13, 0.0  ;;  %9558 = vmatprep.subr.bf16.mxu1 %v10543_v12  ;;  %v10551_v24 = vld [vmem:[%s14343_s7 + $0xe0] sm:$0xff]   ;;  %v10553_v44 = vld [vmem:[%s14343_s7 + $0xe8] sm:$0xff]  }
 0x313   : > { %v3277_v21 = vmul.f32 0.1, %v3191_v8  ;;  %v3194_v58 = vadd.f32 %v3193_v3, %v11854_v49  ;;  %10337 = vmatmul.mubr.bf16.gmra.mrb[164].mxu1 %v3328_v38  ;;  %vm3245_vm9 = vcmp.gt.f32.partialorder %v3191_v8, 0.0  ;;  %v10548_v38 = vld [vmem:[%s14343_s7 + $0x90] sm:$0xff]  }
 0x314   : > { %v3280_v18 = vmul.f32 0.1, %v3202_v32  ;;  %vm3248_vm10 = vcmp.gt.f32.partialorder %v3202_v32, 0.0  ;;  %v3311_v22 = vsel %vm3247_vm8, %v3199_v13, %v3279_v19  ;;  %v10549_v13 = vld [vmem:[%s14343_s7 + $0xd8] sm:$0xff]   ;;  %v10554_v19 = vld [vmem:[%s14343_s7 + $0xa8] sm:$0xff]   ;;  %v10556_v3 = vld [vmem:[%s14343_s7 + $0xb0] sm:$0xff]  }
 0x315   : > { %v3278_v46 = vmul.f32 0.1, %v3194_v58  ;;  %vm3246_vm11 = vcmp.gt.f32.partialorder %v3194_v58, 0.0  ;;  %v3309_v35 = vsel %vm3245_vm9, %v3191_v8, %v3277_v21  ;;  %9559 = vmatpush3.bf16.msra.mxu1 %v10545_v54  ;;  %v10552_v8 = vld [vmem:[%s14343_s7 + $0xa0] sm:$0xff]  }
 0x316   : > { %v3312_v29 = vsel %vm3248_vm10, %v3202_v32, %v3280_v18  ;;  %9560 = vmatprep.subr.bf16.mxu1 %v10547_v28  ;;  %v10555_v32 = vld [vmem:[%s14343_s7 + $0xf0] sm:$0xff]   ;;  %v10558_v18 = vld [vmem:[%s14343_s7 + $0xb8] sm:$0xff]  }
 0x317   : > { %v10298_v23 = vpop.f32.mrb[140].mxu1  ;;  %v3310_v50 = vsel %vm3246_vm11, %v3194_v58, %v3278_v46  ;;  %v3330_v45 = vpack.c.bf16 %v3312_v29, %v3311_v22  ;;  %v10557_v58 = vld [vmem:[%s14343_s7 + $0xf8] sm:$0xff]  }
 0x318   : > { %v3215_v1 = vadd.f32 %v10298_v23, %v11880_v0  ;;  %v3206_v55 = vpop.f32.mrb[141].mxu1  ;;  %v3329_v57 = vpack.c.bf16 %v3310_v50, %v3309_v35 }
 0x319   : > { %v3207_v63 = vadd.f32 %v3206_v55, %v11870_v53  ;;  %v10299_v49 = vpop.f32.mrb[142].mxu1  ;;  %9561 = vmatpush3.bf16.msra.mxu1 %v10548_v38 }
 0x31a   : > { %v3283_v34 = vmul.f32 0.1, %v3215_v1  ;;  %v3218_v42 = vadd.f32 %v10299_v49, %v11884_v7  ;;  %v3209_v51 = vpop.f32.mrb[143].mxu1  ;;  %10340 = vmatprep.mubr.bf16.mxu1 %v3329_v57  ;;  %vm3251_vm12 = vcmp.gt.f32.partialorder %v3215_v1, 0.0  ;;  %v10668_v7 = vmov -inf   ;;  %9562 = vmatprep.subr.bf16.mxu1 %v10549_v13 }
 0x31b   : > { %v3281_v33 = vmul.f32 0.1, %v3207_v63  ;;  %v3210_v41 = vadd.f32 %v3209_v51, %v11874_v47  ;;  %10341 = vmatmul.mubr.bf16.gmra.mrb[168].mxu1 %v3330_v45  ;;  %vm3249_vm13 = vcmp.gt.f32.partialorder %v3207_v63, 0.0  ;;  %485 = vst [vmem:[#allocation4] sm:$0xff] %v10668_v7  ;;  %486 = vst [vmem:[#allocation4 + $0x8] sm:$0xff] %v10668_v7  ;;  %v10533_v47 = vld [vmem:[%s14343_s7 + $0x58] sm:$0xff]  }
 0x31c   : > { %v3284_v56 = vmul.f32 0.1, %v3218_v42  ;;  %vm3252_vm14 = vcmp.gt.f32.partialorder %v3218_v42, 0.0  ;;  %v3315_v0 = vsel %vm3251_vm12, %v3215_v1, %v3283_v34  ;;  %487 = vst [vmem:[#allocation4 + $0x10] sm:$0xf] %v10668_v7  ;;  %488 = vst [vmem:[#allocation4 + $0x18] sm:$0xff] %v10668_v7  ;;  %9450 = vmatprep.subr.bf16.mxu0 %v10533_v47 }
 0x31d   : > { %v3282_v20 = vmul.f32 0.1, %v3210_v41  ;;  %vm3250_vm15 = vcmp.gt.f32.partialorder %v3210_v41, 0.0  ;;  %v3313_v10 = vsel %vm3249_vm13, %v3207_v63, %v3281_v33  ;;  %489 = vst [vmem:[#allocation4 + $0x20] sm:$0xff] %v10668_v7  ;;  %490 = vst [vmem:[#allocation4 + $0x28] sm:$0xf] %v10668_v7  ;;  %9451 = vmatpush3.bf16.msra.mxu0 %v10534_v11  ;;  %9563 = vmatpush3.bf16.msra.mxu1 %v10550_v30 }
 0x31e   : > { %v3316_v6 = vsel %vm3252_vm14, %v3218_v42, %v3284_v56  ;;  %500 = vst [vmem:[#allocation4 + $0x30] sm:$0x3] %v10668_v7  ;;  %501 = vst [vmem:[#allocation4 + $0x48] sm:$0x3] %v10668_v7  ;;  %9452 = vmatprep.subr.bf16.mxu0 %v10535_v14  ;;  %9564 = vmatprep.subr.bf16.mxu1 %v10551_v24 }
 0x31f   : > { %v3314_v53 = vsel %vm3250_vm15, %v3210_v41, %v3282_v20  ;;  %v3332_v39 = vpack.c.bf16 %v3316_v6, %v3315_v0  ;;  %502 = vst [vmem:[#allocation4 + $0x60] sm:$0x3] %v10668_v7  ;;  %520 = vst [vmem:[#allocation4 + $0x42] sm:$0x3] %v10668_v7  ;;  %v11983_v0 = vld [vmem:[%s14342_s6] ss:$0 sm:$0xff] }
 0x320   : > { %v3331_v9 = vpack.c.bf16 %v3314_v53, %v3313_v10  ;;  %521 = vst [vmem:[#allocation4 + $0x5a] sm:$0x3] %v10668_v7  ;;  %522 = vst [vmem:[#allocation4 + $0x72] sm:$0x3] %v10668_v7 }
 0x321   : > { %492 = vst [vmem:[#allocation4 + $0x1b0] sm:$0xff] %v10668_v7  ;;  %493 = vst [vmem:[#allocation4 + $0x1b8] sm:$0xff] %v10668_v7  ;;  %9453 = vmatpush3.bf16.msra.mxu0 %v10536_v25  ;;  %9565 = vmatpush3.bf16.msra.mxu1 %v10552_v8 }
 0x322   : > { %10344 = vmatprep.mubr.bf16.mxu1 %v3331_v9  ;;  %494 = vst [vmem:[#allocation4 + $0x1c0] sm:$0xf] %v10668_v7  ;;  %495 = vst [vmem:[#allocation4 + $0x1c8] sm:$0xff] %v10668_v7  ;;  %9454 = vmatprep.subr.bf16.mxu0 %v10538_v48  ;;  %v3814_v1 = vld [vmem:[#allocation4 + $0x2] sm:$0xff] }
 0x323   : > { %10345 = vmatmul.mubr.bf16.gmra.mrb[172].mxu1 %v3332_v39  ;;  %496 = vst [vmem:[#allocation4 + $0x1d0] sm:$0xff] %v10668_v7  ;;  %497 = vst [vmem:[#allocation4 + $0x1d8] sm:$0xf] %v10668_v7  ;;  %9566 = vmatprep.subr.bf16.mxu1 %v10553_v44  ;;  %v3735_v23 = vld [vmem:[#allocation4 + $0x9] sm:$0xff] }
 0x324   : > { %503 = vst [vmem:[#allocation4 + $0x78] sm:$0x3] %v10668_v7  ;;  %504 = vst [vmem:[#allocation4 + $0x90] sm:$0x3] %v10668_v7  ;;  %v3737_v35 = vld [vmem:[#allocation4 + $0x21] sm:$0xff]  ;;  %v3815_v57 = vld [vmem:[#allocation4 + $0xa] sm:$0xff] }
 0x325   : > { %505 = vst [vmem:[#allocation4 + $0xa8] sm:$0x3] %v10668_v7  ;;  %506 = vst [vmem:[#allocation4 + $0xc0] sm:$0x3] %v10668_v7  ;;  %9455 = vmatpush3.bf16.msra.mxu0 %v10540_v15  ;;  %9567 = vmatpush3.bf16.msra.mxu1 %v10554_v19  ;;  %v3816_v55 = vld [vmem:[#allocation4 + $0x1a] sm:$0xff]  ;;  %v3817_v63 = vld [vmem:[#allocation4 + $0x22] sm:$0xff]  ;;  %v3855_v42 = vmax.f32 %v3735_v23, %v3815_v57 }
 0x326   : > { %507 = vst [vmem:[#allocation4 + $0xd8] sm:$0x3] %v10668_v7  ;;  %508 = vst [vmem:[#allocation4 + $0xf0] sm:$0x3] %v10668_v7  ;;  %9456 = vmatprep.subr.bf16.mxu0 %v10541_v43  ;;  %9568 = vmatprep.subr.bf16.mxu1 %v10555_v32  ;;  %v3857_v51 = vmax.f32 %v3737_v35, %v3817_v63  ;;  %v3894_v33 = vld [vmem:[#allocation4 + $0x3] sm:$0xff]  ;;  %v3896_v41 = vld [vmem:[#allocation4 + $0x1b] sm:$0xff] }
 0x327   : > { %509 = vst [vmem:[#allocation4 + $0x108] sm:$0x3] %v10668_v7  ;;  %510 = vst [vmem:[#allocation4 + $0x120] sm:$0x3] %v10668_v7  ;;  %v3974_v53 = vld [vmem:[#allocation4 + $0x4] sm:$0xff]  ;;  %v3976_v11 = vld [vmem:[#allocation4 + $0x1c] sm:$0xff] }
 0x328   : > { %511 = vst [vmem:[#allocation4 + $0x138] sm:$0x3] %v10668_v7  ;;  %512 = vst [vmem:[#allocation4 + $0x150] sm:$0x3] %v10668_v7  ;;  %v4775_v43 = vld [vmem:[#allocation4 + $0x9] sm:$0xff]  ;;  %v4856_v44 = vld [vmem:[#allocation4 + $0x1a] sm:$0xff] }
 0x329   : > { %513 = vst [vmem:[#allocation4 + $0x168] sm:$0x3] %v10668_v7  ;;  %514 = vst [vmem:[#allocation4 + $0x180] sm:$0x3] %v10668_v7  ;;  %9457 = vmatpush3.bf16.msra.mxu0 %v10542_v52  ;;  %9569 = vmatpush3.bf16.msra.mxu1 %v10556_v3  ;;  %v4777_v52 = vld [vmem:[#allocation4 + $0x21] sm:$0xff] }
 0x32a   : > { %515 = vst [vmem:[#allocation4 + $0x198] sm:$0x3] %v10668_v7  ;;  %523 = vst [vmem:[#allocation4 + $0x8a] sm:$0x3] %v10668_v7  ;;  %9458 = vmatprep.subr.bf16.mxu0 %v10544_v40  ;;  %9570 = vmatprep.subr.bf16.mxu1 %v10557_v58  ;;  %v4854_v38 = vld [vmem:[#allocation4 + $0x2] sm:$0xff] }
 0x32b   : > { %524 = vst [vmem:[#allocation4 + $0xa2] sm:$0x3] %v10668_v7  ;;  %525 = vst [vmem:[#allocation4 + $0xba] sm:$0x3] %v10668_v7  ;;  %v4936_v57 = vld [vmem:[#allocation4 + $0x1b] sm:$0xff] }
 0x32c   : > { %526 = vst [vmem:[#allocation4 + $0xd2] sm:$0x3] %v10668_v7  ;;  %527 = vst [vmem:[#allocation4 + $0xea] sm:$0x3] %v10668_v7 }
 0x32d   : > { %528 = vst [vmem:[#allocation4 + $0x102] sm:$0x3] %v10668_v7  ;;  %529 = vst [vmem:[#allocation4 + $0x11a] sm:$0x3] %v10668_v7  ;;  %9459 = vmatpush3.bf16.msra.mxu0 %v10546_v5  ;;  %9571 = vmatpush3.bf16.msra.mxu1 %v10558_v18 }
 0x32e   : > { %530 = vst [vmem:[#allocation4 + $0x132] sm:$0x3] %v10668_v7  ;;  %531 = vst [vmem:[#allocation4 + $0x14a] sm:$0x3] %v10668_v7 }
 0x32f   : > { %532 = vst [vmem:[#allocation4 + $0x162] sm:$0x3] %v10668_v7  ;;  %533 = vst [vmem:[#allocation4 + $0x17a] sm:$0x3] %v10668_v7 }
 0x330   : > { %534 = vst [vmem:[#allocation4 + $0x192] sm:$0x3] %v10668_v7  ;;  %535 = vst [vmem:[#allocation4 + $0x1aa] sm:$0x3] %v10668_v7 }
 0x331   : > { %498 = vst [vmem:[#allocation4] sm:$0x3] %v10668_v7  ;;  %499 = vst [vmem:[#allocation4 + $0x18] sm:$0x3] %v10668_v7 }
 0x332   : > { %518 = vst [vmem:[#allocation4 + $0x12] sm:$0x3] %v10668_v7  ;;  %519 = vst [vmem:[#allocation4 + $0x2a] sm:$0x3] %v10668_v7 }
 0x333   : > { %516 = vst [vmem:[#allocation4 + $0x1b0] sm:$0x3] %v10668_v7  ;;  %517 = vst [vmem:[#allocation4 + $0x1c8] sm:$0x3] %v10668_v7 }
 0x334   : > { %536 = vst [vmem:[#allocation4 + $0x1c2] sm:$0x3] %v10668_v7  ;;  %537 = vst [vmem:[#allocation4 + $0x1da] sm:$0x3] %v10668_v7 }
 0x338   : > { %v3694_v21 = vld [vmem:[#allocation4] sm:$0xff]  ;;  %v3696_v46 = vld [vmem:[#allocation4 + $0x18] sm:$0xff] }
 0x339   : > { %v3734_v22 = vld [vmem:[#allocation4 + $0x1] sm:$0xff]  ;;  %v3736_v29 = vld [vmem:[#allocation4 + $0x19] sm:$0xff]  ;;  %v3895_v56 = vld [vmem:[#allocation4 + $0xb] sm:$0xff] }
 0x33a   : > { %v3774_v50 = vmax.f32 %v3694_v21, %v3734_v22  ;;  %v3776_v45 = vmax.f32 %v3696_v46, %v3736_v29  ;;  %v3897_v20 = vld [vmem:[#allocation4 + $0x23] sm:$0xff]  ;;  %v11985_v7 = vmax.f32 %v3855_v42, %v3895_v56  ;;  %v4736_v14 = vld [vmem:[#allocation4 + $0x18] sm:$0xff]  ;;  %v3975_v48 = vld [vmem:[#allocation4 + $0xc] sm:$0xff] }
 0x33b   : > { %v4734_v39 = vld [vmem:[#allocation4] sm:$0xff]  ;;  %v3937_v47 = vmax.f32 %v3857_v51, %v3897_v20  ;;  %v4855_v21 = vld [vmem:[#allocation4 + $0xa] sm:$0xff] }
 0x33c   : > { %v3854_v49 = vmax.f32 %v3774_v50, %v3814_v1  ;;  %v3856_v34 = vmax.f32 %v3776_v45, %v3816_v55  ;;  %v4774_v9 = vld [vmem:[#allocation4 + $0x1] sm:$0xff]  ;;  %v4776_v25 = vld [vmem:[#allocation4 + $0x19] sm:$0xff]  ;;  %v4015_v24 = vmax.f32 %v11985_v7, %v3975_v48  ;;  %v4895_v55 = vmax.f32 %v4775_v43, %v4855_v21 }
 0x33d   : > { %v3977_v15 = vld [vmem:[#allocation4 + $0x24] sm:$0xff]  ;;  %v4814_v31 = vmax.f32 %v4734_v39, %v4774_v9  ;;  %v4816_v28 = vmax.f32 %v4736_v14, %v4776_v25  ;;  %v5016_v25 = vld [vmem:[#allocation4 + $0x1c] sm:$0xff] }
 0x33e   : > { %v3934_v6 = vmax.f32 %v3854_v49, %v3894_v33  ;;  %v3936_v10 = vmax.f32 %v3856_v34, %v3896_v41  ;;  %v11992_v8 = vmax.f32 %v3937_v47, %v3977_v15  ;;  %v4857_v46 = vld [vmem:[#allocation4 + $0x22] sm:$0xff]  ;;  %v4935_v34 = vld [vmem:[#allocation4 + $0xb] sm:$0xff] }
 0x33f   : > { %v4894_v22 = vmax.f32 %v4814_v31, %v4854_v38  ;;  %v4896_v35 = vmax.f32 %v4816_v28, %v4856_v44  ;;  %v4934_v50 = vld [vmem:[#allocation4 + $0x3] sm:$0xff]  ;;  %v4897_v49 = vmax.f32 %v4777_v52, %v4857_v46  ;;  %v12020_v14 = vmax.f32 %v4895_v55, %v4935_v34 }
 0x340   : > { %v4014_v12 = vmax.f32 %v3934_v6, %v3974_v53  ;;  %v11988_v54 = vmax.f32 %v3936_v10, %v3976_v11  ;;  %v4937_v41 = vld [vmem:[#allocation4 + $0x23] sm:$0xff]  ;;  %v12018_v11 = vmax.f32 %v4015_v24, %v11992_v8 }
 0x341   : > { %v4974_v56 = vmax.f32 %v4894_v22, %v4934_v50  ;;  %v4976_v53 = vmax.f32 %v4896_v35, %v4936_v57  ;;  %v5014_v39 = vld [vmem:[#allocation4 + $0x4] sm:$0xff] }
 0x342   : > { %v12015_v47 = vmax.f32 %v4014_v12, %v11988_v54 }
 0x343   : > { %v12026_v12 = vmax.f32 %v4974_v56, %v5014_v39  ;;  %v12030_v24 = vmax.f32 %v4976_v53, %v5016_v25 }
 0x3be   : > { %v10318_v27 = vpop.f32.mrb[144].mxu1 }
 0x3bf   : > { %v3447_v40 = vadd.f32 %v10318_v27, %v11983_v0  ;;  %v3438_v5 = vpop.f32.mrb[145].mxu1  ;;  %v4977_v27 = vmax.f32 %v4897_v49, %v4937_v41 }
 0x3c0   : > { %v3439_v13 = vadd.f32 %v11983_v0, %v3438_v5  ;;  %v10319_v30 = vpop.f32.mrb[146].mxu1  ;;  %v5017_v5 = vld [vmem:[#allocation4 + $0x24] sm:$0xff] }
 0x3c1   : > { %vm3567_vm0 = vcmp.gt.f32.partialorder %v3447_v40, 0.0  ;;  %v3599_v19 = vmul.f32 0.1, %v3447_v40  ;;  %v3450_v32 = vadd.f32 %v10319_v30, %v11983_v0  ;;  %v3441_v3 = vpop.f32.mrb[147].mxu1  ;;  %v12040_v35 = vmax.f32 %v4977_v27, %v5017_v5 }
 0x3c2   : > { %vm3565_vm1 = vcmp.gt.f32.partialorder %v3439_v13, 0.0  ;;  %v3597_v58 = vmul.f32 0.1, %v3439_v13  ;;  %v3442_v18 = vadd.f32 %v11983_v0, %v3441_v3 }
 0x3c3   : > { %v11996_v29 = vsel %vm3567_vm0, %v3447_v40, %v3599_v19  ;;  %vm3568_vm2 = vcmp.gt.f32.partialorder %v3450_v32, 0.0  ;;  %v3600_v23 = vmul.f32 0.1, %v3450_v32  ;;  %v12024_v40 = vld [vmem:[#allocation4 + $0xc] sm:$0xff] }
 0x3c4   : > { %3664 = vst [vmem:[#allocation4 + $0x4a] sm:$0xff] %v11996_v29  ;;  %v11999_v45 = vsel %vm3565_vm1, %v3439_v13, %v3597_v58  ;;  %vm3566_vm3 = vcmp.gt.f32.partialorder %v3442_v18, 0.0  ;;  %v3598_v1 = vmul.f32 0.1, %v3442_v18 }
 0x3c5   : > { %3662 = vst [vmem:[#allocation4 + $0x32] sm:$0xff] %v11999_v45  ;;  %v12002_v63 = vsel %vm3568_vm2, %v3450_v32, %v3600_v23 }
 0x3c6   : > { %3665 = vst [vmem:[#allocation4 + $0x52] sm:$0xff] %v12002_v63  ;;  %v12005_v42 = vsel %vm3566_vm3, %v3442_v18, %v3598_v1  ;;  %v10322_v51 = vpop.f32.mrb[148].mxu1 }
 0x3c7   : > { %3663 = vst [vmem:[#allocation4 + $0x3a] sm:$0xff] %v12005_v42  ;;  %v3463_v6 = vadd.f32 %v10322_v51, %v11983_v0  ;;  %v3454_v10 = vpop.f32.mrb[149].mxu1  ;;  %v14422_v60 = vpack.c.bf16 %v12005_v42, %v11999_v45 }
 0x3c8   : > { %v3455_v9 = vadd.f32 %v11983_v0, %v3454_v10  ;;  %v10323_v7 = vpop.f32.mrb[150].mxu1 }
 0x3c9   : > { %vm3571_vm4 = vcmp.gt.f32.partialorder %v3463_v6, 0.0  ;;  %v3603_v48 = vmul.f32 0.1, %v3463_v6  ;;  %v3466_v15 = vadd.f32 %v10323_v7, %v11983_v0  ;;  %v3457_v43 = vpop.f32.mrb[151].mxu1 }
 0x3ca   : > { %vm3569_vm5 = vcmp.gt.f32.partialorder %v3455_v9, 0.0  ;;  %v3601_v52 = vmul.f32 0.1, %v3455_v9  ;;  %v3458_v31 = vadd.f32 %v11983_v0, %v3457_v43 }
 0x3cb   : > { %v12028_v28 = vsel %vm3571_vm4, %v3463_v6, %v3603_v48  ;;  %vm3572_vm6 = vcmp.gt.f32.partialorder %v3466_v15, 0.0  ;;  %v3604_v38 = vmul.f32 0.1, %v3466_v15  ;;  %v3700_v13 = vld [vmem:[#allocation4 + $0x48] sm:$0xff] }
 0x3cc   : > { %v3740_v30 = vld [vmem:[#allocation4 + $0x49] sm:$0xff]  ;;  %3668 = vst [vmem:[#allocation4 + $0x7a] sm:$0xff] %v12028_v28  ;;  %v12033_v44 = vsel %vm3569_vm5, %v3455_v9, %v3601_v52  ;;  %vm3570_vm7 = vcmp.gt.f32.partialorder %v3458_v31, 0.0  ;;  %v3602_v19 = vmul.f32 0.1, %v3458_v31  ;;  %v3738_v3 = vld [vmem:[#allocation4 + $0x31] sm:$0xff] }
 0x3cd   : > { %v3698_v32 = vld [vmem:[#allocation4 + $0x30] sm:$0xff]  ;;  %v3780_v21 = vmax.f32 %v3700_v13, %v3740_v30  ;;  %3666 = vst [vmem:[#allocation4 + $0x62] sm:$0xff] %v12033_v44  ;;  %v12036_v58 = vsel %vm3572_vm6, %v3466_v15, %v3604_v38 }
 0x3ce   : > { %v3701_v18 = vld [vmem:[#allocation4 + $0x50] sm:$0xff]  ;;  %v3778_v22 = vmax.f32 %v3698_v32, %v3738_v3  ;;  %3669 = vst [vmem:[#allocation4 + $0x82] sm:$0xff] %v12036_v58  ;;  %v12043_v50 = vsel %vm3570_vm7, %v3458_v31, %v3602_v19  ;;  %v10326_v1 = vpop.f32.mrb[152].mxu1  ;;  %v3699_v55 = vld [vmem:[#allocation4 + $0x38] sm:$0xff] }
 0x3cf   : > { %v3741_v46 = vld [vmem:[#allocation4 + $0x51] sm:$0xff]  ;;  %v3739_v57 = vld [vmem:[#allocation4 + $0x39] sm:$0xff]  ;;  %v3860_v34 = vmax.f32 %v3780_v21, %v11996_v29  ;;  %3667 = vst [vmem:[#allocation4 + $0x6a] sm:$0xff] %v12043_v50  ;;  %v3479_v41 = vadd.f32 %v10326_v1, %v11983_v0  ;;  %v3470_v56 = vpop.f32.mrb[153].mxu1 }
 0x3d0   : > { %v3781_v49 = vmax.f32 %v3701_v18, %v3741_v46  ;;  %v3779_v6 = vmax.f32 %v3699_v55, %v3739_v57  ;;  %v3858_v10 = vmax.f32 %v3778_v22, %v11999_v45  ;;  %v3900_v53 = vld [vmem:[#allocation4 + $0x4b] sm:$0xff]  ;;  %v3471_v9 = vadd.f32 %v11983_v0, %v3470_v56  ;;  %v10327_v7 = vpop.f32.mrb[154].mxu1  ;;  %v3898_v5 = vld [vmem:[#allocation4 + $0x33] sm:$0xff]  ;;  %v3899_v30 = vld [vmem:[#allocation4 + $0x3b] sm:$0xff] }
 0x3d1   : > { %v3940_v48 = vmax.f32 %v3860_v34, %v3900_v53  ;;  %vm3575_vm8 = vcmp.gt.f32.partialorder %v3479_v41, 0.0  ;;  %v3607_v43 = vmul.f32 0.1, %v3479_v41  ;;  %v3482_v27 = vadd.f32 %v10327_v7, %v11983_v0  ;;  %v3473_v52 = vpop.f32.mrb[155].mxu1  ;;  %v3901_v19 = vld [vmem:[#allocation4 + $0x53] sm:$0xff]  ;;  %v3979_v22 = vld [vmem:[#allocation4 + $0x3c] sm:$0xff] }
 0x3d2   : > { %v3861_v25 = vmax.f32 %v3781_v49, %v12002_v63  ;;  %v3859_v31 = vmax.f32 %v3779_v6, %v12005_v42  ;;  %vm3573_vm9 = vcmp.gt.f32.partialorder %v3471_v9, 0.0  ;;  %v3605_v38 = vmul.f32 0.1, %v3471_v9  ;;  %v3978_v3 = vld [vmem:[#allocation4 + $0x34] sm:$0xff]  ;;  %v3980_v53 = vld [vmem:[#allocation4 + $0x4c] sm:$0xff] }
 0x3d3   : > { %v3474_v13 = vadd.f32 %v11983_v0, %v3473_v52  ;;  %v3938_v32 = vmax.f32 %v3858_v10, %v3898_v5  ;;  %v12060_v21 = vsel %vm3575_vm8, %v3479_v41, %v3607_v43  ;;  %vm3576_vm10 = vcmp.gt.f32.partialorder %v3482_v27, 0.0  ;;  %v3704_v1 = vld [vmem:[#allocation4 + $0x78] sm:$0xff] }
 0x3d4   : > { %v3608_v18 = vmul.f32 0.1, %v3482_v27  ;;  %v3939_v46 = vmax.f32 %v3859_v31, %v3899_v30  ;;  %v3744_v55 = vld [vmem:[#allocation4 + $0x79] sm:$0xff]  ;;  %3672 = vst [vmem:[#allocation4 + $0xaa] sm:$0xff] %v12060_v21  ;;  %v12063_v57 = vsel %vm3573_vm9, %v3471_v9, %v3605_v38  ;;  %v3742_v56 = vld [vmem:[#allocation4 + $0x61] sm:$0xff]  ;;  %v3941_v6 = vmax.f32 %v3861_v25, %v3901_v19 }
 0x3d5   : > { %vm3574_vm11 = vcmp.gt.f32.partialorder %v3474_v13, 0.0  ;;  %v3606_v49 = vmul.f32 0.1, %v3474_v13  ;;  %v3702_v34 = vld [vmem:[#allocation4 + $0x60] sm:$0xff]  ;;  %3670 = vst [vmem:[#allocation4 + $0x92] sm:$0xff] %v12063_v57  ;;  %v3981_v7 = vld [vmem:[#allocation4 + $0x54] sm:$0xff]  ;;  %v12068_v43 = vmax.f32 %v3938_v32, %v3978_v3  ;;  %v12075_v19 = vmax.f32 %v3940_v48, %v3980_v53 }
 0x3d6   : > { %v12066_v41 = vsel %vm3576_vm10, %v3482_v27, %v3608_v18  ;;  %v3782_v10 = vmax.f32 %v3702_v34, %v3742_v56  ;;  %v12070_v52 = vmax.f32 %v3939_v46, %v3979_v22  ;;  %v3705_v31 = vld [vmem:[#allocation4 + $0x80] sm:$0xff]  ;;  %v10330_v38 = vpop.f32.mrb[156].mxu1  ;;  %v3703_v30 = vld [vmem:[#allocation4 + $0x68] sm:$0xff]  ;;  %v12077_v15 = vmax.f32 %v3941_v6, %v3981_v7 }
 0x3d7   : > { %v3745_v5 = vld [vmem:[#allocation4 + $0x81] sm:$0xff]  ;;  %3673 = vst [vmem:[#allocation4 + $0xb2] sm:$0xff] %v12066_v41  ;;  %v12073_v9 = vsel %vm3574_vm11, %v3474_v13, %v3606_v49  ;;  %v3743_v25 = vld [vmem:[#allocation4 + $0x69] sm:$0xff]  ;;  %v3784_v27 = vmax.f32 %v3704_v1, %v3744_v55  ;;  %v3495_v32 = vadd.f32 %v10330_v38, %v11983_v0  ;;  %v3486_v3 = vpop.f32.mrb[157].mxu1  ;;  %v4086_v13 = vmax.f32 %v12015_v47, %v12068_v43 }
 0x3d8   : > { %3671 = vst [vmem:[#allocation4 + $0x9a] sm:$0xff] %v12073_v9  ;;  %v3783_v18 = vmax.f32 %v3703_v30, %v3743_v25  ;;  %v3862_v46 = vmax.f32 %v3782_v10, %v12033_v44  ;;  %v3487_v22 = vadd.f32 %v11983_v0, %v3486_v3  ;;  %v10331_v49 = vpop.f32.mrb[158].mxu1  ;;  %v4087_v48 = vmax.f32 %v12018_v11, %v12070_v52  ;;  %v3902_v10 = vld [vmem:[#allocation4 + $0x63] sm:$0xff]  ;;  %v3903_v30 = vld [vmem:[#allocation4 + $0x6b] sm:$0xff] }
 0x3d9   : > { %v3785_v34 = vmax.f32 %v3705_v31, %v3745_v5  ;;  %v3864_v1 = vmax.f32 %v3784_v27, %v12028_v28  ;;  %vm3579_vm12 = vcmp.gt.f32.partialorder %v3495_v32, 0.0  ;;  %v3611_v55 = vmul.f32 0.1, %v3495_v32  ;;  %v3489_v6 = vpop.f32.mrb[159].mxu1  ;;  %v3982_v27 = vld [vmem:[#allocation4 + $0x64] sm:$0xff] }
 0x3da   : > { %v3498_v56 = vadd.f32 %v10331_v49, %v11983_v0  ;;  %v3863_v53 = vmax.f32 %v3783_v18, %v12043_v50  ;;  %vm3577_vm13 = vcmp.gt.f32.partialorder %v3487_v22, 0.0  ;;  %v3609_v7 = vmul.f32 0.1, %v3487_v22  ;;  %v3983_v18 = vld [vmem:[#allocation4 + $0x6c] sm:$0xff]  ;;  %v3985_v33 = vld [vmem:[#allocation4 + $0x84] sm:$0xff] }
 0x3db   : > { %v3490_v38 = vadd.f32 %v11983_v0, %v3489_v6  ;;  %v3942_v25 = vmax.f32 %v3862_v46, %v3902_v10  ;;  %v12091_v3 = vsel %vm3579_vm12, %v3495_v32, %v3611_v55  ;;  %v4118_v32 = vmax.f32 %v4086_v13, %v12075_v19  ;;  %v12140_v36 = vld [vmem:[#allocation4 + $0xa8] sm:$0xff] }
 0x3dc   : > { %vm3580_vm14 = vcmp.gt.f32.partialorder %v3498_v56, 0.0  ;;  %v3612_v31 = vmul.f32 0.1, %v3498_v56  ;;  %v3943_v5 = vmax.f32 %v3863_v53, %v3903_v30  ;;  %3676 = vst [vmem:[#allocation4 + $0xda] sm:$0xff] %v12091_v3  ;;  %v12094_v23 = vsel %vm3577_vm13, %v3487_v22, %v3609_v7  ;;  %v3904_v53 = vld [vmem:[#allocation4 + $0x7b] sm:$0xff] }
 0x3dd   : > { %vm3578_vm15 = vcmp.gt.f32.partialorder %v3490_v38, 0.0  ;;  %v3610_v49 = vmul.f32 0.1, %v3490_v38  ;;  %v12096_v51 = vmax.f32 %v3942_v25, %v3982_v27  ;;  %3674 = vst [vmem:[#allocation4 + $0xc2] sm:$0xff] %v12094_v23  ;;  %v4119_v55 = vmax.f32 %v4087_v48, %v12077_v15 }
 0x3de   : > { %v12099_v6 = vsel %vm3580_vm14, %v3498_v56, %v3612_v31  ;;  %v12101_v46 = vmax.f32 %v3943_v5, %v3983_v18  ;;  %v10334_v10 = vpop.f32.mrb[160].mxu1  ;;  %v3865_v7 = vmax.f32 %v3785_v34, %v12036_v58  ;;  %v3944_v30 = vmax.f32 %v3864_v1, %v3904_v53  ;;  %v3984_v5 = vld [vmem:[#allocation4 + $0x7c] sm:$0xff] }
 0x3df   : > { %3677 = vst [vmem:[#allocation4 + $0xe2] sm:$0xff] %v12099_v6  ;;  %v12106_v22 = vsel %vm3578_vm15, %v3490_v38, %v3610_v49  ;;  %v4056_v25 = vmax.f32 %v11988_v54, %v12068_v43  ;;  %v3511_v56 = vadd.f32 %v10334_v10, %v11983_v0  ;;  %v3502_v31 = vpop.f32.mrb[161].mxu1  ;;  %v12114_v13 = vmax.f32 %v4118_v32, %v12096_v51  ;;  %v3905_v38 = vld [vmem:[#allocation4 + $0x83] sm:$0xff]  ;;  %v3747_v20 = vld [vmem:[#allocation4 + $0x99] sm:$0xff] }
 0x3e0   : > { %3675 = vst [vmem:[#allocation4 + $0xca] sm:$0xff] %v12106_v22  ;;  %v12117_v48 = vmax.f32 %v4119_v55, %v12101_v46  ;;  %v4057_v34 = vmax.f32 %v11992_v8, %v12070_v52  ;;  %v3503_v1 = vadd.f32 %v11983_v0, %v3502_v31  ;;  %v10335_v27 = vpop.f32.mrb[162].mxu1  ;;  %v3945_v49 = vmax.f32 %v3865_v7, %v3905_v38  ;;  %v3706_v31 = vld [vmem:[#allocation4 + $0x90] sm:$0xff] }
 0x3e1   : > { %v12122_v18 = vmax.f32 %v3944_v30, %v3984_v5  ;;  %v4088_v53 = vmax.f32 %v4056_v25, %v12075_v19  ;;  %vm3583_vm0 = vcmp.gt.f32.partialorder %v3511_v56, 0.0  ;;  %v3615_v10 = vmul.f32 0.1, %v3511_v56  ;;  %v3505_v39 = vpop.f32.mrb[163].mxu1  ;;  %4182 = vst [vmem:[#allocation4 + $0x32] sm:$0xff] %v12114_v13  ;;  %v3707_v25 = vld [vmem:[#allocation4 + $0x98] sm:$0xff] }
 0x3e2   : > { %v3514_v32 = vadd.f32 %v10335_v27, %v11983_v0  ;;  %4183 = vst [vmem:[#allocation4 + $0x3a] sm:$0xff] %v12117_v48  ;;  %v5238_v55 = vpack.c.bf16 %v12117_v48, %v12114_v13  ;;  %vm3581_vm1 = vcmp.gt.f32.partialorder %v3503_v1, 0.0  ;;  %v3613_v7 = vmul.f32 0.1, %v3503_v1  ;;  %v3746_v5 = vld [vmem:[#allocation4 + $0x91] sm:$0xff] }
 0x3e3   : > { %v3506_v30 = vadd.f32 %v11983_v0, %v3505_v39  ;;  %v12131_v38 = vmax.f32 %v3945_v49, %v3985_v33  ;;  %v3647_v27 = vsel %vm3583_vm0, %v3511_v56, %v3615_v10  ;;  %v4089_v26 = vmax.f32 %v4057_v34, %v12077_v15 }
 0x3e4   : > { %vm3584_vm2 = vcmp.gt.f32.partialorder %v3514_v32, 0.0  ;;  %v3616_v4 = vmul.f32 0.1, %v3514_v32  ;;  %5581 = vmatprep.mubr.bf16.mxu0 %v5238_v55  ;;  %3680 = vst [vmem:[#allocation4 + $0x10a] sm:$0xff] %v3647_v27  ;;  %v3645_v2 = vsel %vm3581_vm1, %v3503_v1, %v3613_v7  ;;  %v4120_v33 = vmax.f32 %v4088_v53, %v12096_v51  ;;  %v12142_v55 = vld [vmem:[#allocation4 + $0xa9] sm:$0xff] }
 0x3e5   : > { %vm3582_vm3 = vcmp.gt.f32.partialorder %v3506_v30, 0.0  ;;  %v3614_v59 = vmul.f32 0.1, %v3506_v30  ;;  %5582 = vmatmul.mubr.bf16.vlgmr.msra.gmra.mrb[208].mxu0 %v14422_v60  ;;  %3678 = vst [vmem:[#allocation4 + $0xf2] sm:$0xff] %v3645_v2  ;;  %v4121_v49 = vmax.f32 %v4089_v26, %v12101_v46  ;;  %v3786_v56 = vmax.f32 %v3706_v31, %v3746_v5 }
 0x3e6   : > { %v3648_v39 = vsel %vm3584_vm2, %v3514_v32, %v3616_v4  ;;  %v3787_v10 = vmax.f32 %v3707_v25, %v3747_v20  ;;  %v12145_v1 = vmax.f32 %v4120_v33, %v12122_v18  ;;  %v10338_v7 = vpop.f32.mrb[164].mxu1  ;;  %v4058_v60 = vmax.f32 %v12068_v43, %v12075_v19  ;;  %v3753_v62 = vld [vmem:[#allocation4 + $0xe1] sm:$0xff] }
 0x3e7   : > { %3681 = vst [vmem:[#allocation4 + $0x112] sm:$0xff] %v3648_v39  ;;  %v3646_v34 = vsel %vm3582_vm3, %v3506_v30, %v3614_v59  ;;  %v4059_v2 = vmax.f32 %v12070_v52, %v12077_v15  ;;  %v12152_v26 = vmax.f32 %v4121_v49, %v12131_v38  ;;  %v3527_v4 = vadd.f32 %v10338_v7, %v11983_v0  ;;  %v3518_v45 = vpop.f32.mrb[165].mxu1  ;;  %v3906_v7 = vld [vmem:[#allocation4 + $0x93] sm:$0xff] }
 0x3e8   : > { %3679 = vst [vmem:[#allocation4 + $0xfa] sm:$0xff] %v3646_v34  ;;  %v3866_v42 = vmax.f32 %v3786_v56, %v12063_v57  ;;  %v3867_v59 = vmax.f32 %v3787_v10, %v12073_v9  ;;  %v4218_v20 = vld [vmem:[#allocation4 + $0x30] sm:$0xff]  ;;  %4184 = vst [vmem:[#allocation4 + $0x4a] sm:$0xff] %v12145_v1  ;;  %v3519_v43 = vadd.f32 %v11983_v0, %v3518_v45  ;;  %v10339_v31 = vpop.f32.mrb[166].mxu1 }
 0x3e9   : > { %v4219_v53 = vld [vmem:[#allocation4 + $0x38] sm:$0xff]  ;;  %v4090_v52 = vmax.f32 %v4058_v60, %v12096_v51  ;;  %v4091_v30 = vmax.f32 %v4059_v2, %v12101_v46  ;;  %4185 = vst [vmem:[#allocation4 + $0x52] sm:$0xff] %v12152_v26  ;;  %v5239_v33 = vpack.c.bf16 %v12152_v26, %v12145_v1  ;;  %vm3587_vm4 = vcmp.gt.f32.partialorder %v3527_v4, 0.0  ;;  %v3521_v34 = vpop.f32.mrb[167].mxu1 }
 0x3ea   : > { %v4258_v32 = vld [vmem:[#allocation4 + $0x31] sm:$0xff]  ;;  %v4259_v5 = vld [vmem:[#allocation4 + $0x39] sm:$0xff]  ;;  %v3619_v39 = vmul.f32 0.1, %v3527_v4  ;;  %vm3585_vm5 = vcmp.gt.f32.partialorder %v3519_v43, 0.0  ;;  %v3530_v10 = vadd.f32 %v10339_v31, %v11983_v0  ;;  %v3522_v45 = vadd.f32 %v11983_v0, %v3521_v34 }
 0x3eb   : > { %v4298_v27 = vmax.f32 %v4218_v20, %v4258_v32  ;;  %v4299_v49 = vmax.f32 %v4219_v53, %v4259_v5  ;;  %v3617_v56 = vmul.f32 0.1, %v3519_v43  ;;  %5589 = vmatprep.mubr.bf16.mxu0 %v5239_v33  ;;  %v3946_v20 = vmax.f32 %v3866_v42, %v3906_v7  ;;  %v4418_v25 = vld [vmem:[#allocation4 + $0x33] sm:$0xff]  ;;  %v3907_v5 = vld [vmem:[#allocation4 + $0x9b] sm:$0xff] }
 0x3ec   : > { %v3651_v2 = vsel %vm3587_vm4, %v3527_v4, %v3619_v39  ;;  %vm3588_vm6 = vcmp.gt.f32.partialorder %v3530_v10, 0.0  ;;  %v3620_v53 = vmul.f32 0.1, %v3530_v10  ;;  %v14423_v31 = vpack.c.bf16 %v12002_v63, %v11996_v29  ;;  %v4419_v16 = vld [vmem:[#allocation4 + $0x3b] sm:$0xff] }
 0x3ed   : > { %v4378_v60 = vmax.f32 %v4298_v27, %v12114_v13  ;;  %v4379_v32 = vmax.f32 %v4299_v49, %v12117_v48  ;;  %3684 = vst [vmem:[#allocation4 + $0x13a] sm:$0xff] %v3651_v2  ;;  %v12170_v37 = vsel %vm3585_vm5, %v3519_v43, %v3617_v56  ;;  %vm3586_vm7 = vcmp.gt.f32.partialorder %v3522_v45, 0.0  ;;  %v3986_v27 = vld [vmem:[#allocation4 + $0x94] sm:$0xff]  ;;  %v3987_v43 = vld [vmem:[#allocation4 + $0x9c] sm:$0xff] }
 0x3ee   : > { %5590 = vmatmul.mubr.bf16.gmra.mrb[212].mxu0 %v14423_v31  ;;  %3682 = vst [vmem:[#allocation4 + $0x122] sm:$0xff] %v12170_v37  ;;  %v3618_v4 = vmul.f32 0.1, %v3522_v45  ;;  %v3947_v42 = vmax.f32 %v3867_v59, %v3907_v5  ;;  %v4498_v33 = vld [vmem:[#allocation4 + $0x34] sm:$0xff]  ;;  %v3652_v39 = vsel %vm3588_vm6, %v3530_v10, %v3620_v53  ;;  %v12176_v49 = vmax.f32 %v3946_v20, %v3986_v27  ;;  %v10342_v34 = vpop.f32.mrb[168].mxu1  ;;  %v4499_v29 = vld [vmem:[#allocation4 + $0x3c] sm:$0xff] }
 0x3ef   : > { %v4458_v13 = vmax.f32 %v4378_v60, %v4418_v25  ;;  %v4459_v48 = vmax.f32 %v4379_v32, %v4419_v16  ;;  %v4122_v56 = vmax.f32 %v4090_v52, %v12122_v18  ;;  %v4220_v7 = vld [vmem:[#allocation4 + $0x48] sm:$0xff]  ;;  %3685 = vst [vmem:[#allocation4 + $0x142] sm:$0xff] %v3652_v39  ;;  %v4123_v16 = vmax.f32 %v4091_v30, %v12131_v38  ;;  %v3534_v10 = vpop.f32.mrb[169].mxu1  ;;  %v3709_v27 = vld [vmem:[#allocation4 + $0xb0] sm:$0xff] }
 0x3f0   : > { %v4260_v25 = vld [vmem:[#allocation4 + $0x49] sm:$0xff]  ;;  %v12182_v60 = vsel %vm3586_vm7, %v3522_v45, %v3618_v4  ;;  %v12184_v59 = vmax.f32 %v3947_v42, %v3987_v43  ;;  %v4261_v32 = vld [vmem:[#allocation4 + $0x51] sm:$0xff]  ;;  %v3543_v31 = vadd.f32 %v10342_v34, %v11983_v0  ;;  %v10343_v5 = vpop.f32.mrb[170].mxu1 }
 0x3f1   : > { %v12179_v63 = vmax.f32 %v4458_v13, %v4498_v33  ;;  %v12187_v2 = vmax.f32 %v4459_v48, %v4499_v29  ;;  %v4221_v20 = vld [vmem:[#allocation4 + $0x50] sm:$0xff]  ;;  %v4300_v52 = vmax.f32 %v4220_v7, %v4260_v25  ;;  %3683 = vst [vmem:[#allocation4 + $0x12a] sm:$0xff] %v12182_v60  ;;  %v12191_v53 = vmax.f32 %v4122_v56, %v12176_v49  ;;  %v3537_v42 = vpop.f32.mrb[171].mxu1 }
 0x3f2   : > { %v4301_v13 = vmax.f32 %v4221_v20, %v4261_v32  ;;  %v12199_v4 = vmax.f32 %v4123_v16, %v12184_v59  ;;  %v3749_v48 = vld [vmem:[#allocation4 + $0xb1] sm:$0xff]  ;;  %vm3591_vm8 = vcmp.gt.f32.partialorder %v3543_v31, 0.0  ;;  %v3623_v34 = vmul.f32 0.1, %v3543_v31 }
 0x3f3   : > { %v4576_v45 = vmax.f32 %v11988_v54, %v12179_v63  ;;  %v4606_v30 = vmax.f32 %v12015_v47, %v12179_v63  ;;  %v4577_v33 = vmax.f32 %v11992_v8, %v12187_v2  ;;  %v4607_v39 = vmax.f32 %v12018_v11, %v12187_v2  ;;  %4186 = vst [vmem:[#allocation4 + $0x62] sm:$0xff] %v12191_v53  ;;  %v4420_v47 = vld [vmem:[#allocation4 + $0x4b] sm:$0xff]  ;;  %v4421_v8 = vld [vmem:[#allocation4 + $0x53] sm:$0xff] }
 0x3f4   : > { %v4380_v43 = vmax.f32 %v4300_v52, %v12145_v1  ;;  %v4381_v54 = vmax.f32 %v4301_v13, %v12152_v26  ;;  %4187 = vst [vmem:[#allocation4 + $0x6a] sm:$0xff] %v12199_v4  ;;  %v5240_v56 = vpack.c.bf16 %v12199_v4, %v12191_v53  ;;  %v3535_v29 = vadd.f32 %v11983_v0, %v3534_v10  ;;  %v4500_v20 = vld [vmem:[#allocation4 + $0x4c] sm:$0xff]  ;;  %v4501_v13 = vld [vmem:[#allocation4 + $0x54] sm:$0xff] }
 0x3f5   : > { %v3546_v11 = vadd.f32 %v10343_v5, %v11983_v0  ;;  %v3538_v1 = vadd.f32 %v11983_v0, %v3537_v42  ;;  %v3789_v25 = vmax.f32 %v3709_v27, %v3749_v48  ;;  %v12214_v26 = vsel %vm3591_vm8, %v3543_v31, %v3623_v34  ;;  %v3828_v52 = vld [vmem:[#allocation4 + $0xaa] sm:$0xff] }
 0x3f6   : > { %v4460_v7 = vmax.f32 %v4380_v43, %v4420_v47  ;;  %v4461_v16 = vmax.f32 %v4381_v54, %v4421_v8  ;;  %5597 = vmatprep.mubr.bf16.mxu0 %v5240_v56  ;;  %14424 = vst [vmem:[#allocation37_spill] sm:$0xff] %v12214_v26  ;;  %vm3589_vm9 = vcmp.gt.f32.partialorder %v3535_v29, 0.0  ;;  %v3621_v32 = vmul.f32 0.1, %v3535_v29  ;;  %3688 = vst [vmem:[#allocation4 + $0x16a] sm:$0xff] %v12214_v26  ;;  %v10346_v42 = vpop.f32.mrb[172].mxu1 }
 0x3f7   : > { %vm3592_vm10 = vcmp.gt.f32.partialorder %v3546_v11, 0.0  ;;  %v3624_v10 = vmul.f32 0.1, %v3546_v11  ;;  %vm3590_vm11 = vcmp.gt.f32.partialorder %v3538_v1, 0.0  ;;  %v14425_v5 = vpack.c.bf16 %v12043_v50, %v12033_v44  ;;  %v3550_v47 = vpop.f32.mrb[173].mxu1 }
 0x3f8   : > { %v12216_v17 = vmax.f32 %v4460_v7, %v4500_v20  ;;  %v12222_v27 = vmax.f32 %v4461_v16, %v4501_v13  ;;  %v12224_v31 = vsel %vm3589_vm9, %v3535_v29, %v3621_v32  ;;  %v3622_v48 = vmul.f32 0.1, %v3538_v1  ;;  %v10347_v29 = vpop.f32.mrb[174].mxu1 }
 0x3f9   : > { %5598 = vmatmul.mubr.bf16.gmra.mrb[216].mxu0 %v14425_v5  ;;  %14426 = vst [vmem:[#allocation38_spill] sm:$0xff] %v12224_v31  ;;  %v14427_v43 = vmax.f32 %v12140_v36, %v12142_v55  ;;  %3686 = vst [vmem:[#allocation4 + $0x152] sm:$0xff] %v12224_v31  ;;  %v12236_v50 = vsel %vm3592_vm10, %v3546_v11, %v3624_v10  ;;  %v3553_v16 = vpop.f32.mrb[175].mxu1  ;;  %v3909_v10 = vld [vmem:[#allocation4 + $0xb3] sm:$0xff] }
 0x3fa   : > { %v4578_v56 = vmax.f32 %v12179_v63, %v12216_v17  ;;  %v12232_v34 = vmax.f32 %v4576_v45, %v12216_v17  ;;  %v4638_v44 = vmax.f32 %v4606_v30, %v12216_v17  ;;  %14428 = vst [vmem:[#allocation39_spill] sm:$0xff] %v12236_v50  ;;  %v4579_v8 = vmax.f32 %v12187_v2, %v12222_v27  ;;  %v4222_v7 = vld [vmem:[#allocation4 + $0x60] sm:$0xff]  ;;  %v3908_v30 = vld [vmem:[#allocation4 + $0xab] sm:$0xff] }
 0x3fb   : > { %v3868_v54 = vmax.f32 %v14427_v43, %v3828_v52  ;;  %v12241_v36 = vmax.f32 %v4577_v33, %v12222_v27  ;;  %v4639_v55 = vmax.f32 %v4607_v39, %v12222_v27  ;;  %v4262_v63 = vld [vmem:[#allocation4 + $0x61] sm:$0xff]  ;;  %3689 = vst [vmem:[#allocation4 + $0x172] sm:$0xff] %v12236_v50  ;;  %v4263_v20 = vld [vmem:[#allocation4 + $0x69] sm:$0xff]  ;;  %v12248_v52 = vsel %vm3590_vm11, %v3538_v1, %v3622_v48 }
 0x3fc   : > { %v4223_v11 = vld [vmem:[#allocation4 + $0x68] sm:$0xff]  ;;  %v4302_v32 = vmax.f32 %v4222_v7, %v4262_v63  ;;  %14429 = vst [vmem:[#allocation40_spill] sm:$0xff] %v12248_v52  ;;  %v3869_v2 = vmax.f32 %v3789_v25, %v12066_v41  ;;  %3687 = vst [vmem:[#allocation4 + $0x15a] sm:$0xff] %v12248_v52  ;;  %v4060_v43 = vmax.f32 %v12075_v19, %v12096_v51 }
 0x3fd   : > { %v3948_v33 = vmax.f32 %v3868_v54, %v3908_v30  ;;  %v4303_v13 = vmax.f32 %v4223_v11, %v4263_v20  ;;  %v3988_v5 = vld [vmem:[#allocation4 + $0xac] sm:$0xff]  ;;  %v4061_v7 = vmax.f32 %v12077_v15, %v12101_v46  ;;  %v3559_v25 = vadd.f32 %v10346_v42, %v11983_v0  ;;  %v4422_v30 = vld [vmem:[#allocation4 + $0x63] sm:$0xff]  ;;  %v3989_v11 = vld [vmem:[#allocation4 + $0xb4] sm:$0xff] }
 0x3fe   : > { %v4382_v1 = vmax.f32 %v4302_v32, %v12191_v53  ;;  %v3949_v48 = vmax.f32 %v3869_v2, %v3909_v10  ;;  %v4092_v20 = vmax.f32 %v4060_v43, %v12122_v18  ;;  %v3551_v19 = vadd.f32 %v11983_v0, %v3550_v47  ;;  %v4423_v39 = vld [vmem:[#allocation4 + $0x6b] sm:$0xff] }
 0x3ff   : > { %v12259_v63 = vmax.f32 %v3948_v33, %v3988_v5  ;;  %v4383_v54 = vmax.f32 %v4303_v13, %v12199_v4  ;;  %v4093_v45 = vmax.f32 %v4061_v7, %v12131_v38  ;;  %vm3595_vm12 = vcmp.gt.f32.partialorder %v3559_v25, 0.0  ;;  %v4502_v2 = vld [vmem:[#allocation4 + $0x64] sm:$0xff]  ;;  %v4503_v33 = vld [vmem:[#allocation4 + $0x6c] sm:$0xff] }
 0x400   : > { %v4462_v61 = vmax.f32 %v4382_v1, %v4422_v30  ;;  %v12266_v15 = vmax.f32 %v3949_v48, %v3989_v11  ;;  %v3627_v53 = vmul.f32 0.1, %v3559_v25  ;;  %v4124_v42 = vmax.f32 %v4092_v20, %v12176_v49  ;;  %v3710_v1 = vld [vmem:[#allocation4 + $0xc0] sm:$0xff]  ;;  %v3751_v11 = vld [vmem:[#allocation4 + $0xc9] sm:$0xff] }
 0x401   : > { %v4463_v32 = vmax.f32 %v4383_v54, %v4423_v39  ;;  %v4125_v4 = vmax.f32 %v4093_v45, %v12184_v59  ;;  %vm3593_vm13 = vcmp.gt.f32.partialorder %v3551_v19, 0.0  ;;  %v3625_v5 = vmul.f32 0.1, %v3551_v19  ;;  %v3711_v54 = vld [vmem:[#allocation4 + $0xc8] sm:$0xff] }
 0x402   : > { %v12270_v13 = vmax.f32 %v4462_v61, %v4502_v2  ;;  %v12272_v10 = vsel %vm3595_vm12, %v3559_v25, %v3627_v53  ;;  %v3562_v47 = vadd.f32 %v10347_v29, %v11983_v0  ;;  %v12278_v7 = vmax.f32 %v4124_v42, %v12259_v63  ;;  %v3750_v30 = vld [vmem:[#allocation4 + $0xc1] sm:$0xff]  ;;  %v3831_v20 = vld [vmem:[#allocation4 + $0xca] sm:$0xff] }
 0x403   : > { %14430 = vst [vmem:[#allocation41_spill] sm:$0xff] %v12272_v10  ;;  %v12275_v43 = vmax.f32 %v4463_v32, %v4503_v33  ;;  %v12281_v39 = vmax.f32 %v4125_v4, %v12266_v15  ;;  %3692 = vst [vmem:[#allocation4 + $0x19a] sm:$0xff] %v12272_v10  ;;  %v3554_v45 = vadd.f32 %v11983_v0, %v3553_v16  ;;  %v3830_v42 = vld [vmem:[#allocation4 + $0xc2] sm:$0xff]  ;;  %v3712_v4 = vld [vmem:[#allocation4 + $0xd8] sm:$0xff] }
 0x404   : > { %v12288_v48 = vmax.f32 %v4578_v56, %v12270_v13  ;;  %v12293_v25 = vmax.f32 %v4638_v44, %v12270_v13  ;;  %4188 = vst [vmem:[#allocation4 + $0x7a] sm:$0xff] %v12278_v7  ;;  %v12311_v53 = vsel %vm3593_vm13, %v3551_v19, %v3625_v5  ;;  %vm3596_vm14 = vcmp.gt.f32.partialorder %v3562_v47, 0.0  ;;  %v3752_v33 = vld [vmem:[#allocation4 + $0xd9] sm:$0xff] }
 0x405   : > { %v12298_v0 = vmax.f32 %v4579_v8, %v12275_v43  ;;  %v12303_v56 = vmax.f32 %v4639_v55, %v12275_v43  ;;  %4189 = vst [vmem:[#allocation4 + $0x82] sm:$0xff] %v12281_v39  ;;  %v5241_v44 = vpack.c.bf16 %v12281_v39, %v12278_v7  ;;  %14431 = vst [vmem:[#allocation42_spill] sm:$0xff] %v12311_v53  ;;  %v3628_v8 = vmul.f32 0.1, %v3562_v47  ;;  %v3713_v61 = vld [vmem:[#allocation4 + $0xe0] sm:$0xff] }
 0x406   : > { %4702 = vst [vmem:[#allocation4 + $0x32] sm:$0xff] %v12293_v25  ;;  %3690 = vst [vmem:[#allocation4 + $0x182] sm:$0xff] %v12311_v53  ;;  %vm3594_vm15 = vcmp.gt.f32.partialorder %v3554_v45, 0.0  ;;  %v3626_v55 = vmul.f32 0.1, %v3554_v45  ;;  %v3790_v32 = vmax.f32 %v3710_v1, %v3750_v30  ;;  %v3791_v2 = vmax.f32 %v3711_v54, %v3751_v11  ;;  %v3910_v11 = vld [vmem:[#allocation4 + $0xc3] sm:$0xff] }
 0x407   : > { %4703 = vst [vmem:[#allocation4 + $0x3a] sm:$0xff] %v12303_v56  ;;  %5605 = vmatprep.mubr.bf16.mxu0 %v5241_v44  ;;  %v12315_v16 = vsel %vm3596_vm14, %v3562_v47, %v3628_v8  ;;  %v4062_v19 = vmax.f32 %v12096_v51, %v12122_v18  ;;  %v4063_v5 = vmax.f32 %v12101_v46, %v12131_v38  ;;  %v3911_v44 = vld [vmem:[#allocation4 + $0xcb] sm:$0xff] }
 0x408   : > { %14432 = vst [vmem:[#allocation43_spill] sm:$0xff] %v12315_v16  ;;  %3693 = vst [vmem:[#allocation4 + $0x1a2] sm:$0xff] %v12315_v16  ;;  %v12327_v47 = vsel %vm3594_vm15, %v3554_v45, %v3626_v55  ;;  %v14434_v54 = vpack.c.bf16 %v12036_v58, %v12028_v28  ;;  %v3870_v51 = vmax.f32 %v3790_v32, %v3830_v42  ;;  %v3832_v45 = vld [vmem:[#allocation4 + $0xda] sm:$0xff]  ;;  %v3990_v16 = vld [vmem:[#allocation4 + $0xc4] sm:$0xff] }
 0x409   : > { %14433 = vst [vmem:[#allocation44_spill] sm:$0xff] %v12327_v47  ;;  %v3871_v30 = vmax.f32 %v3791_v2, %v3831_v20  ;;  %3691 = vst [vmem:[#allocation4 + $0x18a] sm:$0xff] %v12327_v47  ;;  %v4094_v8 = vmax.f32 %v4062_v19, %v12176_v49  ;;  %v4095_v1 = vmax.f32 %v4063_v5, %v12184_v59  ;;  %v3991_v28 = vld [vmem:[#allocation4 + $0xcc] sm:$0xff]  ;;  %v3833_v32 = vld [vmem:[#allocation4 + $0xe2] sm:$0xff] }
 0x40a   : > { %5606 = vmatmul.mubr.bf16.gmra.mrb[220].mxu0 %v14434_v54  ;;  %v3792_v29 = vmax.f32 %v3712_v4, %v3752_v33  ;;  %v3950_v55 = vmax.f32 %v3870_v51, %v3910_v11  ;;  %v3793_v58 = vmax.f32 %v3713_v61, %v3753_v62  ;;  %v4064_v20 = vmax.f32 %v12122_v18, %v12176_v49  ;;  %v3913_v11 = vld [vmem:[#allocation4 + $0xe3] sm:$0xff] }
 0x40b   : > { %v3951_v10 = vmax.f32 %v3871_v30, %v3911_v44  ;;  %v4224_v2 = vld [vmem:[#allocation4 + $0x78] sm:$0xff]  ;;  %v4126_v46 = vmax.f32 %v4094_v8, %v12259_v63  ;;  %v4127_v19 = vmax.f32 %v4095_v1, %v12266_v15  ;;  %v4065_v4 = vmax.f32 %v12131_v38, %v12184_v59 }
 0x40c   : > { %v4225_v42 = vld [vmem:[#allocation4 + $0x80] sm:$0xff]  ;;  %v3872_v53 = vmax.f32 %v3792_v29, %v3832_v45  ;;  %v12343_v51 = vmax.f32 %v3950_v55, %v3990_v16  ;;  %v3873_v61 = vmax.f32 %v3793_v58, %v3833_v32  ;;  %v4096_v8 = vmax.f32 %v4064_v20, %v12259_v63  ;;  %v3714_v29 = vld [vmem:[#allocation4 + $0xf0] sm:$0xff]  ;;  %v3715_v55 = vld [vmem:[#allocation4 + $0xf8] sm:$0xff] }
 0x40d   : > { %v4264_v54 = vld [vmem:[#allocation4 + $0x79] sm:$0xff]  ;;  %v4265_v33 = vld [vmem:[#allocation4 + $0x81] sm:$0xff]  ;;  %v12345_v62 = vmax.f32 %v3951_v10, %v3991_v28  ;;  %v4097_v1 = vmax.f32 %v4065_v4, %v12266_v15  ;;  %v3754_v28 = vld [vmem:[#allocation4 + $0xf1] sm:$0xff] }
 0x40e   : > { %v4304_v5 = vmax.f32 %v4224_v2, %v4264_v54  ;;  %v3912_v30 = vld [vmem:[#allocation4 + $0xdb] sm:$0xff]  ;;  %v4305_v18 = vmax.f32 %v4225_v42, %v4265_v33  ;;  %v12351_v38 = vmax.f32 %v4126_v46, %v12343_v51  ;;  %v3953_v10 = vmax.f32 %v3873_v61, %v3913_v11  ;;  %v3993_v2 = vld [vmem:[#allocation4 + $0xe4] sm:$0xff] }
 0x40f   : > { %v3952_v44 = vmax.f32 %v3872_v53, %v3912_v30  ;;  %v3992_v47 = vld [vmem:[#allocation4 + $0xdc] sm:$0xff]  ;;  %v12354_v16 = vmax.f32 %v4127_v19, %v12345_v62  ;;  %v4128_v42 = vmax.f32 %v4096_v8, %v12343_v51  ;;  %v3794_v61 = vmax.f32 %v3714_v29, %v3754_v28  ;;  %v3834_v8 = vld [vmem:[#allocation4 + $0xf2] sm:$0xff] }
 0x410   : > { %v4384_v45 = vmax.f32 %v4304_v5, %v12278_v7  ;;  %v3755_v58 = vld [vmem:[#allocation4 + $0xf9] sm:$0xff]  ;;  %v4385_v53 = vmax.f32 %v4305_v18, %v12281_v39  ;;  %v4129_v7 = vmax.f32 %v4097_v1, %v12345_v62  ;;  %v4425_v54 = vld [vmem:[#allocation4 + $0x83] sm:$0xff]  ;;  %4190 = vst [vmem:[#allocation4 + $0x92] sm:$0xff] %v12351_v38  ;;  %v12365_v4 = vmax.f32 %v3953_v10, %v3993_v2 }
 0x411   : > { %v4424_v32 = vld [vmem:[#allocation4 + $0x7b] sm:$0xff]  ;;  %v12357_v20 = vmax.f32 %v3952_v44, %v3992_v47  ;;  %4191 = vst [vmem:[#allocation4 + $0x9a] sm:$0xff] %v12354_v16  ;;  %v5242_v19 = vpack.c.bf16 %v12354_v16, %v12351_v38  ;;  %v3795_v30 = vmax.f32 %v3715_v55, %v3755_v58  ;;  %v4505_v18 = vld [vmem:[#allocation4 + $0x84] sm:$0xff]  ;;  %v4067_v10 = vmax.f32 %v12184_v59, %v12266_v15 }
 0x412   : > { %v4464_v46 = vmax.f32 %v4384_v45, %v4424_v32  ;;  %v4465_v47 = vmax.f32 %v4385_v53, %v4425_v54  ;;  %v4504_v33 = vld [vmem:[#allocation4 + $0x7c] sm:$0xff]  ;;  %v12375_v44 = vmax.f32 %v4129_v7, %v12365_v4  ;;  %v4066_v45 = vmax.f32 %v12176_v49, %v12259_v63  ;;  %v3716_v32 = vld [vmem:[#allocation4 + $0x108] sm:$0xff]  ;;  %v3717_v7 = vld [vmem:[#allocation4 + $0x110] sm:$0xff] }
 0x413   : > { %v12370_v5 = vmax.f32 %v4128_v42, %v12357_v20  ;;  %5613 = vmatprep.mubr.bf16.mxu0 %v5242_v19  ;;  %v3835_v1 = vld [vmem:[#allocation4 + $0xfa] sm:$0xff]  ;;  %v14435_v29 = vpack.c.bf16 %v12073_v9, %v12063_v57  ;;  %v3874_v55 = vmax.f32 %v3794_v61, %v3834_v8  ;;  %v14436_v59 = vmax.f32 %v12216_v17, %v12270_v13  ;;  %v3756_v54 = vld [vmem:[#allocation4 + $0x109] sm:$0xff] }
 0x414   : > { %v12372_v11 = vmax.f32 %v4464_v46, %v4504_v33  ;;  %v12381_v53 = vmax.f32 %v4465_v47, %v4505_v18  ;;  %v3875_v28 = vmax.f32 %v3795_v30, %v3835_v1  ;;  %v14437_v9 = vmax.f32 %v12232_v34, %v12270_v13  ;;  %4193 = vst [vmem:[#allocation4 + $0xb2] sm:$0xff] %v12375_v44  ;;  %v3757_v46 = vld [vmem:[#allocation4 + $0x111] sm:$0xff]  ;;  %v3915_v18 = vld [vmem:[#allocation4 + $0xfb] sm:$0xff] }
 0x415   : > { %5614 = vmatmul.mubr.bf16.gmra.mrb[224].mxu0 %v14435_v29  ;;  %4192 = vst [vmem:[#allocation4 + $0xaa] sm:$0xff] %v12370_v5  ;;  %v14438_v17 = vmax.f32 %v12222_v27, %v12275_v43  ;;  %v14439_v34 = vmax.f32 %v12241_v36, %v12275_v43  ;;  %v3914_v30 = vld [vmem:[#allocation4 + $0xf3] sm:$0xff]  ;;  %v5243_v8 = vpack.c.bf16 %v12375_v44, %v12370_v5 }
 0x416   : > { %v12395_v2 = vmax.f32 %v14436_v59, %v12372_v11  ;;  %v12403_v42 = vmax.f32 %v14437_v9, %v12372_v11  ;;  %v3954_v1 = vmax.f32 %v3874_v55, %v3914_v30  ;;  %v3955_v27 = vmax.f32 %v3875_v28, %v3915_v18  ;;  %v3994_v29 = vld [vmem:[#allocation4 + $0xf4] sm:$0xff]  ;;  %v3995_v59 = vld [vmem:[#allocation4 + $0xfc] sm:$0xff]  ;;  %v3836_v30 = vld [vmem:[#allocation4 + $0x10a] sm:$0xff] }
 0x417   : > { %v12412_v47 = vmax.f32 %v14438_v17, %v12381_v53  ;;  %v12420_v61 = vmax.f32 %v14439_v34, %v12381_v53  ;;  %v4098_v9 = vmax.f32 %v4066_v45, %v12343_v51  ;;  %v4226_v17 = vld [vmem:[#allocation4 + $0x90] sm:$0xff]  ;;  %v4099_v34 = vmax.f32 %v4067_v10, %v12345_v62  ;;  %5621 = vmatprep.mubr.bf16.mxu0 %v5243_v8 }
 0x418   : > { %4704 = vst [vmem:[#allocation4 + $0x4a] sm:$0xff] %v12403_v42  ;;  %v4227_v58 = vld [vmem:[#allocation4 + $0x98] sm:$0xff]  ;;  %v3796_v33 = vmax.f32 %v3716_v32, %v3756_v54  ;;  %v3797_v19 = vmax.f32 %v3717_v7, %v3757_v46  ;;  %v4068_v57 = vmax.f32 %v12259_v63, %v12343_v51  ;;  %v12430_v55 = vmax.f32 %v3954_v1, %v3994_v29  ;;  %v3916_v7 = vld [vmem:[#allocation4 + $0x10b] sm:$0xff] }
 0x419   : > { %4705 = vst [vmem:[#allocation4 + $0x52] sm:$0xff] %v12420_v61  ;;  %v4266_v36 = vld [vmem:[#allocation4 + $0x91] sm:$0xff]  ;;  %v4267_v49 = vld [vmem:[#allocation4 + $0x99] sm:$0xff]  ;;  %v12432_v28 = vmax.f32 %v3955_v27, %v3995_v59  ;;  %v4130_v45 = vmax.f32 %v4098_v9, %v12357_v20  ;;  %v4131_v50 = vmax.f32 %v4099_v34, %v12365_v4  ;;  %v4069_v27 = vmax.f32 %v12266_v15, %v12345_v62 }
 0x41a   : > { %v4306_v39 = vmax.f32 %v4226_v17, %v4266_v36  ;;  %v3837_v18 = vld [vmem:[#allocation4 + $0x112] sm:$0xff]  ;;  %v4307_v26 = vmax.f32 %v4227_v58, %v4267_v49  ;;  %v3876_v10 = vmax.f32 %v3796_v33, %v3836_v30  ;;  %v4100_v29 = vmax.f32 %v4068_v57, %v12357_v20  ;;  %v4427_v36 = vld [vmem:[#allocation4 + $0x9b] sm:$0xff] }
 0x41b   : > { %v3877_v32 = vmax.f32 %v3797_v19, %v3837_v18  ;;  %v3917_v54 = vld [vmem:[#allocation4 + $0x113] sm:$0xff]  ;;  %v12438_v8 = vmax.f32 %v4130_v45, %v12430_v55 }
 0x41c   : > { %v4386_v63 = vmax.f32 %v4306_v39, %v12351_v38  ;;  %v4228_v46 = vld [vmem:[#allocation4 + $0xa8] sm:$0xff]  ;;  %v4387_v58 = vmax.f32 %v4307_v26, %v12354_v16  ;;  %v4426_v49 = vld [vmem:[#allocation4 + $0x93] sm:$0xff]  ;;  %v14440_v38 = vpack.c.bf16 %v12066_v41, %v12060_v21  ;;  %v12448_v39 = vmax.f32 %v4131_v50, %v12432_v28 }
 0x41d   : > { %v4268_v17 = vld [vmem:[#allocation4 + $0xa9] sm:$0xff]  ;;  %v4269_v19 = vld [vmem:[#allocation4 + $0xb1] sm:$0xff]  ;;  %v3956_v9 = vmax.f32 %v3876_v10, %v3916_v7  ;;  %4194 = vst [vmem:[#allocation4 + $0xc2] sm:$0xff] %v12438_v8  ;;  %v3957_v15 = vmax.f32 %v3877_v32, %v3917_v54  ;;  %v4101_v26 = vmax.f32 %v4069_v27, %v12365_v4  ;;  %v4507_v10 = vld [vmem:[#allocation4 + $0x9c] sm:$0xff] }
 0x41e   : > { %v3996_v1 = vld [vmem:[#allocation4 + $0x10c] sm:$0xff]  ;;  %v4308_v59 = vmax.f32 %v4228_v46, %v4268_v17  ;;  %5622 = vmatmul.mubr.bf16.gmra.mrb[228].mxu0 %v14440_v38  ;;  %v4466_v34 = vmax.f32 %v4386_v63, %v4426_v49  ;;  %v4467_v30 = vmax.f32 %v4387_v58, %v4427_v36  ;;  %v4506_v18 = vld [vmem:[#allocation4 + $0x94] sm:$0xff]  ;;  %4195 = vst [vmem:[#allocation4 + $0xca] sm:$0xff] %v12448_v39 }
 0x41f   : > { %v4229_v33 = vld [vmem:[#allocation4 + $0xb0] sm:$0xff]  ;;  %v5244_v21 = vpack.c.bf16 %v12448_v39, %v12438_v8  ;;  %v12456_v50 = vmax.f32 %v3956_v9, %v3996_v1  ;;  %v4132_v17 = vmax.f32 %v4100_v29, %v12430_v55  ;;  %v4133_v58 = vmax.f32 %v4101_v26, %v12432_v28  ;;  %v4739_v49 = vld [vmem:[#allocation4 + $0x38] sm:$0xff] }
 0x420   : > { %v4309_v45 = vmax.f32 %v4229_v33, %v4269_v19  ;;  %v4738_v16 = vld [vmem:[#allocation4 + $0x30] sm:$0xff]  ;;  %v4388_v46 = vmax.f32 %v4308_v59, %v12370_v5  ;;  %v12458_v7 = vmax.f32 %v4466_v34, %v4506_v18  ;;  %v12464_v27 = vmax.f32 %v4467_v30, %v4507_v10  ;;  %v4740_v33 = vld [vmem:[#allocation4 + $0x48] sm:$0xff]  ;;  %v4779_v1 = vld [vmem:[#allocation4 + $0x39] sm:$0xff] }
 0x421   : > { %v4778_v57 = vld [vmem:[#allocation4 + $0x31] sm:$0xff]  ;;  %5629 = vmatprep.mubr.bf16.mxu0 %v5244_v21  ;;  %v14442_v9 = vmax.f32 %v12288_v48, %v12372_v11  ;;  %v14444_v48 = vmax.f32 %v12298_v0, %v12381_v53  ;;  %v4819_v10 = vmax.f32 %v4739_v49, %v4779_v1 }
 0x422   : > { %v3997_v41 = vld [vmem:[#allocation4 + $0x114] sm:$0xff]  ;;  %v4389_v32 = vmax.f32 %v4309_v45, %v12375_v44  ;;  %v4428_v54 = vld [vmem:[#allocation4 + $0xab] sm:$0xff]  ;;  %v4818_v19 = vmax.f32 %v4738_v16, %v4778_v57  ;;  %v4584_v59 = vmax.f32 %v12372_v11, %v12458_v7  ;;  %v14441_v44 = vmax.f32 %v12270_v13, %v12372_v11 }
 0x423   : > { %v12461_v63 = vmax.f32 %v3957_v15, %v3997_v41  ;;  %v4468_v5 = vmax.f32 %v4388_v46, %v4428_v54  ;;  %v4644_v29 = vmax.f32 %v12395_v2, %v12458_v7  ;;  %v12481_v36 = vmax.f32 %v14442_v9, %v12458_v7  ;;  %v4741_v34 = vld [vmem:[#allocation4 + $0x50] sm:$0xff] }
 0x424   : > { %v12473_v38 = vmax.f32 %v14441_v44, %v12458_v7  ;;  %v4780_v45 = vld [vmem:[#allocation4 + $0x49] sm:$0xff]  ;;  %v4781_v15 = vld [vmem:[#allocation4 + $0x51] sm:$0xff]  ;;  %v4585_v26 = vmax.f32 %v12381_v53, %v12464_v27  ;;  %v14443_v13 = vmax.f32 %v12275_v43, %v12381_v53  ;;  %v4645_v2 = vmax.f32 %v12412_v47, %v12464_v27  ;;  %v4230_v41 = vld [vmem:[#allocation4 + $0xc0] sm:$0xff] }
 0x425   : > { %v12497_v11 = vmax.f32 %v14444_v48, %v12464_v27  ;;  %v4429_v57 = vld [vmem:[#allocation4 + $0xb3] sm:$0xff]  ;;  %4706 = vst [vmem:[#allocation4 + $0x62] sm:$0xff] %v12481_v36  ;;  %v12503_v43 = vmax.f32 %v4132_v17, %v12456_v50  ;;  %v12506_v21 = vmax.f32 %v4133_v58, %v12461_v63  ;;  %v4270_v0 = vld [vmem:[#allocation4 + $0xc1] sm:$0xff]  ;;  %v14445_v53 = vpack.c.bf16 %v12106_v22, %v12094_v23  ;;  %v4271_v48 = vld [vmem:[#allocation4 + $0xc9] sm:$0xff] }
 0x426   : > { %v12489_v16 = vmax.f32 %v14443_v13, %v12464_v27  ;;  %v4508_v30 = vld [vmem:[#allocation4 + $0xac] sm:$0xff]  ;;  %v4469_v18 = vmax.f32 %v4389_v32, %v4429_v57  ;;  %v4509_v47 = vld [vmem:[#allocation4 + $0xb4] sm:$0xff]  ;;  %v4820_v54 = vmax.f32 %v4740_v33, %v4780_v45  ;;  %v4821_v32 = vmax.f32 %v4741_v34, %v4781_v15 }
 0x427   : > { %v12500_v46 = vmax.f32 %v4468_v5, %v4508_v30  ;;  %4707 = vst [vmem:[#allocation4 + $0x6a] sm:$0xff] %v12497_v11  ;;  %5630 = vmatmul.mubr.bf16.gmra.mrb[232].mxu0 %v14445_v53  ;;  %v4898_v5 = vmax.f32 %v4818_v19, %v12293_v25  ;;  %v4231_v13 = vld [vmem:[#allocation4 + $0xc8] sm:$0xff]  ;;  %4196 = vst [vmem:[#allocation4 + $0xda] sm:$0xff] %v12503_v43  ;;  %v4310_v22 = vmax.f32 %v4230_v41, %v4270_v0  ;;  %v4938_v45 = vld [vmem:[#allocation4 + $0x33] sm:$0xff] }
 0x428   : > { %v12513_v44 = vmax.f32 %v4469_v18, %v4509_v47  ;;  %4197 = vst [vmem:[#allocation4 + $0xe2] sm:$0xff] %v12506_v21  ;;  %v4311_v49 = vmax.f32 %v4231_v13, %v4271_v48  ;;  %v5245_v33 = vpack.c.bf16 %v12506_v21, %v12503_v43  ;;  %v4899_v57 = vmax.f32 %v4819_v10, %v12303_v56  ;;  %v4940_v30 = vld [vmem:[#allocation4 + $0x4b] sm:$0xff]  ;;  %v5018_v18 = vld [vmem:[#allocation4 + $0x34] sm:$0xff]  ;;  %v5019_v53 = vld [vmem:[#allocation4 + $0x3c] sm:$0xff] }
 0x429   : > { %v12518_v58 = vmax.f32 %v4584_v59, %v12500_v46  ;;  %v12525_v23 = vmax.f32 %v4644_v29, %v12500_v46  ;;  %v4390_v29 = vmax.f32 %v4310_v22, %v12438_v8  ;;  %v4901_v47 = vmax.f32 %v4821_v32, %v12420_v61  ;;  %v4941_v41 = vld [vmem:[#allocation4 + $0x53] sm:$0xff]  ;;  %v4510_v13 = vld [vmem:[#allocation4 + $0xc4] sm:$0xff] }
 0x42a   : > { %v4587_v1 = vmax.f32 %v12464_v27, %v12513_v44  ;;  %v12532_v19 = vmax.f32 %v4585_v26, %v12513_v44  ;;  %v4647_v59 = vmax.f32 %v12489_v16, %v12513_v44  ;;  %v12537_v34 = vmax.f32 %v4645_v2, %v12513_v44  ;;  %5637 = vmatprep.mubr.bf16.mxu0 %v5245_v33  ;;  %v4939_v26 = vld [vmem:[#allocation4 + $0x3b] sm:$0xff]  ;;  %v4430_v16 = vld [vmem:[#allocation4 + $0xc3] sm:$0xff]  ;;  %v4431_v2 = vld [vmem:[#allocation4 + $0xcb] sm:$0xff] }
 0x42b   : > { %4708 = vst [vmem:[#allocation4 + $0x7a] sm:$0xff] %v12525_v23  ;;  %v4391_v15 = vmax.f32 %v4311_v49, %v12448_v39  ;;  %v4900_v27 = vmax.f32 %v4820_v54, %v12403_v42  ;;  %v4978_v0 = vmax.f32 %v4898_v5, %v4938_v45  ;;  %v5229_v39 = vpack.c.bf16 %v12099_v6, %v12091_v3  ;;  %v5020_v9 = vld [vmem:[#allocation4 + $0x4c] sm:$0xff] }
 0x42c   : > { %4709 = vst [vmem:[#allocation4 + $0x82] sm:$0xff] %v12537_v34  ;;  %v4470_v10 = vmax.f32 %v4390_v29, %v4430_v16  ;;  %v4742_v48 = vld [vmem:[#allocation4 + $0x60] sm:$0xff]  ;;  %v4979_v49 = vmax.f32 %v4899_v57, %v4939_v26  ;;  %v4511_v17 = vld [vmem:[#allocation4 + $0xcc] sm:$0xff]  ;;  %v4981_v5 = vmax.f32 %v4901_v47, %v4941_v41  ;;  %v14446_v8 = vmax.f32 %v12020_v14, %v12024_v40  ;;  %v5021_v26 = vld [vmem:[#allocation4 + $0x54] sm:$0xff] }
 0x42d   : > { %v4471_v54 = vmax.f32 %v4391_v15, %v4431_v2  ;;  %v4782_v22 = vld [vmem:[#allocation4 + $0x61] sm:$0xff]  ;;  %v4980_v33 = vmax.f32 %v4900_v27, %v4940_v30  ;;  %v12550_v45 = vmax.f32 %v4978_v0, %v5018_v18 }
 0x42e   : > { %v4743_v31 = vld [vmem:[#allocation4 + $0x68] sm:$0xff]  ;;  %v4822_v52 = vmax.f32 %v4742_v48, %v4782_v22  ;;  %v5095_v3 = vmax.f32 %v14446_v8, %v12040_v35  ;;  %v12556_v6 = vmax.f32 %v4470_v10, %v4510_v13  ;;  %v4232_v15 = vld [vmem:[#allocation4 + $0xd8] sm:$0xff]  ;;  %v12560_v30 = vmax.f32 %v4979_v49, %v5019_v53 }
 0x42f   : > { %v4783_v32 = vld [vmem:[#allocation4 + $0x69] sm:$0xff]  ;;  %v12558_v29 = vmax.f32 %v4471_v54, %v4511_v17  ;;  %v4272_v57 = vld [vmem:[#allocation4 + $0xd9] sm:$0xff]  ;;  %5638 = vmatmul.mubr.bf16.gmra.mrb[236].mxu0 %v5229_v39  ;;  %v4273_v2 = vld [vmem:[#allocation4 + $0xe1] sm:$0xff]  ;;  %v12563_v41 = vmax.f32 %v4980_v33, %v5020_v9  ;;  %v12565_v14 = vmax.f32 %v4981_v5, %v5021_v26  ;;  %v14448_v8 = vmax.f32 %v12473_v38, %v12500_v46 }
 0x430   : > { %v4823_v27 = vmax.f32 %v4743_v31, %v4783_v32  ;;  %v4233_v16 = vld [vmem:[#allocation4 + $0xe0] sm:$0xff]  ;;  %v4312_v18 = vmax.f32 %v4232_v15, %v4272_v57  ;;  %v4902_v47 = vmax.f32 %v4822_v52, %v12481_v36  ;;  %v4588_v40 = vmax.f32 %v12500_v46, %v12556_v6 }
 0x431   : > { %v4589_v17 = vmax.f32 %v12513_v44, %v12558_v29  ;;  %v14447_v31 = vmax.f32 %v12458_v7, %v12500_v46  ;;  %v12578_v53 = vmax.f32 %v4587_v1, %v12558_v29  ;;  %v4648_v52 = vmax.f32 %v12518_v58, %v12556_v6  ;;  %v4942_v7 = vld [vmem:[#allocation4 + $0x63] sm:$0xff]  ;;  %v4432_v38 = vld [vmem:[#allocation4 + $0xdb] sm:$0xff]  ;;  %v4943_v46 = vld [vmem:[#allocation4 + $0x6b] sm:$0xff] }
 0x432   : > { %v4649_v9 = vmax.f32 %v12532_v19, %v12558_v29  ;;  %v12588_v44 = vmax.f32 %v14448_v8, %v12556_v6  ;;  %v12591_v39 = vmax.f32 %v4647_v59, %v12558_v29  ;;  %v4744_v10 = vld [vmem:[#allocation4 + $0x78] sm:$0xff]  ;;  %v4313_v54 = vmax.f32 %v4233_v16, %v4273_v2  ;;  %v5022_v49 = vld [vmem:[#allocation4 + $0x64] sm:$0xff] }
 0x433   : > { %v12575_v0 = vmax.f32 %v14447_v31, %v12556_v6  ;;  %v4392_v1 = vmax.f32 %v4312_v18, %v12503_v43  ;;  %v4903_v13 = vmax.f32 %v4823_v27, %v12497_v11  ;;  %v4982_v58 = vmax.f32 %v4902_v47, %v4942_v7  ;;  %v4745_v48 = vld [vmem:[#allocation4 + $0x80] sm:$0xff]  ;;  %v5023_v31 = vld [vmem:[#allocation4 + $0x6c] sm:$0xff] }
 0x434   : > { %v4784_v22 = vld [vmem:[#allocation4 + $0x79] sm:$0xff]  ;;  %v4785_v19 = vld [vmem:[#allocation4 + $0x81] sm:$0xff]  ;;  %4710 = vst [vmem:[#allocation4 + $0x92] sm:$0xff] %v12588_v44  ;;  %4711 = vst [vmem:[#allocation4 + $0x9a] sm:$0xff] %v12591_v39  ;;  %v14449_v59 = vmax.f32 %v12026_v12, %v12030_v24  ;;  %v5127_v43 = vmax.f32 %v5095_v3, %v12560_v30  ;;  %v4393_v15 = vmax.f32 %v4313_v54, %v12506_v21 }
 0x435   : > { %v4824_v32 = vmax.f32 %v4744_v10, %v4784_v22  ;;  %v4825_v5 = vmax.f32 %v4745_v48, %v4785_v19  ;;  %v4472_v57 = vmax.f32 %v4392_v1, %v4432_v38  ;;  %v4983_v27 = vmax.f32 %v4903_v13, %v4943_v46  ;;  %v3718_v16 = vld [vmem:[#allocation4 + $0x120] sm:$0xff] }
 0x436   : > { %v5126_v33 = vmax.f32 %v14449_v59, %v12550_v45  ;;  %v12603_v26 = vmax.f32 %v4982_v58, %v5022_v49  ;;  %v3758_v2 = vld [vmem:[#allocation4 + $0x121] sm:$0xff]  ;;  %v5159_v12 = vmax.f32 %v5127_v43, %v12565_v14  ;;  %v5096_v13 = vmax.f32 %v12030_v24, %v12550_v45  ;;  %v3759_v24 = vld [vmem:[#allocation4 + $0x129] sm:$0xff] }
 0x437   : > { %v4433_v18 = vld [vmem:[#allocation4 + $0xe3] sm:$0xff]  ;;  %v4904_v7 = vmax.f32 %v4824_v32, %v12525_v23  ;;  %v4905_v3 = vmax.f32 %v4825_v5, %v12537_v34  ;;  %v12611_v21 = vmax.f32 %v4983_v27, %v5023_v31  ;;  %v4944_v54 = vld [vmem:[#allocation4 + $0x7b] sm:$0xff]  ;;  %v5097_v46 = vmax.f32 %v12040_v35, %v12560_v30 }
 0x438   : > { %v4512_v47 = vld [vmem:[#allocation4 + $0xdc] sm:$0xff]  ;;  %v5158_v8 = vmax.f32 %v5126_v33, %v12563_v41  ;;  %v4473_v10 = vmax.f32 %v4393_v15, %v4433_v18  ;;  %v4513_v58 = vld [vmem:[#allocation4 + $0xe4] sm:$0xff]  ;;  %v3798_v15 = vmax.f32 %v3718_v16, %v3758_v2 }
 0x439   : > { %v12609_v48 = vmax.f32 %v4472_v57, %v4512_v47  ;;  %v4945_v1 = vld [vmem:[#allocation4 + $0x83] sm:$0xff]  ;;  %v4984_v19 = vmax.f32 %v4904_v7, %v4944_v54  ;;  %v5191_v27 = vmax.f32 %v5159_v12, %v12611_v21  ;;  %v5128_v12 = vmax.f32 %v5096_v13, %v12563_v41 }
 0x43a   : > { %v5190_v22 = vmax.f32 %v5158_v8, %v12603_v26  ;;  %v4985_v38 = vmax.f32 %v4905_v3, %v4945_v1  ;;  %v3719_v49 = vld [vmem:[#allocation4 + $0x128] sm:$0xff]  ;;  %v12618_v59 = vmax.f32 %v4473_v10, %v4513_v58  ;;  %v5024_v32 = vld [vmem:[#allocation4 + $0x7c] sm:$0xff]  ;;  %v5129_v7 = vmax.f32 %v5097_v46, %v12565_v14 }
 0x43b   : > { %v4590_v33 = vmax.f32 %v12556_v6, %v12609_v48  ;;  %v12623_v43 = vmax.f32 %v4588_v40, %v12609_v48  ;;  %v5025_v5 = vld [vmem:[#allocation4 + $0x84] sm:$0xff]  ;;  %v12626_v57 = vmax.f32 %v4648_v52, %v12609_v48  ;;  %v12629_v18 = vmax.f32 %v4984_v19, %v5024_v32  ;;  %v4746_v52 = vld [vmem:[#allocation4 + $0x90] sm:$0xff]  ;;  %v4747_v54 = vld [vmem:[#allocation4 + $0x98] sm:$0xff] }
 0x43c   : > { %v12631_v35 = vmax.f32 %v4985_v38, %v5025_v5  ;;  %v4591_v47 = vmax.f32 %v12558_v29, %v12618_v59  ;;  %v12636_v31 = vmax.f32 %v4589_v17, %v12618_v59  ;;  %v4651_v40 = vmax.f32 %v12578_v53, %v12618_v59  ;;  %v4786_v2 = vld [vmem:[#allocation4 + $0x91] sm:$0xff]  ;;  %v3838_v10 = vld [vmem:[#allocation4 + $0x122] sm:$0xff]  ;;  %v4787_v17 = vld [vmem:[#allocation4 + $0x99] sm:$0xff] }
 0x43d   : > { %v12641_v16 = vmax.f32 %v4649_v9, %v12618_v59  ;;  %4712 = vst [vmem:[#allocation4 + $0xaa] sm:$0xff] %v12626_v57  ;;  %v5270_v8 = vpack.c.bf16 %v5191_v27, %v5190_v22  ;;  %v3799_v3 = vmax.f32 %v3719_v49, %v3759_v24  ;;  %v3839_v1 = vld [vmem:[#allocation4 + $0x12a] sm:$0xff]  ;;  %v3878_v58 = vmax.f32 %v3798_v15, %v3838_v10  ;;  %v4946_v10 = vld [vmem:[#allocation4 + $0x93] sm:$0xff] }
 0x43e   : > { %v4070_v9 = vmax.f32 %v12343_v51, %v12357_v20  ;;  %v4071_v19 = vmax.f32 %v12345_v62, %v12365_v4  ;;  %v5255_v22 = vpack.c.bf16 %v12420_v61, %v12403_v42  ;;  %v5160_v13 = vmax.f32 %v5128_v12, %v12603_v26  ;;  %v3918_v49 = vld [vmem:[#allocation4 + $0x123] sm:$0xff]  ;;  %v3919_v24 = vld [vmem:[#allocation4 + $0x12b] sm:$0xff] }
 0x43f   : > { %4713 = vst [vmem:[#allocation4 + $0xb2] sm:$0xff] %v12641_v16  ;;  %5742 = vmatprep.mubr.bf16.mxu1 %v5270_v8  ;;  %v5161_v38 = vmax.f32 %v5129_v7, %v12611_v21  ;;  %v3879_v46 = vmax.f32 %v3799_v3, %v3839_v1  ;;  %v4826_v32 = vmax.f32 %v4746_v52, %v4786_v2  ;;  %v3998_v12 = vld [vmem:[#allocation4 + $0x124] sm:$0xff]  ;;  %v3999_v7 = vld [vmem:[#allocation4 + $0x12c] sm:$0xff]  ;;  %v3720_v1 = vld [vmem:[#allocation4 + $0x138] sm:$0xff] }
 0x440   : > { %v14450_v5 = vpack.c.bf16 %v12303_v56, %v12293_v25  ;;  %v3958_v51 = vmax.f32 %v3878_v58, %v3918_v49  ;;  %v4102_v15 = vmax.f32 %v4070_v9, %v12430_v55  ;;  %v4103_v62 = vmax.f32 %v4071_v19, %v12432_v28  ;;  %v4947_v9 = vld [vmem:[#allocation4 + $0x9b] sm:$0xff] }
 0x441   : > { %v4827_v27 = vmax.f32 %v4747_v54, %v4787_v17  ;;  %v5192_v42 = vmax.f32 %v5160_v13, %v12629_v18  ;;  %v5193_v61 = vmax.f32 %v5161_v38, %v12631_v35  ;;  %v3959_v8 = vmax.f32 %v3879_v46, %v3919_v24  ;;  %v3760_v54 = vld [vmem:[#allocation4 + $0x139] sm:$0xff]  ;;  %v3761_v46 = vld [vmem:[#allocation4 + $0x141] sm:$0xff] }
 0x442   : > { %5743 = vmatmul.mubr.bf16.vlgmr.msra.gmra.mrb[176].mxu1 %v14450_v5  ;;  %v4906_v52 = vmax.f32 %v4826_v32, %v12588_v44  ;;  %v12663_v2 = vmax.f32 %v3958_v51, %v3998_v12  ;;  %v4134_v25 = vmax.f32 %v4102_v15, %v12456_v50  ;;  %v4135_v56 = vmax.f32 %v4103_v62, %v12461_v63  ;;  %v3721_v38 = vld [vmem:[#allocation4 + $0x140] sm:$0xff]  ;;  %v5026_v5 = vld [vmem:[#allocation4 + $0x94] sm:$0xff] }
 0x443   : > { %v4907_v3 = vmax.f32 %v4827_v27, %v12591_v39  ;;  %v5271_v17 = vpack.c.bf16 %v5193_v61, %v5192_v42  ;;  %v12668_v58 = vmax.f32 %v3959_v8, %v3999_v7  ;;  %v5098_v13 = vmax.f32 %v12550_v45, %v12563_v41  ;;  %v10648_v51 = vld [vmem:[#allocation4 + $0xf2] sm:$0xff]  ;;  %v10649_v15 = vld [vmem:[#allocation4 + $0xfa] sm:$0xff] }
 0x444   : > { %v4986_v19 = vmax.f32 %v4906_v52, %v4946_v10  ;;  %v12673_v49 = vmax.f32 %v4134_v25, %v12663_v2  ;;  %v5099_v24 = vmax.f32 %v12560_v30, %v12565_v14  ;;  %v5230_v62 = vpack.c.bf16 %v10649_v15, %v10648_v51  ;;  %v5027_v42 = vld [vmem:[#allocation4 + $0x9c] sm:$0xff] }
 0x445   : > { %v4987_v32 = vmax.f32 %v4907_v3, %v4947_v9  ;;  %5750 = vmatprep.mubr.bf16.mxu1 %v5271_v17  ;;  %v12678_v27 = vmax.f32 %v4135_v56, %v12668_v58  ;;  %v5130_v45 = vmax.f32 %v5098_v13, %v12603_v26  ;;  %v3800_v8 = vmax.f32 %v3720_v1, %v3760_v54  ;;  %v3840_v52 = vld [vmem:[#allocation4 + $0x13a] sm:$0xff]  ;;  %v4748_v3 = vld [vmem:[#allocation4 + $0xa8] sm:$0xff] }
 0x446   : > { %v12680_v61 = vmax.f32 %v4986_v19, %v5026_v5  ;;  %4198 = vst [vmem:[#allocation4 + $0xf2] sm:$0xff] %v12673_v49  ;;  %v5131_v7 = vmax.f32 %v5099_v24, %v12611_v21  ;;  %v3801_v30 = vmax.f32 %v3721_v38, %v3761_v46  ;;  %v4072_v25 = vmax.f32 %v12357_v20, %v12430_v55  ;;  %v4788_v56 = vld [vmem:[#allocation4 + $0xa9] sm:$0xff]  ;;  %v4789_v13 = vld [vmem:[#allocation4 + $0xb1] sm:$0xff]  ;;  %v3920_v46 = vld [vmem:[#allocation4 + $0x13b] sm:$0xff] }
 0x447   : > { %v12684_v12 = vmax.f32 %v4987_v32, %v5027_v42  ;;  %4199 = vst [vmem:[#allocation4 + $0xfa] sm:$0xff] %v12678_v27  ;;  %v5246_v10 = vpack.c.bf16 %v12678_v27, %v12673_v49  ;;  %v5162_v1 = vmax.f32 %v5130_v45, %v12629_v18  ;;  %v3841_v54 = vld [vmem:[#allocation4 + $0x142] sm:$0xff]  ;;  %v3880_v17 = vmax.f32 %v3800_v8, %v3840_v52  ;;  %v4749_v19 = vld [vmem:[#allocation4 + $0xb0] sm:$0xff] }
 0x448   : > { %v4073_v9 = vmax.f32 %v12365_v4, %v12432_v28  ;;  %v5163_v38 = vmax.f32 %v5131_v7, %v12631_v35  ;;  %v3881_v20 = vmax.f32 %v3801_v30, %v3841_v54  ;;  %v4104_v32 = vmax.f32 %v4072_v25, %v12456_v50  ;;  %v3921_v51 = vld [vmem:[#allocation4 + $0x143] sm:$0xff] }
 0x449   : > { %v5256_v5 = vpack.c.bf16 %v12497_v11, %v12481_v36  ;;  %5645 = vmatprep.mubr.bf16.mxu0 %v5246_v10  ;;  %v5194_v24 = vmax.f32 %v5162_v1, %v12680_v61  ;;  %v3960_v15 = vmax.f32 %v3880_v17, %v3920_v46  ;;  %v4828_v4 = vmax.f32 %v4748_v3, %v4788_v56  ;;  %v4000_v8 = vld [vmem:[#allocation4 + $0x13c] sm:$0xff]  ;;  %v4001_v52 = vld [vmem:[#allocation4 + $0x144] sm:$0xff]  ;;  %v3722_v1 = vld [vmem:[#allocation4 + $0x150] sm:$0xff] }
 0x44a   : > { %5751 = vmatmul.mubr.bf16.gmra.mrb[180].mxu1 %v5255_v22  ;;  %v4105_v42 = vmax.f32 %v4073_v9, %v12461_v63  ;;  %v5195_v45 = vmax.f32 %v5163_v38, %v12684_v12  ;;  %5646 = vmatmul.mubr.bf16.gmra.mrb[240].mxu0 %v5230_v62  ;;  %v3961_v22 = vmax.f32 %v3881_v20, %v3921_v51  ;;  %v3762_v3 = vld [vmem:[#allocation4 + $0x151] sm:$0xff]  ;;  %v3763_v38 = vld [vmem:[#allocation4 + $0x159] sm:$0xff] }
 0x44b   : > { %v4136_v7 = vmax.f32 %v4104_v32, %v12663_v2  ;;  %v4829_v30 = vmax.f32 %v4749_v19, %v4789_v13  ;;  %v12703_v25 = vmax.f32 %v3960_v15, %v4000_v8  ;;  %v4908_v11 = vmax.f32 %v4828_v4, %v12626_v57  ;;  %v4948_v17 = vld [vmem:[#allocation4 + $0xab] sm:$0xff]  ;;  %v4949_v9 = vld [vmem:[#allocation4 + $0xb3] sm:$0xff] }
 0x44c   : > { %v4137_v36 = vmax.f32 %v4105_v42, %v12668_v58  ;;  %v5100_v10 = vmax.f32 %v12563_v41, %v12603_v26  ;;  %v5272_v56 = vpack.c.bf16 %v5195_v45, %v5194_v24  ;;  %v12709_v54 = vmax.f32 %v3961_v22, %v4001_v52  ;;  %v3723_v13 = vld [vmem:[#allocation4 + $0x158] sm:$0xff]  ;;  %v10650_v24 = vld [vmem:[#allocation4 + $0x10a] sm:$0xff] }
 0x44d   : > { %v4909_v62 = vmax.f32 %v4829_v30, %v12641_v16  ;;  %v5101_v19 = vmax.f32 %v12565_v14, %v12611_v21  ;;  %v4234_v20 = vld [vmem:[#allocation4 + $0xf0] sm:$0xff]  ;;  %v12715_v32 = vmax.f32 %v4136_v7, %v12703_v25  ;;  %v4988_v41 = vmax.f32 %v4908_v11, %v4948_v17 }
 0x44e   : > { %v4274_v46 = vld [vmem:[#allocation4 + $0xf1] sm:$0xff]  ;;  %v5132_v51 = vmax.f32 %v5100_v10, %v12629_v18  ;;  %v4275_v22 = vld [vmem:[#allocation4 + $0xf9] sm:$0xff]  ;;  %5758 = vmatprep.mubr.bf16.mxu1 %v5272_v56  ;;  %v12722_v8 = vmax.f32 %v4137_v36, %v12709_v54 }
 0x44f   : > { %v10651_v15 = vld [vmem:[#allocation4 + $0x112] sm:$0xff]  ;;  %v4314_v14 = vmax.f32 %v4234_v20, %v4274_v46  ;;  %v4989_v30 = vmax.f32 %v4909_v62, %v4949_v9  ;;  %v5133_v52 = vmax.f32 %v5101_v19, %v12631_v35  ;;  %4200 = vst [vmem:[#allocation4 + $0x10a] sm:$0xff] %v12715_v32  ;;  %v3803_v46 = vmax.f32 %v3723_v13, %v3763_v38 }
 0x450   : > { %v5231_v42 = vpack.c.bf16 %v10651_v15, %v10650_v24  ;;  %v10559_v4 = vld [vmem:[%s14345_s9 + $0x40] sm:$0xff]   ;;  %v4235_v45 = vld [vmem:[#allocation4 + $0xf8] sm:$0xff]  ;;  %v5164_v24 = vmax.f32 %v5132_v51, %v12680_v61  ;;  %v3802_v15 = vmax.f32 %v3722_v1, %v3762_v3  ;;  %4201 = vst [vmem:[#allocation4 + $0x112] sm:$0xff] %v12722_v8  ;;  %v5247_v36 = vpack.c.bf16 %v12722_v8, %v12715_v32 }
 0x451   : > { %v5028_v7 = vld [vmem:[#allocation4 + $0xac] sm:$0xff]  ;;  %v4315_v11 = vmax.f32 %v4235_v45, %v4275_v22  ;;  %v5029_v10 = vld [vmem:[#allocation4 + $0xb4] sm:$0xff]  ;;  %9668 = vmatprep.subr.bf16.mxu0 %v10559_v4  ;;  %v4394_v20 = vmax.f32 %v4314_v14, %v12673_v49  ;;  %v5165_v62 = vmax.f32 %v5133_v52, %v12684_v12  ;;  %v4074_v14 = vmax.f32 %v12430_v55, %v12456_v50 }
 0x452   : > { %v12726_v17 = vmax.f32 %v4988_v41, %v5028_v7  ;;  %5759 = vmatmul.mubr.bf16.gmra.mrb[184].mxu1 %v5256_v5  ;;  %v12733_v56 = vmax.f32 %v4989_v30, %v5029_v10  ;;  %v3842_v9 = vld [vmem:[#allocation4 + $0x152] sm:$0xff]  ;;  %v4435_v51 = vld [vmem:[#allocation4 + $0xfb] sm:$0xff]  ;;  %5653 = vmatprep.mubr.bf16.mxu0 %v5247_v36  ;;  %v4075_v30 = vmax.f32 %v12432_v28, %v12461_v63 }
 0x453   : > { %v10560_v19 = vld [vmem:[%s14345_s9] sm:$0xff]   ;;  %v4395_v1 = vmax.f32 %v4315_v11, %v12678_v27  ;;  %v3882_v41 = vmax.f32 %v3802_v15, %v3842_v9  ;;  %v3843_v45 = vld [vmem:[#allocation4 + $0x15a] sm:$0xff]  ;;  %5654 = vmatmul.mubr.bf16.gmra.mrb[244].mxu0 %v5231_v42  ;;  %v5257_v13 = vpack.c.bf16 %v12537_v34, %v12525_v23  ;;  %v4650_v38 = vmax.f32 %v12575_v0, %v12609_v48  ;;  %v3724_v34 = vld [vmem:[#allocation4 + $0x168] sm:$0xff] }
 0x454   : > { %v4434_v3 = vld [vmem:[#allocation4 + $0xf3] sm:$0xff]  ;;  %v5196_v49 = vmax.f32 %v5164_v24, %v12726_v17  ;;  %v5197_v5 = vmax.f32 %v5165_v62, %v12733_v56  ;;  %v3883_v52 = vmax.f32 %v3803_v46, %v3843_v45  ;;  %v4515_v10 = vld [vmem:[#allocation4 + $0xfc] sm:$0xff]  ;;  %v4106_v55 = vmax.f32 %v4074_v14, %v12663_v2  ;;  %9669 = vmatpush3.bf16.msra.mxu0 %v10560_v19 }
 0x455   : > { %v4474_v4 = vmax.f32 %v4394_v20, %v4434_v3  ;;  %v3922_v22 = vld [vmem:[#allocation4 + $0x153] sm:$0xff]  ;;  %v4475_v7 = vmax.f32 %v4395_v1, %v4435_v51  ;;  %v3923_v20 = vld [vmem:[#allocation4 + $0x15b] sm:$0xff]  ;;  %v4107_v62 = vmax.f32 %v4075_v30, %v12668_v58  ;;  %v5102_v23 = vmax.f32 %v12603_v26, %v12629_v18 }
 0x456   : > { %v4514_v27 = vld [vmem:[#allocation4 + $0xf4] sm:$0xff]  ;;  %v3962_v11 = vmax.f32 %v3882_v41, %v3922_v22  ;;  %v5273_v15 = vpack.c.bf16 %v5197_v5, %v5196_v49  ;;  %v3963_v36 = vmax.f32 %v3883_v52, %v3923_v20  ;;  %v4236_v1 = vld [vmem:[#allocation4 + $0x108] sm:$0xff]  ;;  %v4003_v45 = vld [vmem:[#allocation4 + $0x15c] sm:$0xff]  ;;  %v4138_v6 = vmax.f32 %v4106_v55, %v12703_v25 }
 0x457   : > { %v12750_v24 = vmax.f32 %v4474_v4, %v4514_v27  ;;  %v12753_v28 = vmax.f32 %v4475_v7, %v4515_v10  ;;  %v4002_v42 = vld [vmem:[#allocation4 + $0x154] sm:$0xff]  ;;  %v4276_v3 = vld [vmem:[#allocation4 + $0x109] sm:$0xff]  ;;  %v4139_v53 = vmax.f32 %v4107_v62, %v12709_v54  ;;  %v12792_v52 = vmax.f32 %v5102_v23, %v12680_v61 }
 0x458   : > { %5766 = vmatprep.mubr.bf16.mxu1 %v5273_v15  ;;  %v12763_v19 = vmax.f32 %v3962_v11, %v4002_v42  ;;  %v3764_v49 = vld [vmem:[#allocation4 + $0x169] sm:$0xff]  ;;  %v4277_v5 = vld [vmem:[#allocation4 + $0x111] sm:$0xff]  ;;  %v4316_v22 = vmax.f32 %v4236_v1, %v4276_v3  ;;  %v12782_v30 = vmax.f32 %v3963_v36, %v4003_v45  ;;  %v4076_v1 = vmax.f32 %v12456_v50, %v12663_v2 }
 0x459   : > { %v4592_v0 = vmax.f32 %v12609_v48, %v12750_v24  ;;  %v12761_v9 = vmax.f32 %v4650_v38, %v12750_v24  ;;  %v4593_v46 = vmax.f32 %v12618_v59, %v12753_v28  ;;  %v12771_v26 = vmax.f32 %v4590_v33, %v12750_v24  ;;  %v4237_v4 = vld [vmem:[#allocation4 + $0x110] sm:$0xff] }
 0x45a   : > { %v4652_v41 = vmax.f32 %v12623_v43, %v12750_v24  ;;  %v12779_v51 = vmax.f32 %v4651_v40, %v12753_v28  ;;  %v4317_v14 = vmax.f32 %v4237_v4, %v4277_v5  ;;  %5767 = vmatmul.mubr.bf16.gmra.mrb[188].mxu1 %v5257_v13  ;;  %v3725_v33 = vld [vmem:[#allocation4 + $0x170] sm:$0xff]  ;;  %v4653_v27 = vmax.f32 %v12636_v31, %v12753_v28 }
 0x45b   : > { %4714 = vst [vmem:[#allocation4 + $0xc2] sm:$0xff] %v12761_v9  ;;  %v3765_v7 = vld [vmem:[#allocation4 + $0x171] sm:$0xff]  ;;  %v5103_v40 = vmax.f32 %v12611_v21, %v12631_v35  ;;  %v4396_v11 = vmax.f32 %v4316_v22, %v12715_v32  ;;  %v12797_v13 = vmax.f32 %v4138_v6, %v12763_v19  ;;  %v3804_v10 = vmax.f32 %v3724_v34, %v3764_v49 }
 0x45c   : > { %4715 = vst [vmem:[#allocation4 + $0xca] sm:$0xff] %v12779_v51  ;;  %v4397_v38 = vmax.f32 %v4317_v14, %v12722_v8  ;;  %v4436_v15 = vld [vmem:[#allocation4 + $0x10b] sm:$0xff]  ;;  %v4437_v31 = vld [vmem:[#allocation4 + $0x113] sm:$0xff]  ;;  %v12800_v20 = vmax.f32 %v4139_v53, %v12782_v30  ;;  %v5166_v21 = vmax.f32 %v12792_v52, %v12726_v17  ;;  %v3805_v36 = vmax.f32 %v3725_v33, %v3765_v7 }
 0x45d   : > { %v12803_v55 = vmax.f32 %v5103_v40, %v12684_v12  ;;  %v3844_v42 = vld [vmem:[#allocation4 + $0x16a] sm:$0xff]  ;;  %v4476_v32 = vmax.f32 %v4396_v11, %v4436_v15  ;;  %4202 = vst [vmem:[#allocation4 + $0x122] sm:$0xff] %v12797_v13  ;;  %v3845_v8 = vld [vmem:[#allocation4 + $0x172] sm:$0xff]  ;;  %v4077_v22 = vmax.f32 %v12461_v63, %v12668_v58  ;;  %v5232_v33 = vpack.c.bf16 %v12182_v60, %v12170_v37 }
 0x45e   : > { %v4477_v62 = vmax.f32 %v4397_v38, %v4437_v31  ;;  %v3884_v23 = vmax.f32 %v3804_v10, %v3844_v42  ;;  %v3924_v34 = vld [vmem:[#allocation4 + $0x16b] sm:$0xff]  ;;  %v4517_v49 = vld [vmem:[#allocation4 + $0x114] sm:$0xff]  ;;  %4203 = vst [vmem:[#allocation4 + $0x12a] sm:$0xff] %v12800_v20  ;;  %v5248_v4 = vpack.c.bf16 %v12800_v20, %v12797_v13  ;;  %v3885_v45 = vmax.f32 %v3805_v36, %v3845_v8  ;;  %v3926_v15 = vld [vmem:[#allocation4 + $0x183] sm:$0xff] }
 0x45f   : > { %v4516_v3 = vld [vmem:[#allocation4 + $0x10c] sm:$0xff]  ;;  %v5167_v5 = vmax.f32 %v12803_v55, %v12733_v56  ;;  %v10561_v14 = vld [vmem:[%s14345_s9 + $0x48] sm:$0xff]   ;;  %v12833_v63 = vmax.f32 %v4591_v47, %v12753_v28  ;;  %v5104_v37 = vmax.f32 %v12629_v18, %v12680_v61  ;;  %v4108_v36 = vmax.f32 %v4076_v1, %v12703_v25  ;;  %v3726_v1 = vld [vmem:[#allocation4 + $0x180] sm:$0xff] }
 0x460   : > { %v12820_v6 = vmax.f32 %v4476_v32, %v4516_v3  ;;  %v12822_v50 = vmax.f32 %v4477_v62, %v4517_v49  ;;  %v3925_v7 = vld [vmem:[#allocation4 + $0x173] sm:$0xff]  ;;  %v3964_v53 = vmax.f32 %v3884_v23, %v3924_v34  ;;  %5661 = vmatprep.mubr.bf16.mxu0 %v5248_v4  ;;  %v4109_v42 = vmax.f32 %v4077_v22, %v12709_v54  ;;  %v3727_v3 = vld [vmem:[#allocation4 + $0x188] sm:$0xff] }
 0x461   : > { %v10562_v40 = vld [vmem:[%s14345_s9 + $0x8] sm:$0xff]   ;;  %v3965_v10 = vmax.f32 %v3885_v45, %v3925_v7  ;;  %5662 = vmatmul.mubr.bf16.gmra.mrb[248].mxu0 %v5232_v33  ;;  %v4004_v62 = vld [vmem:[#allocation4 + $0x16c] sm:$0xff]  ;;  %9670 = vmatprep.subr.bf16.mxu0 %v10561_v14  ;;  %v5105_v4 = vmax.f32 %v12631_v35, %v12684_v12  ;;  %v12877_v45 = vmax.f32 %v5104_v37, %v12726_v17  ;;  %v3766_v22 = vld [vmem:[#allocation4 + $0x181] sm:$0xff] }
 0x462   : > { %v4750_v11 = vld [vmem:[#allocation4 + $0xc0] sm:$0xff]  ;;  %v4594_v60 = vmax.f32 %v12750_v24, %v12820_v6  ;;  %v12845_v29 = vmax.f32 %v4592_v0, %v12820_v6  ;;  %v12853_v18 = vmax.f32 %v4593_v46, %v12822_v50  ;;  %v4654_v32 = vmax.f32 %v12771_v26, %v12820_v6  ;;  %v4005_v8 = vld [vmem:[#allocation4 + $0x174] sm:$0xff]  ;;  %9671 = vmatpush3.bf16.msra.mxu0 %v10562_v40  ;;  %v10566_v55 = vld [vmem:[%s14345_s9 + $0x18] sm:$0xff]  }
 0x463   : > { %v4790_v38 = vld [vmem:[#allocation4 + $0xc1] sm:$0xff]  ;;  %v4791_v31 = vld [vmem:[#allocation4 + $0xc9] sm:$0xff]  ;;  %v12861_v48 = vmax.f32 %v4652_v41, %v12820_v6  ;;  %v12864_v0 = vmax.f32 %v4653_v27, %v12822_v50  ;;  %v12866_v59 = vmax.f32 %v3964_v53, %v4004_v62  ;;  %v12868_v46 = vmax.f32 %v3965_v10, %v4005_v8 }
 0x464   : > { %v4751_v47 = vld [vmem:[#allocation4 + $0xc8] sm:$0xff]  ;;  %v4830_v23 = vmax.f32 %v4750_v11, %v4790_v38  ;;  %v4238_v43 = vld [vmem:[#allocation4 + $0x120] sm:$0xff]  ;;  %v4140_v27 = vmax.f32 %v4108_v36, %v12763_v19  ;;  %v4141_v49 = vmax.f32 %v4109_v42, %v12782_v30  ;;  %v12888_v62 = vmax.f32 %v5105_v4, %v12733_v56 }
 0x465   : > { %v4831_v34 = vmax.f32 %v4751_v47, %v4791_v31  ;;  %4716 = vst [vmem:[#allocation4 + $0xda] sm:$0xff] %v12861_v48  ;;  %4717 = vst [vmem:[#allocation4 + $0xe2] sm:$0xff] %v12864_v0  ;;  %v4278_v41 = vld [vmem:[#allocation4 + $0x121] sm:$0xff]  ;;  %v4279_v33 = vld [vmem:[#allocation4 + $0x129] sm:$0xff] }
 0x466   : > { %v4239_v14 = vld [vmem:[#allocation4 + $0x128] sm:$0xff]  ;;  %v4318_v7 = vmax.f32 %v4238_v43, %v4278_v41  ;;  %v4910_v53 = vmax.f32 %v4830_v23, %v12761_v9  ;;  %v10652_v11 = vld [vmem:[#allocation4 + $0x13a] sm:$0xff]  ;;  %v12882_v35 = vmax.f32 %v4140_v27, %v12866_v59  ;;  %v12885_v37 = vmax.f32 %v4141_v49, %v12868_v46 }
 0x467   : > { %v4911_v40 = vmax.f32 %v4831_v34, %v12779_v51  ;;  %v10653_v38 = vld [vmem:[#allocation4 + $0x142] sm:$0xff]  ;;  %v4319_v31 = vmax.f32 %v4239_v14, %v4279_v33  ;;  %v4951_v42 = vld [vmem:[#allocation4 + $0xcb] sm:$0xff]  ;;  %v3806_v41 = vmax.f32 %v3726_v1, %v3766_v22  ;;  %v4078_v1 = vmax.f32 %v12663_v2, %v12703_v25 }
 0x468   : > { %v5233_v10 = vpack.c.bf16 %v10653_v38, %v10652_v11  ;;  %v3767_v47 = vld [vmem:[#allocation4 + $0x189] sm:$0xff]  ;;  %v4398_v8 = vmax.f32 %v4318_v7, %v12797_v13  ;;  %v10563_v14 = vld [vmem:[%s14345_s9 + $0x50] sm:$0xff]   ;;  %4204 = vst [vmem:[#allocation4 + $0x13a] sm:$0xff] %v12882_v35  ;;  %4205 = vst [vmem:[#allocation4 + $0x142] sm:$0xff] %v12885_v37  ;;  %v5249_v13 = vpack.c.bf16 %v12885_v37, %v12882_v35 }
 0x469   : > { %v4950_v36 = vld [vmem:[#allocation4 + $0xc3] sm:$0xff]  ;;  %v4991_v34 = vmax.f32 %v4911_v40, %v4951_v42  ;;  %v4399_v27 = vmax.f32 %v4319_v31, %v12800_v20  ;;  %v5031_v38 = vld [vmem:[#allocation4 + $0xcc] sm:$0xff]  ;;  %v3807_v49 = vmax.f32 %v3727_v3, %v3767_v47  ;;  %9672 = vmatprep.subr.bf16.mxu0 %v10563_v14  ;;  %v4655_v2 = vmax.f32 %v12833_v63, %v12822_v50 }
 0x46a   : > { %v4990_v23 = vmax.f32 %v4910_v53, %v4950_v36  ;;  %v5030_v43 = vld [vmem:[#allocation4 + $0xc4] sm:$0xff]  ;;  %5669 = vmatprep.mubr.bf16.mxu0 %v5249_v13 }
 0x46b   : > { %v3846_v11 = vld [vmem:[#allocation4 + $0x182] sm:$0xff]  ;;  %v4439_v22 = vld [vmem:[#allocation4 + $0x12b] sm:$0xff]  ;;  %v12906_v53 = vmax.f32 %v4991_v34, %v5031_v38  ;;  %5670 = vmatmul.mubr.bf16.gmra.mrb[252].mxu0 %v5233_v10 }
 0x46c   : > { %v4438_v33 = vld [vmem:[#allocation4 + $0x123] sm:$0xff]  ;;  %v12904_v20 = vmax.f32 %v4990_v23, %v5030_v43  ;;  %v3886_v31 = vmax.f32 %v3806_v41, %v3846_v11  ;;  %v4479_v47 = vmax.f32 %v4399_v27, %v4439_v22  ;;  %v4519_v23 = vld [vmem:[#allocation4 + $0x12c] sm:$0xff]  ;;  %v4752_v41 = vld [vmem:[#allocation4 + $0xd8] sm:$0xff] }
 0x46d   : > { %v10564_v4 = vld [vmem:[%s14345_s9 + $0x10] sm:$0xff]   ;;  %v4478_v7 = vmax.f32 %v4398_v8, %v4438_v33  ;;  %v3847_v40 = vld [vmem:[#allocation4 + $0x18a] sm:$0xff]  ;;  %v4110_v8 = vmax.f32 %v4078_v1, %v12763_v19  ;;  %v5199_v63 = vmax.f32 %v5167_v5, %v12906_v53  ;;  %v5169_v52 = vmax.f32 %v12888_v62, %v12906_v53 }
 0x46e   : > { %v10565_v3 = vld [vmem:[%s14345_s9 + $0x58] sm:$0xff]   ;;  %v3887_v42 = vmax.f32 %v3807_v49, %v3847_v40  ;;  %v5198_v43 = vmax.f32 %v5166_v21, %v12904_v20  ;;  %v4792_v11 = vld [vmem:[#allocation4 + $0xd9] sm:$0xff]  ;;  %v5168_v14 = vmax.f32 %v12877_v45, %v12904_v20  ;;  %v12926_v27 = vmax.f32 %v4479_v47, %v4519_v23  ;;  %9673 = vmatpush3.bf16.msra.mxu0 %v10564_v4 }
 0x46f   : > { %v4518_v36 = vld [vmem:[#allocation4 + $0x124] sm:$0xff]  ;;  %v4832_v13 = vmax.f32 %v4752_v41, %v4792_v11  ;;  %v3966_v21 = vmax.f32 %v3886_v31, %v3926_v15  ;;  %v4079_v1 = vmax.f32 %v12668_v58, %v12709_v54  ;;  %9674 = vmatprep.subr.bf16.mxu0 %v10565_v3  ;;  %v10567_v58 = vld [vmem:[%s14345_s9 + $0x60] sm:$0xff]   ;;  %v4280_v31 = vld [vmem:[#allocation4 + $0x139] sm:$0xff]  ;;  %v4142_v5 = vmax.f32 %v4110_v8, %v12866_v59 }
 0x470   : > { %v12914_v34 = vmax.f32 %v4478_v7, %v4518_v36  ;;  %v4753_v33 = vld [vmem:[#allocation4 + $0xe0] sm:$0xff]  ;;  %v3927_v49 = vld [vmem:[#allocation4 + $0x18b] sm:$0xff]  ;;  %v12954_v26 = vmax.f32 %v4655_v2, %v12926_v27  ;;  %v5274_v24 = vpack.c.bf16 %v5199_v63, %v5198_v43  ;;  %v10569_v8 = vld [vmem:[%s14345_s9 + $0x68] sm:$0xff]  }
 0x471   : > { %v4793_v38 = vld [vmem:[#allocation4 + $0xe1] sm:$0xff]  ;;  %v4007_v7 = vld [vmem:[#allocation4 + $0x18c] sm:$0xff]  ;;  %v4912_v47 = vmax.f32 %v4832_v13, %v12861_v48  ;;  %v3967_v36 = vmax.f32 %v3887_v42, %v3927_v49  ;;  %v4111_v22 = vmax.f32 %v4079_v1, %v12782_v30  ;;  %v12972_v13 = vld [vmem:[#allocation4 + $0x198] sm:$0xff]  ;;  %v14451_v49 = vpack.c.bf16 %v12591_v39, %v12588_v44 }
 0x472   : > { %v12939_v10 = vmax.f32 %v4654_v32, %v12914_v34  ;;  %v12947_v15 = vmax.f32 %v4594_v60, %v12914_v34  ;;  %v4656_v4 = vmax.f32 %v12845_v29, %v12914_v34  ;;  %v4006_v32 = vld [vmem:[#allocation4 + $0x184] sm:$0xff]  ;;  %v4240_v60 = vld [vmem:[#allocation4 + $0x138] sm:$0xff]  ;;  %v4833_v3 = vmax.f32 %v4753_v33, %v4793_v38  ;;  %4719 = vst [vmem:[#allocation4 + $0xfa] sm:$0xff] %v12954_v26  ;;  %v10568_v43 = vld [vmem:[%s14345_s9 + $0x20] sm:$0xff]  }
 0x473   : > { %v4241_v40 = vld [vmem:[#allocation4 + $0x140] sm:$0xff]  ;;  %v4320_v23 = vmax.f32 %v4240_v60, %v4280_v31  ;;  %v12962_v11 = vmax.f32 %v3966_v21, %v4006_v32  ;;  %9675 = vmatpush3.bf16.msra.mxu0 %v10566_v55  ;;  %5774 = vmatprep.mubr.bf16.mxu1 %v5274_v24  ;;  %v12970_v38 = vmax.f32 %v3967_v36, %v4007_v7 }
 0x474   : > { %4718 = vst [vmem:[#allocation4 + $0xf2] sm:$0xff] %v12939_v10  ;;  %v4281_v2 = vld [vmem:[#allocation4 + $0x141] sm:$0xff]  ;;  %v4913_v42 = vmax.f32 %v4833_v3, %v12864_v0  ;;  %v12974_v21 = vld [vmem:[#allocation4 + $0x199] sm:$0xff]  ;;  %5775 = vmatmul.mubr.bf16.gmra.mrb[192].mxu1 %v14451_v49  ;;  %v4143_v24 = vmax.f32 %v4111_v22, %v12868_v46  ;;  %v5259_v60 = vpack.c.bf16 %v12641_v16, %v12626_v57 }
 0x475   : > { %v4952_v41 = vld [vmem:[#allocation4 + $0xdb] sm:$0xff]  ;;  %v4321_v63 = vmax.f32 %v4241_v40, %v4281_v2  ;;  %v4400_v55 = vmax.f32 %v4320_v23, %v12882_v35  ;;  %v4953_v1 = vld [vmem:[#allocation4 + $0xe3] sm:$0xff]  ;;  %v12985_v7 = vmax.f32 %v4142_v5, %v12962_v11  ;;  %v5106_v44 = vmax.f32 %v12680_v61, %v12726_v17  ;;  %9676 = vmatprep.subr.bf16.mxu0 %v10567_v58 }
 0x476   : > { %v4992_v33 = vmax.f32 %v4912_v47, %v4952_v41  ;;  %v5032_v32 = vld [vmem:[#allocation4 + $0xdc] sm:$0xff]  ;;  %v4993_v3 = vmax.f32 %v4913_v42, %v4953_v1  ;;  %v5033_v2 = vld [vmem:[#allocation4 + $0xe4] sm:$0xff]  ;;  %v12995_v5 = vmax.f32 %v4143_v24, %v12970_v38  ;;  %v3808_v23 = vmax.f32 %v12972_v13, %v12974_v21 }
 0x477   : > { %v4401_v40 = vmax.f32 %v4321_v63, %v12885_v37  ;;  %v4440_v31 = vld [vmem:[#allocation4 + $0x13b] sm:$0xff]  ;;  %v4441_v36 = vld [vmem:[#allocation4 + $0x143] sm:$0xff]  ;;  %4206 = vst [vmem:[#allocation4 + $0x152] sm:$0xff] %v12985_v7  ;;  %v5107_v37 = vmax.f32 %v12684_v12, %v12733_v56  ;;  %9677 = vmatpush3.bf16.msra.mxu0 %v10568_v43  ;;  %v13009_v42 = vmax.f32 %v5106_v44, %v12904_v20 }
 0x478   : > { %v12990_v47 = vmax.f32 %v4992_v33, %v5032_v32  ;;  %v3729_v39 = vld [vmem:[#allocation4 + $0x1a0] sm:$0xff]  ;;  %v4480_v22 = vmax.f32 %v4400_v55, %v4440_v31  ;;  %v13002_v63 = vmax.f32 %v4993_v3, %v5033_v2  ;;  %9678 = vmatprep.subr.bf16.mxu0 %v10569_v8  ;;  %v10570_v12 = vld [vmem:[%s14345_s9 + $0x28] sm:$0xff]   ;;  %4207 = vst [vmem:[#allocation4 + $0x15a] sm:$0xff] %v12995_v5 }
 0x479   : > { %v3769_v35 = vld [vmem:[#allocation4 + $0x1a1] sm:$0xff]  ;;  %v4481_v41 = vmax.f32 %v4401_v40, %v4441_v36  ;;  %v5250_v43 = vpack.c.bf16 %v12995_v5, %v12985_v7  ;;  %v13020_v45 = vmax.f32 %v5107_v37, %v12906_v53  ;;  %v14453_v36 = vmax.f32 %v12853_v18, %v12926_v27 }
 0x47a   : > { %v4520_v61 = vld [vmem:[#allocation4 + $0x13c] sm:$0xff]  ;;  %v5200_v58 = vmax.f32 %v5168_v14, %v12990_v47  ;;  %v4521_v33 = vld [vmem:[#allocation4 + $0x144] sm:$0xff]  ;;  %v3809_v14 = vmax.f32 %v3729_v39, %v3769_v35  ;;  %v5201_v8 = vmax.f32 %v5169_v52, %v13002_v63  ;;  %v5170_v40 = vmax.f32 %v13009_v42, %v12990_v47 }
 0x47b   : > { %v13014_v13 = vmax.f32 %v4480_v22, %v4520_v61  ;;  %v4754_v21 = vld [vmem:[#allocation4 + $0xf0] sm:$0xff]  ;;  %v13022_v49 = vmax.f32 %v4481_v41, %v4521_v33  ;;  %v4755_v1 = vld [vmem:[#allocation4 + $0xf8] sm:$0xff]  ;;  %v10571_v31 = vld [vmem:[%s14345_s9 + $0x70] sm:$0xff]   ;;  %5677 = vmatprep.mubr.bf16.mxu0 %v5250_v43  ;;  %v14452_v52 = vmax.f32 %v12753_v28, %v12822_v50  ;;  %9679 = vmatpush3.bf16.msra.mxu0 %v10570_v12 }
 0x47c   : > { %v4794_v55 = vld [vmem:[#allocation4 + $0xf1] sm:$0xff]  ;;  %v4795_v32 = vld [vmem:[#allocation4 + $0xf9] sm:$0xff]  ;;  %v14455_v22 = vld [vmem:[#allocation38_spill] sm:$0xff]  ;;  %v5275_v28 = vpack.c.bf16 %v5201_v8, %v5200_v58  ;;  %v4080_v8 = vmax.f32 %v12703_v25, %v12763_v19  ;;  %9680 = vmatprep.subr.bf16.mxu0 %v10571_v31  ;;  %v5108_v42 = vmax.f32 %v12726_v17, %v12904_v20 }
 0x47d   : > { %v4834_v24 = vmax.f32 %v4754_v21, %v4794_v55  ;;  %v13039_v44 = vmax.f32 %v4656_v4, %v13014_v13  ;;  %v13047_v39 = vmax.f32 %v14452_v52, %v12926_v27  ;;  %v13055_v29 = vmax.f32 %v14453_v36, %v13022_v49  ;;  %v14454_v4 = vld [vmem:[#allocation40_spill] sm:$0xff]  ;;  %v3849_v41 = vld [vmem:[#allocation4 + $0x1a2] sm:$0xff]  ;;  %v10573_v12 = vld [vmem:[%s14345_s9 + $0xc0] sm:$0xff]  }
 0x47e   : > { %v14456_v2 = vpack.c.bf16 %v14454_v4, %v14455_v22  ;;  %v3848_v37 = vld [vmem:[#allocation4 + $0x19a] sm:$0xff]  ;;  %v4835_v61 = vmax.f32 %v4755_v1, %v4795_v32  ;;  %v5171_v21 = vmax.f32 %v13020_v45, %v13002_v63  ;;  %v3929_v18 = vld [vmem:[#allocation4 + $0x1a3] sm:$0xff]  ;;  %v4242_v36 = vld [vmem:[#allocation4 + $0x150] sm:$0xff]  ;;  %v3889_v58 = vmax.f32 %v3809_v14, %v3849_v41  ;;  %5782 = vmatprep.mubr.bf16.mxu1 %v5275_v28 }
 0x47f   : > { %4720 = vst [vmem:[#allocation4 + $0x10a] sm:$0xff] %v13039_v44  ;;  %v4914_v33 = vmax.f32 %v4834_v24, %v12939_v10  ;;  %v4954_v43 = vld [vmem:[#allocation4 + $0xf3] sm:$0xff]  ;;  %v3928_v55 = vld [vmem:[#allocation4 + $0x19b] sm:$0xff]  ;;  %4721 = vst [vmem:[#allocation4 + $0x112] sm:$0xff] %v13055_v29  ;;  %v3888_v22 = vmax.f32 %v3808_v23, %v3848_v37  ;;  %v4081_v1 = vmax.f32 %v12709_v54, %v12782_v30  ;;  %5783 = vmatmul.mubr.bf16.gmra.mrb[196].mxu1 %v5259_v60 }
 0x480   : > { %5678 = vmatmul.mubr.bf16.gmra.mrb[0].mxu0 %v14456_v2  ;;  %v10572_v52 = vld [vmem:[%s14345_s9 + $0x30] sm:$0xff]   ;;  %v4282_v4 = vld [vmem:[#allocation4 + $0x151] sm:$0xff]  ;;  %v4915_v24 = vmax.f32 %v4835_v61, %v12954_v26  ;;  %v3969_v37 = vmax.f32 %v3889_v58, %v3929_v18  ;;  %v4112_v41 = vmax.f32 %v4080_v8, %v12866_v59  ;;  %9780 = vmatprep.subr.bf16.mxu1 %v10573_v12  ;;  %v10577_v8 = vld [vmem:[%s14345_s9 + $0x78] sm:$0xff]  }
 0x481   : > { %v4322_v32 = vmax.f32 %v4242_v36, %v4282_v4  ;;  %v4955_v2 = vld [vmem:[#allocation4 + $0xfb] sm:$0xff]  ;;  %v4994_v62 = vmax.f32 %v4914_v33, %v4954_v43  ;;  %v10574_v25 = vld [vmem:[%s14345_s9 + $0x80] sm:$0xff]   ;;  %v3968_v31 = vmax.f32 %v3888_v22, %v3928_v55  ;;  %v4113_v28 = vmax.f32 %v4081_v1, %v12868_v46  ;;  %v4009_v35 = vld [vmem:[#allocation4 + $0x1a4] sm:$0xff]  ;;  %9681 = vmatpush3.bf16.msra.mxu0 %v10572_v52 }
 0x482   : > { %v5034_v3 = vld [vmem:[#allocation4 + $0xf4] sm:$0xff]  ;;  %v4995_v36 = vmax.f32 %v4915_v24, %v4955_v2  ;;  %v4008_v23 = vld [vmem:[#allocation4 + $0x19c] sm:$0xff]  ;;  %v13094_v55 = vmax.f32 %v3969_v37, %v4009_v35  ;;  %v4144_v18 = vmax.f32 %v4112_v41, %v12962_v11  ;;  %9781 = vmatpush3.bf16.msra.mxu1 %v10574_v25  ;;  %v10578_v1 = vld [vmem:[%s14345_s9 + $0x38] sm:$0xff]   ;;  %9682 = vmatprep.subr.bf16.mxu0 %v10577_v8 }
 0x483   : > { %v4243_v54 = vld [vmem:[#allocation4 + $0x158] sm:$0xff]  ;;  %v4402_v43 = vmax.f32 %v4322_v32, %v12985_v7  ;;  %v13090_v4 = vmax.f32 %v4994_v62, %v5034_v3  ;;  %v13092_v60 = vmax.f32 %v3968_v31, %v4008_v23  ;;  %v4145_v22 = vmax.f32 %v4113_v28, %v12970_v38 }
 0x484   : > { %v4283_v14 = vld [vmem:[#allocation4 + $0x159] sm:$0xff]  ;;  %v5140_v28 = vmax.f32 %v5108_v42, %v12990_v47  ;;  %v3770_v45 = vld [vmem:[#allocation4 + $0x1b1] sm:$0xff] }
 0x485   : > { %v10575_v61 = vld [vmem:[%s14345_s9 + $0xc8] sm:$0xff]   ;;  %v4323_v33 = vmax.f32 %v4243_v54, %v4283_v14  ;;  %v5202_v35 = vmax.f32 %v5170_v40, %v13090_v4  ;;  %v13118_v32 = vmax.f32 %v4145_v22, %v13094_v55  ;;  %v5109_v40 = vmax.f32 %v12733_v56, %v12906_v53  ;;  %9683 = vmatpush3.bf16.msra.mxu0 %v10578_v1  ;;  %v10579_v22 = vld [vmem:[%s14345_s9 + $0xd0] sm:$0xff]  }
 0x486   : > { %v4442_v57 = vld [vmem:[#allocation4 + $0x153] sm:$0xff]  ;;  %v5035_v16 = vld [vmem:[#allocation4 + $0xfc] sm:$0xff]  ;;  %v4756_v24 = vld [vmem:[#allocation4 + $0x108] sm:$0xff]  ;;  %9782 = vmatprep.subr.bf16.mxu1 %v10575_v61 }
 0x487   : > { %v10576_v7 = vld [vmem:[%s14345_s9 + $0x88] sm:$0xff]   ;;  %v4403_v3 = vmax.f32 %v4323_v33, %v12995_v5  ;;  %v4482_v58 = vmax.f32 %v4402_v43, %v4442_v57  ;;  %v13102_v52 = vmax.f32 %v4995_v36, %v5035_v16  ;;  %v13115_v5 = vmax.f32 %v4144_v18, %v13092_v60  ;;  %v4796_v2 = vld [vmem:[#allocation4 + $0x109] sm:$0xff]  ;;  %4209 = vst [vmem:[#allocation4 + $0x172] sm:$0xff] %v13118_v32 }
 0x488   : > { %v4443_v62 = vld [vmem:[#allocation4 + $0x15b] sm:$0xff]  ;;  %v4757_v14 = vld [vmem:[#allocation4 + $0x110] sm:$0xff]  ;;  %v4836_v37 = vmax.f32 %v4756_v24, %v4796_v2  ;;  %v5141_v61 = vmax.f32 %v5109_v40, %v13002_v63  ;;  %v14457_v36 = vmax.f32 %v12947_v15, %v13014_v13  ;;  %9783 = vmatpush3.bf16.msra.mxu1 %v10576_v7  ;;  %v4598_v7 = vmax.f32 %v12914_v34, %v13014_v13 }
 0x489   : > { %v4522_v12 = vld [vmem:[#allocation4 + $0x154] sm:$0xff]  ;;  %v4483_v23 = vmax.f32 %v4403_v3, %v4443_v62  ;;  %v5203_v54 = vmax.f32 %v5171_v21, %v13102_v52  ;;  %v4523_v41 = vld [vmem:[#allocation4 + $0x15c] sm:$0xff]  ;;  %4208 = vst [vmem:[#allocation4 + $0x16a] sm:$0xff] %v13115_v5  ;;  %v5251_v17 = vpack.c.bf16 %v13118_v32, %v13115_v5  ;;  %v4659_v21 = vmax.f32 %v13047_v39, %v13022_v49  ;;  %v4956_v1 = vld [vmem:[#allocation4 + $0x10b] sm:$0xff] }
 0x48a   : > { %v13124_v25 = vmax.f32 %v4482_v58, %v4522_v12  ;;  %v4797_v31 = vld [vmem:[#allocation4 + $0x111] sm:$0xff]  ;;  %v3771_v18 = vld [vmem:[#allocation4 + $0x1b9] sm:$0xff]  ;;  %v4916_v3 = vmax.f32 %v4836_v37, %v13039_v44  ;;  %v5172_v62 = vmax.f32 %v5140_v28, %v13090_v4  ;;  %v5173_v58 = vmax.f32 %v5141_v61, %v13102_v52  ;;  %v13168_v37 = vld [vmem:[#allocation4 + $0x8] sm:$0xff]  ;;  %9784 = vmatprep.subr.bf16.mxu1 %v10579_v22 }
 0x48b   : > { %v4837_v56 = vmax.f32 %v4757_v14, %v4797_v31  ;;  %v3730_v33 = vld [vmem:[#allocation4 + $0x1b0] sm:$0xff]  ;;  %v13138_v43 = vmax.f32 %v4483_v23, %v4523_v41  ;;  %v5276_v16 = vpack.c.bf16 %v5203_v54, %v5202_v35  ;;  %5685 = vmatprep.mubr.bf16.mxu0 %v5251_v17  ;;  %v10580_v15 = vld [vmem:[%s14345_s9 + $0x90] sm:$0xff]   ;;  %v14461_v54 = vpack.c.bf16 %v12779_v51, %v12761_v9 }
 0x48c   : > { %v13144_v57 = vmax.f32 %v14457_v36, %v13124_v25  ;;  %v3850_v8 = vld [vmem:[#allocation4 + $0x1b2] sm:$0xff]  ;;  %v14459_v2 = vld [vmem:[#allocation37_spill] sm:$0xff]  ;;  %v3810_v40 = vmax.f32 %v3730_v33, %v3770_v45  ;;  %v4996_v14 = vmax.f32 %v4916_v3, %v4956_v1  ;;  %v3811_v41 = vmax.f32 %v13168_v37, %v3771_v18  ;;  %9785 = vmatpush3.bf16.msra.mxu1 %v10580_v15 }
 0x48d   : > { %v4917_v39 = vmax.f32 %v4837_v56, %v13055_v29  ;;  %v13159_v35 = vmax.f32 %v4659_v21, %v13138_v43  ;;  %5790 = vmatprep.mubr.bf16.mxu1 %v5276_v16  ;;  %v4957_v12 = vld [vmem:[#allocation4 + $0x113] sm:$0xff]  ;;  %v4082_v56 = vmax.f32 %v12763_v19, %v12866_v59  ;;  %v4599_v28 = vmax.f32 %v12926_v27, %v13022_v49  ;;  %v3931_v21 = vld [vmem:[#allocation4 + $0x1bb] sm:$0xff] }
 0x48e   : > { %4722 = vst [vmem:[#allocation4 + $0x122] sm:$0xff] %v13144_v57  ;;  %v14458_v24 = vld [vmem:[#allocation39_spill] sm:$0xff]  ;;  %v3851_v23 = vld [vmem:[#allocation4 + $0x1ba] sm:$0xff]  ;;  %5791 = vmatmul.mubr.bf16.gmra.mrb[200].mxu1 %v14461_v54  ;;  %v14462_v61 = vmax.f32 %v12820_v6, %v12914_v34  ;;  %v3890_v45 = vmax.f32 %v3810_v40, %v3850_v8  ;;  %v4083_v36 = vmax.f32 %v12782_v30, %v12868_v46 }
 0x48f   : > { %v14460_v42 = vpack.c.bf16 %v14458_v24, %v14459_v2  ;;  %v4997_v31 = vmax.f32 %v4917_v39, %v4957_v12  ;;  %v3930_v17 = vld [vmem:[#allocation4 + $0x1b3] sm:$0xff]  ;;  %4723 = vst [vmem:[#allocation4 + $0x12a] sm:$0xff] %v13159_v35  ;;  %v3891_v18 = vmax.f32 %v3811_v41, %v3851_v23  ;;  %v4011_v39 = vld [vmem:[#allocation4 + $0x1bc] sm:$0xff]  ;;  %v4114_v6 = vmax.f32 %v4082_v56, %v12962_v11 }
 0x490   : > { %v13179_v33 = vmax.f32 %v14462_v61, %v13014_v13  ;;  %v5036_v9 = vld [vmem:[#allocation4 + $0x10c] sm:$0xff]  ;;  %v5037_v51 = vld [vmem:[#allocation4 + $0x114] sm:$0xff]  ;;  %v14463_v1 = vmax.f32 %v12822_v50, %v12926_v27  ;;  %v3970_v2 = vmax.f32 %v3890_v45, %v3930_v17 }
 0x491   : > { %5686 = vmatmul.mubr.bf16.gmra.mrb[4].mxu0 %v14460_v42  ;;  %v13184_v19 = vmax.f32 %v4996_v14, %v5036_v9  ;;  %v13186_v16 = vmax.f32 %v4997_v31, %v5037_v51  ;;  %v4010_v3 = vld [vmem:[#allocation4 + $0x1b4] sm:$0xff]  ;;  %v4244_v30 = vld [vmem:[#allocation4 + $0x168] sm:$0xff]  ;;  %v4115_v42 = vmax.f32 %v4083_v36, %v12970_v38  ;;  %v3971_v14 = vmax.f32 %v3891_v18, %v3931_v21 }
 0x492   : > { %v4629_v8 = vmax.f32 %v14463_v1, %v13022_v49  ;;  %v4660_v12 = vmax.f32 %v13179_v33, %v13124_v25  ;;  %v4245_v22 = vld [vmem:[#allocation4 + $0x170] sm:$0xff]  ;;  %v13198_v41 = vmax.f32 %v3970_v2, %v4010_v3  ;;  %v4146_v50 = vmax.f32 %v4114_v6, %v13092_v60  ;;  %v3732_v45 = vld [vmem:[#allocation4 + $0x1c8] sm:$0xff] }
 0x493   : > { %v4284_v24 = vld [vmem:[#allocation4 + $0x169] sm:$0xff]  ;;  %v4285_v40 = vld [vmem:[#allocation4 + $0x171] sm:$0xff]  ;;  %v5204_v54 = vmax.f32 %v5172_v62, %v13184_v19  ;;  %v5205_v15 = vmax.f32 %v5173_v58, %v13186_v16  ;;  %v4147_v56 = vmax.f32 %v4115_v42, %v13094_v55  ;;  %v13203_v17 = vmax.f32 %v3971_v14, %v4011_v39 }
 0x494   : > { %v4324_v23 = vmax.f32 %v4244_v30, %v4284_v24  ;;  %v4325_v31 = vmax.f32 %v4245_v22, %v4285_v40  ;;  %v5261_v9 = vpack.c.bf16 %v12864_v0, %v12861_v48  ;;  %v4444_v21 = vld [vmem:[#allocation4 + $0x16b] sm:$0xff]  ;;  %v13209_v36 = vmax.f32 %v4146_v50, %v13198_v41  ;;  %v4445_v1 = vld [vmem:[#allocation4 + $0x173] sm:$0xff] }
 0x495   : > { %v5277_v33 = vpack.c.bf16 %v5205_v15, %v5204_v54  ;;  %v4758_v51 = vld [vmem:[#allocation4 + $0x120] sm:$0xff]  ;;  %v5110_v3 = vmax.f32 %v12904_v20, %v12990_v47  ;;  %v3773_v6 = vld [vmem:[#allocation4 + $0x1d1] sm:$0xff]  ;;  %v4661_v39 = vmax.f32 %v4629_v8, %v13138_v43  ;;  %v13215_v48 = vmax.f32 %v4147_v56, %v13203_v17 }
 0x496   : > { %v4404_v61 = vmax.f32 %v4324_v23, %v13115_v5  ;;  %v4798_v62 = vld [vmem:[#allocation4 + $0x121] sm:$0xff]  ;;  %v4405_v58 = vmax.f32 %v4325_v31, %v13118_v32  ;;  %v3772_v5 = vld [vmem:[#allocation4 + $0x1c9] sm:$0xff]  ;;  %v5111_v22 = vmax.f32 %v12906_v53, %v13002_v63  ;;  %4210 = vst [vmem:[#allocation4 + $0x182] sm:$0xff] %v13209_v36  ;;  %v4525_v40 = vld [vmem:[#allocation4 + $0x174] sm:$0xff] }
 0x497   : > { %v4838_v18 = vmax.f32 %v4758_v51, %v4798_v62  ;;  %5798 = vmatprep.mubr.bf16.mxu1 %v5277_v33  ;;  %v4759_v0 = vld [vmem:[#allocation4 + $0x128] sm:$0xff]  ;;  %v5142_v8 = vmax.f32 %v5110_v3, %v13090_v4  ;;  %4211 = vst [vmem:[#allocation4 + $0x18a] sm:$0xff] %v13215_v48  ;;  %v5252_v54 = vpack.c.bf16 %v13215_v48, %v13209_v36  ;;  %v3853_v51 = vld [vmem:[#allocation4 + $0x1d2] sm:$0xff] }
 0x498   : > { %v4484_v30 = vmax.f32 %v4404_v61, %v4444_v21  ;;  %v4799_v32 = vld [vmem:[#allocation4 + $0x129] sm:$0xff]  ;;  %v4485_v24 = vmax.f32 %v4405_v58, %v4445_v1  ;;  %5799 = vmatmul.mubr.bf16.gmra.mrb[204].mxu1 %v5261_v9  ;;  %v5143_v53 = vmax.f32 %v5111_v22, %v13102_v52  ;;  %v3812_v14 = vmax.f32 %v3732_v45, %v3772_v5  ;;  %v3933_v27 = vld [vmem:[#allocation4 + $0x1d3] sm:$0xff] }
 0x499   : > { %v4524_v2 = vld [vmem:[#allocation4 + $0x16c] sm:$0xff]  ;;  %v4839_v20 = vmax.f32 %v4759_v0, %v4799_v32  ;;  %v4918_v42 = vmax.f32 %v4838_v18, %v13144_v57  ;;  %v4958_v15 = vld [vmem:[#allocation4 + $0x123] sm:$0xff]  ;;  %v3813_v61 = vmax.f32 %v13168_v37, %v3773_v6  ;;  %5693 = vmatprep.mubr.bf16.mxu0 %v5252_v54  ;;  %v13242_v45 = vmax.f32 %v4598_v7, %v13124_v25  ;;  %v14464_v18 = vld [vmem:[#allocation44_spill] sm:$0xff] }
 0x49a   : > { %v13222_v23 = vmax.f32 %v4484_v30, %v4524_v2  ;;  %v13228_v31 = vmax.f32 %v4485_v24, %v4525_v40  ;;  %v3852_v33 = vld [vmem:[#allocation4 + $0x1ca] sm:$0xff]  ;;  %v13248_v37 = vmax.f32 %v4599_v28, %v13138_v43  ;;  %v5174_v21 = vmax.f32 %v5142_v8, %v13184_v19  ;;  %v4013_v54 = vld [vmem:[#allocation4 + $0x1d4] sm:$0xff] }
 0x49b   : > { %v4919_v50 = vmax.f32 %v4839_v20, %v13159_v35  ;;  %v4998_v56 = vmax.f32 %v4918_v42, %v4958_v15  ;;  %v4959_v58 = vld [vmem:[#allocation4 + $0x12b] sm:$0xff]  ;;  %v3892_v1 = vmax.f32 %v3812_v14, %v3852_v33  ;;  %v3893_v30 = vmax.f32 %v3813_v61, %v3853_v51 }
 0x49c   : > { %v13233_v9 = vmax.f32 %v4660_v12, %v13222_v23  ;;  %v13236_v62 = vmax.f32 %v4661_v39, %v13228_v31  ;;  %v5038_v12 = vld [vmem:[#allocation4 + $0x124] sm:$0xff]  ;;  %v5175_v39 = vmax.f32 %v5143_v53, %v13186_v16  ;;  %v5039_v28 = vld [vmem:[#allocation4 + $0x12c] sm:$0xff]  ;;  %v4084_v32 = vmax.f32 %v12866_v59, %v12962_v11 }
 0x49d   : > { %v14465_v3 = vld [vmem:[#allocation42_spill] sm:$0xff]  ;;  %v4999_v34 = vmax.f32 %v4919_v50, %v4959_v58  ;;  %v13255_v7 = vmax.f32 %v4998_v56, %v5038_v12  ;;  %v4085_v22 = vmax.f32 %v12868_v46, %v12970_v38  ;;  %v5262_v24 = vpack.c.bf16 %v12954_v26, %v12939_v10  ;;  %v4246_v2 = vld [vmem:[#allocation4 + $0x180] sm:$0xff] }
 0x49e   : > { %v14466_v5 = vpack.c.bf16 %v14464_v18, %v14465_v3  ;;  %v3932_v6 = vld [vmem:[#allocation4 + $0x1cb] sm:$0xff]  ;;  %4724 = vst [vmem:[#allocation4 + $0x13a] sm:$0xff] %v13233_v9  ;;  %4725 = vst [vmem:[#allocation4 + $0x142] sm:$0xff] %v13236_v62  ;;  %v4286_v20 = vld [vmem:[#allocation4 + $0x181] sm:$0xff]  ;;  %v5112_v15 = vmax.f32 %v12990_v47, %v13090_v4  ;;  %v3973_v11 = vmax.f32 %v3893_v30, %v3933_v27 }
 0x49f   : > { %v4012_v0 = vld [vmem:[#allocation4 + $0x1cc] sm:$0xff]  ;;  %v13265_v42 = vmax.f32 %v4999_v34, %v5039_v28  ;;  %v5206_v8 = vmax.f32 %v5174_v21, %v13255_v7  ;;  %v3972_v40 = vmax.f32 %v3892_v1, %v3932_v6  ;;  %v4326_v59 = vmax.f32 %v4246_v2, %v4286_v20  ;;  %v4446_v58 = vld [vmem:[#allocation4 + $0x183] sm:$0xff] }
 0x4a0   : > { %5694 = vmatmul.mubr.bf16.gmra.mrb[8].mxu0 %v14466_v5  ;;  %v4247_v53 = vld [vmem:[#allocation4 + $0x188] sm:$0xff]  ;;  %v4116_v46 = vmax.f32 %v4084_v32, %v13092_v60  ;;  %v4117_v38 = vmax.f32 %v4085_v22, %v13094_v55  ;;  %v5113_v56 = vmax.f32 %v13002_v63, %v13102_v52  ;;  %v13278_v33 = vmax.f32 %v3973_v11, %v4013_v54 }
 0x4a1   : > { %v4287_v14 = vld [vmem:[#allocation4 + $0x189] sm:$0xff]  ;;  %v5207_v26 = vmax.f32 %v5175_v39, %v13265_v42  ;;  %v13273_v50 = vmax.f32 %v3972_v40, %v4012_v0  ;;  %v4406_v61 = vmax.f32 %v4326_v59, %v13209_v36  ;;  %v4662_v63 = vmax.f32 %v13242_v45, %v13222_v23  ;;  %v14468_v59 = vld [vmem:[#allocation41_spill] sm:$0xff] }
 0x4a2   : > { %v4327_v10 = vmax.f32 %v4247_v53, %v4287_v14  ;;  %v4148_v47 = vmax.f32 %v4116_v46, %v13198_v41  ;;  %v4149_v51 = vmax.f32 %v4117_v38, %v13203_v17  ;;  %v13284_v12 = vmax.f32 %v5113_v56, %v13186_v16  ;;  %v4447_v21 = vld [vmem:[#allocation4 + $0x18b] sm:$0xff] }
 0x4a3   : > { %v5278_v55 = vpack.c.bf16 %v5207_v26, %v5206_v8  ;;  %v4486_v18 = vmax.f32 %v4406_v61, %v4446_v58  ;;  %v4663_v39 = vmax.f32 %v13248_v37, %v13228_v31  ;;  %v4527_v30 = vld [vmem:[#allocation4 + $0x18c] sm:$0xff]  ;;  %v4600_v37 = vmax.f32 %v13014_v13, %v13124_v25 }
 0x4a4   : > { %v4407_v60 = vmax.f32 %v4327_v10, %v13215_v48  ;;  %v13289_v36 = vmax.f32 %v4148_v47, %v13273_v50  ;;  %v13292_v3 = vmax.f32 %v4149_v51, %v13278_v33  ;;  %v4526_v48 = vld [vmem:[#allocation4 + $0x184] sm:$0xff]  ;;  %v5115_v20 = vmax.f32 %v13102_v52, %v13186_v16  ;;  %v10583_v13 = vld [vmem:[%s14345_s9 + $0xe0] sm:$0xff]  }
 0x4a5   : > { %v4760_v5 = vld [vmem:[#allocation4 + $0x138] sm:$0xff]  ;;  %5806 = vmatprep.mubr.bf16.mxu1 %v5278_v55  ;;  %v4761_v1 = vld [vmem:[#allocation4 + $0x140] sm:$0xff]  ;;  %v13296_v0 = vmax.f32 %v4486_v18, %v4526_v48  ;;  %v10581_v8 = vld [vmem:[%s14345_s9 + $0xd8] sm:$0xff]   ;;  %v4601_v54 = vmax.f32 %v13022_v49, %v13138_v43  ;;  %v5144_v10 = vmax.f32 %v5112_v15, %v13184_v19  ;;  %v4602_v26 = vmax.f32 %v13124_v25, %v13222_v23 }
 0x4a6   : > { %v4800_v6 = vld [vmem:[#allocation4 + $0x139] sm:$0xff]  ;;  %v4487_v34 = vmax.f32 %v4407_v60, %v4447_v21  ;;  %v4801_v27 = vld [vmem:[#allocation4 + $0x141] sm:$0xff]  ;;  %4212 = vst [vmem:[#allocation4 + $0x19a] sm:$0xff] %v13289_v36  ;;  %4213 = vst [vmem:[#allocation4 + $0x1a2] sm:$0xff] %v13292_v3  ;;  %v5253_v45 = vpack.c.bf16 %v13292_v3, %v13289_v36  ;;  %5807 = vmatmul.mubr.bf16.gmra.mrb[208].mxu1 %v5262_v24  ;;  %9786 = vmatprep.subr.bf16.mxu1 %v10581_v8 }
 0x4a7   : > { %v4840_v28 = vmax.f32 %v4760_v5, %v4800_v6  ;;  %v4841_v32 = vmax.f32 %v4761_v1, %v4801_v27  ;;  %v10582_v40 = vld [vmem:[%s14345_s9 + $0x98] sm:$0xff]   ;;  %v13316_v24 = vmax.f32 %v4662_v63, %v13296_v0  ;;  %v4960_v53 = vld [vmem:[#allocation4 + $0x13b] sm:$0xff]  ;;  %v14467_v14 = vld [vmem:[#allocation43_spill] sm:$0xff]  ;;  %v13335_v49 = vmax.f32 %v4600_v37, %v13222_v23 }
 0x4a8   : > { %v13302_v22 = vmax.f32 %v4487_v34, %v4527_v30  ;;  %5701 = vmatprep.mubr.bf16.mxu0 %v5253_v45  ;;  %v14469_v11 = vpack.c.bf16 %v14467_v14, %v14468_v59  ;;  %v4961_v56 = vld [vmem:[#allocation4 + $0x143] sm:$0xff]  ;;  %9787 = vmatpush3.bf16.msra.mxu1 %v10582_v40  ;;  %v10584_v47 = vld [vmem:[%s14345_s9 + $0xa0] sm:$0xff]   ;;  %v5176_v15 = vmax.f32 %v5144_v10, %v13255_v7  ;;  %v10585_v37 = vld [vmem:[%s14345_s9 + $0xe8] sm:$0xff]  }
 0x4a9   : > { %v4920_v2 = vmax.f32 %v4840_v28, %v13233_v9  ;;  %4726 = vst [vmem:[#allocation4 + $0x152] sm:$0xff] %v13316_v24  ;;  %v4921_v46 = vmax.f32 %v4841_v32, %v13236_v62  ;;  %v5040_v61 = vld [vmem:[#allocation4 + $0x13c] sm:$0xff]  ;;  %v5041_v60 = vld [vmem:[#allocation4 + $0x144] sm:$0xff]  ;;  %v5177_v25 = vmax.f32 %v13284_v12, %v13265_v42  ;;  %9788 = vmatprep.subr.bf16.mxu1 %v10583_v13 }
 0x4aa   : > { %v13324_v52 = vmax.f32 %v4663_v39, %v13302_v22  ;;  %5702 = vmatmul.mubr.bf16.gmra.mrb[12].mxu0 %v14469_v11  ;;  %v4603_v55 = vmax.f32 %v13138_v43, %v13228_v31  ;;  %v13349_v21 = vmax.f32 %v4601_v54, %v13228_v31  ;;  %v5263_v6 = vpack.c.bf16 %v13055_v29, %v13039_v44  ;;  %v10655_v54 = vld [vmem:[#allocation2 + $0x8] sm:$0xff] }
 0x4ab   : > { %v5000_v38 = vmax.f32 %v4920_v2, %v4960_v53  ;;  %v5001_v51 = vmax.f32 %v4921_v46, %v4961_v56  ;;  %v4604_v34 = vmax.f32 %v13222_v23, %v13296_v0  ;;  %v5114_v12 = vmax.f32 %v13090_v4, %v13184_v19  ;;  %v6063_v23 = vld [vmem:[#allocation2 + $0x1] sm:$0xff] }
 0x4ac   : > { %4727 = vst [vmem:[#allocation4 + $0x15a] sm:$0xff] %v13324_v52  ;;  %v4605_v43 = vmax.f32 %v13228_v31, %v13302_v22  ;;  %v13362_v27 = vmax.f32 %v4602_v26, %v13296_v0  ;;  %v4664_v28 = vmax.f32 %v13335_v49, %v13296_v0  ;;  %9789 = vmatpush3.bf16.msra.mxu1 %v10584_v47  ;;  %v6064_v31 = vld [vmem:[#allocation2 + $0x9] sm:$0xff]  ;;  %v5999_v2 = vld [vmem:[#allocation2] sm:$0xff] }
 0x4ad   : > { %v13341_v58 = vmax.f32 %v5000_v38, %v5040_v61  ;;  %v4248_v18 = vld [vmem:[#allocation4 + $0x198] sm:$0xff]  ;;  %v4249_v63 = vld [vmem:[#allocation4 + $0x1a0] sm:$0xff]  ;;  %v13355_v1 = vmax.f32 %v5001_v51, %v5041_v60  ;;  %v13370_v4 = vmax.f32 %v5114_v12, %v13255_v7  ;;  %v13377_v13 = vmax.f32 %v5115_v20, %v13265_v42  ;;  %9790 = vmatprep.subr.bf16.mxu1 %v10585_v37 }
 0x4ae   : > { %v4288_v5 = vld [vmem:[#allocation4 + $0x199] sm:$0xff]  ;;  %v4289_v48 = vld [vmem:[#allocation4 + $0x1a1] sm:$0xff]  ;;  %v6031_v53 = vpack.c.bf16 %v10655_v54, %v5999_v2  ;;  %v4635_v59 = vmax.f32 %v4603_v55, %v13302_v22  ;;  %v4665_v20 = vmax.f32 %v13349_v21, %v13302_v22  ;;  %v10589_v22 = vld [vmem:[%s14345_s9 + $0x100] sm:$0xff]  }
 0x4af   : > { %v4328_v39 = vmax.f32 %v4248_v18, %v4288_v5  ;;  %v4329_v44 = vmax.f32 %v4249_v63, %v4289_v48  ;;  %v4448_v29 = vld [vmem:[#allocation4 + $0x19b] sm:$0xff]  ;;  %v5208_v45 = vmax.f32 %v5176_v15, %v13341_v58  ;;  %v5209_v32 = vmax.f32 %v5177_v25, %v13355_v1  ;;  %v4449_v11 = vld [vmem:[#allocation4 + $0x1a3] sm:$0xff]  ;;  %v10587_v15 = vld [vmem:[%s14345_s9 + $0x140] sm:$0xff]  }
 0x4b0   : > { %v4762_v8 = vld [vmem:[#allocation4 + $0x150] sm:$0xff]  ;;  %v10586_v14 = vld [vmem:[%s14345_s9 + $0xa8] sm:$0xff]   ;;  %v4529_v61 = vld [vmem:[#allocation4 + $0x1a4] sm:$0xff]  ;;  %v5178_v63 = vmax.f32 %v13370_v4, %v13341_v58  ;;  %v5179_v5 = vmax.f32 %v13377_v13, %v13355_v1  ;;  %9892 = vmatprep.subr.bf16.mxu0 %v10587_v15 }
 0x4b1   : > { %v4408_v30 = vmax.f32 %v4328_v39, %v13289_v36  ;;  %v4409_v0 = vmax.f32 %v4329_v44, %v13292_v3  ;;  %v4802_v40 = vld [vmem:[#allocation4 + $0x151] sm:$0xff]  ;;  %v6095_v36 = vpack.c.bf16 %v6064_v31, %v6063_v23  ;;  %v5279_v38 = vpack.c.bf16 %v5209_v32, %v5208_v45  ;;  %v4528_v56 = vld [vmem:[#allocation4 + $0x19c] sm:$0xff]  ;;  %9791 = vmatpush3.bf16.msra.mxu1 %v10586_v14  ;;  %v10591_v39 = vld [vmem:[%s14345_s9 + $0xf8] sm:$0xff]  }
 0x4b2   : > { %v4842_v3 = vmax.f32 %v4762_v8, %v4802_v40  ;;  %v10588_v25 = vld [vmem:[%s14345_s9 + $0xf0] sm:$0xff]   ;;  %v5117_v14 = vmax.f32 %v13186_v16, %v13265_v42  ;;  %v5118_v16 = vmax.f32 %v13255_v7, %v13341_v58 }
 0x4b3   : > { %v4488_v46 = vmax.f32 %v4408_v30, %v4448_v29  ;;  %v4763_v10 = vld [vmem:[#allocation4 + $0x158] sm:$0xff]  ;;  %v4489_v49 = vmax.f32 %v4409_v0, %v4449_v11  ;;  %7334 = vmatprep.mubr.bf16.mxu0 %v6095_v36  ;;  %5814 = vmatprep.mubr.bf16.mxu1 %v5279_v38  ;;  %v10590_v48 = vld [vmem:[%s14345_s9 + $0xb0] sm:$0xff]   ;;  %v5264_v11 = vpack.c.bf16 %v13159_v35, %v13144_v57 }
 0x4b4   : > { %v4803_v26 = vld [vmem:[#allocation4 + $0x159] sm:$0xff]  ;;  %v4922_v60 = vmax.f32 %v4842_v3, %v13316_v24  ;;  %7335 = vmatmul.mubr.bf16.vlgmr.msra.gmra.mrb[16].mxu0 %v6031_v53  ;;  %5815 = vmatmul.mubr.bf16.gmra.mrb[212].mxu1 %v5263_v6  ;;  %v5116_v53 = vmax.f32 %v13184_v19, %v13255_v7 }
 0x4b5   : > { %v4843_v47 = vmax.f32 %v4763_v10, %v4803_v26  ;;  %v4568_v51 = vmax.f32 %v4488_v46, %v4528_v56  ;;  %v4569_v55 = vmax.f32 %v4489_v49, %v4529_v61  ;;  %v4962_v18 = vld [vmem:[#allocation4 + $0x153] sm:$0xff]  ;;  %v4963_v29 = vld [vmem:[#allocation4 + $0x15b] sm:$0xff]  ;;  %9792 = vmatprep.subr.bf16.mxu1 %v10588_v25  ;;  %9893 = vmatpush3.bf16.msra.mxu0 %v10589_v22 }
 0x4b6   : > { %v5002_v23 = vmax.f32 %v4922_v60, %v4962_v18  ;;  %v5042_v31 = vld [vmem:[#allocation4 + $0x154] sm:$0xff]  ;;  %9793 = vmatpush3.bf16.msra.mxu1 %v10590_v48  ;;  %v5148_v10 = vmax.f32 %v5116_v53, %v13341_v58  ;;  %v5119_v56 = vmax.f32 %v13265_v42, %v13355_v1 }
 0x4b7   : > { %v4923_v21 = vmax.f32 %v4843_v47, %v13324_v52  ;;  %v4636_v12 = vmax.f32 %v4604_v34, %v4568_v51  ;;  %v4666_v6 = vmax.f32 %v13362_v27, %v4568_v51  ;;  %v13407_v44 = vmax.f32 %v4664_v28, %v4568_v51  ;;  %v5043_v34 = vld [vmem:[#allocation4 + $0x15c] sm:$0xff]  ;;  %9794 = vmatprep.subr.bf16.mxu1 %v10591_v39 }
 0x4b8   : > { %v4637_v30 = vmax.f32 %v4605_v43, %v4569_v55  ;;  %v4667_v45 = vmax.f32 %v4635_v59, %v4569_v55  ;;  %v13409_v32 = vmax.f32 %v4665_v20, %v4569_v55  ;;  %v13416_v27 = vmax.f32 %v5002_v23, %v5042_v31  ;;  %v10592_v43 = vld [vmem:[%s14345_s9 + $0xb8] sm:$0xff]  }
 0x4b9   : > { %v5003_v4 = vmax.f32 %v4923_v21, %v4963_v29  ;;  %v4668_v37 = vmax.f32 %v4636_v12, %v13198_v41  ;;  %v13413_v2 = vmax.f32 %v4666_v6, %v13198_v41  ;;  %4728 = vst [vmem:[#allocation4 + $0x16a] sm:$0xff] %v13407_v44  ;;  %v5149_v20 = vmax.f32 %v5117_v14, %v13355_v1 }
 0x4ba   : > { %v4669_v28 = vmax.f32 %v4637_v30, %v13203_v17  ;;  %v13423_v0 = vmax.f32 %v4667_v45, %v13203_v17  ;;  %4729 = vst [vmem:[#allocation4 + $0x172] sm:$0xff] %v13409_v32  ;;  %v5210_v36 = vmax.f32 %v5178_v63, %v13416_v27  ;;  %9795 = vmatpush3.bf16.msra.mxu1 %v10592_v43 }
 0x4bb   : > { %v13426_v8 = vmax.f32 %v5003_v4, %v5043_v34  ;;  %v13429_v40 = vmax.f32 %v4668_v37, %v13273_v50  ;;  %4730 = vst [vmem:[#allocation4 + $0x182] sm:$0xff] %v13413_v2  ;;  %v5180_v15 = vmax.f32 %v5148_v10, %v13416_v27  ;;  %v5150_v42 = vmax.f32 %v5118_v16, %v13416_v27 }
 0x4bc   : > { %v13433_v13 = vmax.f32 %v4669_v28, %v13278_v33  ;;  %4731 = vst [vmem:[#allocation4 + $0x18a] sm:$0xff] %v13423_v0  ;;  %v9460_v28 = vpop.f32.mrb[208].mxu0  ;;  %v5120_v14 = vmax.f32 %v13341_v58, %v13416_v27 }
 0x4bd   : > { %v5211_v54 = vmax.f32 %v5179_v5, %v13426_v8  ;;  %4732 = vst [vmem:[#allocation4 + $0x19a] sm:$0xff] %v13429_v40  ;;  %v5181_v7 = vmax.f32 %v5149_v20, %v13426_v8  ;;  %v5151_v12 = vmax.f32 %v5119_v56, %v13426_v8  ;;  %v5121_v30 = vmax.f32 %v13355_v1, %v13426_v8  ;;  %v10594_v1 = vld [vmem:[%s14345_s9 + $0x108] sm:$0xff]  }
 0x4be   : > { %4733 = vst [vmem:[#allocation4 + $0x1a2] sm:$0xff] %v13433_v13 }
 0x4bf   : > { %v5280_v59 = vpack.c.bf16 %v5211_v54, %v5210_v36 }
 0x4c0   : > { %v4764_v46 = vld [vmem:[#allocation4 + $0x168] sm:$0xff] }
 0x4c1   : > { %5822 = vmatprep.mubr.bf16.mxu1 %v5280_v59  ;;  %v4804_v38 = vld [vmem:[#allocation4 + $0x169] sm:$0xff]  ;;  %v4805_v19 = vld [vmem:[#allocation4 + $0x171] sm:$0xff]  ;;  %v9461_v59 = vpop.f32.mrb[209].mxu0 }
 0x4c2   : > { %5823 = vmatmul.mubr.bf16.gmra.mrb[216].mxu1 %v5264_v11  ;;  %v4765_v26 = vld [vmem:[#allocation4 + $0x170] sm:$0xff]  ;;  %v4844_v3 = vmax.f32 %v4764_v46, %v4804_v38  ;;  %v4766_v35 = vld [vmem:[#allocation4 + $0x180] sm:$0xff]  ;;  %v10593_v11 = vld [vmem:[%s14345_s9 + $0x148] sm:$0xff]  }
 0x4c3   : > { %v4845_v49 = vmax.f32 %v4765_v26, %v4805_v19  ;;  %v4767_v61 = vld [vmem:[#allocation4 + $0x188] sm:$0xff]  ;;  %v4965_v55 = vld [vmem:[#allocation4 + $0x173] sm:$0xff]  ;;  %9894 = vmatprep.subr.bf16.mxu0 %v10593_v11 }
 0x4c4   : > { %v4924_v57 = vmax.f32 %v4844_v3, %v13407_v44  ;;  %v4806_v47 = vld [vmem:[#allocation4 + $0x181] sm:$0xff]  ;;  %v4964_v60 = vld [vmem:[#allocation4 + $0x16b] sm:$0xff]  ;;  %v4768_v5 = vld [vmem:[#allocation4 + $0x198] sm:$0xff]  ;;  %v9463_v3 = vpop.f32.mrb[210].mxu0  ;;  %9895 = vmatpush3.bf16.msra.mxu0 %v10594_v1 }
 0x4c5   : > { %v4925_v51 = vmax.f32 %v4845_v49, %v13409_v32  ;;  %v4807_v25 = vld [vmem:[#allocation4 + $0x189] sm:$0xff]  ;;  %v4846_v22 = vmax.f32 %v4766_v35, %v4806_v47  ;;  %v4769_v6 = vld [vmem:[#allocation4 + $0x1a0] sm:$0xff]  ;;  %v5045_v45 = vld [vmem:[#allocation4 + $0x174] sm:$0xff]  ;;  %v9464_v35 = vpop.f32.mrb[211].mxu0 }
 0x4c6   : > { %v5004_v21 = vmax.f32 %v4924_v57, %v4964_v60  ;;  %v5044_v18 = vld [vmem:[#allocation4 + $0x16c] sm:$0xff]  ;;  %v4847_v63 = vmax.f32 %v4767_v61, %v4807_v25  ;;  %v4808_v29 = vld [vmem:[#allocation4 + $0x199] sm:$0xff]  ;;  %v4809_v23 = vld [vmem:[#allocation4 + $0x1a1] sm:$0xff]  ;;  %v5265_v61 = vpack.c.bf16 %v13236_v62, %v13233_v9 }
 0x4c7   : > { %v5005_v48 = vmax.f32 %v4925_v51, %v4965_v55  ;;  %v4926_v39 = vmax.f32 %v4846_v22, %v13413_v2  ;;  %v4966_v37 = vld [vmem:[#allocation4 + $0x183] sm:$0xff]  ;;  %v4848_v34 = vmax.f32 %v4768_v5, %v4808_v29  ;;  %v4849_v43 = vmax.f32 %v4769_v6, %v4809_v23  ;;  %v4967_v54 = vld [vmem:[#allocation4 + $0x18b] sm:$0xff]  ;;  %v4968_v57 = vld [vmem:[#allocation4 + $0x19b] sm:$0xff] }
 0x4c8   : > { %v5084_v4 = vmax.f32 %v5004_v21, %v5044_v18  ;;  %v4927_v31 = vmax.f32 %v4847_v63, %v13423_v0  ;;  %v5046_v10 = vld [vmem:[#allocation4 + $0x184] sm:$0xff]  ;;  %v5047_v16 = vld [vmem:[#allocation4 + $0x18c] sm:$0xff]  ;;  %v5048_v55 = vld [vmem:[#allocation4 + $0x19c] sm:$0xff]  ;;  %v13476_v23 = vadd.f32 %v9461_v59, %v9460_v28 }
 0x4c9   : > { %v5085_v36 = vmax.f32 %v5005_v48, %v5045_v45  ;;  %v5006_v53 = vmax.f32 %v4926_v39, %v4966_v37  ;;  %v4928_v19 = vmax.f32 %v4848_v34, %v13429_v40  ;;  %v4929_v56 = vmax.f32 %v4849_v43, %v13433_v13  ;;  %v4969_v51 = vld [vmem:[#allocation4 + $0x1a3] sm:$0xff] }
 0x4ca   : > { %v5212_v46 = vmax.f32 %v5180_v15, %v5084_v4  ;;  %v5007_v38 = vmax.f32 %v4927_v31, %v4967_v54  ;;  %v5182_v26 = vmax.f32 %v5150_v42, %v5084_v4  ;;  %v5152_v21 = vmax.f32 %v5120_v14, %v5084_v4  ;;  %v5049_v42 = vld [vmem:[#allocation4 + $0x1a4] sm:$0xff] }
 0x4cb   : > { %v5213_v20 = vmax.f32 %v5181_v7, %v5085_v36  ;;  %v5086_v49 = vmax.f32 %v5006_v53, %v5046_v10  ;;  %v5183_v58 = vmax.f32 %v5151_v12, %v5085_v36  ;;  %v5008_v60 = vmax.f32 %v4928_v19, %v4968_v57 }
 0x4cc   : > { %v5087_v47 = vmax.f32 %v5007_v38, %v5047_v16  ;;  %v5153_v15 = vmax.f32 %v5121_v30, %v5085_v36  ;;  %v5009_v22 = vmax.f32 %v4929_v56, %v4969_v51  ;;  %v5122_v18 = vmax.f32 %v13416_v27, %v5084_v4  ;;  %v9466_v30 = vpop.f32.mrb[212].mxu0 }
 0x4cd   : > { %v5281_v25 = vpack.c.bf16 %v5213_v20, %v5212_v46  ;;  %v5214_v7 = vmax.f32 %v5182_v26, %v5086_v49  ;;  %v5088_v5 = vmax.f32 %v5008_v60, %v5048_v55  ;;  %v5123_v9 = vmax.f32 %v13426_v8, %v5085_v36  ;;  %v9467_v34 = vpop.f32.mrb[213].mxu0  ;;  %v10598_v55 = vld [vmem:[%s14345_s9 + $0x118] sm:$0xff]  }
 0x4ce   : > { %v5215_v63 = vmax.f32 %v5183_v58, %v5087_v47  ;;  %v5185_v48 = vmax.f32 %v5153_v15, %v5087_v47  ;;  %v5089_v39 = vmax.f32 %v5009_v22, %v5049_v42  ;;  %v5154_v62 = vmax.f32 %v5122_v18, %v5086_v49  ;;  %v9469_v8 = vpop.f32.mrb[214].mxu0 }
 0x4cf   : > { %5830 = vmatprep.mubr.bf16.mxu1 %v5281_v25  ;;  %v5124_v12 = vmax.f32 %v5084_v4, %v5086_v49  ;;  %v5125_v29 = vmax.f32 %v5085_v36, %v5087_v47  ;;  %v5184_v45 = vmax.f32 %v5152_v21, %v5086_v49  ;;  %v5155_v31 = vmax.f32 %v5123_v9, %v5087_v47  ;;  %v9470_v36 = vpop.f32.mrb[215].mxu0 }
 0x4d0   : > { %5831 = vmatmul.mubr.bf16.gmra.mrb[220].mxu1 %v5265_v61  ;;  %v5282_v6 = vpack.c.bf16 %v5215_v63, %v5214_v7  ;;  %v5186_v27 = vmax.f32 %v5154_v62, %v5088_v5  ;;  %v13478_v54 = vadd.f32 %v9464_v35, %v9463_v3  ;;  %v13480_v53 = vadd.f32 %v9467_v34, %v9466_v30  ;;  %v9472_v49 = vpop.f32.mrb[216].mxu0  ;;  %v10599_v34 = vld [vmem:[%s14345_s9 + $0x160] sm:$0xff]  }
 0x4d1   : > { %v5156_v37 = vmax.f32 %v5124_v12, %v5088_v5  ;;  %v5157_v43 = vmax.f32 %v5125_v29, %v5089_v39  ;;  %v5217_v14 = vmax.f32 %v5185_v48, %v5089_v39  ;;  %v5187_v4 = vmax.f32 %v5155_v31, %v5089_v39  ;;  %v9473_v58 = vpop.f32.mrb[217].mxu0 }
 0x4d2   : > { %5838 = vmatprep.mubr.bf16.mxu1 %v5282_v6  ;;  %v13484_v59 = vadd.f32 %v9470_v36, %v9469_v8  ;;  %v5216_v1 = vmax.f32 %v5184_v45, %v5088_v5  ;;  %v5218_v46 = vmax.f32 %v5186_v27, %v13198_v41  ;;  %v5266_v26 = vpack.c.bf16 %v13324_v52, %v13316_v24  ;;  %v9475_v57 = vpop.f32.mrb[218].mxu0  ;;  %v10596_v24 = vld [vmem:[%s14345_s9 + $0x110] sm:$0xff]   ;;  %v13543_v8 = vld [vmem:[%s14344_s8] ss:$0 sm:$0xff] }
 0x4d3   : > { %v5188_v11 = vmax.f32 %v5156_v37, %v13198_v41  ;;  %v5189_v28 = vmax.f32 %v5157_v43, %v13203_v17  ;;  %v5219_v38 = vmax.f32 %v5187_v4, %v13203_v17  ;;  %v13492_v56 = vadd.f32 %v9473_v58, %v9472_v49  ;;  %v9476_v41 = vpop.f32.mrb[219].mxu0  ;;  %v10600_v43 = vld [vmem:[%s14345_s9 + $0x120] sm:$0xff]  }
 0x4d4   : > { %v5283_v3 = vpack.c.bf16 %v5217_v14, %v5216_v1  ;;  %v5267_v17 = vpack.c.bf16 %v13409_v32, %v13407_v44  ;;  %v5268_v52 = vpack.c.bf16 %v13423_v0, %v13413_v2  ;;  %v5269_v47 = vpack.c.bf16 %v13433_v13, %v13429_v40  ;;  %v10597_v0 = vld [vmem:[%s14345_s9 + $0x158] sm:$0xff]  }
 0x4d5   : > { %v5220_v10 = vmax.f32 %v5188_v11, %v13273_v50  ;;  %v5221_v19 = vmax.f32 %v5189_v28, %v13278_v33  ;;  %v5284_v20 = vpack.c.bf16 %v5219_v38, %v5218_v46  ;;  %v13496_v50 = vadd.f32 %v9476_v41, %v9475_v57  ;;  %v10595_v33 = vld [vmem:[%s14345_s9 + $0x150] sm:$0xff]  }
 0x4d6   : > { %9896 = vmatprep.subr.bf16.mxu0 %v10595_v33  ;;  %v5584_v11 = vadd.f32 %v13476_v23, %v13543_v8  ;;  %v5587_v46 = vadd.f32 %v13478_v54, %v13543_v8  ;;  %v5592_v23 = vadd.f32 %v13480_v53, %v13543_v8 }
 0x4d7   : > { %v5285_v16 = vpack.c.bf16 %v5221_v19, %v5220_v10  ;;  %9897 = vmatpush3.bf16.msra.mxu0 %v10596_v24 }
 0x4d8   : > { %5839 = vmatmul.mubr.bf16.gmra.mrb[224].mxu1 %v5266_v26  ;;  %9898 = vmatprep.subr.bf16.mxu0 %v10597_v0  ;;  %v6128_v0 = vld [vmem:[#allocation2 + $0xa] sm:$0xff] }
 0x4d9   : > { %5846 = vmatprep.mubr.bf16.mxu1 %v5283_v3 }
 0x4db   : > { %9899 = vmatpush3.bf16.msra.mxu0 %v10598_v55 }
 0x4dc   : > { %9900 = vmatprep.subr.bf16.mxu0 %v10599_v34 }
 0x4dd   : > { %v9478_v44 = vpop.f32.mrb[220].mxu0 }
 0x4de   : > { %v9479_v32 = vpop.f32.mrb[221].mxu0 }
 0x4df   : > { %v13506_v35 = vadd.f32 %v9479_v32, %v9478_v44  ;;  %v9481_v61 = vpop.f32.mrb[222].mxu0  ;;  %9901 = vmatpush3.bf16.msra.mxu0 %v10600_v43 }
 0x4e0   : > { %5847 = vmatmul.mubr.bf16.gmra.mrb[228].mxu1 %v5267_v17  ;;  %v9482_v51 = vpop.f32.mrb[223].mxu0 }
 0x4e1   : > { %5854 = vmatprep.mubr.bf16.mxu1 %v5284_v20  ;;  %v13510_v60 = vadd.f32 %v9482_v51, %v9481_v61 }
 0x4e8   : > { %5855 = vmatmul.mubr.bf16.gmra.mrb[232].mxu1 %v5268_v52  ;;  %v9484_v15 = vpop.f32.mrb[224].mxu0  ;;  %v5595_v52 = vadd.f32 %v13484_v59, %v13543_v8  ;;  %v10601_v59 = vld [vmem:[%s14345_s9 + $0x168] sm:$0xff]  }
 0x4e9   : > { %5862 = vmatprep.mubr.bf16.mxu1 %v5285_v16  ;;  %v9485_v25 = vpop.f32.mrb[225].mxu0  ;;  %9902 = vmatprep.subr.bf16.mxu0 %v10601_v59 }
 0x4ea   : > { %v13512_v22 = vadd.f32 %v9485_v25, %v9484_v15  ;;  %v9487_v2 = vpop.f32.mrb[226].mxu0 }
 0x4eb   : > { %v9488_v21 = vpop.f32.mrb[227].mxu0 }
 0x4ec   : > { %v13520_v18 = vadd.f32 %v9488_v21, %v9487_v2  ;;  %v6127_v2 = vld [vmem:[#allocation2 + $0x2] sm:$0xff] }
 0x4f0   : > { %5863 = vmatmul.mubr.bf16.gmra.mrb[236].mxu1 %v5269_v47 }
 0x4f1   : > { %v9490_v40 = vpop.f32.mrb[228].mxu0 }
 0x4f2   : > { %v9491_v13 = vpop.f32.mrb[229].mxu0 }
 0x4f3   : > { %v13522_v7 = vadd.f32 %v9491_v13, %v9490_v40  ;;  %v9493_v63 = vpop.f32.mrb[230].mxu0 }
 0x4f4   : > { %v9494_v42 = vpop.f32.mrb[231].mxu0 }
 0x4f5   : > { %v13524_v5 = vadd.f32 %v9494_v42, %v9493_v63  ;;  %v10602_v63 = vld [vmem:[%s14345_s9 + $0x128] sm:$0xff]   ;;  %v5600_v42 = vadd.f32 %v13492_v56, %v13543_v8 }
 0x4f6   : > { %9903 = vmatpush3.bf16.msra.mxu0 %v10602_v63 }
 0x4fa   : > { %v9496_v48 = vpop.f32.mrb[232].mxu0 }
 0x4fb   : > { %v9497_v39 = vpop.f32.mrb[233].mxu0 }
 0x4fc   : > { %v13526_v9 = vadd.f32 %v9497_v39, %v9496_v48  ;;  %v9499_v62 = vpop.f32.mrb[234].mxu0 }
 0x4fd   : > { %v9500_v12 = vpop.f32.mrb[235].mxu0 }
 0x4fe   : > { %v13528_v6 = vadd.f32 %v9500_v12, %v9499_v62 }
 0x502   : > { %v9502_v29 = vpop.f32.mrb[236].mxu0 }
 0x503   : > { %v9503_v30 = vpop.f32.mrb[237].mxu0 }
 0x504   : > { %v13530_v45 = vadd.f32 %v9503_v30, %v9502_v29  ;;  %v9505_v31 = vpop.f32.mrb[238].mxu0  ;;  %v6159_v30 = vpack.c.bf16 %v6128_v0, %v6127_v2  ;;  %v10603_v0 = vld [vmem:[%s14345_s9 + $0x170] sm:$0xff]  }
 0x505   : > { %v9506_v27 = vpop.f32.mrb[239].mxu0  ;;  %9904 = vmatprep.subr.bf16.mxu0 %v10603_v0 }
 0x506   : > { %v13532_v37 = vadd.f32 %v9506_v27, %v9505_v31 }
 0x515   : > { %v9572_v14 = vpop.f32.mrb[176].mxu1 }
 0x516   : > { %v9573_v4 = vpop.f32.mrb[177].mxu1 }
 0x517   : > { %v9574_v36 = vadd.f32 %v9573_v4, %v9572_v14  ;;  %v9575_v28 = vpop.f32.mrb[178].mxu1  ;;  %v5603_v14 = vadd.f32 %v13496_v50, %v13543_v8 }
 0x518   : > { %v9576_v1 = vpop.f32.mrb[179].mxu1 }
 0x519   : > { %v5745_v38 = vadd.f32 %v9574_v36, %v5584_v11  ;;  %v9577_v10 = vadd.f32 %v9576_v1, %v9575_v28 }
 0x51b   : > { %vm5871_vm0 = vcmp.gt.f32.partialorder %v5745_v38, 0.0  ;;  %v5903_v26 = vmul.f32 0.1, %v5745_v38  ;;  %v5748_v19 = vadd.f32 %v9577_v10, %v5587_v46 }
 0x51d   : > { %v5935_v3 = vsel %vm5871_vm0, %v5745_v38, %v5903_v26  ;;  %vm5872_vm1 = vcmp.gt.f32.partialorder %v5748_v19, 0.0  ;;  %v5904_v20 = vmul.f32 0.1, %v5748_v19  ;;  %v9578_v16 = vpop.f32.mrb[180].mxu1  ;;  %v9508_v17 = vpop.f32.mrb[240].mxu0 }
 0x51e   : > { %5967 = vst [vmem:[#allocation2 + $0x19] sm:$0xff] %v5935_v3  ;;  %v9579_v49 = vpop.f32.mrb[181].mxu1  ;;  %v9509_v33 = vpop.f32.mrb[241].mxu0 }
 0x51f   : > { %v5936_v58 = vsel %vm5872_vm1, %v5748_v19, %v5904_v20  ;;  %v9580_v57 = vadd.f32 %v9579_v49, %v9578_v16  ;;  %v9581_v41 = vpop.f32.mrb[182].mxu1  ;;  %v13553_v61 = vadd.f32 %v9509_v33, %v9508_v17  ;;  %v9511_v47 = vpop.f32.mrb[242].mxu0  ;;  %v5608_v49 = vadd.f32 %v13506_v35, %v13543_v8 }
 0x520   : > { %5968 = vst [vmem:[#allocation2 + $0x21] sm:$0xff] %v5936_v58  ;;  %v9582_v54 = vpop.f32.mrb[183].mxu1  ;;  %v6096_v24 = vpack.c.bf16 %v5936_v58, %v5935_v3  ;;  %v9512_v51 = vpop.f32.mrb[243].mxu0 }
 0x521   : > { %v5753_v44 = vadd.f32 %v9580_v57, %v5592_v23  ;;  %v9583_v32 = vadd.f32 %v9582_v54, %v9581_v41  ;;  %v13555_v25 = vadd.f32 %v9512_v51, %v9511_v47 }
 0x522   : > { %7342 = vmatprep.mubr.bf16.mxu0 %v6096_v24 }
 0x523   : > { %vm5873_vm2 = vcmp.gt.f32.partialorder %v5753_v44, 0.0  ;;  %v5905_v53 = vmul.f32 0.1, %v5753_v44  ;;  %v5756_v15 = vadd.f32 %v9583_v32, %v5595_v52  ;;  %v5611_v52 = vadd.f32 %v13510_v60, %v13543_v8 }
 0x525   : > { %v5937_v55 = vsel %vm5873_vm2, %v5753_v44, %v5905_v53  ;;  %vm5874_vm3 = vcmp.gt.f32.partialorder %v5756_v15, 0.0  ;;  %v5906_v21 = vmul.f32 0.1, %v5756_v15  ;;  %v9584_v40 = vpop.f32.mrb[184].mxu1  ;;  %v6191_v12 = vld [vmem:[#allocation2 + $0x18] sm:$0xff] }
 0x526   : > { %5969 = vst [vmem:[#allocation2 + $0x31] sm:$0xff] %v5937_v55  ;;  %v9585_v13 = vpop.f32.mrb[185].mxu1  ;;  %v9514_v27 = vpop.f32.mrb[244].mxu0 }
 0x527   : > { %v5938_v48 = vsel %vm5874_vm3, %v5756_v15, %v5906_v21  ;;  %v9586_v39 = vadd.f32 %v9585_v13, %v9584_v40  ;;  %v9587_v62 = vpop.f32.mrb[186].mxu1  ;;  %v6192_v29 = vld [vmem:[#allocation2 + $0x20] sm:$0xff]  ;;  %v9515_v36 = vpop.f32.mrb[245].mxu0  ;;  %v10604_v40 = vld [vmem:[%s14345_s9 + $0x130] sm:$0xff]  }
 0x528   : > { %5970 = vst [vmem:[#allocation2 + $0x39] sm:$0xff] %v5938_v48  ;;  %v9588_v31 = vpop.f32.mrb[187].mxu1  ;;  %v6223_v34 = vpack.c.bf16 %v6192_v29, %v6191_v12  ;;  %v6097_v43 = vpack.c.bf16 %v5938_v48, %v5937_v55  ;;  %v13567_v56 = vadd.f32 %v9515_v36, %v9514_v27  ;;  %v9517_v28 = vpop.f32.mrb[246].mxu0  ;;  %v6129_v20 = vld [vmem:[#allocation2 + $0x1a] sm:$0xff]  ;;  %v6130_v16 = vld [vmem:[#allocation2 + $0x22] sm:$0xff]  ;;  %9905 = vmatpush3.bf16.msra.mxu0 %v10604_v40 }
 0x529   : > { %v5761_v4 = vadd.f32 %v9586_v39, %v5600_v42  ;;  %v9589_v11 = vadd.f32 %v9588_v31, %v9587_v62  ;;  %v9518_v38 = vpop.f32.mrb[247].mxu0  ;;  %v6160_v47 = vpack.c.bf16 %v6130_v16, %v6129_v20  ;;  %v10605_v31 = vld [vmem:[%s14345_s9 + $0x1c0] sm:$0xff]   ;;  %v10609_v20 = vld [vmem:[%s14345_s9 + $0x178] sm:$0xff]  }
 0x52a   : > { %7495 = vmatprep.mubr.bf16.mxu1 %v6223_v34  ;;  %7343 = vmatmul.mubr.bf16.gmra.mrb[20].mxu0 %v6223_v34  ;;  %v13569_v10 = vadd.f32 %v9518_v38, %v9517_v28  ;;  %v10606_v27 = vld [vmem:[%s14345_s9 + $0x180] sm:$0xff]   ;;  %v10610_v16 = vld [vmem:[%s14345_s9 + $0x138] sm:$0xff]  }
 0x52b   : > { %vm5875_vm4 = vcmp.gt.f32.partialorder %v5761_v4, 0.0  ;;  %v5907_v1 = vmul.f32 0.1, %v5761_v4  ;;  %v5764_v46 = vadd.f32 %v9589_v11, %v5603_v14  ;;  %7496 = vmatmul.mubr.bf16.vlgmr.msra.gmra.mrb[240].mxu1 %v6159_v30  ;;  %7350 = vmatprep.mubr.bf16.mxu0 %v6097_v43 }
 0x52c   : > { %10004 = vmatprep.subr.bf16.mxu1 %v10605_v31  ;;  %9906 = vmatprep.subr.bf16.mxu0 %v10609_v20 }
 0x52d   : > { %v5939_v26 = vsel %vm5875_vm4, %v5761_v4, %v5907_v1  ;;  %vm5876_vm5 = vcmp.gt.f32.partialorder %v5764_v46, 0.0  ;;  %v5908_v19 = vmul.f32 0.1, %v5764_v46  ;;  %v9590_v50 = vpop.f32.mrb[188].mxu1  ;;  %v6193_v41 = vld [vmem:[#allocation2 + $0x30] sm:$0xff]  ;;  %10005 = vmatpush3.bf16.msra.mxu1 %v10606_v27  ;;  %9907 = vmatpush3.bf16.msra.mxu0 %v10610_v16  ;;  %v10618_v27 = vld [vmem:[%s14345_s9 + $0x1a8] sm:$0xff]  }
 0x52e   : > { %5971 = vst [vmem:[#allocation2 + $0x49] sm:$0xff] %v5939_v26  ;;  %v9591_v3 = vpop.f32.mrb[189].mxu1 }
 0x52f   : > { %v5940_v23 = vsel %vm5876_vm5, %v5764_v46, %v5908_v19  ;;  %v9592_v58 = vadd.f32 %v9591_v3, %v9590_v50  ;;  %v9593_v57 = vpop.f32.mrb[190].mxu1  ;;  %v6194_v17 = vld [vmem:[#allocation2 + $0x38] sm:$0xff]  ;;  %v10607_v50 = vld [vmem:[%s14345_s9 + $0x1c8] sm:$0xff]  }
 0x530   : > { %5972 = vst [vmem:[#allocation2 + $0x51] sm:$0xff] %v5940_v23  ;;  %v9594_v54 = vpop.f32.mrb[191].mxu1  ;;  %v6224_v33 = vpack.c.bf16 %v6194_v17, %v6193_v41  ;;  %v6098_v24 = vpack.c.bf16 %v5940_v23, %v5939_v26  ;;  %v6131_v55 = vld [vmem:[#allocation2 + $0x32] sm:$0xff]  ;;  %v6132_v21 = vld [vmem:[#allocation2 + $0x3a] sm:$0xff]  ;;  %10006 = vmatprep.subr.bf16.mxu1 %v10607_v50  ;;  %v10608_v3 = vld [vmem:[%s14345_s9 + $0x188] sm:$0xff]   ;;  %v5616_v41 = vadd.f32 %v13512_v22, %v13543_v8 }
 0x531   : > { %v5769_v44 = vadd.f32 %v9592_v58, %v5608_v49  ;;  %v9595_v32 = vadd.f32 %v9594_v54, %v9593_v57  ;;  %v6161_v30 = vpack.c.bf16 %v6132_v21, %v6131_v55  ;;  %v10611_v23 = vld [vmem:[%s14345_s9 + $0x1d0] sm:$0xff]   ;;  %10007 = vmatpush3.bf16.msra.mxu1 %v10608_v3  ;;  %v10616_v55 = vld [vmem:[%s14345_s9 + $0x1a0] sm:$0xff]  }
 0x532   : > { %7503 = vmatprep.mubr.bf16.mxu1 %v6224_v33  ;;  %7351 = vmatmul.mubr.bf16.gmra.mrb[24].mxu0 %v6224_v33  ;;  %v10612_v57 = vld [vmem:[%s14345_s9 + $0x190] sm:$0xff]   ;;  %v10613_v33 = vld [vmem:[%s14345_s9 + $0x1d8] sm:$0xff]   ;;  %v13637_v21 = vld [vmem:[%s14345_s9 + $0x200] sm:$0xff]  }
 0x533   : > { %vm5877_vm6 = vcmp.gt.f32.partialorder %v5769_v44, 0.0  ;;  %v5909_v51 = vmul.f32 0.1, %v5769_v44  ;;  %v5772_v35 = vadd.f32 %v9595_v32, %v5611_v52  ;;  %7504 = vmatmul.mubr.bf16.gmra.mrb[244].mxu1 %v6160_v47  ;;  %7358 = vmatprep.mubr.bf16.mxu0 %v6098_v24  ;;  %v5619_v52 = vadd.f32 %v13520_v18, %v13543_v8  ;;  %v10614_v47 = vld [vmem:[%s14345_s9 + $0x198] sm:$0xff]  }
 0x534   : > { %v9520_v2 = vpop.f32.mrb[248].mxu0  ;;  %10008 = vmatprep.subr.bf16.mxu1 %v10611_v23  ;;  %10348 = vmatprep.subr.bf16.mxu0 %v13637_v21 }
 0x535   : > { %v5941_v53 = vsel %vm5877_vm6, %v5769_v44, %v5909_v51  ;;  %vm5878_vm7 = vcmp.gt.f32.partialorder %v5772_v35, 0.0  ;;  %v5910_v15 = vmul.f32 0.1, %v5772_v35  ;;  %v9521_v60 = vpop.f32.mrb[249].mxu0  ;;  %v6195_v42 = vld [vmem:[#allocation2 + $0x48] sm:$0xff]  ;;  %10009 = vmatpush3.bf16.msra.mxu1 %v10612_v57 }
 0x536   : > { %5973 = vst [vmem:[#allocation2 + $0x61] sm:$0xff] %v5941_v53  ;;  %v13581_v13 = vadd.f32 %v9521_v60, %v9520_v2  ;;  %v9523_v63 = vpop.f32.mrb[250].mxu0  ;;  %10010 = vmatprep.subr.bf16.mxu1 %v10613_v33 }
 0x537   : > { %v5942_v59 = vsel %vm5878_vm7, %v5772_v35, %v5910_v15  ;;  %v6196_v48 = vld [vmem:[#allocation2 + $0x50] sm:$0xff]  ;;  %v9524_v39 = vpop.f32.mrb[251].mxu0  ;;  %v10615_v35 = vld [vmem:[%s14345_s9 + $0x1e0] sm:$0xff]  }
 0x538   : > { %5974 = vst [vmem:[#allocation2 + $0x69] sm:$0xff] %v5942_v59  ;;  %v6225_v62 = vpack.c.bf16 %v6196_v48, %v6195_v42  ;;  %v6099_v12 = vpack.c.bf16 %v5942_v59, %v5941_v53  ;;  %v13583_v29 = vadd.f32 %v9524_v39, %v9523_v63  ;;  %v6133_v34 = vld [vmem:[#allocation2 + $0x4a] sm:$0xff]  ;;  %v6134_v43 = vld [vmem:[#allocation2 + $0x52] sm:$0xff] }
 0x539   : > { %v13593_v38 = vpack.c.bf16 %v6134_v43, %v6133_v34  ;;  %10011 = vmatpush3.bf16.msra.mxu1 %v10614_v47  ;;  %v10617_v63 = vld [vmem:[%s14345_s9 + $0x1e8] sm:$0xff]   ;;  %v10620_v43 = vld [vmem:[%s14345_s9 + $0x1f0] sm:$0xff]  }
 0x53a   : > { %7511 = vmatprep.mubr.bf16.mxu1 %v6225_v62  ;;  %7359 = vmatmul.mubr.bf16.gmra.mrb[28].mxu0 %v6225_v62 }
 0x53b   : > { %7512 = vmatmul.mubr.bf16.gmra.mrb[248].mxu1 %v6161_v30  ;;  %7366 = vmatprep.mubr.bf16.mxu0 %v6099_v12  ;;  %v5624_v12 = vadd.f32 %v13522_v7, %v13543_v8 }
 0x53c   : > { %10012 = vmatprep.subr.bf16.mxu1 %v10615_v35 }
 0x53d   : > { %v6197_v4 = vld [vmem:[#allocation2 + $0x60] sm:$0xff]  ;;  %10013 = vmatpush3.bf16.msra.mxu1 %v10616_v55 }
 0x53e   : > { %v9526_v14 = vpop.f32.mrb[252].mxu0  ;;  %10014 = vmatprep.subr.bf16.mxu1 %v10617_v63 }
 0x53f   : > { %v6198_v11 = vld [vmem:[#allocation2 + $0x68] sm:$0xff]  ;;  %v9527_v36 = vpop.f32.mrb[253].mxu0 }
 0x540   : > { %v6226_v28 = vpack.c.bf16 %v6198_v11, %v6197_v4  ;;  %v13591_v1 = vadd.f32 %v9527_v36, %v9526_v14  ;;  %v9529_v46 = vpop.f32.mrb[254].mxu0  ;;  %v5627_v14 = vadd.f32 %v13524_v5, %v13543_v8 }
 0x541   : > { %v9530_v26 = vpop.f32.mrb[255].mxu0  ;;  %10015 = vmatpush3.bf16.msra.mxu1 %v10618_v27  ;;  %v5640_v27 = vadd.f32 %v13530_v45, %v13543_v8 }
 0x542   : > { %7519 = vmatprep.mubr.bf16.mxu1 %v6226_v28  ;;  %7367 = vmatmul.mubr.bf16.gmra.mrb[32].mxu0 %v6226_v28  ;;  %v13595_v19 = vadd.f32 %v9530_v26, %v9529_v46  ;;  %v6135_v28 = vld [vmem:[#allocation2 + $0x62] sm:$0xff]  ;;  %v6136_v46 = vld [vmem:[#allocation2 + $0x6a] sm:$0xff] }
 0x543   : > { %7520 = vmatmul.mubr.bf16.gmra.mrb[252].mxu1 %v13593_v38  ;;  %10016 = vmatprep.subr.bf16.mxu1 %v10620_v43  ;;  %v13658_v23 = vpack.c.bf16 %v6136_v46, %v6135_v28 }
 0x547   : > { %v9596_v49 = vpop.f32.mrb[192].mxu1 }
 0x548   : > { %v9597_v58 = vpop.f32.mrb[193].mxu1 }
 0x549   : > { %v9598_v17 = vadd.f32 %v9597_v58, %v9596_v49  ;;  %v9599_v54 = vpop.f32.mrb[194].mxu1  ;;  %v10621_v49 = vld [vmem:[%s14345_s9 + $0x1b0] sm:$0xff]   ;;  %v10622_v58 = vld [vmem:[%s14345_s9 + $0x1f8] sm:$0xff]  }
 0x54a   : > { %v9600_v24 = vpop.f32.mrb[195].mxu1  ;;  %10017 = vmatpush3.bf16.msra.mxu1 %v10621_v49 }
 0x54b   : > { %v5777_v44 = vadd.f32 %v9598_v17, %v5616_v41  ;;  %v9601_v32 = vadd.f32 %v9600_v24, %v9599_v54  ;;  %10018 = vmatprep.subr.bf16.mxu1 %v10622_v58 }
 0x54d   : > { %vm5879_vm8 = vcmp.gt.f32.partialorder %v5777_v44, 0.0  ;;  %v5911_v22 = vmul.f32 0.1, %v5777_v44  ;;  %v5780_v51 = vadd.f32 %v9601_v32, %v5619_v52 }
 0x54f   : > { %v5943_v15 = vsel %vm5879_vm8, %v5777_v44, %v5911_v22  ;;  %vm5880_vm9 = vcmp.gt.f32.partialorder %v5780_v51, 0.0  ;;  %v5912_v2 = vmul.f32 0.1, %v5780_v51  ;;  %v5632_v44 = vadd.f32 %v13526_v9, %v13543_v8 }
 0x550   : > { %5975 = vst [vmem:[#allocation2 + $0x79] sm:$0xff] %v5943_v15 }
 0x551   : > { %v5944_v40 = vsel %vm5880_vm9, %v5780_v51, %v5912_v2  ;;  %v10623_v51 = vld [vmem:[%s14345_s9 + $0x1b8] sm:$0xff]  }
 0x552   : > { %5976 = vst [vmem:[#allocation2 + $0x81] sm:$0xff] %v5944_v40  ;;  %v9602_v42 = vpop.f32.mrb[196].mxu1  ;;  %v6100_v39 = vpack.c.bf16 %v5944_v40, %v5943_v15  ;;  %v5635_v15 = vadd.f32 %v13528_v6, %v13543_v8  ;;  %10019 = vmatpush3.bf16.msra.mxu1 %v10623_v51 }
 0x553   : > { %v9532_v53 = vpop.f32.mrb[0].mxu0  ;;  %v9603_v62 = vpop.f32.mrb[197].mxu1 }
 0x554   : > { %v9533_v18 = vpop.f32.mrb[1].mxu0  ;;  %v9604_v30 = vadd.f32 %v9603_v62, %v9602_v42  ;;  %v9605_v31 = vpop.f32.mrb[198].mxu1  ;;  %7374 = vmatprep.mubr.bf16.mxu0 %v6100_v39 }
 0x555   : > { %v13629_v0 = vadd.f32 %v9533_v18, %v9532_v53  ;;  %v9535_v60 = vpop.f32.mrb[2].mxu0  ;;  %v9606_v34 = vpop.f32.mrb[199].mxu1 }
 0x556   : > { %v9536_v59 = vpop.f32.mrb[3].mxu0  ;;  %v5785_v4 = vadd.f32 %v9604_v30, %v5624_v12  ;;  %v9607_v11 = vadd.f32 %v9606_v34, %v9605_v31 }
 0x557   : > { %v13642_v48 = vadd.f32 %v9536_v59, %v9535_v60  ;;  %v6199_v26 = vld [vmem:[#allocation2 + $0x78] sm:$0xff] }
 0x558   : > { %vm5881_vm10 = vcmp.gt.f32.partialorder %v5785_v4, 0.0  ;;  %v5913_v7 = vmul.f32 0.1, %v5785_v4  ;;  %v5788_v36 = vadd.f32 %v9607_v11, %v5627_v14  ;;  %v5643_v11 = vadd.f32 %v13532_v37, %v13543_v8 }
 0x559   : > { %v6200_v50 = vld [vmem:[#allocation2 + $0x80] sm:$0xff] }
 0x55a   : > { %v5945_v3 = vsel %vm5881_vm10, %v5785_v4, %v5913_v7  ;;  %vm5882_vm11 = vcmp.gt.f32.partialorder %v5788_v36, 0.0  ;;  %v5914_v20 = vmul.f32 0.1, %v5788_v36  ;;  %v6227_v16 = vpack.c.bf16 %v6200_v50, %v6199_v26  ;;  %v6137_v55 = vld [vmem:[#allocation2 + $0x7a] sm:$0xff]  ;;  %v6138_v40 = vld [vmem:[#allocation2 + $0x82] sm:$0xff] }
 0x55b   : > { %5977 = vst [vmem:[#allocation2 + $0x91] sm:$0xff] %v5945_v3  ;;  %v13677_v6 = vpack.c.bf16 %v6138_v40, %v6137_v55 }
 0x55c   : > { %v5946_v57 = vsel %vm5882_vm11, %v5788_v36, %v5914_v20  ;;  %7527 = vmatprep.mubr.bf16.mxu1 %v6227_v16  ;;  %7375 = vmatmul.mubr.bf16.gmra.mrb[36].mxu0 %v6227_v16 }
 0x55d   : > { %5978 = vst [vmem:[#allocation2 + $0x99] sm:$0xff] %v5946_v57  ;;  %7528 = vmatmul.mubr.bf16.gmra.mrb[0].mxu1 %v13658_v23  ;;  %v6101_v52 = vpack.c.bf16 %v5946_v57, %v5945_v3 }
 0x55f   : > { %7382 = vmatprep.mubr.bf16.mxu0 %v6101_v52 }
 0x561   : > { %v9608_v41 = vpop.f32.mrb[200].mxu1 }
 0x562   : > { %v9609_v54 = vpop.f32.mrb[201].mxu1  ;;  %v6201_v42 = vld [vmem:[#allocation2 + $0x90] sm:$0xff] }
 0x563   : > { %v9610_v32 = vadd.f32 %v9609_v54, %v9608_v41  ;;  %v9611_v47 = vpop.f32.mrb[202].mxu1 }
 0x564   : > { %v9538_v5 = vpop.f32.mrb[4].mxu0  ;;  %v9612_v35 = vpop.f32.mrb[203].mxu1  ;;  %v6202_v39 = vld [vmem:[#allocation2 + $0x98] sm:$0xff] }
 0x565   : > { %v9539_v17 = vpop.f32.mrb[5].mxu0  ;;  %v5793_v2 = vadd.f32 %v9610_v32, %v5632_v44  ;;  %v9613_v18 = vadd.f32 %v9612_v35, %v9611_v47  ;;  %v13675_v12 = vpack.c.bf16 %v6202_v39, %v6201_v42  ;;  %v6140_v58 = vld [vmem:[#allocation2 + $0x9a] sm:$0xff]  ;;  %v5648_v47 = vadd.f32 %v13553_v61, %v13543_v8 }
 0x566   : > { %v13663_v33 = vadd.f32 %v9539_v17, %v9538_v5  ;;  %v9541_v24 = vpop.f32.mrb[6].mxu0  ;;  %v6139_v5 = vld [vmem:[#allocation2 + $0x92] sm:$0xff] }
 0x567   : > { %v9542_v22 = vpop.f32.mrb[7].mxu0  ;;  %vm5883_vm12 = vcmp.gt.f32.partialorder %v5793_v2, 0.0  ;;  %v5915_v9 = vmul.f32 0.1, %v5793_v2  ;;  %v5796_v60 = vadd.f32 %v9613_v18, %v5635_v15  ;;  %7535 = vmatprep.mubr.bf16.mxu1 %v13675_v12  ;;  %7383 = vmatmul.mubr.bf16.gmra.mrb[40].mxu0 %v13675_v12 }
 0x568   : > { %v13671_v53 = vadd.f32 %v9542_v22, %v9541_v24  ;;  %7536 = vmatmul.mubr.bf16.gmra.mrb[4].mxu1 %v13677_v6  ;;  %v13692_v24 = vpack.c.bf16 %v6140_v58, %v6139_v5 }
 0x569   : > { %v5947_v59 = vsel %vm5883_vm12, %v5793_v2, %v5915_v9  ;;  %vm5884_vm13 = vcmp.gt.f32.partialorder %v5796_v60, 0.0  ;;  %v5916_v63 = vmul.f32 0.1, %v5796_v60  ;;  %v5651_v9 = vadd.f32 %v13555_v25, %v13543_v8 }
 0x56a   : > { %5979 = vst [vmem:[#allocation2 + $0xa9] sm:$0xff] %v5947_v59 }
 0x56b   : > { %v9614_v62 = vpop.f32.mrb[204].mxu1  ;;  %v5948_v30 = vsel %vm5884_vm13, %v5796_v60, %v5916_v63 }
 0x56c   : > { %v9615_v31 = vpop.f32.mrb[205].mxu1  ;;  %5980 = vst [vmem:[#allocation2 + $0xb1] sm:$0xff] %v5948_v30  ;;  %v6102_v14 = vpack.c.bf16 %v5948_v30, %v5947_v59 }
 0x56d   : > { %v9616_v34 = vadd.f32 %v9615_v31, %v9614_v62  ;;  %v9617_v43 = vpop.f32.mrb[206].mxu1 }
 0x56e   : > { %v9618_v4 = vpop.f32.mrb[207].mxu1  ;;  %7390 = vmatprep.mubr.bf16.mxu0 %v6102_v14 }
 0x56f   : > { %v5801_v7 = vadd.f32 %v9616_v34, %v5640_v27  ;;  %v9619_v36 = vadd.f32 %v9618_v4, %v9617_v43 }
 0x571   : > { %vm5885_vm14 = vcmp.gt.f32.partialorder %v5801_v7, 0.0  ;;  %v5917_v45 = vmul.f32 0.1, %v5801_v7  ;;  %v5804_v26 = vadd.f32 %v9619_v36, %v5643_v11  ;;  %v6203_v37 = vld [vmem:[#allocation2 + $0xa8] sm:$0xff]  ;;  %v5656_v36 = vadd.f32 %v13567_v56, %v13543_v8 }
 0x573   : > { %v9544_v28 = vpop.f32.mrb[8].mxu0  ;;  %v5949_v16 = vsel %vm5885_vm14, %v5801_v7, %v5917_v45  ;;  %vm5886_vm15 = vcmp.gt.f32.partialorder %v5804_v26, 0.0  ;;  %v5918_v49 = vmul.f32 0.1, %v5804_v26  ;;  %v6204_v41 = vld [vmem:[#allocation2 + $0xb0] sm:$0xff] }
 0x574   : > { %v9545_v46 = vpop.f32.mrb[9].mxu0  ;;  %5981 = vst [vmem:[#allocation2 + $0xc1] sm:$0xff] %v5949_v16  ;;  %v13690_v54 = vpack.c.bf16 %v6204_v41, %v6203_v37  ;;  %v6141_v2 = vld [vmem:[#allocation2 + $0xaa] sm:$0xff]  ;;  %v6142_v18 = vld [vmem:[#allocation2 + $0xb2] sm:$0xff] }
 0x575   : > { %v13686_v50 = vadd.f32 %v9545_v46, %v9544_v28  ;;  %v9547_v3 = vpop.f32.mrb[10].mxu0  ;;  %v5950_v17 = vsel %vm5886_vm15, %v5804_v26, %v5918_v49  ;;  %v13705_v27 = vpack.c.bf16 %v6142_v18, %v6141_v2  ;;  %v5659_v49 = vadd.f32 %v13569_v10, %v13543_v8 }
 0x576   : > { %v9548_v20 = vpop.f32.mrb[11].mxu0  ;;  %5982 = vst [vmem:[#allocation2 + $0xc9] sm:$0xff] %v5950_v17  ;;  %v6103_v52 = vpack.c.bf16 %v5950_v17, %v5949_v16  ;;  %7543 = vmatprep.mubr.bf16.mxu1 %v13690_v54  ;;  %7391 = vmatmul.mubr.bf16.gmra.mrb[44].mxu0 %v13690_v54  ;;  %v5667_v18 = vadd.f32 %v13583_v29, %v13543_v8 }
 0x577   : > { %v13688_v57 = vadd.f32 %v9548_v20, %v9547_v3  ;;  %7544 = vmatmul.mubr.bf16.gmra.mrb[8].mxu1 %v13692_v24 }
 0x578   : > { %7398 = vmatprep.mubr.bf16.mxu0 %v6103_v52 }
 0x579   : > { %v9620_v44 = vpop.f32.mrb[208].mxu1 }
 0x57a   : > { %v9621_v32 = vpop.f32.mrb[209].mxu1 }
 0x57b   : > { %v9622_v22 = vadd.f32 %v9621_v32, %v9620_v44  ;;  %v9623_v51 = vpop.f32.mrb[210].mxu1  ;;  %v6205_v59 = vld [vmem:[#allocation2 + $0xc0] sm:$0xff] }
 0x57c   : > { %v9624_v35 = vpop.f32.mrb[211].mxu1 }
 0x57d   : > { %v9550_v15 = vpop.f32.mrb[12].mxu0  ;;  %v5809_v60 = vadd.f32 %v9622_v22, %v5648_v47  ;;  %v9625_v55 = vadd.f32 %v9624_v35, %v9623_v51  ;;  %v6206_v63 = vld [vmem:[#allocation2 + $0xc8] sm:$0xff]  ;;  %v5664_v51 = vadd.f32 %v13581_v13, %v13543_v8 }
 0x57e   : > { %v9551_v40 = vpop.f32.mrb[13].mxu0  ;;  %v13703_v62 = vpack.c.bf16 %v6206_v63, %v6205_v59  ;;  %v6143_v45 = vld [vmem:[#allocation2 + $0xc2] sm:$0xff]  ;;  %v6144_v26 = vld [vmem:[#allocation2 + $0xca] sm:$0xff] }
 0x57f   : > { %v13701_v42 = vadd.f32 %v9551_v40, %v9550_v15  ;;  %v9553_v39 = vpop.f32.mrb[14].mxu0  ;;  %vm5887_vm0 = vcmp.gt.f32.partialorder %v5809_v60, 0.0  ;;  %v5919_v61 = vmul.f32 0.1, %v5809_v60  ;;  %v5812_v30 = vadd.f32 %v9625_v55, %v5651_v9 }
 0x580   : > { %v9554_v31 = vpop.f32.mrb[15].mxu0  ;;  %7551 = vmatprep.mubr.bf16.mxu1 %v13703_v62  ;;  %7399 = vmatmul.mubr.bf16.gmra.mrb[48].mxu0 %v13703_v62  ;;  %v13718_v41 = vpack.c.bf16 %v6144_v26, %v6143_v45 }
 0x581   : > { %v13707_v34 = vadd.f32 %v9554_v31, %v9553_v39  ;;  %v5951_v25 = vsel %vm5887_vm0, %v5809_v60, %v5919_v61  ;;  %vm5888_vm1 = vcmp.gt.f32.partialorder %v5812_v30, 0.0  ;;  %v5920_v43 = vmul.f32 0.1, %v5812_v30  ;;  %7552 = vmatmul.mubr.bf16.gmra.mrb[12].mxu1 %v13705_v27 }
 0x582   : > { %5983 = vst [vmem:[#allocation2 + $0xd9] sm:$0xff] %v5951_v25 }
 0x583   : > { %v5952_v14 = vsel %vm5888_vm1, %v5812_v30, %v5920_v43 }
 0x584   : > { %5984 = vst [vmem:[#allocation2 + $0xe1] sm:$0xff] %v5952_v14  ;;  %v6104_v4 = vpack.c.bf16 %v5952_v14, %v5951_v25 }
 0x586   : > { %7406 = vmatprep.mubr.bf16.mxu0 %v6104_v4 }
 0x587   : > { %v9626_v11 = vpop.f32.mrb[212].mxu1  ;;  %v9684_v14 = vpop.f32.mrb[16].mxu0 }
 0x588   : > { %v9627_v7 = vpop.f32.mrb[213].mxu1 }
 0x589   : > { %v9628_v28 = vadd.f32 %v9627_v7, %v9626_v11  ;;  %v9629_v46 = vpop.f32.mrb[214].mxu1  ;;  %v6207_v20 = vld [vmem:[#allocation2 + $0xd8] sm:$0xff]  ;;  %v5672_v7 = vadd.f32 %v13591_v1, %v13543_v8  ;;  %v9685_v1 = vpop.f32.mrb[17].mxu0 }
 0x58a   : > { %v9630_v3 = vpop.f32.mrb[215].mxu1 }
 0x58b   : > { %v6208_v16 = vld [vmem:[#allocation2 + $0xe0] sm:$0xff]  ;;  %v5817_v5 = vadd.f32 %v9628_v28, %v5656_v36  ;;  %v9631_v58 = vadd.f32 %v9630_v3, %v9629_v46  ;;  %v5675_v3 = vadd.f32 %v13595_v19, %v13543_v8 }
 0x58c   : > { %v13716_v37 = vpack.c.bf16 %v6208_v16, %v6207_v20  ;;  %v6145_v59 = vld [vmem:[#allocation2 + $0xda] sm:$0xff]  ;;  %v6146_v63 = vld [vmem:[#allocation2 + $0xe2] sm:$0xff] }
 0x58d   : > { %vm5889_vm2 = vcmp.gt.f32.partialorder %v5817_v5, 0.0  ;;  %v5921_v17 = vmul.f32 0.1, %v5817_v5  ;;  %v5820_v52 = vadd.f32 %v9631_v58, %v5659_v49  ;;  %v13732_v25 = vpack.c.bf16 %v6146_v63, %v6145_v59 }
 0x58e   : > { %7559 = vmatprep.mubr.bf16.mxu1 %v13716_v37  ;;  %7407 = vmatmul.mubr.bf16.gmra.mrb[52].mxu0 %v13716_v37  ;;  %v5683_v59 = vadd.f32 %v13642_v48, %v13543_v8 }
 0x58f   : > { %7560 = vmatmul.mubr.bf16.gmra.mrb[16].mxu1 %v13718_v41  ;;  %v5953_v56 = vsel %vm5889_vm2, %v5817_v5, %v5921_v17  ;;  %vm5890_vm3 = vcmp.gt.f32.partialorder %v5820_v52, 0.0  ;;  %v5922_v44 = vmul.f32 0.1, %v5820_v52 }
 0x590   : > { %5985 = vst [vmem:[#allocation2 + $0xf1] sm:$0xff] %v5953_v56 }
 0x591   : > { %v5954_v10 = vsel %vm5890_vm3, %v5820_v52, %v5922_v44  ;;  %v13750_v44 = vadd.f32 %v9685_v1, %v9684_v14 }
 0x592   : > { %5986 = vst [vmem:[#allocation2 + $0xf9] sm:$0xff] %v5954_v10  ;;  %v13723_v47 = vpack.c.bf16 %v5954_v10, %v5953_v56  ;;  %v9687_v10 = vpop.f32.mrb[18].mxu0 }
 0x594   : > { %7414 = vmatprep.mubr.bf16.mxu0 %v13723_v47 }
 0x595   : > { %v9632_v32 = vpop.f32.mrb[216].mxu1 }
 0x596   : > { %v9633_v22 = vpop.f32.mrb[217].mxu1 }
 0x597   : > { %v9634_v35 = vadd.f32 %v9633_v22, %v9632_v32  ;;  %v9635_v15 = vpop.f32.mrb[218].mxu1  ;;  %v6209_v39 = vld [vmem:[#allocation2 + $0xf0] sm:$0xff] }
 0x598   : > { %v9636_v2 = vpop.f32.mrb[219].mxu1 }
 0x599   : > { %v5825_v9 = vadd.f32 %v9634_v35, %v5664_v51  ;;  %v9637_v60 = vadd.f32 %v9636_v2, %v9635_v15  ;;  %v6210_v61 = vld [vmem:[#allocation2 + $0xf8] sm:$0xff]  ;;  %v9688_v51 = vpop.f32.mrb[19].mxu0  ;;  %v5680_v2 = vadd.f32 %v13629_v0, %v13543_v8 }
 0x59a   : > { %v13730_v31 = vpack.c.bf16 %v6210_v61, %v6209_v39  ;;  %v6147_v45 = vld [vmem:[#allocation2 + $0xf2] sm:$0xff]  ;;  %v6148_v26 = vld [vmem:[#allocation2 + $0xfa] sm:$0xff]  ;;  %v13753_v15 = vadd.f32 %v9688_v51, %v9687_v10  ;;  %v5696_v51 = vadd.f32 %v13686_v50, %v13543_v8 }
 0x59b   : > { %vm5891_vm4 = vcmp.gt.f32.partialorder %v5825_v9, 0.0  ;;  %v5923_v55 = vmul.f32 0.1, %v5825_v9  ;;  %v5828_v40 = vadd.f32 %v9637_v60, %v5667_v18  ;;  %v13746_v56 = vpack.c.bf16 %v6148_v26, %v6147_v45 }
 0x59c   : > { %7567 = vmatprep.mubr.bf16.mxu1 %v13730_v31  ;;  %7415 = vmatmul.mubr.bf16.gmra.mrb[56].mxu0 %v13730_v31 }
 0x59d   : > { %v5955_v30 = vsel %vm5891_vm4, %v5825_v9, %v5923_v55  ;;  %vm5892_vm5 = vcmp.gt.f32.partialorder %v5828_v40, 0.0  ;;  %v5924_v13 = vmul.f32 0.1, %v5828_v40  ;;  %7568 = vmatmul.mubr.bf16.gmra.mrb[20].mxu1 %v13732_v25 }
 0x59e   : > { %5987 = vst [vmem:[#allocation2 + $0x109] sm:$0xff] %v5955_v30 }
 0x59f   : > { %v5956_v43 = vsel %vm5892_vm5, %v5828_v40, %v5924_v13 }
 0x5a0   : > { %5988 = vst [vmem:[#allocation2 + $0x111] sm:$0xff] %v5956_v43  ;;  %v13737_v29 = vpack.c.bf16 %v5956_v43, %v5955_v30 }
 0x5a2   : > { %7422 = vmatprep.mubr.bf16.mxu0 %v13737_v29 }
 0x5a3   : > { %v9638_v4 = vpop.f32.mrb[220].mxu1 }
 0x5a4   : > { %v9639_v11 = vpop.f32.mrb[221].mxu1 }
 0x5a5   : > { %v9640_v36 = vadd.f32 %v9639_v11, %v9638_v4  ;;  %v9641_v28 = vpop.f32.mrb[222].mxu1  ;;  %v6211_v49 = vld [vmem:[#allocation2 + $0x108] sm:$0xff] }
 0x5a6   : > { %v9642_v46 = vpop.f32.mrb[223].mxu1 }
 0x5a7   : > { %v5833_v20 = vadd.f32 %v9640_v36, %v5672_v7  ;;  %v9643_v16 = vadd.f32 %v9642_v46, %v9641_v28  ;;  %v6212_v5 = vld [vmem:[#allocation2 + $0x110] sm:$0xff]  ;;  %v5688_v7 = vadd.f32 %v13663_v33, %v13543_v8 }
 0x5a8   : > { %v13744_v58 = vpack.c.bf16 %v6212_v5, %v6211_v49  ;;  %v6149_v4 = vld [vmem:[#allocation2 + $0x10a] sm:$0xff]  ;;  %v6150_v11 = vld [vmem:[#allocation2 + $0x112] sm:$0xff] }
 0x5a9   : > { %vm5893_vm6 = vcmp.gt.f32.partialorder %v5833_v20, 0.0  ;;  %v5925_v17 = vmul.f32 0.1, %v5833_v20  ;;  %v5836_v52 = vadd.f32 %v9643_v16, %v5675_v3  ;;  %v5691_v16 = vadd.f32 %v13671_v53, %v13543_v8 }
 0x5aa   : > { %7575 = vmatprep.mubr.bf16.mxu1 %v13744_v58  ;;  %7423 = vmatmul.mubr.bf16.gmra.mrb[60].mxu0 %v13744_v58 }
 0x5ab   : > { %v5957_v19 = vsel %vm5893_vm6, %v5833_v20, %v5925_v17  ;;  %vm5894_vm7 = vcmp.gt.f32.partialorder %v5836_v52, 0.0  ;;  %v5926_v32 = vmul.f32 0.1, %v5836_v52  ;;  %v9644_v22 = vpop.f32.mrb[224].mxu1  ;;  %7576 = vmatmul.mubr.bf16.gmra.mrb[24].mxu1 %v13746_v56  ;;  %v13770_v17 = vpack.c.bf16 %v6150_v11, %v6149_v4 }
 0x5ac   : > { %5989 = vst [vmem:[#allocation2 + $0x121] sm:$0xff] %v5957_v19  ;;  %v9645_v35 = vpop.f32.mrb[225].mxu1 }
 0x5ad   : > { %v5958_v18 = vsel %vm5894_vm7, %v5836_v52, %v5926_v32  ;;  %v9646_v9 = vadd.f32 %v9645_v35, %v9644_v22  ;;  %v9647_v60 = vpop.f32.mrb[226].mxu1 }
 0x5ae   : > { %5990 = vst [vmem:[#allocation2 + $0x129] sm:$0xff] %v5958_v18  ;;  %v9648_v55 = vpop.f32.mrb[227].mxu1  ;;  %v13757_v40 = vpack.c.bf16 %v5958_v18, %v5957_v19 }
 0x5af   : > { %v5841_v63 = vadd.f32 %v9646_v9, %v5680_v2  ;;  %v9649_v39 = vadd.f32 %v9648_v55, %v9647_v60 }
 0x5b0   : > { %7430 = vmatprep.mubr.bf16.mxu0 %v13757_v40 }
 0x5b1   : > { %vm5895_vm8 = vcmp.gt.f32.partialorder %v5841_v63, 0.0  ;;  %v5927_v61 = vmul.f32 0.1, %v5841_v63  ;;  %v5844_v30 = vadd.f32 %v9649_v39, %v5683_v59  ;;  %v5699_v39 = vadd.f32 %v13688_v57, %v13543_v8 }
 0x5b3   : > { %v5959_v13 = vsel %vm5895_vm8, %v5841_v63, %v5927_v61  ;;  %vm5896_vm9 = vcmp.gt.f32.partialorder %v5844_v30, 0.0  ;;  %v5928_v0 = vmul.f32 0.1, %v5844_v30  ;;  %v9650_v43 = vpop.f32.mrb[228].mxu1  ;;  %v6213_v46 = vld [vmem:[#allocation2 + $0x120] sm:$0xff] }
 0x5b4   : > { %5991 = vst [vmem:[#allocation2 + $0x139] sm:$0xff] %v5959_v13  ;;  %v9651_v14 = vpop.f32.mrb[229].mxu1 }
 0x5b5   : > { %v5960_v36 = vsel %vm5896_vm9, %v5844_v30, %v5928_v0  ;;  %v9652_v48 = vadd.f32 %v9651_v14, %v9650_v43  ;;  %v9653_v28 = vpop.f32.mrb[230].mxu1  ;;  %v6214_v45 = vld [vmem:[#allocation2 + $0x128] sm:$0xff] }
 0x5b6   : > { %5992 = vst [vmem:[#allocation2 + $0x141] sm:$0xff] %v5960_v36  ;;  %v9654_v26 = vpop.f32.mrb[231].mxu1  ;;  %v13764_v3 = vpack.c.bf16 %v6214_v45, %v6213_v46  ;;  %v13766_v20 = vpack.c.bf16 %v5960_v36, %v5959_v13  ;;  %v6151_v32 = vld [vmem:[#allocation2 + $0x122] sm:$0xff]  ;;  %v6152_v22 = vld [vmem:[#allocation2 + $0x12a] sm:$0xff] }
 0x5b7   : > { %v5849_v49 = vadd.f32 %v9652_v48, %v5688_v7  ;;  %v9655_v5 = vadd.f32 %v9654_v26, %v9653_v28  ;;  %v13784_v13 = vpack.c.bf16 %v6152_v22, %v6151_v32  ;;  %v10656_v7 = vld [vmem:[%s14344_s8] ss:$0 sm:$0xff] }
 0x5b8   : > { %7583 = vmatprep.mubr.bf16.mxu1 %v13764_v3  ;;  %7431 = vmatmul.mubr.bf16.gmra.mrb[64].mxu0 %v13764_v3  ;;  %v5704_v36 = vadd.f32 %v10656_v7, %v13701_v42  ;;  %v6319_v22 = vld [vmem:[#allocation2 + $0x1a] sm:$0xff] }
 0x5b9   : > { %vm5897_vm10 = vcmp.gt.f32.partialorder %v5849_v49, 0.0  ;;  %v5929_v33 = vmul.f32 0.1, %v5849_v49  ;;  %v5852_v52 = vadd.f32 %v9655_v5, %v5691_v16  ;;  %7584 = vmatmul.mubr.bf16.gmra.mrb[28].mxu1 %v13770_v17  ;;  %7438 = vmatprep.mubr.bf16.mxu0 %v13766_v20 }
 0x5bb   : > { %v5961_v1 = vsel %vm5897_vm10, %v5849_v49, %v5929_v33  ;;  %vm5898_vm11 = vcmp.gt.f32.partialorder %v5852_v52, 0.0  ;;  %v5930_v10 = vmul.f32 0.1, %v5852_v52  ;;  %v9656_v19 = vpop.f32.mrb[232].mxu1  ;;  %v6215_v9 = vld [vmem:[#allocation2 + $0x138] sm:$0xff]  ;;  %v5707_v33 = vadd.f32 %v10656_v7, %v13707_v34 }
 0x5bc   : > { %5993 = vst [vmem:[#allocation2 + $0x151] sm:$0xff] %v5961_v1  ;;  %v9657_v53 = vpop.f32.mrb[233].mxu1 }
 0x5bd   : > { %v5962_v35 = vsel %vm5898_vm11, %v5852_v52, %v5930_v10  ;;  %v9658_v2 = vadd.f32 %v9657_v53, %v9656_v19  ;;  %v9659_v18 = vpop.f32.mrb[234].mxu1  ;;  %v6216_v60 = vld [vmem:[#allocation2 + $0x140] sm:$0xff] }
 0x5be   : > { %5994 = vst [vmem:[#allocation2 + $0x159] sm:$0xff] %v5962_v35  ;;  %v9660_v55 = vpop.f32.mrb[235].mxu1  ;;  %v13778_v59 = vpack.c.bf16 %v6216_v60, %v6215_v9  ;;  %v13780_v63 = vpack.c.bf16 %v5962_v35, %v5961_v1  ;;  %v6153_v57 = vld [vmem:[#allocation2 + $0x13a] sm:$0xff]  ;;  %v6154_v11 = vld [vmem:[#allocation2 + $0x142] sm:$0xff] }
 0x5bf   : > { %v5857_v61 = vadd.f32 %v9658_v2, %v5696_v51  ;;  %v9661_v30 = vadd.f32 %v9660_v55, %v9659_v18  ;;  %v13799_v10 = vpack.c.bf16 %v6154_v11, %v6153_v57  ;;  %v6320_v35 = vld [vmem:[#allocation2 + $0x22] sm:$0xff]  ;;  %v6448_v11 = vld [vmem:[#allocation2 + $0x39] sm:$0xff] }
 0x5c0   : > { %7591 = vmatprep.mubr.bf16.mxu1 %v13778_v59  ;;  %7439 = vmatmul.mubr.bf16.gmra.mrb[68].mxu0 %v13778_v59 }
 0x5c1   : > { %vm5899_vm12 = vcmp.gt.f32.partialorder %v5857_v61, 0.0  ;;  %v5931_v50 = vmul.f32 0.1, %v5857_v61  ;;  %v5860_v0 = vadd.f32 %v9661_v30, %v5699_v39  ;;  %7592 = vmatmul.mubr.bf16.gmra.mrb[32].mxu1 %v13784_v13  ;;  %7446 = vmatprep.mubr.bf16.mxu0 %v13780_v63  ;;  %v6255_v30 = vld [vmem:[#allocation2 + $0x19] sm:$0xff] }
 0x5c3   : > { %v5963_v43 = vsel %vm5899_vm12, %v5857_v61, %v5931_v50  ;;  %vm5900_vm13 = vcmp.gt.f32.partialorder %v5860_v0, 0.0  ;;  %v5932_v14 = vmul.f32 0.1, %v5860_v0  ;;  %v9662_v4 = vpop.f32.mrb[236].mxu1  ;;  %v6217_v45 = vld [vmem:[#allocation2 + $0x150] sm:$0xff]  ;;  %v6351_v61 = vpack.c.bf16 %v6320_v35, %v6319_v22  ;;  %v6256_v50 = vld [vmem:[#allocation2 + $0x21] sm:$0xff] }
 0x5c4   : > { %5995 = vst [vmem:[#allocation2 + $0x169] sm:$0xff] %v5963_v43  ;;  %v9663_v8 = vpop.f32.mrb[237].mxu1  ;;  %v6386_v22 = vld [vmem:[#allocation2 + $0x50] sm:$0xff] }
 0x5c5   : > { %v5964_v48 = vsel %vm5900_vm13, %v5860_v0, %v5932_v14  ;;  %v9664_v28 = vadd.f32 %v9663_v8, %v9662_v4  ;;  %v9665_v46 = vpop.f32.mrb[238].mxu1  ;;  %v6218_v26 = vld [vmem:[#allocation2 + $0x158] sm:$0xff] }
 0x5c6   : > { %5996 = vst [vmem:[#allocation2 + $0x171] sm:$0xff] %v5964_v48  ;;  %v9666_v16 = vpop.f32.mrb[239].mxu1  ;;  %v13794_v49 = vpack.c.bf16 %v6218_v26, %v6217_v45  ;;  %v13796_v5 = vpack.c.bf16 %v5964_v48, %v5963_v43  ;;  %v6155_v34 = vld [vmem:[#allocation2 + $0x152] sm:$0xff]  ;;  %v6156_v51 = vld [vmem:[#allocation2 + $0x15a] sm:$0xff] }
 0x5c7   : > { %v5865_v52 = vadd.f32 %v9664_v28, %v5704_v36  ;;  %v9667_v1 = vadd.f32 %v9666_v16, %v9665_v46  ;;  %v13809_v39 = vpack.c.bf16 %v6156_v51, %v6155_v34  ;;  %v6321_v0 = vld [vmem:[#allocation2 + $0x32] sm:$0xff]  ;;  %v6322_v4 = vld [vmem:[#allocation2 + $0x3a] sm:$0xff]  ;;  %v6287_v36 = vpack.c.bf16 %v6256_v50, %v6255_v30  ;;  %v10624_v46 = vld [vmem:[%s14345_s9 + $0x208] sm:$0xff]  }
 0x5c8   : > { %7599 = vmatprep.mubr.bf16.mxu1 %v13794_v49  ;;  %7447 = vmatmul.mubr.bf16.gmra.mrb[72].mxu0 %v13794_v49  ;;  %v6447_v28 = vld [vmem:[#allocation2 + $0x31] sm:$0xff]  ;;  %v13822_v45 = vpack.c.bf16 %v6322_v4, %v6321_v0  ;;  %v6452_v34 = vld [vmem:[#allocation2 + $0x69] sm:$0xff]  ;;  %v6454_v30 = vld [vmem:[#allocation2 + $0x81] sm:$0xff] }
 0x5c9   : > { %vm5901_vm14 = vcmp.gt.f32.partialorder %v5865_v52, 0.0  ;;  %v5933_v42 = vmul.f32 0.1, %v5865_v52  ;;  %v5868_v19 = vadd.f32 %v9667_v1, %v5707_v33  ;;  %7600 = vmatmul.mubr.bf16.gmra.mrb[36].mxu1 %v13799_v10  ;;  %7454 = vmatprep.mubr.bf16.mxu0 %v13796_v5  ;;  %v6479_v26 = vpack.c.bf16 %v6448_v11, %v6447_v28  ;;  %v10625_v16 = vld [vmem:[%s14345_s9 + $0x210] sm:$0xff]   ;;  %v6384_v33 = vld [vmem:[#allocation2 + $0x38] sm:$0xff]  ;;  %v6385_v51 = vld [vmem:[#allocation2 + $0x48] sm:$0xff] }
 0x5ca   : > { %v6383_v1 = vld [vmem:[#allocation2 + $0x30] sm:$0xff]  ;;  %v6416_v35 = vpack.c.bf16 %v6386_v22, %v6385_v51  ;;  %v6387_v50 = vld [vmem:[#allocation2 + $0x60] sm:$0xff] }
 0x5cb   : > { %v5965_v53 = vsel %vm5901_vm14, %v5865_v52, %v5933_v42  ;;  %vm5902_vm15 = vcmp.gt.f32.partialorder %v5868_v19, 0.0  ;;  %v5934_v32 = vmul.f32 0.1, %v5868_v19  ;;  %v6219_v18 = vld [vmem:[#allocation2 + $0x168] sm:$0xff]  ;;  %v6450_v52 = vld [vmem:[#allocation2 + $0x51] sm:$0xff]  ;;  %v6415_v42 = vpack.c.bf16 %v6384_v33, %v6383_v1  ;;  %v6390_v4 = vld [vmem:[#allocation2 + $0x80] sm:$0xff] }
 0x5cc   : > { %5997 = vst [vmem:[#allocation2 + $0x181] sm:$0xff] %v5965_v53  ;;  %v13854_v33 = vld [vmem:[%s14346_s10] ss:$0 sm:$0xff]  ;;  %v6459_v1 = vld [vmem:[#allocation2 + $0xc1] sm:$0xff] }
 0x5cd   : > { %v5966_v2 = vsel %vm5902_vm15, %v5868_v19, %v5934_v32  ;;  %v6220_v9 = vld [vmem:[#allocation2 + $0x170] sm:$0xff]  ;;  %v10627_v32 = vld [vmem:[%s14345_s9 + $0x220] sm:$0xff]  }
 0x5ce   : > { %5998 = vst [vmem:[#allocation2 + $0x189] sm:$0xff] %v5966_v2  ;;  %v13805_v60 = vpack.c.bf16 %v6220_v9, %v6219_v18  ;;  %v13807_v55 = vpack.c.bf16 %v5966_v2, %v5965_v53  ;;  %v6157_v43 = vld [vmem:[#allocation2 + $0x16a] sm:$0xff]  ;;  %v6158_v14 = vld [vmem:[#allocation2 + $0x172] sm:$0xff]  ;;  %v6451_v2 = vld [vmem:[#allocation2 + $0x61] sm:$0xff] }
 0x5cf   : > { %v13816_v48 = vpack.c.bf16 %v6158_v14, %v6157_v43  ;;  %v6449_v19 = vld [vmem:[#allocation2 + $0x49] sm:$0xff]  ;;  %v10626_v53 = vld [vmem:[%s14345_s9 + $0x218] sm:$0xff]  }
 0x5d0   : > { %7607 = vmatprep.mubr.bf16.mxu1 %v13805_v60  ;;  %7455 = vmatmul.mubr.bf16.gmra.mrb[76].mxu0 %v13805_v60  ;;  %v10628_v18 = vld [vmem:[%s14345_s9 + $0x228] sm:$0xff]   ;;  %v10629_v9 = vld [vmem:[%s14345_s9 + $0x230] sm:$0xff]   ;;  %v6453_v43 = vld [vmem:[#allocation2 + $0x79] sm:$0xff] }
 0x5d1   : > { %7608 = vmatmul.mubr.bf16.gmra.mrb[40].mxu1 %v13809_v39  ;;  %7656 = vmatprep.mubr.bf16.mxu0 %v6351_v61  ;;  %v6388_v61 = vld [vmem:[#allocation2 + $0x68] sm:$0xff]  ;;  %v10630_v14 = vld [vmem:[%s14345_s9 + $0x238] sm:$0xff]  }
 0x5d2   : > { %v6417_v0 = vpack.c.bf16 %v6388_v61, %v6387_v50 }
 0x5d3   : > { %v6221_v8 = vld [vmem:[#allocation2 + $0x180] sm:$0xff] }
 0x5d5   : > { %v6222_v57 = vld [vmem:[#allocation2 + $0x188] sm:$0xff] }
 0x5d6   : > { %v13814_v7 = vpack.c.bf16 %v6222_v57, %v6221_v8  ;;  %v6456_v8 = vld [vmem:[#allocation2 + $0x99] sm:$0xff] }
 0x5d7   : > { %v6389_v57 = vld [vmem:[#allocation2 + $0x78] sm:$0xff] }
 0x5d8   : > { %7615 = vmatprep.mubr.bf16.mxu1 %v13814_v7  ;;  %7657 = vmatmul.mubr.bf16.vlgmr.msra.gmra.mrb[80].mxu0 %v6287_v36  ;;  %v6418_v11 = vpack.c.bf16 %v6390_v4, %v6389_v57  ;;  %v6455_v36 = vld [vmem:[#allocation2 + $0x91] sm:$0xff] }
 0x5d9   : > { %7616 = vmatmul.mubr.bf16.gmra.mrb[44].mxu1 %v13816_v48  ;;  %10349 = vmatpush3.bf16.msra.mxu0 %v13637_v21  ;;  %v6480_v21 = vpack.c.bf16 %v6450_v52, %v6449_v19  ;;  %v6483_v28 = vpack.c.bf16 %v6456_v8, %v6455_v36 }
 0x5da   : > { %7664 = vmatprep.mubr.bf16.mxu0 %v13822_v45  ;;  %7817 = vmatprep.mubr.bf16.mxu1 %v6479_v26 }
 0x5db   : > { %10350 = vmatprep.subr.bf16.mxu0 %v10624_v46 }
 0x5dd   : > { %10351 = vmatpush3.bf16.msra.mxu0 %v10624_v46  ;;  %v6458_v46 = vld [vmem:[#allocation2 + $0xb1] sm:$0xff] }
 0x5de   : > { %10352 = vmatprep.subr.bf16.mxu0 %v10625_v16 }
 0x5e0   : > { %7665 = vmatmul.mubr.bf16.gmra.mrb[84].mxu0 %v6479_v26  ;;  %v6457_v26 = vld [vmem:[#allocation2 + $0xa9] sm:$0xff] }
 0x5e1   : > { %7818 = vmatmul.mubr.bf16.vlgmr.msra.gmra.mrb[48].mxu1 %v6415_v42  ;;  %7672 = vmatprep.mubr.bf16.mxu0 %v13593_v38  ;;  %v6481_v38 = vpack.c.bf16 %v6452_v34, %v6451_v2  ;;  %v7340_v2 = vadd.f32 %v13753_v15, %v13854_v33 }
 0x5e2   : > { %7825 = vmatprep.mubr.bf16.mxu1 %v6480_v21  ;;  %10353 = vmatpush3.bf16.msra.mxu0 %v10625_v16  ;;  %v6484_v16 = vpack.c.bf16 %v6458_v46, %v6457_v26 }
 0x5e3   : > { %10354 = vmatprep.subr.bf16.mxu0 %v10626_v53 }
 0x5e6   : > { %10355 = vmatpush3.bf16.msra.mxu0 %v10626_v53 }
 0x5e7   : > { %10356 = vmatprep.subr.bf16.mxu0 %v10627_v32 }
 0x5e8   : > { %7673 = vmatmul.mubr.bf16.gmra.mrb[88].mxu0 %v6480_v21 }
 0x5e9   : > { %7826 = vmatmul.mubr.bf16.gmra.mrb[52].mxu1 %v6416_v35  ;;  %7680 = vmatprep.mubr.bf16.mxu0 %v13658_v23  ;;  %v6482_v23 = vpack.c.bf16 %v6454_v30, %v6453_v43 }
 0x5ea   : > { %7833 = vmatprep.mubr.bf16.mxu1 %v6481_v38  ;;  %10357 = vmatpush3.bf16.msra.mxu0 %v10627_v32 }
 0x5eb   : > { %10358 = vmatprep.subr.bf16.mxu0 %v10628_v18 }
 0x5ee   : > { %10359 = vmatpush3.bf16.msra.mxu0 %v10628_v18 }
 0x5ef   : > { %10360 = vmatprep.subr.bf16.mxu0 %v10629_v9 }
 0x5f0   : > { %7681 = vmatmul.mubr.bf16.gmra.mrb[92].mxu0 %v6481_v38 }
 0x5f1   : > { %7834 = vmatmul.mubr.bf16.gmra.mrb[56].mxu1 %v6417_v0  ;;  %7688 = vmatprep.mubr.bf16.mxu0 %v13677_v6  ;;  %v6460_v6 = vld [vmem:[#allocation2 + $0xc9] sm:$0xff] }
 0x5f2   : > { %7841 = vmatprep.mubr.bf16.mxu1 %v6482_v23  ;;  %10361 = vmatpush3.bf16.msra.mxu0 %v10629_v9  ;;  %v6485_v19 = vpack.c.bf16 %v6460_v6, %v6459_v1  ;;  %v6462_v9 = vld [vmem:[#allocation2 + $0xe1] sm:$0xff] }
 0x5f3   : > { %10362 = vmatprep.subr.bf16.mxu0 %v10630_v14 }
 0x5f6   : > { %10363 = vmatpush3.bf16.msra.mxu0 %v10630_v14 }
 0x5f8   : > { %7689 = vmatmul.mubr.bf16.gmra.mrb[96].mxu0 %v6482_v23 }
 0x5f9   : > { %7842 = vmatmul.mubr.bf16.gmra.mrb[60].mxu1 %v6418_v11  ;;  %7696 = vmatprep.mubr.bf16.mxu0 %v13692_v24 }
 0x5fa   : > { %7849 = vmatprep.mubr.bf16.mxu1 %v6483_v28 }
 0x5fd   : > { %v9690_v52 = vpop.f32.mrb[20].mxu0 }
 0x5fe   : > { %v9796_v42 = vpop.f32.mrb[240].mxu1  ;;  %v9691_v24 = vpop.f32.mrb[21].mxu0 }
 0x5ff   : > { %v9692_v53 = vadd.f32 %v9691_v24, %v9690_v52  ;;  %v9797_v21 = vpop.f32.mrb[241].mxu1  ;;  %v9693_v32 = vpop.f32.mrb[22].mxu0 }
 0x600   : > { %7697 = vmatmul.mubr.bf16.gmra.mrb[100].mxu0 %v6483_v28  ;;  %v9799_v22 = vpop.f32.mrb[242].mxu1  ;;  %v9694_v34 = vpop.f32.mrb[23].mxu0 }
 0x601   : > { %7850 = vmatmul.mubr.bf16.gmra.mrb[64].mxu1 %v13675_v12  ;;  %7704 = vmatprep.mubr.bf16.mxu0 %v13705_v27  ;;  %v7337_v12 = vadd.f32 %v13750_v44, %v13854_v33  ;;  %v9798_v27 = vadd.f32 %v9797_v21, %v9796_v42  ;;  %v9695_v51 = vadd.f32 %v9694_v34, %v9693_v32  ;;  %v9800_v35 = vpop.f32.mrb[243].mxu1 }
 0x602   : > { %7857 = vmatprep.mubr.bf16.mxu1 %v6484_v16  ;;  %v9801_v38 = vadd.f32 %v9800_v35, %v9799_v22  ;;  %v7345_v15 = vadd.f32 %v9692_v53, %v13854_v33 }
 0x603   : > { %v13862_v18 = vadd.f32 %v9798_v27, %v7337_v12  ;;  %v7348_v36 = vadd.f32 %v9695_v51, %v13854_v33 }
 0x604   : > { %v13864_v61 = vadd.f32 %v9801_v38, %v7340_v2 }
 0x606   : > { %v9802_v30 = vpop.f32.mrb[244].mxu1 }
 0x607   : > { %v9803_v43 = vpop.f32.mrb[245].mxu1 }
 0x608   : > { %7705 = vmatmul.mubr.bf16.gmra.mrb[104].mxu0 %v6484_v16  ;;  %v9804_v23 = vadd.f32 %v9803_v43, %v9802_v30  ;;  %v9805_v4 = vpop.f32.mrb[246].mxu1 }
 0x609   : > { %7858 = vmatmul.mubr.bf16.gmra.mrb[68].mxu1 %v13690_v54  ;;  %7712 = vmatprep.mubr.bf16.mxu0 %v13718_v41  ;;  %v9696_v54 = vpop.f32.mrb[24].mxu0  ;;  %v6461_v41 = vld [vmem:[#allocation2 + $0xd9] sm:$0xff]  ;;  %v9806_v11 = vpop.f32.mrb[247].mxu1 }
 0x60a   : > { %7865 = vmatprep.mubr.bf16.mxu1 %v6485_v19  ;;  %v9697_v50 = vpop.f32.mrb[25].mxu0  ;;  %v6486_v44 = vpack.c.bf16 %v6462_v9, %v6461_v41  ;;  %v13870_v28 = vadd.f32 %v9804_v23, %v7345_v15  ;;  %v9807_v46 = vadd.f32 %v9806_v11, %v9805_v4 }
 0x60b   : > { %v9698_v0 = vadd.f32 %v9697_v50, %v9696_v54  ;;  %v9699_v14 = vpop.f32.mrb[26].mxu0 }
 0x60c   : > { %v9700_v8 = vpop.f32.mrb[27].mxu0  ;;  %v13872_v26 = vadd.f32 %v9807_v46, %v7348_v36 }
 0x60d   : > { %v9701_v57 = vadd.f32 %v9700_v8, %v9699_v14  ;;  %v9702_v16 = vpop.f32.mrb[28].mxu0  ;;  %v7353_v42 = vadd.f32 %v9698_v0, %v13854_v33 }
 0x60e   : > { %v9808_v6 = vpop.f32.mrb[248].mxu1 }
 0x60f   : > { %v9809_v52 = vpop.f32.mrb[249].mxu1  ;;  %v7356_v12 = vadd.f32 %v9701_v57, %v13854_v33 }
 0x610   : > { %7713 = vmatmul.mubr.bf16.gmra.mrb[108].mxu0 %v6485_v19  ;;  %v9810_v24 = vadd.f32 %v9809_v52, %v9808_v6  ;;  %v9811_v19 = vpop.f32.mrb[250].mxu1 }
 0x611   : > { %7866 = vmatmul.mubr.bf16.gmra.mrb[72].mxu1 %v13703_v62  ;;  %7720 = vmatprep.mubr.bf16.mxu0 %v13732_v25  ;;  %v9703_v62 = vpop.f32.mrb[29].mxu0  ;;  %v9812_v32 = vpop.f32.mrb[251].mxu1 }
 0x612   : > { %7873 = vmatprep.mubr.bf16.mxu1 %v6486_v44  ;;  %v9704_v25 = vadd.f32 %v9703_v62, %v9702_v16  ;;  %v9705_v1 = vpop.f32.mrb[30].mxu0  ;;  %v13879_v27 = vadd.f32 %v9810_v24, %v7353_v42  ;;  %v9813_v22 = vadd.f32 %v9812_v32, %v9811_v19  ;;  %v6349_v62 = vld [vmem:[#allocation2 + $0x182] sm:$0xff] }
 0x613   : > { %v9706_v53 = vpop.f32.mrb[31].mxu0 }
 0x614   : > { %v9707_v21 = vadd.f32 %v9706_v53, %v9705_v1  ;;  %v13881_v34 = vadd.f32 %v9813_v22, %v7356_v12  ;;  %v7361_v9 = vadd.f32 %v9704_v25, %v13854_v33  ;;  %v6350_v25 = vld [vmem:[#allocation2 + $0x18a] sm:$0xff] }
 0x615   : > { %v9708_v51 = vpop.f32.mrb[32].mxu0 }
 0x616   : > { %v9709_v35 = vpop.f32.mrb[33].mxu0  ;;  %v7364_v0 = vadd.f32 %v9707_v21, %v13854_v33 }
 0x617   : > { %v9711_v38 = vpop.f32.mrb[34].mxu0 }
 0x618   : > { %7721 = vmatmul.mubr.bf16.gmra.mrb[112].mxu0 %v6486_v44  ;;  %v9712_v30 = vpop.f32.mrb[35].mxu0 }
 0x619   : > { %7874 = vmatmul.mubr.bf16.gmra.mrb[76].mxu1 %v13716_v37  ;;  %7728 = vmatprep.mubr.bf16.mxu0 %v13746_v56  ;;  %v9814_v37 = vpop.f32.mrb[252].mxu1  ;;  %v9710_v56 = vadd.f32 %v9709_v35, %v9708_v51  ;;  %v9713_v50 = vadd.f32 %v9712_v30, %v9711_v38  ;;  %v10634_v35 = vld [vmem:[%s14347_s11 + $0x8] sm:$0xff]  }
 0x61a   : > { %7881 = vmatprep.mubr.bf16.mxu1 %v13723_v47  ;;  %v9815_v2 = vpop.f32.mrb[253].mxu1 }
 0x61b   : > { %v9816_v54 = vadd.f32 %v9815_v2, %v9814_v37  ;;  %v9817_v41 = vpop.f32.mrb[254].mxu1  ;;  %v7372_v8 = vadd.f32 %v9713_v50, %v13854_v33  ;;  %v10633_v37 = vld [vmem:[%s14347_s11 + $0x48] sm:$0xff]  }
 0x61c   : > { %v9818_v44 = vpop.f32.mrb[255].mxu1  ;;  %v6478_v2 = vld [vmem:[#allocation2 + $0x1a1] sm:$0xff] }
 0x61d   : > { %v13889_v43 = vadd.f32 %v9816_v54, %v7361_v9 }
 0x620   : > { %7729 = vmatmul.mubr.bf16.gmra.mrb[116].mxu0 %v13723_v47  ;;  %v9819_v47 = vadd.f32 %v9818_v44, %v9817_v41 }
 0x621   : > { %7882 = vmatmul.mubr.bf16.gmra.mrb[80].mxu1 %v13730_v31  ;;  %7736 = vmatprep.mubr.bf16.mxu0 %v13770_v17 }
 0x622   : > { %7889 = vmatprep.mubr.bf16.mxu1 %v13737_v29  ;;  %v13891_v14 = vadd.f32 %v9819_v47, %v7364_v0 }
 0x628   : > { %7737 = vmatmul.mubr.bf16.gmra.mrb[120].mxu0 %v13737_v29 }
 0x629   : > { %7890 = vmatmul.mubr.bf16.gmra.mrb[84].mxu1 %v13744_v58  ;;  %7744 = vmatprep.mubr.bf16.mxu0 %v13784_v13 }
 0x62a   : > { %7897 = vmatprep.mubr.bf16.mxu1 %v13757_v40 }
 0x62f   : > { %v9714_v31 = vpop.f32.mrb[36].mxu0 }
 0x630   : > { %7745 = vmatmul.mubr.bf16.gmra.mrb[124].mxu0 %v13757_v40  ;;  %v9820_v17 = vpop.f32.mrb[0].mxu1  ;;  %v9715_v15 = vpop.f32.mrb[37].mxu0  ;;  %v10631_v40 = vld [vmem:[%s14347_s11 + $0x40] sm:$0xff]  }
 0x631   : > { %7898 = vmatmul.mubr.bf16.gmra.mrb[88].mxu1 %v13764_v3  ;;  %7752 = vmatprep.mubr.bf16.mxu0 %v13799_v10  ;;  %v9716_v29 = vadd.f32 %v9715_v15, %v9714_v31  ;;  %v9821_v58 = vpop.f32.mrb[1].mxu1  ;;  %v9717_v13 = vpop.f32.mrb[38].mxu0  ;;  %v10632_v3 = vld [vmem:[%s14347_s11] sm:$0xff]  }
 0x632   : > { %7905 = vmatprep.mubr.bf16.mxu1 %v13766_v20  ;;  %v9822_v10 = vadd.f32 %v9821_v58, %v9820_v17  ;;  %v9823_v23 = vpop.f32.mrb[2].mxu1  ;;  %10140 = vmatprep.subr.bf16.mxu1 %v10631_v40  ;;  %v6513_v40 = vld [vmem:[#allocation2 + $0x4a] sm:$0xff] }
 0x633   : > { %10141 = vmatpush3.bf16.msra.mxu1 %v10632_v3  ;;  %v7377_v24 = vadd.f32 %v9716_v29, %v13854_v33  ;;  %v6514_v3 = vld [vmem:[#allocation2 + $0x52] sm:$0xff] }
 0x634   : > { %10142 = vmatprep.subr.bf16.mxu1 %v10633_v37  ;;  %v6520_v37 = vld [vmem:[#allocation2 + $0x9a] sm:$0xff] }
 0x637   : > { %10143 = vmatpush3.bf16.msra.mxu1 %v10634_v35 }
 0x638   : > { %7753 = vmatmul.mubr.bf16.gmra.mrb[128].mxu0 %v13766_v20  ;;  %v7369_v20 = vadd.f32 %v9710_v56, %v13854_v33  ;;  %v6477_v56 = vld [vmem:[#allocation2 + $0x199] sm:$0xff] }
 0x639   : > { %7906 = vmatmul.mubr.bf16.gmra.mrb[92].mxu1 %v13778_v59  ;;  %7760 = vmatprep.mubr.bf16.mxu0 %v13809_v39  ;;  %v9718_v59 = vpop.f32.mrb[39].mxu0  ;;  %v9824_v39 = vpop.f32.mrb[3].mxu1  ;;  %v6494_v9 = vpack.c.bf16 %v6478_v2, %v6477_v56 }
 0x63a   : > { %7913 = vmatprep.mubr.bf16.mxu1 %v13780_v63  ;;  %v9719_v4 = vadd.f32 %v9718_v59, %v9717_v13  ;;  %v13913_v57 = vadd.f32 %v9822_v10, %v7369_v20  ;;  %v9825_v11 = vadd.f32 %v9824_v39, %v9823_v23  ;;  %v9720_v46 = vpop.f32.mrb[40].mxu0  ;;  %v6413_v13 = vld [vmem:[#allocation2 + $0x198] sm:$0xff]  ;;  %v6515_v10 = vld [vmem:[#allocation2 + $0x62] sm:$0xff]  ;;  %v6516_v23 = vld [vmem:[#allocation2 + $0x6a] sm:$0xff]  ;;  %v6544_v39 = vpack.c.bf16 %v6514_v3, %v6513_v40 }
 0x63b   : > { %v9826_v16 = vpop.f32.mrb[4].mxu1  ;;  %v9721_v6 = vpop.f32.mrb[41].mxu0 }
 0x63c   : > { %v13915_v36 = vadd.f32 %v9825_v11, %v7372_v8  ;;  %v9722_v52 = vadd.f32 %v9721_v6, %v9720_v46  ;;  %v9827_v1 = vpop.f32.mrb[5].mxu1  ;;  %v9723_v42 = vpop.f32.mrb[42].mxu0 }
 0x63d   : > { %v9828_v19 = vadd.f32 %v9827_v1, %v9826_v16  ;;  %v9829_v53 = vpop.f32.mrb[6].mxu1  ;;  %v9724_v21 = vpop.f32.mrb[43].mxu0 }
 0x63e   : > { %v9830_v32 = vpop.f32.mrb[7].mxu1  ;;  %v7385_v50 = vadd.f32 %v9722_v52, %v13854_v33 }
 0x63f   : > { %v13925_v12 = vadd.f32 %v9828_v19, %v7377_v24  ;;  %v9831_v22 = vadd.f32 %v9830_v32, %v9829_v53  ;;  %v10635_v24 = vld [vmem:[%s14347_s11 + $0x50] sm:$0xff]   ;;  %v6517_v32 = vld [vmem:[#allocation2 + $0x7a] sm:$0xff] }
 0x640   : > { %7761 = vmatmul.mubr.bf16.gmra.mrb[132].mxu0 %v13780_v63  ;;  %v9725_v63 = vadd.f32 %v9724_v21, %v9723_v42  ;;  %v10636_v19 = vld [vmem:[%s14347_s11 + $0x10] sm:$0xff]   ;;  %10144 = vmatprep.subr.bf16.mxu1 %v10635_v24 }
 0x641   : > { %7914 = vmatmul.mubr.bf16.gmra.mrb[96].mxu1 %v13794_v49  ;;  %7768 = vmatprep.mubr.bf16.mxu0 %v13816_v48  ;;  %v13922_v49 = vpack.c.bf16 %v6350_v25, %v6349_v62  ;;  %v7380_v48 = vadd.f32 %v9719_v4, %v13854_v33  ;;  %v6532_v24 = vld [vmem:[#allocation2 + $0x12a] sm:$0xff] }
 0x642   : > { %7921 = vmatprep.mubr.bf16.mxu1 %v13796_v5  ;;  %v7388_v15 = vadd.f32 %v9725_v63, %v13854_v33  ;;  %10145 = vmatpush3.bf16.msra.mxu1 %v10636_v19 }
 0x643   : > { %v13930_v51 = vadd.f32 %v9831_v22, %v7380_v48  ;;  %v6518_v48 = vld [vmem:[#allocation2 + $0x82] sm:$0xff]  ;;  %v6519_v22 = vld [vmem:[#allocation2 + $0x92] sm:$0xff] }
 0x644   : > { %v6546_v56 = vpack.c.bf16 %v6518_v48, %v6517_v32  ;;  %v6547_v2 = vpack.c.bf16 %v6520_v37, %v6519_v22 }
 0x648   : > { %7769 = vmatmul.mubr.bf16.gmra.mrb[136].mxu0 %v13796_v5 }
 0x649   : > { %7922 = vmatmul.mubr.bf16.gmra.mrb[100].mxu1 %v13805_v60  ;;  %7776 = vmatprep.mubr.bf16.mxu0 %v13922_v49  ;;  %v9726_v5 = vpop.f32.mrb[44].mxu0 }
 0x64a   : > { %7929 = vmatprep.mubr.bf16.mxu1 %v13807_v55  ;;  %v9832_v60 = vpop.f32.mrb[8].mxu1  ;;  %v9727_v38 = vpop.f32.mrb[45].mxu0 }
 0x64b   : > { %v9728_v54 = vadd.f32 %v9727_v38, %v9726_v5  ;;  %v9833_v41 = vpop.f32.mrb[9].mxu1  ;;  %v9729_v30 = vpop.f32.mrb[46].mxu0  ;;  %v6521_v5 = vld [vmem:[#allocation2 + $0xaa] sm:$0xff] }
 0x64c   : > { %v9834_v44 = vadd.f32 %v9833_v41, %v9832_v60  ;;  %v9835_v0 = vpop.f32.mrb[10].mxu1  ;;  %v9730_v47 = vpop.f32.mrb[47].mxu0  ;;  %v6522_v60 = vld [vmem:[#allocation2 + $0xb2] sm:$0xff] }
 0x64d   : > { %v9731_v31 = vadd.f32 %v9730_v47, %v9729_v30  ;;  %v9836_v17 = vpop.f32.mrb[11].mxu1  ;;  %v7393_v6 = vadd.f32 %v9728_v54, %v13854_v33  ;;  %v6524_v54 = vld [vmem:[#allocation2 + $0xca] sm:$0xff]  ;;  %v6548_v47 = vpack.c.bf16 %v6522_v60, %v6521_v5 }
 0x64e   : > { %v13944_v29 = vadd.f32 %v9834_v44, %v7385_v50  ;;  %v9837_v58 = vadd.f32 %v9836_v17, %v9835_v0 }
 0x64f   : > { %v7396_v53 = vadd.f32 %v9731_v31, %v13854_v33 }
 0x650   : > { %7777 = vmatmul.mubr.bf16.gmra.mrb[140].mxu0 %v13807_v55  ;;  %v13946_v20 = vadd.f32 %v9837_v58, %v7388_v15  ;;  %v10657_v55 = vld [vmem:[#allocation2 + $0x8] sm:$0xff] }
 0x651   : > { %7930 = vmatmul.mubr.bf16.gmra.mrb[104].mxu1 %v13814_v7  ;;  %10364 = vmatprep.mubr.bf16.mxu0 %v13822_v45  ;;  %v6430_v59 = vpack.c.bf16 %v10657_v55, %v6413_v13  ;;  %v6545_v45 = vpack.c.bf16 %v6516_v23, %v6515_v10 }
 0x652   : > { %7937 = vmatprep.mubr.bf16.mxu1 %v6494_v9  ;;  %v6523_v9 = vld [vmem:[#allocation2 + $0xc2] sm:$0xff] }
 0x653   : > { %v9732_v4 = vpop.f32.mrb[48].mxu0  ;;  %v6549_v13 = vpack.c.bf16 %v6524_v54, %v6523_v9 }
 0x654   : > { %v9838_v7 = vpop.f32.mrb[12].mxu1  ;;  %v9733_v8 = vpop.f32.mrb[49].mxu0 }
 0x655   : > { %v9734_v11 = vadd.f32 %v9733_v8, %v9732_v4  ;;  %v9839_v46 = vpop.f32.mrb[13].mxu1  ;;  %v9735_v16 = vpop.f32.mrb[50].mxu0  ;;  %v10638_v4 = vld [vmem:[%s14347_s11 + $0x18] sm:$0xff]   ;;  %v6526_v8 = vld [vmem:[#allocation2 + $0xe2] sm:$0xff] }
 0x656   : > { %v9840_v62 = vadd.f32 %v9839_v46, %v9838_v7  ;;  %v9841_v25 = vpop.f32.mrb[14].mxu1  ;;  %v9736_v52 = vpop.f32.mrb[51].mxu0  ;;  %v6525_v7 = vld [vmem:[#allocation2 + $0xda] sm:$0xff] }
 0x657   : > { %v9737_v1 = vadd.f32 %v9736_v52, %v9735_v16  ;;  %v9842_v42 = vpop.f32.mrb[15].mxu1  ;;  %v7401_v31 = vadd.f32 %v9734_v11, %v13854_v33  ;;  %v6528_v11 = vld [vmem:[#allocation2 + $0xfa] sm:$0xff]  ;;  %v6550_v46 = vpack.c.bf16 %v6526_v8, %v6525_v7 }
 0x658   : > { %10365 = vmatmul.mubr.bf16.vlgmr.msra.gmra.mrb[144].mxu0 %v6544_v39  ;;  %v13956_v21 = vadd.f32 %v9840_v62, %v7393_v6  ;;  %v9843_v63 = vadd.f32 %v9842_v42, %v9841_v25  ;;  %v6529_v62 = vld [vmem:[#allocation2 + $0x10a] sm:$0xff]  ;;  %v6530_v25 = vld [vmem:[#allocation2 + $0x112] sm:$0xff]  ;;  %v6531_v42 = vld [vmem:[#allocation2 + $0x122] sm:$0xff] }
 0x659   : > { %7938 = vmatmul.mubr.bf16.gmra.mrb[108].mxu1 %v6430_v59  ;;  %10368 = vmatprep.mubr.bf16.mxu0 %v6545_v45  ;;  %v7404_v10 = vadd.f32 %v9737_v1, %v13854_v33  ;;  %v10637_v59 = vld [vmem:[%s14347_s11 + $0x58] sm:$0xff]  }
 0x65a   : > { %v13958_v35 = vadd.f32 %v9843_v63, %v7396_v53  ;;  %10146 = vmatprep.subr.bf16.mxu1 %v10637_v59  ;;  %v6527_v45 = vld [vmem:[#allocation2 + $0xf2] sm:$0xff] }
 0x65b   : > { %10147 = vmatpush3.bf16.msra.mxu1 %v10638_v4  ;;  %v6551_v16 = vpack.c.bf16 %v6528_v11, %v6527_v45 }
 0x660   : > { %10369 = vmatmul.mubr.bf16.gmra.mrb[148].mxu0 %v6546_v56  ;;  %v6552_v56 = vpack.c.bf16 %v6530_v25, %v6529_v62  ;;  %v6537_v62 = vld [vmem:[#allocation2 + $0x16a] sm:$0xff]  ;;  %v6538_v25 = vld [vmem:[#allocation2 + $0x172] sm:$0xff] }
 0x661   : > { %10372 = vmatprep.mubr.bf16.mxu0 %v6547_v2  ;;  %v9738_v38 = vpop.f32.mrb[52].mxu0 }
 0x662   : > { %v9844_v41 = vpop.f32.mrb[16].mxu1  ;;  %v9739_v30 = vpop.f32.mrb[53].mxu0 }
 0x663   : > { %v9740_v50 = vadd.f32 %v9739_v30, %v9738_v38  ;;  %v9845_v44 = vpop.f32.mrb[17].mxu1  ;;  %v9741_v0 = vpop.f32.mrb[54].mxu0  ;;  %v6553_v38 = vpack.c.bf16 %v6532_v24, %v6531_v42  ;;  %v10639_v30 = vld [vmem:[%s14347_s11 + $0x60] sm:$0xff]  }
 0x664   : > { %v9846_v17 = vadd.f32 %v9845_v44, %v9844_v41  ;;  %v9847_v15 = vpop.f32.mrb[18].mxu1  ;;  %v9742_v58 = vpop.f32.mrb[55].mxu0  ;;  %v6533_v44 = vld [vmem:[#allocation2 + $0x13a] sm:$0xff]  ;;  %10148 = vmatprep.subr.bf16.mxu1 %v10639_v30  ;;  %v6542_v24 = vld [vmem:[#allocation2 + $0x1a2] sm:$0xff] }
 0x665   : > { %v9743_v40 = vadd.f32 %v9742_v58, %v9741_v0  ;;  %v9848_v3 = vpop.f32.mrb[19].mxu1  ;;  %v7409_v32 = vadd.f32 %v9740_v50, %v13854_v33  ;;  %v10640_v50 = vld [vmem:[%s14347_s11 + $0x20] sm:$0xff]  }
 0x666   : > { %v13962_v23 = vadd.f32 %v9846_v17, %v7401_v31  ;;  %v9849_v55 = vadd.f32 %v9848_v3, %v9847_v15  ;;  %v6534_v0 = vld [vmem:[#allocation2 + $0x142] sm:$0xff]  ;;  %v6536_v31 = vld [vmem:[#allocation2 + $0x15a] sm:$0xff]  ;;  %10149 = vmatpush3.bf16.msra.mxu1 %v10640_v50 }
 0x667   : > { %v7412_v60 = vadd.f32 %v9743_v40, %v13854_v33  ;;  %v6554_v15 = vpack.c.bf16 %v6534_v0, %v6533_v44  ;;  %v6541_v42 = vld [vmem:[#allocation2 + $0x19a] sm:$0xff] }
 0x668   : > { %10373 = vmatmul.mubr.bf16.gmra.mrb[152].mxu0 %v6548_v47  ;;  %v13970_v39 = vadd.f32 %v9849_v55, %v7404_v10  ;;  %v6535_v47 = vld [vmem:[#allocation2 + $0x152] sm:$0xff] }
 0x669   : > { %10376 = vmatprep.mubr.bf16.mxu0 %v6549_v13  ;;  %v6555_v40 = vpack.c.bf16 %v6536_v31, %v6535_v47 }
 0x66f   : > { %v9744_v6 = vpop.f32.mrb[56].mxu0 }
 0x670   : > { %10377 = vmatmul.mubr.bf16.gmra.mrb[156].mxu0 %v6550_v46  ;;  %v9850_v52 = vpop.f32.mrb[20].mxu1  ;;  %v9745_v1 = vpop.f32.mrb[57].mxu0 }
 0x671   : > { %10380 = vmatprep.mubr.bf16.mxu0 %v6551_v16  ;;  %v9746_v19 = vadd.f32 %v9745_v1, %v9744_v6  ;;  %v9851_v53 = vpop.f32.mrb[21].mxu1  ;;  %v9747_v63 = vpop.f32.mrb[58].mxu0  ;;  %v6556_v1 = vpack.c.bf16 %v6538_v25, %v6537_v62 }
 0x672   : > { %v9852_v48 = vadd.f32 %v9851_v53, %v9850_v52  ;;  %v9853_v22 = vpop.f32.mrb[22].mxu1  ;;  %v9748_v37 = vpop.f32.mrb[59].mxu0  ;;  %v10642_v53 = vld [vmem:[%s14347_s11 + $0x28] sm:$0xff]  }
 0x673   : > { %v9749_v2 = vadd.f32 %v9748_v37, %v9747_v63  ;;  %v9854_v5 = vpop.f32.mrb[23].mxu1  ;;  %v7417_v59 = vadd.f32 %v9746_v19, %v13854_v33  ;;  %v10641_v19 = vld [vmem:[%s14347_s11 + $0x68] sm:$0xff]  }
 0x674   : > { %v13974_v9 = vadd.f32 %v9852_v48, %v7409_v32  ;;  %v9855_v54 = vadd.f32 %v9854_v5, %v9853_v22  ;;  %10150 = vmatprep.subr.bf16.mxu1 %v10641_v19  ;;  %v6558_v22 = vpack.c.bf16 %v6542_v24, %v6541_v42 }
 0x675   : > { %v7420_v46 = vadd.f32 %v9749_v2, %v13854_v33  ;;  %10151 = vmatpush3.bf16.msra.mxu1 %v10642_v53 }
 0x676   : > { %v13976_v41 = vadd.f32 %v9855_v54, %v7412_v60 }
 0x678   : > { %10381 = vmatmul.mubr.bf16.gmra.mrb[160].mxu0 %v6552_v56 }
 0x679   : > { %10384 = vmatprep.mubr.bf16.mxu0 %v6553_v38 }
 0x67d   : > { %v9750_v17 = vpop.f32.mrb[60].mxu0 }
 0x67e   : > { %v9856_v58 = vpop.f32.mrb[24].mxu1  ;;  %v9751_v13 = vpop.f32.mrb[61].mxu0 }
 0x67f   : > { %v9752_v3 = vadd.f32 %v9751_v13, %v9750_v17  ;;  %v9857_v10 = vpop.f32.mrb[25].mxu1  ;;  %v9753_v55 = vpop.f32.mrb[62].mxu0 }
 0x680   : > { %10385 = vmatmul.mubr.bf16.gmra.mrb[164].mxu0 %v6554_v15  ;;  %v9858_v4 = vadd.f32 %v9857_v10, %v9856_v58  ;;  %v9859_v7 = vpop.f32.mrb[26].mxu1  ;;  %v9754_v8 = vpop.f32.mrb[63].mxu0 }
 0x681   : > { %10388 = vmatprep.mubr.bf16.mxu0 %v6555_v40  ;;  %v9755_v45 = vadd.f32 %v9754_v8, %v9753_v55  ;;  %v9860_v11 = vpop.f32.mrb[27].mxu1 }
 0x682   : > { %v13986_v16 = vadd.f32 %v9858_v4, %v7417_v59  ;;  %v9861_v6 = vadd.f32 %v9860_v11, %v9859_v7 }
 0x683   : > { %v7428_v50 = vadd.f32 %v9755_v45, %v13854_v33 }
 0x684   : > { %v13988_v52 = vadd.f32 %v9861_v6, %v7420_v46  ;;  %v10643_v46 = vld [vmem:[%s14347_s11 + $0x70] sm:$0xff]  }
 0x685   : > { %v10644_v6 = vld [vmem:[%s14347_s11 + $0x30] sm:$0xff]   ;;  %10152 = vmatprep.subr.bf16.mxu1 %v10643_v46 }
 0x686   : > { %10153 = vmatpush3.bf16.msra.mxu1 %v10644_v6 }
 0x688   : > { %10389 = vmatmul.mubr.bf16.gmra.mrb[168].mxu0 %v6556_v1 }
 0x689   : > { %10392 = vmatprep.mubr.bf16.mxu0 %v13922_v49  ;;  %v7425_v49 = vadd.f32 %v9752_v3, %v13854_v33 }
 0x68b   : > { %v9756_v63 = vpop.f32.mrb[64].mxu0 }
 0x68c   : > { %v9862_v32 = vpop.f32.mrb[28].mxu1  ;;  %v9757_v48 = vpop.f32.mrb[65].mxu0 }
 0x68d   : > { %v9758_v37 = vadd.f32 %v9757_v48, %v9756_v63  ;;  %v9863_v56 = vpop.f32.mrb[29].mxu1  ;;  %v9759_v2 = vpop.f32.mrb[66].mxu0 }
 0x68e   : > { %v9864_v5 = vadd.f32 %v9863_v56, %v9862_v32  ;;  %v9865_v60 = vpop.f32.mrb[30].mxu1  ;;  %v9760_v38 = vpop.f32.mrb[67].mxu0 }
 0x68f   : > { %v9761_v54 = vadd.f32 %v9760_v38, %v9759_v2  ;;  %v9866_v30 = vpop.f32.mrb[31].mxu1  ;;  %v7433_v3 = vadd.f32 %v9758_v37, %v13854_v33 }
 0x690   : > { %v13999_v44 = vadd.f32 %v9864_v5, %v7425_v49  ;;  %v9867_v0 = vadd.f32 %v9866_v30, %v9865_v60  ;;  %10393 = vmatmul.mubr.bf16.gmra.mrb[172].mxu0 %v6558_v22 }
 0x691   : > { %v7436_v8 = vadd.f32 %v9761_v54, %v13854_v33 }
 0x692   : > { %v14001_v47 = vadd.f32 %v9867_v0, %v7428_v50 }
 0x693   : > { %v9762_v31 = vpop.f32.mrb[68].mxu0 }
 0x694   : > { %v9868_v17 = vpop.f32.mrb[32].mxu1  ;;  %v9763_v15 = vpop.f32.mrb[69].mxu0 }
 0x695   : > { %v9764_v58 = vadd.f32 %v9763_v15, %v9762_v31  ;;  %v9869_v13 = vpop.f32.mrb[33].mxu1  ;;  %v9765_v40 = vpop.f32.mrb[70].mxu0 }
 0x696   : > { %v9870_v10 = vadd.f32 %v9869_v13, %v9868_v17  ;;  %v9871_v55 = vpop.f32.mrb[34].mxu1  ;;  %v9766_v59 = vpop.f32.mrb[71].mxu0 }
 0x697   : > { %v9767_v4 = vadd.f32 %v9766_v59, %v9765_v40  ;;  %v9872_v7 = vpop.f32.mrb[35].mxu1  ;;  %v7441_v63 = vadd.f32 %v9764_v58, %v13854_v33 }
 0x698   : > { %v14005_v45 = vadd.f32 %v9870_v10, %v7433_v3  ;;  %v9873_v11 = vadd.f32 %v9872_v7, %v9871_v55  ;;  %v10646_v7 = vld [vmem:[%s14347_s11 + $0x38] sm:$0xff]  }
 0x699   : > { %v7444_v2 = vadd.f32 %v9767_v4, %v13854_v33  ;;  %v10645_v4 = vld [vmem:[%s14347_s11 + $0x78] sm:$0xff]  }
 0x69a   : > { %v14013_v62 = vadd.f32 %v9873_v11, %v7436_v8  ;;  %10154 = vmatprep.subr.bf16.mxu1 %v10645_v4 }
 0x69b   : > { %v9768_v25 = vpop.f32.mrb[72].mxu0  ;;  %10155 = vmatpush3.bf16.msra.mxu1 %v10646_v7 }
 0x69c   : > { %v9874_v1 = vpop.f32.mrb[36].mxu1  ;;  %v9769_v42 = vpop.f32.mrb[73].mxu0 }
 0x69d   : > { %v9770_v24 = vadd.f32 %v9769_v42, %v9768_v25  ;;  %v9875_v19 = vpop.f32.mrb[37].mxu1  ;;  %v9771_v53 = vpop.f32.mrb[74].mxu0 }
 0x69e   : > { %v9876_v32 = vadd.f32 %v9875_v19, %v9874_v1  ;;  %v9877_v48 = vpop.f32.mrb[38].mxu1  ;;  %v9772_v22 = vpop.f32.mrb[75].mxu0 }
 0x69f   : > { %v9773_v37 = vadd.f32 %v9772_v22, %v9771_v53  ;;  %v9878_v56 = vpop.f32.mrb[39].mxu1  ;;  %v7449_v17 = vadd.f32 %v9770_v24, %v13854_v33 }
 0x6a0   : > { %v14017_v49 = vadd.f32 %v9876_v32, %v7441_v63  ;;  %v9879_v5 = vadd.f32 %v9878_v56, %v9877_v48 }
 0x6a1   : > { %v7452_v10 = vadd.f32 %v9773_v37, %v13854_v33 }
 0x6a2   : > { %v14019_v60 = vadd.f32 %v9879_v5, %v7444_v2 }
 0x6a3   : > { %v9774_v38 = vpop.f32.mrb[76].mxu0 }
 0x6a4   : > { %v9880_v54 = vpop.f32.mrb[40].mxu1  ;;  %v9775_v30 = vpop.f32.mrb[77].mxu0 }
 0x6a5   : > { %v9776_v50 = vadd.f32 %v9775_v30, %v9774_v38  ;;  %v9881_v0 = vpop.f32.mrb[41].mxu1  ;;  %v9777_v31 = vpop.f32.mrb[78].mxu0 }
 0x6a6   : > { %v9882_v15 = vadd.f32 %v9881_v0, %v9880_v54  ;;  %v9883_v58 = vpop.f32.mrb[42].mxu1  ;;  %v9778_v13 = vpop.f32.mrb[79].mxu0 }
 0x6a7   : > { %v9779_v40 = vadd.f32 %v9778_v13, %v9777_v31  ;;  %v9884_v3 = vpop.f32.mrb[43].mxu1  ;;  %v7457_v24 = vadd.f32 %v9776_v50, %v13854_v33 }
 0x6a8   : > { %v14023_v55 = vadd.f32 %v9882_v15, %v7449_v17  ;;  %v9885_v59 = vadd.f32 %v9884_v3, %v9883_v58 }
 0x6a9   : > { %v7460_v37 = vadd.f32 %v9779_v40, %v13854_v33 }
 0x6aa   : > { %v14031_v8 = vadd.f32 %v9885_v59, %v7452_v10 }
 0x6ab   : > { %v9908_v11 = vpop.f32.mrb[80].mxu0 }
 0x6ac   : > { %v9886_v46 = vpop.f32.mrb[44].mxu1  ;;  %v9909_v6 = vpop.f32.mrb[81].mxu0 }
 0x6ad   : > { %v9887_v25 = vpop.f32.mrb[45].mxu1  ;;  %v9910_v1 = vadd.f32 %v9909_v6, %v9908_v11  ;;  %v9911_v42 = vpop.f32.mrb[82].mxu0 }
 0x6ae   : > { %v9888_v19 = vadd.f32 %v9887_v25, %v9886_v46  ;;  %v9889_v53 = vpop.f32.mrb[46].mxu1  ;;  %v9912_v63 = vpop.f32.mrb[83].mxu0 }
 0x6af   : > { %v7659_v32 = vadd.f32 %v9910_v1, %v13862_v18  ;;  %v9890_v48 = vpop.f32.mrb[47].mxu1  ;;  %v9913_v22 = vadd.f32 %v9912_v63, %v9911_v42 }
 0x6b0   : > { %v14036_v56 = vadd.f32 %v9888_v19, %v7457_v24  ;;  %v9891_v2 = vadd.f32 %v9890_v48, %v9889_v53 }
 0x6b1   : > { %v7662_v5 = vadd.f32 %v9913_v22, %v13864_v61 }
 0x6b2   : > { %v14039_v38 = vadd.f32 %v9891_v2, %v7460_v37 }
 0x6b3   : > { %v9914_v54 = vpop.f32.mrb[84].mxu0 }
 0x6b4   : > { %v10020_v30 = vpop.f32.mrb[48].mxu1  ;;  %v9915_v0 = vpop.f32.mrb[85].mxu0 }
 0x6b5   : > { %v9916_v50 = vadd.f32 %v9915_v0, %v9914_v54  ;;  %v10021_v31 = vpop.f32.mrb[49].mxu1  ;;  %v9917_v17 = vpop.f32.mrb[86].mxu0 }
 0x6b6   : > { %v10022_v15 = vadd.f32 %v10021_v31, %v10020_v30  ;;  %v10023_v58 = vpop.f32.mrb[50].mxu1  ;;  %v9918_v18 = vpop.f32.mrb[87].mxu0 }
 0x6b7   : > { %v7667_v13 = vadd.f32 %v9916_v50, %v13870_v28  ;;  %v9919_v3 = vadd.f32 %v9918_v18, %v9917_v17  ;;  %v10024_v33 = vpop.f32.mrb[51].mxu1 }
 0x6b8   : > { %v10025_v40 = vadd.f32 %v10024_v33, %v10023_v58  ;;  %v14042_v10 = vadd.f32 %v10022_v15, %v7659_v32 }
 0x6b9   : > { %v7670_v61 = vadd.f32 %v9919_v3, %v13872_v26 }
 0x6ba   : > { %v14045_v59 = vadd.f32 %v10025_v40, %v7662_v5 }
 0x6bb   : > { %v9920_v4 = vpop.f32.mrb[88].mxu0 }
 0x6bc   : > { %v10026_v7 = vpop.f32.mrb[52].mxu1  ;;  %v9921_v11 = vpop.f32.mrb[89].mxu0 }
 0x6bd   : > { %v9922_v46 = vadd.f32 %v9921_v11, %v9920_v4  ;;  %v10027_v6 = vpop.f32.mrb[53].mxu1  ;;  %v9923_v25 = vpop.f32.mrb[90].mxu0 }
 0x6be   : > { %v10028_v1 = vadd.f32 %v10027_v6, %v10026_v7  ;;  %v10029_v42 = vpop.f32.mrb[54].mxu1  ;;  %v9924_v24 = vpop.f32.mrb[91].mxu0 }
 0x6bf   : > { %v7675_v28 = vadd.f32 %v9922_v46, %v13879_v27  ;;  %v9925_v19 = vadd.f32 %v9924_v24, %v9923_v25  ;;  %v10030_v53 = vpop.f32.mrb[55].mxu1 }
 0x6c0   : > { %v10031_v63 = vadd.f32 %v10030_v53, %v10029_v42  ;;  %v14048_v32 = vadd.f32 %v10028_v1, %v7667_v13 }
 0x6c1   : > { %v7678_v26 = vadd.f32 %v9925_v19, %v13881_v34 }
 0x6c2   : > { %v14051_v48 = vadd.f32 %v10031_v63, %v7670_v61 }
 0x6c3   : > { %v9926_v22 = vpop.f32.mrb[92].mxu0 }
 0x6c4   : > { %v10032_v37 = vpop.f32.mrb[56].mxu1  ;;  %v9927_v2 = vpop.f32.mrb[93].mxu0 }
 0x6c5   : > { %v9928_v5 = vadd.f32 %v9927_v2, %v9926_v22  ;;  %v10033_v54 = vpop.f32.mrb[57].mxu1  ;;  %v9929_v30 = vpop.f32.mrb[94].mxu0 }
 0x6c6   : > { %v10034_v0 = vadd.f32 %v10033_v54, %v10032_v37  ;;  %v10035_v50 = vpop.f32.mrb[58].mxu1  ;;  %v9930_v31 = vpop.f32.mrb[95].mxu0 }
 0x6c7   : > { %v7683_v27 = vadd.f32 %v9928_v5, %v13889_v43  ;;  %v9931_v17 = vadd.f32 %v9930_v31, %v9929_v30  ;;  %v10036_v15 = vpop.f32.mrb[59].mxu1 }
 0x6c8   : > { %v10037_v58 = vadd.f32 %v10036_v15, %v10035_v50  ;;  %v14054_v18 = vadd.f32 %v10034_v0, %v7675_v28 }
 0x6c9   : > { %v7686_v34 = vadd.f32 %v9931_v17, %v13891_v14 }
 0x6ca   : > { %v14057_v13 = vadd.f32 %v10037_v58, %v7678_v26 }
 0x6cb   : > { %v9932_v3 = vpop.f32.mrb[96].mxu0 }
 0x6cc   : > { %v10038_v33 = vpop.f32.mrb[60].mxu1  ;;  %v9933_v40 = vpop.f32.mrb[97].mxu0 }
 0x6cd   : > { %v9934_v61 = vadd.f32 %v9933_v40, %v9932_v3  ;;  %v10039_v4 = vpop.f32.mrb[61].mxu1  ;;  %v9935_v7 = vpop.f32.mrb[98].mxu0 }
 0x6ce   : > { %v10040_v11 = vadd.f32 %v10039_v4, %v10038_v33  ;;  %v10041_v46 = vpop.f32.mrb[62].mxu1  ;;  %v9936_v6 = vpop.f32.mrb[99].mxu0 }
 0x6cf   : > { %v7691_v43 = vadd.f32 %v9934_v61, %v13913_v57  ;;  %v9937_v25 = vadd.f32 %v9936_v6, %v9935_v7  ;;  %v10042_v1 = vpop.f32.mrb[63].mxu1 }
 0x6d0   : > { %v10043_v42 = vadd.f32 %v10042_v1, %v10041_v46  ;;  %v14060_v24 = vadd.f32 %v10040_v11, %v7683_v27 }
 0x6d1   : > { %v7694_v14 = vadd.f32 %v9937_v25, %v13915_v36 }
 0x6d2   : > { %v14063_v28 = vadd.f32 %v10043_v42, %v7686_v34 }
 0x6d3   : > { %v9938_v19 = vpop.f32.mrb[100].mxu0 }
 0x6d4   : > { %v10044_v53 = vpop.f32.mrb[64].mxu1  ;;  %v9939_v63 = vpop.f32.mrb[101].mxu0 }
 0x6d5   : > { %v9940_v26 = vadd.f32 %v9939_v63, %v9938_v19  ;;  %v10045_v22 = vpop.f32.mrb[65].mxu1  ;;  %v9941_v37 = vpop.f32.mrb[102].mxu0 }
 0x6d6   : > { %v10046_v2 = vadd.f32 %v10045_v22, %v10044_v53  ;;  %v10047_v5 = vpop.f32.mrb[66].mxu1  ;;  %v9942_v54 = vpop.f32.mrb[103].mxu0 }
 0x6d7   : > { %v7699_v57 = vadd.f32 %v9940_v26, %v13925_v12  ;;  %v9943_v30 = vadd.f32 %v9942_v54, %v9941_v37  ;;  %v10048_v0 = vpop.f32.mrb[67].mxu1 }
 0x6d8   : > { %v10049_v50 = vadd.f32 %v10048_v0, %v10047_v5  ;;  %v14066_v31 = vadd.f32 %v10046_v2, %v7691_v43 }
 0x6d9   : > { %v7702_v36 = vadd.f32 %v9943_v30, %v13930_v51 }
 0x6da   : > { %v14069_v27 = vadd.f32 %v10049_v50, %v7694_v14 }
 0x6db   : > { %v9944_v17 = vpop.f32.mrb[104].mxu0 }
 0x6dc   : > { %v10050_v15 = vpop.f32.mrb[68].mxu1  ;;  %v9945_v58 = vpop.f32.mrb[105].mxu0 }
 0x6dd   : > { %v9946_v34 = vadd.f32 %v9945_v58, %v9944_v17  ;;  %v10051_v3 = vpop.f32.mrb[69].mxu1  ;;  %v9947_v33 = vpop.f32.mrb[106].mxu0 }
 0x6de   : > { %v10052_v40 = vadd.f32 %v10051_v3, %v10050_v15  ;;  %v10053_v61 = vpop.f32.mrb[70].mxu1  ;;  %v9948_v4 = vpop.f32.mrb[107].mxu0 }
 0x6df   : > { %v7707_v12 = vadd.f32 %v9946_v34, %v13944_v29  ;;  %v9949_v7 = vadd.f32 %v9948_v4, %v9947_v33  ;;  %v10054_v11 = vpop.f32.mrb[71].mxu1 }
 0x6e0   : > { %v10055_v46 = vadd.f32 %v10054_v11, %v10053_v61  ;;  %v14072_v6 = vadd.f32 %v10052_v40, %v7699_v57 }
 0x6e1   : > { %v7710_v51 = vadd.f32 %v9949_v7, %v13946_v20 }
 0x6e2   : > { %v14075_v43 = vadd.f32 %v10055_v46, %v7702_v36 }
 0x6e3   : > { %v9950_v25 = vpop.f32.mrb[108].mxu0 }
 0x6e4   : > { %v10056_v1 = vpop.f32.mrb[72].mxu1  ;;  %v9951_v42 = vpop.f32.mrb[109].mxu0 }
 0x6e5   : > { %v9952_v14 = vadd.f32 %v9951_v42, %v9950_v25  ;;  %v10057_v19 = vpop.f32.mrb[73].mxu1  ;;  %v9953_v53 = vpop.f32.mrb[110].mxu0 }
 0x6e6   : > { %v10058_v63 = vadd.f32 %v10057_v19, %v10056_v1  ;;  %v10059_v26 = vpop.f32.mrb[74].mxu1  ;;  %v9954_v22 = vpop.f32.mrb[111].mxu0 }
 0x6e7   : > { %v7715_v29 = vadd.f32 %v9952_v14, %v13956_v21  ;;  %v9955_v37 = vadd.f32 %v9954_v22, %v9953_v53  ;;  %v10060_v2 = vpop.f32.mrb[75].mxu1 }
 0x6e8   : > { %v10061_v5 = vadd.f32 %v10060_v2, %v10059_v26  ;;  %v14078_v54 = vadd.f32 %v10058_v63, %v7707_v12 }
 0x6e9   : > { %v7718_v20 = vadd.f32 %v9955_v37, %v13958_v35 }
 0x6ea   : > { %v14081_v57 = vadd.f32 %v10061_v5, %v7710_v51 }
 0x6eb   : > { %v9956_v30 = vpop.f32.mrb[112].mxu0 }
 0x6ec   : > { %v10062_v0 = vpop.f32.mrb[76].mxu1  ;;  %v9957_v50 = vpop.f32.mrb[113].mxu0 }
 0x6ed   : > { %v9958_v36 = vadd.f32 %v9957_v50, %v9956_v30  ;;  %v10063_v17 = vpop.f32.mrb[77].mxu1  ;;  %v9959_v15 = vpop.f32.mrb[114].mxu0 }
 0x6ee   : > { %v10064_v58 = vadd.f32 %v10063_v17, %v10062_v0  ;;  %v10065_v34 = vpop.f32.mrb[78].mxu1  ;;  %v9960_v3 = vpop.f32.mrb[115].mxu0 }
 0x6ef   : > { %v7723_v21 = vadd.f32 %v9958_v36, %v13962_v23  ;;  %v9961_v33 = vadd.f32 %v9960_v3, %v9959_v15  ;;  %v10066_v40 = vpop.f32.mrb[79].mxu1 }
 0x6f0   : > { %v10067_v61 = vadd.f32 %v10066_v40, %v10065_v34  ;;  %v14084_v4 = vadd.f32 %v10064_v58, %v7715_v29 }
 0x6f1   : > { %v7726_v35 = vadd.f32 %v9961_v33, %v13970_v39 }
 0x6f2   : > { %v14087_v12 = vadd.f32 %v10067_v61, %v7718_v20 }
 0x6f3   : > { %v9962_v7 = vpop.f32.mrb[116].mxu0 }
 0x6f4   : > { %v10068_v11 = vpop.f32.mrb[80].mxu1  ;;  %v9963_v46 = vpop.f32.mrb[117].mxu0 }
 0x6f5   : > { %v9964_v51 = vadd.f32 %v9963_v46, %v9962_v7  ;;  %v10069_v25 = vpop.f32.mrb[81].mxu1  ;;  %v9965_v1 = vpop.f32.mrb[118].mxu0 }
 0x6f6   : > { %v10070_v42 = vadd.f32 %v10069_v25, %v10068_v11  ;;  %v10071_v14 = vpop.f32.mrb[82].mxu1  ;;  %v9966_v19 = vpop.f32.mrb[119].mxu0 }
 0x6f7   : > { %v7731_v23 = vadd.f32 %v9964_v51, %v13974_v9  ;;  %v9967_v53 = vadd.f32 %v9966_v19, %v9965_v1  ;;  %v10072_v63 = vpop.f32.mrb[83].mxu1 }
 0x6f8   : > { %v10073_v26 = vadd.f32 %v10072_v63, %v10071_v14  ;;  %v14090_v22 = vadd.f32 %v10070_v42, %v7723_v21 }
 0x6f9   : > { %v7734_v39 = vadd.f32 %v9967_v53, %v13976_v41 }
 0x6fa   : > { %v14093_v29 = vadd.f32 %v10073_v26, %v7726_v35 }
 0x6fb   : > { %v9968_v37 = vpop.f32.mrb[120].mxu0 }
 0x6fc   : > { %v10074_v2 = vpop.f32.mrb[84].mxu1  ;;  %v9969_v5 = vpop.f32.mrb[121].mxu0 }
 0x6fd   : > { %v9970_v20 = vadd.f32 %v9969_v5, %v9968_v37  ;;  %v10075_v30 = vpop.f32.mrb[85].mxu1  ;;  %v9971_v0 = vpop.f32.mrb[122].mxu0 }
 0x6fe   : > { %v10076_v50 = vadd.f32 %v10075_v30, %v10074_v2  ;;  %v10077_v36 = vpop.f32.mrb[86].mxu1  ;;  %v9972_v17 = vpop.f32.mrb[123].mxu0 }
 0x6ff   : > { %v7739_v9 = vadd.f32 %v9970_v20, %v13986_v16  ;;  %v9973_v15 = vadd.f32 %v9972_v17, %v9971_v0  ;;  %v10078_v58 = vpop.f32.mrb[87].mxu1 }
 0x700   : > { %v10079_v34 = vadd.f32 %v10078_v58, %v10077_v36  ;;  %v14096_v3 = vadd.f32 %v10076_v50, %v7731_v23 }
 0x701   : > { %v7742_v41 = vadd.f32 %v9973_v15, %v13988_v52 }
 0x702   : > { %v14099_v21 = vadd.f32 %v10079_v34, %v7734_v39 }
 0x703   : > { %v9974_v33 = vpop.f32.mrb[124].mxu0 }
 0x704   : > { %v10080_v40 = vpop.f32.mrb[88].mxu1  ;;  %v9975_v61 = vpop.f32.mrb[125].mxu0 }
 0x705   : > { %v9976_v35 = vadd.f32 %v9975_v61, %v9974_v33  ;;  %v10081_v7 = vpop.f32.mrb[89].mxu1  ;;  %v9977_v11 = vpop.f32.mrb[126].mxu0 }
 0x706   : > { %v10082_v46 = vadd.f32 %v10081_v7, %v10080_v40  ;;  %v10083_v51 = vpop.f32.mrb[90].mxu1  ;;  %v9978_v25 = vpop.f32.mrb[127].mxu0 }
 0x707   : > { %v7747_v16 = vadd.f32 %v9976_v35, %v13999_v44  ;;  %v9979_v1 = vadd.f32 %v9978_v25, %v9977_v11  ;;  %v10084_v42 = vpop.f32.mrb[91].mxu1 }
 0x708   : > { %v10085_v14 = vadd.f32 %v10084_v42, %v10083_v51  ;;  %v14102_v19 = vadd.f32 %v10082_v46, %v7739_v9 }
 0x709   : > { %v7750_v52 = vadd.f32 %v9979_v1, %v14001_v47 }
 0x70a   : > { %v14105_v23 = vadd.f32 %v10085_v14, %v7742_v41 }
 0x70b   : > { %v9980_v53 = vpop.f32.mrb[128].mxu0 }
 0x70c   : > { %v10086_v63 = vpop.f32.mrb[92].mxu1  ;;  %v9981_v26 = vpop.f32.mrb[129].mxu0 }
 0x70d   : > { %v9982_v39 = vadd.f32 %v9981_v26, %v9980_v53  ;;  %v10087_v37 = vpop.f32.mrb[93].mxu1  ;;  %v9983_v2 = vpop.f32.mrb[130].mxu0 }
 0x70e   : > { %v10088_v5 = vadd.f32 %v10087_v37, %v10086_v63  ;;  %v10089_v20 = vpop.f32.mrb[94].mxu1  ;;  %v9984_v30 = vpop.f32.mrb[131].mxu0 }
 0x70f   : > { %v7755_v44 = vadd.f32 %v9982_v39, %v14005_v45  ;;  %v9985_v0 = vadd.f32 %v9984_v30, %v9983_v2  ;;  %v10090_v50 = vpop.f32.mrb[95].mxu1 }
 0x710   : > { %v10091_v36 = vadd.f32 %v10090_v50, %v10089_v20  ;;  %v14108_v17 = vadd.f32 %v10088_v5, %v7747_v16 }
 0x711   : > { %v7758_v47 = vadd.f32 %v9985_v0, %v14013_v62 }
 0x712   : > { %v14111_v9 = vadd.f32 %v10091_v36, %v7750_v52 }
 0x713   : > { %v9986_v15 = vpop.f32.mrb[132].mxu0 }
 0x714   : > { %v10092_v58 = vpop.f32.mrb[96].mxu1  ;;  %v9987_v34 = vpop.f32.mrb[133].mxu0 }
 0x715   : > { %v9988_v41 = vadd.f32 %v9987_v34, %v9986_v15  ;;  %v10093_v33 = vpop.f32.mrb[97].mxu1  ;;  %v9989_v40 = vpop.f32.mrb[134].mxu0 }
 0x716   : > { %v10094_v61 = vadd.f32 %v10093_v33, %v10092_v58  ;;  %v10095_v35 = vpop.f32.mrb[98].mxu1  ;;  %v9990_v7 = vpop.f32.mrb[135].mxu0 }
 0x717   : > { %v7763_v45 = vadd.f32 %v9988_v41, %v14017_v49  ;;  %v9991_v11 = vadd.f32 %v9990_v7, %v9989_v40  ;;  %v10096_v46 = vpop.f32.mrb[99].mxu1 }
 0x718   : > { %v10097_v51 = vadd.f32 %v10096_v46, %v10095_v35  ;;  %v14114_v25 = vadd.f32 %v10094_v61, %v7755_v44 }
 0x719   : > { %v7766_v62 = vadd.f32 %v9991_v11, %v14019_v60 }
 0x71a   : > { %v14117_v16 = vadd.f32 %v10097_v51, %v7758_v47 }
 0x71b   : > { %v9992_v1 = vpop.f32.mrb[136].mxu0 }
 0x71c   : > { %v10098_v42 = vpop.f32.mrb[100].mxu1  ;;  %v9993_v14 = vpop.f32.mrb[137].mxu0 }
 0x71d   : > { %v9994_v52 = vadd.f32 %v9993_v14, %v9992_v1  ;;  %v10099_v53 = vpop.f32.mrb[101].mxu1  ;;  %v9995_v63 = vpop.f32.mrb[138].mxu0 }
 0x71e   : > { %v10100_v26 = vadd.f32 %v10099_v53, %v10098_v42  ;;  %v10101_v39 = vpop.f32.mrb[102].mxu1  ;;  %v9996_v37 = vpop.f32.mrb[139].mxu0 }
 0x71f   : > { %v7771_v49 = vadd.f32 %v9994_v52, %v14023_v55  ;;  %v9997_v2 = vadd.f32 %v9996_v37, %v9995_v63  ;;  %v10102_v5 = vpop.f32.mrb[103].mxu1 }
 0x720   : > { %v10103_v20 = vadd.f32 %v10102_v5, %v10101_v39  ;;  %v14120_v30 = vadd.f32 %v10100_v26, %v7763_v45 }
 0x721   : > { %v7774_v60 = vadd.f32 %v9997_v2, %v14031_v8 }
 0x722   : > { %v14123_v44 = vadd.f32 %v10103_v20, %v7766_v62 }
 0x723   : > { %v9998_v0 = vpop.f32.mrb[140].mxu0 }
 0x724   : > { %v10104_v50 = vpop.f32.mrb[104].mxu1  ;;  %v9999_v36 = vpop.f32.mrb[141].mxu0 }
 0x725   : > { %v10000_v47 = vadd.f32 %v9999_v36, %v9998_v0  ;;  %v10105_v15 = vpop.f32.mrb[105].mxu1  ;;  %v10001_v58 = vpop.f32.mrb[142].mxu0 }
 0x726   : > { %v10106_v34 = vadd.f32 %v10105_v15, %v10104_v50  ;;  %v10107_v41 = vpop.f32.mrb[106].mxu1  ;;  %v10002_v33 = vpop.f32.mrb[143].mxu0 }
 0x727   : > { %v7779_v55 = vadd.f32 %v10000_v47, %v14036_v56  ;;  %v10003_v40 = vadd.f32 %v10002_v33, %v10001_v58  ;;  %v10108_v61 = vpop.f32.mrb[107].mxu1 }
 0x728   : > { %v10109_v35 = vadd.f32 %v10108_v61, %v10107_v41  ;;  %v14126_v7 = vadd.f32 %v10106_v34, %v7771_v49 }
 0x729   : > { %v7782_v8 = vadd.f32 %v10003_v40, %v14039_v38 }
 0x72a   : > { %v14129_v45 = vadd.f32 %v10109_v35, %v7774_v60  ;;  %v14470_v35 = vld [vmem:[#allocation6_spill] sm:$0xff] }
 0x72b   : > { %v10366_v11 = vpop.f32.mrb[144].mxu0 }
 0x72c   : > { %v10110_v46 = vpop.f32.mrb[108].mxu1  ;;  %v7989_v51 = vadd.f32 %v10366_v11, %v14048_v32  ;;  %v7980_v62 = vpop.f32.mrb[145].mxu0 }
 0x72d   : > { %v10111_v1 = vpop.f32.mrb[109].mxu1  ;;  %v7981_v42 = vadd.f32 %v7980_v62, %v14042_v10  ;;  %v10367_v14 = vpop.f32.mrb[146].mxu0 }
 0x72e   : > { %v8141_v52 = vmul.f32 0.1, %v7989_v51  ;;  %v10112_v56 = vadd.f32 %v10111_v1, %v10110_v46  ;;  %v10113_v53 = vpop.f32.mrb[110].mxu1  ;;  %v7992_v63 = vadd.f32 %v10367_v14, %v14051_v48  ;;  %v7983_v26 = vpop.f32.mrb[147].mxu0  ;;  %vm8109_vm0 = vcmp.gt.f32.partialorder %v7989_v51, 0.0 }
 0x72f   : > { %v8139_v39 = vmul.f32 0.1, %v7981_v42  ;;  %v10114_v38 = vpop.f32.mrb[111].mxu1  ;;  %v7984_v37 = vadd.f32 %v7983_v26, %v14045_v59  ;;  %vm8107_vm1 = vcmp.gt.f32.partialorder %v7981_v42, 0.0 }
 0x730   : > { %vm8110_vm2 = vcmp.gt.f32.partialorder %v7992_v63, 0.0  ;;  %v8142_v49 = vmul.f32 0.1, %v7992_v63  ;;  %v10115_v32 = vadd.f32 %v10114_v38, %v10113_v53  ;;  %v14135_v5 = vadd.f32 %v10112_v56, %v7779_v55 }
 0x731   : > { %vm8108_vm3 = vcmp.gt.f32.partialorder %v7984_v37, 0.0  ;;  %v8140_v2 = vmul.f32 0.1, %v7984_v37  ;;  %v8173_v10 = vsel %vm8109_vm0, %v7989_v51, %v8141_v52  ;;  %v8171_v48 = vsel %vm8107_vm1, %v7981_v42, %v8139_v39 }
 0x732   : > { %v8174_v20 = vsel %vm8110_vm2, %v7992_v63, %v8142_v49  ;;  %v14137_v60 = vadd.f32 %v10115_v32, %v7782_v8  ;;  %v14471_v8 = vld [vmem:[#allocation5_spill] sm:$0xff]  ;;  %v14473_v49 = vld [vmem:[#allocation8_spill] sm:$0xff]  ;;  %v14474_v32 = vld [vmem:[#allocation7_spill] sm:$0xff] }
 0x733   : > { %v10370_v0 = vpop.f32.mrb[148].mxu0  ;;  %v8172_v50 = vsel %vm8108_vm3, %v7984_v37, %v8140_v2  ;;  %v8220_v36 = vpack.c.bf16 %v8174_v20, %v8173_v10  ;;  %v14472_v11 = vpack.c.bf16 %v14470_v35, %v14471_v8  ;;  %v14475_v2 = vpack.c.bf16 %v14473_v49, %v14474_v32 }
 0x734   : > { %v8005_v47 = vadd.f32 %v10370_v0, %v14060_v24  ;;  %v7996_v15 = vpop.f32.mrb[149].mxu0  ;;  %v8219_v59 = vpack.c.bf16 %v8172_v50, %v8171_v48 }
 0x735   : > { %v7997_v58 = vadd.f32 %v7996_v15, %v14054_v18  ;;  %v10371_v34 = vpop.f32.mrb[150].mxu0 }
 0x736   : > { %v8145_v41 = vmul.f32 0.1, %v8005_v47  ;;  %v8008_v33 = vadd.f32 %v10371_v34, %v14063_v28  ;;  %v7999_v55 = vpop.f32.mrb[151].mxu0  ;;  %8402 = vmatprep.mubr.bf16.mxu1 %v8219_v59  ;;  %vm8113_vm4 = vcmp.gt.f32.partialorder %v8005_v47, 0.0 }
 0x737   : > { %v8143_v40 = vmul.f32 0.1, %v7997_v58  ;;  %v8000_v61 = vadd.f32 %v7999_v55, %v14057_v13  ;;  %8403 = vmatmul.mubr.bf16.vlgmr.msra.gmra.mrb[112].mxu1 %v14472_v11  ;;  %vm8111_vm5 = vcmp.gt.f32.partialorder %v7997_v58, 0.0 }
 0x738   : > { %vm8114_vm6 = vcmp.gt.f32.partialorder %v8008_v33, 0.0  ;;  %v8146_v24 = vmul.f32 0.1, %v8008_v33  ;;  %8410 = vmatprep.mubr.bf16.mxu1 %v8220_v36  ;;  %v8177_v46 = vsel %vm8113_vm4, %v8005_v47, %v8145_v41 }
 0x739   : > { %vm8112_vm7 = vcmp.gt.f32.partialorder %v8000_v61, 0.0  ;;  %v8144_v18 = vmul.f32 0.1, %v8000_v61  ;;  %v8175_v28 = vsel %vm8111_vm5, %v7997_v58, %v8143_v40  ;;  %v14476_v40 = vld [vmem:[#allocation10_spill] sm:$0xff] }
 0x73a   : > { %v8178_v51 = vsel %vm8114_vm6, %v8008_v33, %v8146_v24 }
 0x73b   : > { %v10374_v62 = vpop.f32.mrb[152].mxu0  ;;  %v8176_v1 = vsel %vm8112_vm7, %v8000_v61, %v8144_v18  ;;  %v8222_v42 = vpack.c.bf16 %v8178_v51, %v8177_v46  ;;  %v14477_v61 = vld [vmem:[#allocation9_spill] sm:$0xff] }
 0x73c   : > { %v8021_v14 = vadd.f32 %v10374_v62, %v14072_v6  ;;  %v8012_v52 = vpop.f32.mrb[153].mxu0  ;;  %v8221_v13 = vpack.c.bf16 %v8176_v1, %v8175_v28  ;;  %v14478_v35 = vpack.c.bf16 %v14476_v40, %v14477_v61 }
 0x73d   : > { %v8013_v56 = vadd.f32 %v8012_v52, %v14066_v31  ;;  %v10375_v53 = vpop.f32.mrb[154].mxu0 }
 0x73e   : > { %v8149_v63 = vmul.f32 0.1, %v8021_v14  ;;  %v8024_v26 = vadd.f32 %v10375_v53, %v14075_v43  ;;  %v8015_v39 = vpop.f32.mrb[155].mxu0  ;;  %vm8117_vm8 = vcmp.gt.f32.partialorder %v8021_v14, 0.0  ;;  %v14479_v53 = vld [vmem:[#allocation12_spill] sm:$0xff] }
 0x73f   : > { %v8147_v38 = vmul.f32 0.1, %v8013_v56  ;;  %v8016_v37 = vadd.f32 %v8015_v39, %v14069_v27  ;;  %8411 = vmatmul.mubr.bf16.gmra.mrb[116].mxu1 %v14475_v2  ;;  %vm8115_vm9 = vcmp.gt.f32.partialorder %v8013_v56, 0.0 }
 0x740   : > { %vm8118_vm10 = vcmp.gt.f32.partialorder %v8024_v26, 0.0  ;;  %v8150_v6 = vmul.f32 0.1, %v8024_v26  ;;  %8418 = vmatprep.mubr.bf16.mxu1 %v8221_v13  ;;  %v14153_v31 = vsel %vm8117_vm8, %v8021_v14, %v8149_v63  ;;  %v14480_v63 = vld [vmem:[#allocation11_spill] sm:$0xff] }
 0x741   : > { %vm8116_vm11 = vcmp.gt.f32.partialorder %v8016_v37, 0.0  ;;  %v8148_v10 = vmul.f32 0.1, %v8016_v37  ;;  %v8179_v0 = vsel %vm8115_vm9, %v8013_v56, %v8147_v38 }
 0x742   : > { %v14155_v20 = vsel %vm8118_vm10, %v8024_v26, %v8150_v6  ;;  %v14481_v26 = vpack.c.bf16 %v14479_v53, %v14480_v63 }
 0x743   : > { %v10378_v43 = vpop.f32.mrb[156].mxu0  ;;  %v8180_v48 = vsel %vm8116_vm11, %v8016_v37, %v8148_v10  ;;  %v8224_v27 = vpack.c.bf16 %v14155_v20, %v14153_v31 }
 0x744   : > { %v8037_v50 = vadd.f32 %v10378_v43, %v14084_v4  ;;  %v8028_v36 = vpop.f32.mrb[157].mxu0  ;;  %v8223_v47 = vpack.c.bf16 %v8180_v48, %v8179_v0 }
 0x745   : > { %v8029_v15 = vadd.f32 %v8028_v36, %v14078_v54  ;;  %v10379_v59 = vpop.f32.mrb[158].mxu0 }
 0x746   : > { %v8153_v58 = vmul.f32 0.1, %v8037_v50  ;;  %v8040_v34 = vadd.f32 %v10379_v59, %v14087_v12  ;;  %v8031_v41 = vpop.f32.mrb[159].mxu0  ;;  %vm8121_vm12 = vcmp.gt.f32.partialorder %v8037_v50, 0.0  ;;  %v14483_v59 = vld [vmem:[#allocation13_spill] sm:$0xff] }
 0x747   : > { %v8151_v33 = vmul.f32 0.1, %v8029_v15  ;;  %v8032_v55 = vadd.f32 %v8031_v41, %v14081_v57  ;;  %8419 = vmatmul.mubr.bf16.gmra.mrb[120].mxu1 %v14478_v35  ;;  %vm8119_vm13 = vcmp.gt.f32.partialorder %v8029_v15, 0.0 }
 0x748   : > { %vm8122_vm14 = vcmp.gt.f32.partialorder %v8040_v34, 0.0  ;;  %v8154_v4 = vmul.f32 0.1, %v8040_v34  ;;  %8426 = vmatprep.mubr.bf16.mxu1 %v8222_v42  ;;  %v14166_v54 = vsel %vm8121_vm12, %v8037_v50, %v8153_v58 }
 0x749   : > { %vm8120_vm15 = vcmp.gt.f32.partialorder %v8032_v55, 0.0  ;;  %v8152_v8 = vmul.f32 0.1, %v8032_v55  ;;  %v14170_v24 = vsel %vm8119_vm13, %v8029_v15, %v8151_v33  ;;  %v14482_v15 = vld [vmem:[#allocation14_spill] sm:$0xff] }
 0x74a   : > { %v14168_v11 = vsel %vm8122_vm14, %v8040_v34, %v8154_v4  ;;  %v14484_v58 = vpack.c.bf16 %v14482_v15, %v14483_v59  ;;  %v14494_v59 = vld [vmem:[#allocation22_spill] sm:$0xff] }
 0x74b   : > { %v10382_v12 = vpop.f32.mrb[160].mxu0  ;;  %v14172_v18 = vsel %vm8120_vm15, %v8032_v55, %v8152_v8  ;;  %v8226_v57 = vpack.c.bf16 %v14168_v11, %v14166_v54  ;;  %v14497_v11 = vld [vmem:[#allocation24_spill] sm:$0xff] }
 0x74c   : > { %v8053_v46 = vadd.f32 %v10382_v12, %v14096_v3  ;;  %v8044_v51 = vpop.f32.mrb[161].mxu0  ;;  %v8225_v62 = vpack.c.bf16 %v14172_v18, %v14170_v24  ;;  %v14485_v18 = vld [vmem:[#allocation16_spill] sm:$0xff] }
 0x74d   : > { %v8045_v28 = vadd.f32 %v8044_v51, %v14090_v22  ;;  %v10383_v1 = vpop.f32.mrb[162].mxu0 }
 0x74e   : > { %v8157_v42 = vmul.f32 0.1, %v8053_v46  ;;  %v8056_v14 = vadd.f32 %v10383_v1, %v14099_v21  ;;  %v8047_v52 = vpop.f32.mrb[163].mxu0  ;;  %vm8125_vm0 = vcmp.gt.f32.partialorder %v8053_v46, 0.0 }
 0x74f   : > { %v8155_v13 = vmul.f32 0.1, %v8045_v28  ;;  %v8048_v56 = vadd.f32 %v8047_v52, %v14093_v29  ;;  %8427 = vmatmul.mubr.bf16.gmra.mrb[124].mxu1 %v14481_v26  ;;  %vm8123_vm1 = vcmp.gt.f32.partialorder %v8045_v28, 0.0 }
 0x750   : > { %vm8126_vm2 = vcmp.gt.f32.partialorder %v8056_v14, 0.0  ;;  %v8158_v3 = vmul.f32 0.1, %v8056_v14  ;;  %8434 = vmatprep.mubr.bf16.mxu1 %v8223_v47  ;;  %v14185_v22 = vsel %vm8125_vm0, %v8053_v46, %v8157_v42  ;;  %v14486_v46 = vld [vmem:[#allocation15_spill] sm:$0xff] }
 0x751   : > { %vm8124_vm3 = vcmp.gt.f32.partialorder %v8048_v56, 0.0  ;;  %v8156_v39 = vmul.f32 0.1, %v8048_v56  ;;  %v14189_v37 = vsel %vm8123_vm1, %v8045_v28, %v8155_v13  ;;  %v14487_v51 = vpack.c.bf16 %v14485_v18, %v14486_v46 }
 0x752   : > { %v14187_v38 = vsel %vm8126_vm2, %v8056_v14, %v8158_v3 }
 0x753   : > { %v10386_v21 = vpop.f32.mrb[164].mxu0  ;;  %v14191_v49 = vsel %vm8124_vm3, %v8048_v56, %v8156_v39  ;;  %v8228_v29 = vpack.c.bf16 %v14187_v38, %v14185_v22  ;;  %v14509_v22 = vld [vmem:[#allocation32_spill] sm:$0xff]  ;;  %v14510_v38 = vld [vmem:[#allocation31_spill] sm:$0xff] }
 0x754   : > { %v8069_v32 = vadd.f32 %v10386_v21, %v14108_v17  ;;  %v8060_v2 = vpop.f32.mrb[165].mxu0  ;;  %v8227_v6 = vpack.c.bf16 %v14191_v49, %v14189_v37  ;;  %v14503_v37 = vld [vmem:[#allocation28_spill] sm:$0xff]  ;;  %v14504_v49 = vld [vmem:[#allocation27_spill] sm:$0xff] }
 0x755   : > { %v8061_v10 = vadd.f32 %v8060_v2, %v14102_v19  ;;  %v10387_v43 = vpop.f32.mrb[166].mxu0  ;;  %v14489_v2 = vld [vmem:[#allocation17_spill] sm:$0xff] }
 0x756   : > { %v8161_v0 = vmul.f32 0.1, %v8069_v32  ;;  %v8072_v48 = vadd.f32 %v10387_v43, %v14111_v9  ;;  %v8063_v50 = vpop.f32.mrb[167].mxu0  ;;  %vm8129_vm4 = vcmp.gt.f32.partialorder %v8069_v32, 0.0 }
 0x757   : > { %v8159_v36 = vmul.f32 0.1, %v8061_v10  ;;  %v8064_v47 = vadd.f32 %v8063_v50, %v14105_v23  ;;  %8435 = vmatmul.mubr.bf16.gmra.mrb[128].mxu1 %v14484_v58  ;;  %vm8127_vm5 = vcmp.gt.f32.partialorder %v8061_v10, 0.0  ;;  %v14495_v58 = vld [vmem:[#allocation21_spill] sm:$0xff] }
 0x758   : > { %vm8130_vm6 = vcmp.gt.f32.partialorder %v8072_v48, 0.0  ;;  %v8162_v17 = vmul.f32 0.1, %v8072_v48  ;;  %8442 = vmatprep.mubr.bf16.mxu1 %v8224_v27  ;;  %v8193_v34 = vsel %vm8129_vm4, %v8069_v32, %v8161_v0  ;;  %v14488_v32 = vld [vmem:[#allocation18_spill] sm:$0xff]  ;;  %v14496_v54 = vpack.c.bf16 %v14494_v59, %v14495_v58 }
 0x759   : > { %vm8128_vm7 = vcmp.gt.f32.partialorder %v8064_v47, 0.0  ;;  %v8160_v19 = vmul.f32 0.1, %v8064_v47  ;;  %v8191_v33 = vsel %vm8127_vm5, %v8061_v10, %v8159_v36  ;;  %v14490_v10 = vpack.c.bf16 %v14488_v32, %v14489_v2 }
 0x75a   : > { %v8194_v9 = vsel %vm8130_vm6, %v8072_v48, %v8162_v17 }
 0x75b   : > { %v10390_v41 = vpop.f32.mrb[168].mxu0  ;;  %v8192_v55 = vsel %vm8128_vm7, %v8064_v47, %v8160_v19  ;;  %v8230_v40 = vpack.c.bf16 %v8194_v9, %v8193_v34  ;;  %v14492_v47 = vld [vmem:[#allocation19_spill] sm:$0xff]  ;;  %v14500_v19 = vld [vmem:[#allocation26_spill] sm:$0xff]  ;;  %v14501_v34 = vld [vmem:[#allocation25_spill] sm:$0xff] }
 0x75c   : > { %v8085_v23 = vadd.f32 %v10390_v41, %v14120_v30  ;;  %v8076_v61 = vpop.f32.mrb[169].mxu0  ;;  %v8229_v35 = vpack.c.bf16 %v8192_v55, %v8191_v33  ;;  %v14502_v9 = vpack.c.bf16 %v14500_v19, %v14501_v34  ;;  %v14506_v41 = vld [vmem:[#allocation30_spill] sm:$0xff]  ;;  %v14507_v33 = vld [vmem:[#allocation29_spill] sm:$0xff] }
 0x75d   : > { %v8077_v4 = vadd.f32 %v8076_v61, %v14114_v25  ;;  %v10391_v8 = vpop.f32.mrb[170].mxu0  ;;  %v14508_v55 = vpack.c.bf16 %v14506_v41, %v14507_v33  ;;  %v14513_v61 = vld [vmem:[#allocation33_spill] sm:$0xff] }
 0x75e   : > { %v8165_v12 = vmul.f32 0.1, %v8085_v23  ;;  %v8088_v24 = vadd.f32 %v10391_v8, %v14123_v44  ;;  %v8079_v31 = vpop.f32.mrb[171].mxu0  ;;  %vm8133_vm8 = vcmp.gt.f32.partialorder %v8085_v23, 0.0 }
 0x75f   : > { %v8163_v20 = vmul.f32 0.1, %v8077_v4  ;;  %v8080_v27 = vadd.f32 %v8079_v31, %v14117_v16  ;;  %8443 = vmatmul.mubr.bf16.gmra.mrb[132].mxu1 %v14487_v51  ;;  %vm8131_vm9 = vcmp.gt.f32.partialorder %v8077_v4, 0.0 }
 0x760   : > { %vm8134_vm10 = vcmp.gt.f32.partialorder %v8088_v24, 0.0  ;;  %v8166_v30 = vmul.f32 0.1, %v8088_v24  ;;  %8450 = vmatprep.mubr.bf16.mxu1 %v8225_v62  ;;  %v8197_v25 = vsel %vm8133_vm8, %v8085_v23, %v8165_v12  ;;  %v14512_v23 = vld [vmem:[#allocation34_spill] sm:$0xff] }
 0x761   : > { %vm8132_vm11 = vcmp.gt.f32.partialorder %v8080_v27, 0.0  ;;  %v8164_v28 = vmul.f32 0.1, %v8080_v27  ;;  %v8195_v14 = vsel %vm8131_vm9, %v8077_v4, %v8163_v20  ;;  %v14516_v4 = vld [vmem:[#allocation35_spill] sm:$0xff] }
 0x762   : > { %v8198_v1 = vsel %vm8134_vm10, %v8088_v24, %v8166_v30  ;;  %v14260_v24 = vld [vmem:[%s14348_s12] ss:$0 sm:$0xff] }
 0x763   : > { %v10394_v42 = vpop.f32.mrb[172].mxu0  ;;  %v8196_v44 = vsel %vm8132_vm11, %v8080_v27, %v8164_v28  ;;  %v8232_v52 = vpack.c.bf16 %v8198_v1, %v8197_v25 }
 0x764   : > { %v8101_v13 = vadd.f32 %v10394_v42, %v14135_v5  ;;  %v8092_v56 = vpop.f32.mrb[173].mxu0  ;;  %v8231_v16 = vpack.c.bf16 %v8196_v44, %v8195_v14 }
 0x765   : > { %v8093_v53 = vadd.f32 %v8092_v56, %v14126_v7  ;;  %v10395_v63 = vpop.f32.mrb[174].mxu0 }
 0x766   : > { %v8169_v26 = vmul.f32 0.1, %v8101_v13  ;;  %v8104_v3 = vadd.f32 %v10395_v63, %v14137_v60  ;;  %v8095_v39 = vpop.f32.mrb[175].mxu0  ;;  %vm8137_vm12 = vcmp.gt.f32.partialorder %v8101_v13, 0.0 }
 0x767   : > { %v8167_v62 = vmul.f32 0.1, %v8093_v53  ;;  %v8096_v21 = vadd.f32 %v8095_v39, %v14129_v45  ;;  %8451 = vmatmul.mubr.bf16.gmra.mrb[136].mxu1 %v14490_v10  ;;  %vm8135_vm13 = vcmp.gt.f32.partialorder %v8093_v53, 0.0  ;;  %v14491_v45 = vld [vmem:[#allocation20_spill] sm:$0xff] }
 0x768   : > { %vm8138_vm14 = vcmp.gt.f32.partialorder %v8104_v3, 0.0  ;;  %v8170_v5 = vmul.f32 0.1, %v8104_v3  ;;  %8458 = vmatprep.mubr.bf16.mxu1 %v8226_v57  ;;  %v8201_v43 = vsel %vm8137_vm12, %v8101_v13, %v8169_v26  ;;  %v14493_v15 = vpack.c.bf16 %v14491_v45, %v14492_v47  ;;  %v14498_v57 = vld [vmem:[#allocation23_spill] sm:$0xff] }
 0x769   : > { %vm8136_vm15 = vcmp.gt.f32.partialorder %v8096_v21, 0.0  ;;  %v8168_v7 = vmul.f32 0.1, %v8096_v21  ;;  %v8199_v0 = vsel %vm8135_vm13, %v8093_v53, %v8167_v62  ;;  %v14499_v17 = vpack.c.bf16 %v14497_v11, %v14498_v57 }
 0x76a   : > { %v8202_v60 = vsel %vm8138_vm14, %v8104_v3, %v8170_v5 }
 0x76b   : > { %v8200_v48 = vsel %vm8136_vm15, %v8096_v21, %v8168_v7  ;;  %v8234_v50 = vpack.c.bf16 %v8202_v60, %v8201_v43 }
 0x76c   : > { %v8233_v36 = vpack.c.bf16 %v8200_v48, %v8199_v0 }
 0x76f   : > { %8459 = vmatmul.mubr.bf16.gmra.mrb[140].mxu1 %v14493_v15 }
 0x770   : > { %8466 = vmatprep.mubr.bf16.mxu1 %v8227_v6  ;;  %v14505_v6 = vpack.c.bf16 %v14503_v37, %v14504_v49 }
 0x777   : > { %8467 = vmatmul.mubr.bf16.gmra.mrb[144].mxu1 %v14496_v54 }
 0x778   : > { %8474 = vmatprep.mubr.bf16.mxu1 %v8228_v29  ;;  %v14511_v29 = vpack.c.bf16 %v14509_v22, %v14510_v38 }
 0x77f   : > { %8475 = vmatmul.mubr.bf16.gmra.mrb[148].mxu1 %v14499_v17 }
 0x780   : > { %8482 = vmatprep.mubr.bf16.mxu1 %v8229_v35  ;;  %v14514_v35 = vpack.c.bf16 %v14512_v23, %v14513_v61 }
 0x787   : > { %8483 = vmatmul.mubr.bf16.gmra.mrb[152].mxu1 %v14502_v9 }
 0x788   : > { %8490 = vmatprep.mubr.bf16.mxu1 %v8230_v40  ;;  %v14515_v40 = vld [vmem:[#allocation36_spill] sm:$0xff] }
 0x789   : > { %v14517_v8 = vpack.c.bf16 %v14515_v40, %v14516_v4 }
 0x78f   : > { %8491 = vmatmul.mubr.bf16.gmra.mrb[156].mxu1 %v14505_v6 }
 0x790   : > { %8498 = vmatprep.mubr.bf16.mxu1 %v8231_v16 }
 0x797   : > { %8499 = vmatmul.mubr.bf16.gmra.mrb[160].mxu1 %v14508_v55 }
 0x798   : > { %8506 = vmatprep.mubr.bf16.mxu1 %v8232_v52 }
 0x79f   : > { %8507 = vmatmul.mubr.bf16.gmra.mrb[164].mxu1 %v14511_v29 }
 0x7a0   : > { %8514 = vmatprep.mubr.bf16.mxu1 %v8233_v36 }
 0x7a7   : > { %8515 = vmatmul.mubr.bf16.gmra.mrb[168].mxu1 %v14514_v35 }
 0x7a8   : > { %8522 = vmatprep.mubr.bf16.mxu1 %v8234_v50 }
 0x7af   : > { %8523 = vmatmul.mubr.bf16.gmra.mrb[172].mxu1 %v14517_v8 }
 0x80a   : > { %v10156_v12 = vpop.f32.mrb[112].mxu1 }
 0x80b   : > { %v10157_v31 = vpop.f32.mrb[113].mxu1 }
 0x80c   : > { %v10158_v20 = vadd.f32 %v10157_v31, %v10156_v12  ;;  %v10159_v27 = vpop.f32.mrb[114].mxu1 }
 0x80d   : > { %v10160_v18 = vpop.f32.mrb[115].mxu1 }
 0x80e   : > { %v8405_v46 = vadd.f32 %v10158_v20, %v14260_v24  ;;  %v10161_v51 = vadd.f32 %v10160_v18, %v10159_v27 }
 0x810   : > { %vm8531_vm0 = vcmp.gt.f32.partialorder %v8405_v46, 0.0  ;;  %v8563_v30 = vmul.f32 0.1, %v8405_v46  ;;  %v8408_v28 = vadd.f32 %v10161_v51, %v14260_v24 }
 0x812   : > { %v8595_v25 = vsel %vm8531_vm0, %v8405_v46, %v8563_v30  ;;  %vm8532_vm1 = vcmp.gt.f32.partialorder %v8408_v28, 0.0  ;;  %v8564_v1 = vmul.f32 0.1, %v8408_v28  ;;  %v10162_v42 = vpop.f32.mrb[116].mxu1 }
 0x813   : > { %8627 = vst [vmem:[%s14268_s30] sm:$0xff] %v8595_v25  ;;  %v10163_v14 = vpop.f32.mrb[117].mxu1 }
 0x814   : > { %v8596_v44 = vsel %vm8532_vm1, %v8408_v28, %v8564_v1  ;;  %v10164_v52 = vadd.f32 %v10163_v14, %v10162_v42  ;;  %v10165_v13 = vpop.f32.mrb[118].mxu1 }
 0x815   : > { %8628 = vst [vmem:[%s14268_s30 + $0x8] sm:$0xff] %v8596_v44  ;;  %v10166_v56 = vpop.f32.mrb[119].mxu1 }
 0x816   : > { %v8413_v16 = vadd.f32 %v10164_v52, %v14260_v24  ;;  %v10167_v53 = vadd.f32 %v10166_v56, %v10165_v13 }
 0x818   : > { %vm8533_vm2 = vcmp.gt.f32.partialorder %v8413_v16, 0.0  ;;  %v8565_v63 = vmul.f32 0.1, %v8413_v16  ;;  %v8416_v26 = vadd.f32 %v10167_v53, %v14260_v24 }
 0x81a   : > { %v8597_v3 = vsel %vm8533_vm2, %v8413_v16, %v8565_v63  ;;  %vm8534_vm3 = vcmp.gt.f32.partialorder %v8416_v26, 0.0  ;;  %v8566_v39 = vmul.f32 0.1, %v8416_v26  ;;  %v10168_v62 = vpop.f32.mrb[120].mxu1 }
 0x81b   : > { %8629 = vst [vmem:[%s14268_s30 + $0x10] sm:$0xff] %v8597_v3  ;;  %v10169_v21 = vpop.f32.mrb[121].mxu1 }
 0x81c   : > { %v8598_v32 = vsel %vm8534_vm3, %v8416_v26, %v8566_v39  ;;  %v10170_v2 = vadd.f32 %v10169_v21, %v10168_v62  ;;  %v10171_v10 = vpop.f32.mrb[122].mxu1 }
 0x81d   : > { %8630 = vst [vmem:[%s14268_s30 + $0x18] sm:$0xff] %v8598_v32  ;;  %v10172_v5 = vpop.f32.mrb[123].mxu1 }
 0x81e   : > { %v8421_v7 = vadd.f32 %v10170_v2, %v14260_v24  ;;  %v10173_v43 = vadd.f32 %v10172_v5, %v10171_v10 }
 0x820   : > { %vm8535_vm4 = vcmp.gt.f32.partialorder %v8421_v7, 0.0  ;;  %v8567_v60 = vmul.f32 0.1, %v8421_v7  ;;  %v8424_v0 = vadd.f32 %v10173_v43, %v14260_v24 }
 0x822   : > { %v8599_v48 = vsel %vm8535_vm4, %v8421_v7, %v8567_v60  ;;  %vm8536_vm5 = vcmp.gt.f32.partialorder %v8424_v0, 0.0  ;;  %v8568_v50 = vmul.f32 0.1, %v8424_v0  ;;  %v10174_v36 = vpop.f32.mrb[124].mxu1 }
 0x823   : > { %8631 = vst [vmem:[%s14268_s30 + $0x20] sm:$0xff] %v8599_v48  ;;  %v10175_v45 = vpop.f32.mrb[125].mxu1 }
 0x824   : > { %v8600_v47 = vsel %vm8536_vm5, %v8424_v0, %v8568_v50  ;;  %v10176_v15 = vadd.f32 %v10175_v45, %v10174_v36  ;;  %v10177_v59 = vpop.f32.mrb[126].mxu1 }
 0x825   : > { %8632 = vst [vmem:[%s14268_s30 + $0x28] sm:$0xff] %v8600_v47  ;;  %v10178_v58 = vpop.f32.mrb[127].mxu1 }
 0x826   : > { %v8429_v54 = vadd.f32 %v10176_v15, %v14260_v24  ;;  %v10179_v11 = vadd.f32 %v10178_v58, %v10177_v59 }
 0x828   : > { %vm8537_vm6 = vcmp.gt.f32.partialorder %v8429_v54, 0.0  ;;  %v8569_v57 = vmul.f32 0.1, %v8429_v54  ;;  %v8432_v17 = vadd.f32 %v10179_v11, %v14260_v24 }
 0x82a   : > { %v8601_v19 = vsel %vm8537_vm6, %v8429_v54, %v8569_v57  ;;  %vm8538_vm7 = vcmp.gt.f32.partialorder %v8432_v17, 0.0  ;;  %v8570_v34 = vmul.f32 0.1, %v8432_v17  ;;  %v10180_v9 = vpop.f32.mrb[128].mxu1 }
 0x82b   : > { %8633 = vst [vmem:[%s14268_s30 + $0x30] sm:$0xff] %v8601_v19  ;;  %v10181_v37 = vpop.f32.mrb[129].mxu1 }
 0x82c   : > { %v8602_v49 = vsel %vm8538_vm7, %v8432_v17, %v8570_v34  ;;  %v10182_v6 = vadd.f32 %v10181_v37, %v10180_v9  ;;  %v10183_v41 = vpop.f32.mrb[130].mxu1 }
 0x82d   : > { %8634 = vst [vmem:[%s14268_s30 + $0x38] sm:$0xff] %v8602_v49  ;;  %v10184_v33 = vpop.f32.mrb[131].mxu1 }
 0x82e   : > { %v8437_v55 = vadd.f32 %v10182_v6, %v14260_v24  ;;  %v10185_v22 = vadd.f32 %v10184_v33, %v10183_v41 }
 0x830   : > { %vm8539_vm8 = vcmp.gt.f32.partialorder %v8437_v55, 0.0  ;;  %v8571_v38 = vmul.f32 0.1, %v8437_v55  ;;  %v8440_v29 = vadd.f32 %v10185_v22, %v14260_v24 }
 0x832   : > { %v8603_v23 = vsel %vm8539_vm8, %v8437_v55, %v8571_v38  ;;  %vm8540_vm9 = vcmp.gt.f32.partialorder %v8440_v29, 0.0  ;;  %v8572_v61 = vmul.f32 0.1, %v8440_v29  ;;  %v10186_v35 = vpop.f32.mrb[132].mxu1 }
 0x833   : > { %8635 = vst [vmem:[%s14268_s30 + $0x40] sm:$0xff] %v8603_v23  ;;  %v10187_v40 = vpop.f32.mrb[133].mxu1 }
 0x834   : > { %v8604_v4 = vsel %vm8540_vm9, %v8440_v29, %v8572_v61  ;;  %v10188_v8 = vadd.f32 %v10187_v40, %v10186_v35  ;;  %v10189_v12 = vpop.f32.mrb[134].mxu1 }
 0x835   : > { %8636 = vst [vmem:[%s14268_s30 + $0x48] sm:$0xff] %v8604_v4  ;;  %v10190_v31 = vpop.f32.mrb[135].mxu1 }
 0x836   : > { %v8445_v20 = vadd.f32 %v10188_v8, %v14260_v24  ;;  %v10191_v27 = vadd.f32 %v10190_v31, %v10189_v12 }
 0x838   : > { %vm8541_vm10 = vcmp.gt.f32.partialorder %v8445_v20, 0.0  ;;  %v8573_v18 = vmul.f32 0.1, %v8445_v20  ;;  %v8448_v46 = vadd.f32 %v10191_v27, %v14260_v24 }
 0x83a   : > { %v8605_v51 = vsel %vm8541_vm10, %v8445_v20, %v8573_v18  ;;  %vm8542_vm11 = vcmp.gt.f32.partialorder %v8448_v46, 0.0  ;;  %v8574_v30 = vmul.f32 0.1, %v8448_v46  ;;  %v10192_v28 = vpop.f32.mrb[136].mxu1 }
 0x83b   : > { %8637 = vst [vmem:[%s14268_s30 + $0x50] sm:$0xff] %v8605_v51  ;;  %v10193_v25 = vpop.f32.mrb[137].mxu1 }
 0x83c   : > { %v8606_v1 = vsel %vm8542_vm11, %v8448_v46, %v8574_v30  ;;  %v10194_v42 = vadd.f32 %v10193_v25, %v10192_v28  ;;  %v10195_v14 = vpop.f32.mrb[138].mxu1 }
 0x83d   : > { %8638 = vst [vmem:[%s14268_s30 + $0x58] sm:$0xff] %v8606_v1  ;;  %v10196_v44 = vpop.f32.mrb[139].mxu1 }
 0x83e   : > { %v8453_v52 = vadd.f32 %v10194_v42, %v14260_v24  ;;  %v10197_v13 = vadd.f32 %v10196_v44, %v10195_v14 }
 0x840   : > { %vm8543_vm12 = vcmp.gt.f32.partialorder %v8453_v52, 0.0  ;;  %v8575_v56 = vmul.f32 0.1, %v8453_v52  ;;  %v8456_v16 = vadd.f32 %v10197_v13, %v14260_v24 }
 0x842   : > { %v8607_v53 = vsel %vm8543_vm12, %v8453_v52, %v8575_v56  ;;  %vm8544_vm13 = vcmp.gt.f32.partialorder %v8456_v16, 0.0  ;;  %v8576_v63 = vmul.f32 0.1, %v8456_v16  ;;  %v10198_v26 = vpop.f32.mrb[140].mxu1 }
 0x843   : > { %8639 = vst [vmem:[%s14268_s30 + $0x60] sm:$0xff] %v8607_v53  ;;  %v10199_v3 = vpop.f32.mrb[141].mxu1 }
 0x844   : > { %v8608_v39 = vsel %vm8544_vm13, %v8456_v16, %v8576_v63  ;;  %v10200_v62 = vadd.f32 %v10199_v3, %v10198_v26  ;;  %v10201_v21 = vpop.f32.mrb[142].mxu1 }
 0x845   : > { %8640 = vst [vmem:[%s14268_s30 + $0x68] sm:$0xff] %v8608_v39  ;;  %v10202_v32 = vpop.f32.mrb[143].mxu1 }
 0x846   : > { %v8461_v2 = vadd.f32 %v10200_v62, %v14260_v24  ;;  %v10203_v10 = vadd.f32 %v10202_v32, %v10201_v21 }
 0x848   : > { %vm8545_vm14 = vcmp.gt.f32.partialorder %v8461_v2, 0.0  ;;  %v8577_v5 = vmul.f32 0.1, %v8461_v2  ;;  %v8464_v7 = vadd.f32 %v10203_v10, %v14260_v24 }
 0x84a   : > { %v8609_v43 = vsel %vm8545_vm14, %v8461_v2, %v8577_v5  ;;  %vm8546_vm15 = vcmp.gt.f32.partialorder %v8464_v7, 0.0  ;;  %v8578_v60 = vmul.f32 0.1, %v8464_v7  ;;  %v10204_v0 = vpop.f32.mrb[144].mxu1 }
 0x84b   : > { %8641 = vst [vmem:[%s14268_s30 + $0x70] sm:$0xff] %v8609_v43  ;;  %v10205_v48 = vpop.f32.mrb[145].mxu1 }
 0x84c   : > { %v8610_v50 = vsel %vm8546_vm15, %v8464_v7, %v8578_v60  ;;  %v10206_v36 = vadd.f32 %v10205_v48, %v10204_v0  ;;  %v10207_v45 = vpop.f32.mrb[146].mxu1 }
 0x84d   : > { %8642 = vst [vmem:[%s14268_s30 + $0x78] sm:$0xff] %v8610_v50  ;;  %v10208_v47 = vpop.f32.mrb[147].mxu1 }
 0x84e   : > { %v8469_v15 = vadd.f32 %v10206_v36, %v14260_v24  ;;  %v10209_v59 = vadd.f32 %v10208_v47, %v10207_v45 }
 0x850   : > { %vm8547_vm0 = vcmp.gt.f32.partialorder %v8469_v15, 0.0  ;;  %v8579_v58 = vmul.f32 0.1, %v8469_v15  ;;  %v8472_v54 = vadd.f32 %v10209_v59, %v14260_v24 }
 0x852   : > { %v8611_v11 = vsel %vm8547_vm0, %v8469_v15, %v8579_v58  ;;  %vm8548_vm1 = vcmp.gt.f32.partialorder %v8472_v54, 0.0  ;;  %v8580_v57 = vmul.f32 0.1, %v8472_v54  ;;  %v10210_v17 = vpop.f32.mrb[148].mxu1 }
 0x853   : > { %8643 = vst [vmem:[%s14268_s30 + $0x80] sm:$0xff] %v8611_v11  ;;  %v10211_v19 = vpop.f32.mrb[149].mxu1 }
 0x854   : > { %v8612_v34 = vsel %vm8548_vm1, %v8472_v54, %v8580_v57  ;;  %v10212_v9 = vadd.f32 %v10211_v19, %v10210_v17  ;;  %v10213_v37 = vpop.f32.mrb[150].mxu1 }
 0x855   : > { %8644 = vst [vmem:[%s14268_s30 + $0x88] sm:$0xff] %v8612_v34  ;;  %v10214_v49 = vpop.f32.mrb[151].mxu1 }
 0x856   : > { %v8477_v6 = vadd.f32 %v10212_v9, %v14260_v24  ;;  %v10215_v41 = vadd.f32 %v10214_v49, %v10213_v37 }
 0x858   : > { %vm8549_vm2 = vcmp.gt.f32.partialorder %v8477_v6, 0.0  ;;  %v8581_v33 = vmul.f32 0.1, %v8477_v6  ;;  %v8480_v55 = vadd.f32 %v10215_v41, %v14260_v24 }
 0x85a   : > { %v8613_v22 = vsel %vm8549_vm2, %v8477_v6, %v8581_v33  ;;  %vm8550_vm3 = vcmp.gt.f32.partialorder %v8480_v55, 0.0  ;;  %v8582_v38 = vmul.f32 0.1, %v8480_v55  ;;  %v10216_v29 = vpop.f32.mrb[152].mxu1 }
 0x85b   : > { %8645 = vst [vmem:[%s14268_s30 + $0x90] sm:$0xff] %v8613_v22  ;;  %v10217_v23 = vpop.f32.mrb[153].mxu1 }
 0x85c   : > { %v8614_v61 = vsel %vm8550_vm3, %v8480_v55, %v8582_v38  ;;  %v10218_v35 = vadd.f32 %v10217_v23, %v10216_v29  ;;  %v10219_v40 = vpop.f32.mrb[154].mxu1 }
 0x85d   : > { %8646 = vst [vmem:[%s14268_s30 + $0x98] sm:$0xff] %v8614_v61  ;;  %v10220_v4 = vpop.f32.mrb[155].mxu1 }
 0x85e   : > { %v8485_v8 = vadd.f32 %v10218_v35, %v14260_v24  ;;  %v10221_v12 = vadd.f32 %v10220_v4, %v10219_v40 }
 0x860   : > { %vm8551_vm4 = vcmp.gt.f32.partialorder %v8485_v8, 0.0  ;;  %v8583_v31 = vmul.f32 0.1, %v8485_v8  ;;  %v8488_v20 = vadd.f32 %v10221_v12, %v14260_v24 }
 0x862   : > { %v8615_v27 = vsel %vm8551_vm4, %v8485_v8, %v8583_v31  ;;  %vm8552_vm5 = vcmp.gt.f32.partialorder %v8488_v20, 0.0  ;;  %v8584_v18 = vmul.f32 0.1, %v8488_v20  ;;  %v10222_v46 = vpop.f32.mrb[156].mxu1 }
 0x863   : > { %8647 = vst [vmem:[%s14268_s30 + $0xa0] sm:$0xff] %v8615_v27  ;;  %v10223_v51 = vpop.f32.mrb[157].mxu1 }
 0x864   : > { %v8616_v30 = vsel %vm8552_vm5, %v8488_v20, %v8584_v18  ;;  %v10224_v28 = vadd.f32 %v10223_v51, %v10222_v46  ;;  %v10225_v25 = vpop.f32.mrb[158].mxu1 }
 0x865   : > { %8648 = vst [vmem:[%s14268_s30 + $0xa8] sm:$0xff] %v8616_v30  ;;  %v10226_v1 = vpop.f32.mrb[159].mxu1 }
 0x866   : > { %v8493_v42 = vadd.f32 %v10224_v28, %v14260_v24  ;;  %v10227_v14 = vadd.f32 %v10226_v1, %v10225_v25 }
 0x868   : > { %vm8553_vm6 = vcmp.gt.f32.partialorder %v8493_v42, 0.0  ;;  %v8585_v44 = vmul.f32 0.1, %v8493_v42  ;;  %v8496_v52 = vadd.f32 %v10227_v14, %v14260_v24 }
 0x86a   : > { %v8617_v13 = vsel %vm8553_vm6, %v8493_v42, %v8585_v44  ;;  %vm8554_vm7 = vcmp.gt.f32.partialorder %v8496_v52, 0.0  ;;  %v8586_v56 = vmul.f32 0.1, %v8496_v52  ;;  %v10228_v16 = vpop.f32.mrb[160].mxu1 }
 0x86b   : > { %8649 = vst [vmem:[%s14268_s30 + $0xb0] sm:$0xff] %v8617_v13  ;;  %v10229_v53 = vpop.f32.mrb[161].mxu1 }
 0x86c   : > { %v8618_v63 = vsel %vm8554_vm7, %v8496_v52, %v8586_v56  ;;  %v10230_v26 = vadd.f32 %v10229_v53, %v10228_v16  ;;  %v10231_v3 = vpop.f32.mrb[162].mxu1 }
 0x86d   : > { %8650 = vst [vmem:[%s14268_s30 + $0xb8] sm:$0xff] %v8618_v63  ;;  %v10232_v39 = vpop.f32.mrb[163].mxu1 }
 0x86e   : > { %v8501_v62 = vadd.f32 %v10230_v26, %v14260_v24  ;;  %v10233_v21 = vadd.f32 %v10232_v39, %v10231_v3 }
 0x870   : > { %vm8555_vm8 = vcmp.gt.f32.partialorder %v8501_v62, 0.0  ;;  %v8587_v32 = vmul.f32 0.1, %v8501_v62  ;;  %v8504_v2 = vadd.f32 %v10233_v21, %v14260_v24 }
 0x872   : > { %v8619_v10 = vsel %vm8555_vm8, %v8501_v62, %v8587_v32  ;;  %vm8556_vm9 = vcmp.gt.f32.partialorder %v8504_v2, 0.0  ;;  %v8588_v5 = vmul.f32 0.1, %v8504_v2  ;;  %v10234_v7 = vpop.f32.mrb[164].mxu1 }
 0x873   : > { %8651 = vst [vmem:[%s14268_s30 + $0xc0] sm:$0xff] %v8619_v10  ;;  %v10235_v43 = vpop.f32.mrb[165].mxu1 }
 0x874   : > { %v8620_v60 = vsel %vm8556_vm9, %v8504_v2, %v8588_v5  ;;  %v10236_v0 = vadd.f32 %v10235_v43, %v10234_v7  ;;  %v10237_v48 = vpop.f32.mrb[166].mxu1 }
 0x875   : > { %8652 = vst [vmem:[%s14268_s30 + $0xc8] sm:$0xff] %v8620_v60  ;;  %v10238_v50 = vpop.f32.mrb[167].mxu1 }
 0x876   : > { %v8509_v36 = vadd.f32 %v10236_v0, %v14260_v24  ;;  %v10239_v45 = vadd.f32 %v10238_v50, %v10237_v48 }
 0x878   : > { %vm8557_vm10 = vcmp.gt.f32.partialorder %v8509_v36, 0.0  ;;  %v8589_v47 = vmul.f32 0.1, %v8509_v36  ;;  %v8512_v15 = vadd.f32 %v10239_v45, %v14260_v24 }
 0x87a   : > { %v8621_v59 = vsel %vm8557_vm10, %v8509_v36, %v8589_v47  ;;  %vm8558_vm11 = vcmp.gt.f32.partialorder %v8512_v15, 0.0  ;;  %v8590_v58 = vmul.f32 0.1, %v8512_v15  ;;  %v10240_v54 = vpop.f32.mrb[168].mxu1 }
 0x87b   : > { %8653 = vst [vmem:[%s14268_s30 + $0xd0] sm:$0xff] %v8621_v59  ;;  %v10241_v11 = vpop.f32.mrb[169].mxu1 }
 0x87c   : > { %v8622_v57 = vsel %vm8558_vm11, %v8512_v15, %v8590_v58  ;;  %v10242_v17 = vadd.f32 %v10241_v11, %v10240_v54  ;;  %v10243_v19 = vpop.f32.mrb[170].mxu1 }
 0x87d   : > { %8654 = vst [vmem:[%s14268_s30 + $0xd8] sm:$0xff] %v8622_v57  ;;  %v10244_v34 = vpop.f32.mrb[171].mxu1 }
 0x87e   : > { %v8517_v9 = vadd.f32 %v10242_v17, %v14260_v24  ;;  %v10245_v37 = vadd.f32 %v10244_v34, %v10243_v19 }
 0x880   : > { %vm8559_vm12 = vcmp.gt.f32.partialorder %v8517_v9, 0.0  ;;  %v8591_v49 = vmul.f32 0.1, %v8517_v9  ;;  %v8520_v6 = vadd.f32 %v10245_v37, %v14260_v24 }
 0x882   : > { %v8623_v41 = vsel %vm8559_vm12, %v8517_v9, %v8591_v49  ;;  %vm8560_vm13 = vcmp.gt.f32.partialorder %v8520_v6, 0.0  ;;  %v8592_v33 = vmul.f32 0.1, %v8520_v6  ;;  %v10246_v55 = vpop.f32.mrb[172].mxu1 }
 0x883   : > { %8655 = vst [vmem:[%s14268_s30 + $0xe0] sm:$0xff] %v8623_v41  ;;  %v10247_v22 = vpop.f32.mrb[173].mxu1 }
 0x884   : > { %v8624_v38 = vsel %vm8560_vm13, %v8520_v6, %v8592_v33  ;;  %v10248_v29 = vadd.f32 %v10247_v22, %v10246_v55  ;;  %v10249_v23 = vpop.f32.mrb[174].mxu1 }
 0x885   : > { %8656 = vst [vmem:[%s14268_s30 + $0xe8] sm:$0xff] %v8624_v38  ;;  %v10250_v61 = vpop.f32.mrb[175].mxu1 }
 0x886   : > { %v8525_v35 = vadd.f32 %v10248_v29, %v14260_v24  ;;  %v10251_v40 = vadd.f32 %v10250_v61, %v10249_v23 }
 0x888   : > { %vm8561_vm14 = vcmp.gt.f32.partialorder %v8525_v35, 0.0  ;;  %v8593_v4 = vmul.f32 0.1, %v8525_v35  ;;  %v8528_v8 = vadd.f32 %v10251_v40, %v14260_v24 }
 0x88a   : > { %v8625_v12 = vsel %vm8561_vm14, %v8525_v35, %v8593_v4  ;;  %vm8562_vm15 = vcmp.gt.f32.partialorder %v8528_v8, 0.0  ;;  %v8594_v31 = vmul.f32 0.1, %v8528_v8 }
 0x88b   : > { %8657 = vst [vmem:[%s14268_s30 + $0xf0] sm:$0xff] %v8625_v12 }
 0x88c   : > { %v8626_v20 = vsel %vm8562_vm15, %v8528_v8, %v8594_v31 }
 0x88d   : > { %8658 = vst [vmem:[%s14268_s30 + $0xf8] sm:$0xff] %v8626_v20 }
 0x88e PF: > { %s23_s25 = sadd.s32 1, %s10664_s25  }
 0x88f   : > { %p20_p4 = scmp.ge.s32.totalorder %s23_s25, 4  }
 0x891   :  { %22 = sbr.rel (!%p20_p4) target bundleno = 1 (0x1), region = 107 }

</bundles_post_ra>
